<compile_context>
chip_gen: v7x
topology: tpu7x:2x2x1
jax: 0.10.0
libtpu: 0.0.40
codegen_flags: <defaults>
</compile_context>

<pallas_src>
import functools

import jax
import jax.numpy as jnp
from jax.experimental import pallas as pl
from jax.experimental.pallas import tpu as pltpu

BN_EPS = 1e-5


# ----------------------------- in-kernel helpers --------------------------------------

def _im2col_dot(window, w_ref, *, M, C):
    """3x3 conv as ONE MXU contraction with K = 9*C.

    window(ki, kj) returns the (B, Ho, Wo, C) input window for tap (ki, kj), read
    directly from a VMEM ref via static slices.  The 9 windows are concatenated along
    the channel (lane) axis into an (M, 9*C) im2col slab and cast to bf16 once before
    a single jnp.dot.  The concat is done on f32 values (widest Mosaic support for
    unaligned lane concatenation); windows already f32 cast for free.
    """
    cols = [window(ki, kj).astype(jnp.float32).reshape(M, C)
            for ki in range(3) for kj in range(3)]
    slab = jnp.concatenate(cols, axis=-1).astype(jnp.bfloat16)      # (M, 9*C)
    return jnp.dot(slab, w_ref[...], preferred_element_type=jnp.float32)


def _conv1_kernel(x_ref, scale1_ref, shift1_ref, w1_ref, scale2_ref, shift2_ref,
                  o_ref, a_scr, *, B, H, W, Cin, Cout):
    """relu(bn2(conv1(relu(bn1(x))))) for one batch tile; output stored in bf16."""
    # Zero the padded scratch every step so the conv halo is exactly 0 (correct zero
    # padding of relu(bn1(x))); re-zeroing each step keeps it valid under megacore
    # splitting of the parallel grid axis.
    a_scr[...] = jnp.zeros_like(a_scr)
    a = jnp.maximum(x_ref[...] * scale1_ref[...] + shift1_ref[...], 0.0)   # bn1 + relu
    a_scr[:, 1:1 + H, 1:1 + W, :] = a
    acc = _im2col_dot(lambda ki, kj: a_scr[:, ki:ki + H, kj:kj + W, :],
                      w1_ref, M=B * H * W, C=Cin)
    out = jnp.maximum(acc * scale2_ref[...] + shift2_ref[...], 0.0)        # bn2 + relu
    o_ref[...] = out.reshape(B, H, W, Cout).astype(o_ref.dtype)


def _conv2_eq_kernel(h_ref, x_ref, w2_ref, o_ref, h_scr, *, B, H, W, C):
    """conv2 (stride 1) + residual add of the original block input x (equalInOut)."""
    h_scr[...] = jnp.zeros_like(h_scr)
    h_scr[:, 1:1 + H, 1:1 + W, :] = h_ref[...].astype(jnp.float32)
    acc = _im2col_dot(lambda ki, kj: h_scr[:, ki:ki + H, kj:kj + W, :],
                      w2_ref, M=B * H * W, C=C)
    o_ref[...] = (acc.reshape(B, H, W, C) + x_ref[...]).astype(o_ref.dtype)


def _conv2_proj_kernel(ph_ref, xs_ref, w2_ref, scale1_ref, shift1_ref, ws_ref,
                       o_ref, *, B, s, Ho, Wo, Cmid, Cin, Cout):
    """conv2 (stride s via stride-phase windows) + fused 1x1 shortcut of relu(bn1(x))."""
    def window(ki, kj):
        p = (ki % s) * s + (kj % s)
        di, dj = ki // s, kj // s
        return ph_ref[p, :, di:di + Ho, dj:dj + Wo, :]
    acc = _im2col_dot(window, w2_ref, M=B * Ho * Wo, C=Cmid)
    # shortcut: relu(bn1(x)) recomputed only at the strided positions (1x1 conv, pad 0)
    a_s = jnp.maximum(xs_ref[...] * scale1_ref[...] + shift1_ref[...], 0.0)
    res = jnp.dot(a_s.reshape(B * Ho * Wo, Cin).astype(jnp.bfloat16), ws_ref[...],
                  preferred_element_type=jnp.float32)
    o_ref[...] = (acc + res).reshape(B, Ho, Wo, Cout).astype(o_ref.dtype)


# ----------------------------- wrappers ------------------------------------------------

def _bn_affine(bn, eps=BN_EPS):
    gamma, beta, mean, var = bn
    scale = gamma / jnp.sqrt(var + eps)
    shift = beta - mean * scale
    return scale.astype(jnp.float32), shift.astype(jnp.float32)


def _w_mat(w):
    """PyTorch (Cout, Cin, kh, kw) -> tap-major (kh*kw*Cin, Cout) bf16 MXU operand."""
    cout, cin, kh, kw = w.shape
    return jnp.transpose(w, (2, 3, 1, 0)).reshape(kh * kw * cin, cout).astype(jnp.bfloat16)


def _phase_split(h, s, pad):
    """Pad (N,H,W,C) by `pad`, split into s*s stride phases (phase-major):
    out[pi*s+pj, n, i, j, c] = hpad[n, i*s+pi, j*s+pj, c].  Kept in bf16 (half traffic)."""
    hp = jnp.pad(h, ((0, 0), (pad, pad), (pad, pad), (0, 0)))
    N, Hp, Wp, C = hp.shape
    Hq, Wq = -(-Hp // s) * s, -(-Wp // s) * s
    if (Hq, Wq) != (Hp, Wp):
        hp = jnp.pad(hp, ((0, 0), (0, Hq - Hp), (0, Wq - Wp), (0, 0)))
    ph = hp.reshape(N, Hq // s, s, Wq // s, s, C)
    ph = jnp.transpose(ph, (2, 4, 0, 1, 3, 5))              # (s, s, N, Hq/s, Wq/s, C)
    return ph.reshape(s * s, N, Hq // s, Wq // s, C)


def _pick_btile(n, hw, target_m=1024):
    """Largest divisor of n with b*hw <= target_m, keeping >= 2 grid steps when n >= 2
    (amortises per-step overhead, fills the pipeline, keeps both v7x TCs busy)."""
    best = 1
    for b in range(1, n + 1):
        if n % b or b * hw > target_m:
            continue
        if n // b >= 2 or n == 1:
            best = b
    return best


def _cparams(step_bytes):
    """Parallel batch-tile axis + explicit per-step VMEM budget (clamped 16..64 MiB)."""
    limit = int(min(max(4 * step_bytes, 16 << 20), 64 << 20))
    return pltpu.CompilerParams(dimension_semantics=("parallel",),
                                vmem_limit_bytes=limit)


def basic_block_forward(p, x_nchw):
    """Eval-mode forward of group_relaxed_SCAD_BasicBlock.  Input and output are NCHW."""
    x = jnp.transpose(x_nchw, (0, 2, 3, 1)).astype(jnp.float32)          # -> NHWC
    N, H, W, Cin = x.shape
    stride = int(p['stride'])
    Cout = p['conv1_w'].shape[0]
    equal_in_out = p['shortcut_w'] is None
    k, pad = 3, 1

    scale1, shift1 = _bn_affine(p['bn1'])
    scale2, shift2 = _bn_affine(p['bn2'])
    w1 = _w_mat(p['conv1_w'])                                            # (9*Cin, Cout)
    w2 = _w_mat(p['conv2_w'])                                            # (9*Cout, Cout)

    B = _pick_btile(N, H * W)
    G = N // B

    # ---- kernel 1: conv1 (3x3 / stride 1), bn1+relu prologue, bn2+relu epilogue --------
    k1_bytes = (B * H * W * Cin * 4 + B * H * W * Cout * 2
                + B * (H + 2 * pad) * (W + 2 * pad) * Cin * 4
                + B * H * W * 9 * Cin * 6 + 9 * Cin * Cout * 2)
    conv1 = functools.partial(_conv1_kernel, B=B, H=H, W=W, Cin=Cin, Cout=Cout)
    h = pl.pallas_call(
        conv1,
        out_shape=jax.ShapeDtypeStruct((N, H, W, Cout), jnp.bfloat16),
        grid=(G,),
        in_specs=[
            pl.BlockSpec((B, H, W, Cin), lambda n: (n, 0, 0, 0)),
            pl.BlockSpec((1, 1, Cin), lambda n: (0, 0, 0)),
            pl.BlockSpec((1, 1, Cin), lambda n: (0, 0, 0)),
            pl.BlockSpec((9 * Cin, Cout), lambda n: (0, 0)),
            pl.BlockSpec((1, Cout), lambda n: (0, 0)),
            pl.BlockSpec((1, Cout), lambda n: (0, 0)),
        ],
        out_specs=pl.BlockSpec((B, H, W, Cout), lambda n: (n, 0, 0, 0)),
        scratch_shapes=[pltpu.VMEM((B, H + 2 * pad, W + 2 * pad, Cin), jnp.float32)],
        compiler_params=_cparams(k1_bytes),
    )(x, scale1.reshape(1, 1, Cin), shift1.reshape(1, 1, Cin), w1,
      scale2.reshape(1, Cout), shift2.reshape(1, Cout))
    # TODO(synk): droprate_init dropout omitted (identity in eval mode / droprate 0).

    # ---- kernel 2: conv2 (3x3 / stride) + shortcut projection + residual add -----------
    Ho = (H + 2 * pad - k) // stride + 1
    Wo = (W + 2 * pad - k) // stride + 1

    if equal_in_out:
        assert stride == 1 and Cin == Cout, "equalInOut requires stride 1 and Cin == Cout"
        k2_bytes = (B * H * W * Cout * 2 + B * H * W * Cin * 4 + B * H * W * Cout * 4
                    + B * (H + 2 * pad) * (W + 2 * pad) * Cout * 4
                    + B * H * W * 9 * Cout * 6 + 9 * Cout * Cout * 2)
        conv2 = functools.partial(_conv2_eq_kernel, B=B, H=H, W=W, C=Cout)
        out = pl.pallas_call(
            conv2,
            out_shape=jax.ShapeDtypeStruct((N, H, W, Cout), jnp.float32),
            grid=(G,),
            in_specs=[
                pl.BlockSpec((B, H, W, Cout), lambda n: (n, 0, 0, 0)),   # h (bf16)
                pl.BlockSpec((B, H, W, Cin), lambda n: (n, 0, 0, 0)),    # x residual (f32)
                pl.BlockSpec((9 * Cout, Cout), lambda n: (0, 0)),
            ],
            out_specs=pl.BlockSpec((B, H, W, Cout), lambda n: (n, 0, 0, 0)),
            scratch_shapes=[pltpu.VMEM((B, H + 2 * pad, W + 2 * pad, Cout), jnp.float32)],
            compiler_params=_cparams(k2_bytes),
        )(h, x, w2)
    else:
        # Stride-phase re-layout of the padded bf16 h (single cheap half-width XLA pass;
        # for stride 1 it degenerates to a pad).
        # TODO(synk): for stride > 1 this could be folded into kernel 2 with strided
        # in-kernel slicing if the extra pass over h ever shows up in profiles.
        ph = _phase_split(h, stride, pad)                   # (s*s, N, Ph, Pw, Cout) bf16
        SS, _, Ph, Pw, _ = ph.shape
        x_s = x[:, ::stride, ::stride, :]                   # (N, Ho, Wo, Cin)
        ws = jnp.transpose(p['shortcut_w'][:, :, 0, 0]).astype(jnp.bfloat16)  # (Cin, Cout)
        k2_bytes = (SS * B * Ph * Pw * Cout * 2 + B * Ho * Wo * Cin * 4
                    + B * Ho * Wo * Cout * 4
                    + B * Ho * Wo * 9 * Cout * 6 + 9 * Cout * Cout * 2 + Cin * Cout * 2)
        conv2 = functools.partial(_conv2_proj_kernel, B=B, s=stride, Ho=Ho, Wo=Wo,
                                  Cmid=Cout, Cin=Cin, Cout=Cout)
        out = pl.pallas_call(
            conv2,
            out_shape=jax.ShapeDtypeStruct((N, Ho, Wo, Cout), jnp.float32),
            grid=(G,),
            in_specs=[
                pl.BlockSpec((SS, B, Ph, Pw, Cout), lambda n: (0, n, 0, 0, 0)),
                pl.BlockSpec((B, Ho, Wo, Cin), lambda n: (n, 0, 0, 0)),
                pl.BlockSpec((9 * Cout, Cout), lambda n: (0, 0)),
                pl.BlockSpec((1, 1, Cin), lambda n: (0, 0, 0)),
                pl.BlockSpec((1, 1, Cin), lambda n: (0, 0, 0)),
                pl.BlockSpec((Cin, Cout), lambda n: (0, 0)),
            ],
            out_specs=pl.BlockSpec((B, Ho, Wo, Cout), lambda n: (n, 0, 0, 0)),
            compiler_params=_cparams(k2_bytes),
        )(ph, x_s, w2, scale1.reshape(1, 1, Cin), shift1.reshape(1, 1, Cin), ws)

    return jnp.transpose(out, (0, 3, 1, 2))                               # -> NCHW


# ----------------------------- pure-JAX reference & params -----------------------------

def _ref_conv(x, w, stride, pad):
    return jax.lax.conv_general_dilated(
        x, jnp.transpose(w, (2, 3, 1, 0)), (stride, stride),
        [(pad, pad), (pad, pad)],
        dimension_numbers=('NHWC', 'HWIO', 'NHWC'),
        precision=jax.lax.Precision.HIGHEST)


def basic_block_reference(p, x_nchw):
    x = jnp.transpose(x_nchw, (0, 2, 3, 1)).astype(jnp.float32)
    s1, b1 = _bn_affine(p['bn1'])
    s2, b2 = _bn_affine(p['bn2'])
    a = jnp.maximum(x * s1 + b1, 0.0)
    h = _ref_conv(a, p['conv1_w'], 1, 1)
    h = jnp.maximum(h * s2 + b2, 0.0)
    out = _ref_conv(h, p['conv2_w'], int(p['stride']), 1)
    res = x if p['shortcut_w'] is None else _ref_conv(a, p['shortcut_w'], int(p['stride']), 0)
    return jnp.transpose(out + res, (0, 3, 1, 2))


def init_block_params(key, in_planes, out_planes, stride):
    kc1, kc2, kcs, kb1, kb2 = jax.random.split(key, 5)

    def conv_w(kk, cout, cin, ksz):
        std = (2.0 / (cin * ksz * ksz)) ** 0.5
        return std * jax.random.normal(kk, (cout, cin, ksz, ksz), jnp.float32)

    def bn_params(kk, c):
        ka, kb, km = jax.random.split(kk, 3)
        gamma = 1.0 + 0.1 * jax.random.normal(ka, (c,), jnp.float32)
        beta = 0.1 * jax.random.normal(kb, (c,), jnp.float32)
        mean = 0.1 * jax.random.normal(km, (c,), jnp.float32)
        var = jnp.ones((c,), jnp.float32)
        return gamma, beta, mean, var

    return {
        'stride': stride,
        'bn1': bn_params(kb1, in_planes),
        'conv1_w': conv_w(kc1, out_planes, in_planes, 3),    # group_relaxed_SCAD_Conv2d.weight
        'bn2': bn_params(kb2, out_planes),
        'conv2_w': conv_w(kc2, out_planes, out_planes, 3),   # MAPConv2d.weight
        'shortcut_w': None if in_planes == out_planes
                      else conv_w(kcs, out_planes, in_planes, 1),
    }


if __name__ == "__main__":
    key = jax.random.PRNGKey(0)
    kx, kb_eq, kb_dn = jax.random.split(key, 3)

    x = jax.random.normal(kx, (2, 16, 16, 16), jnp.float32)   # NCHW, like PyTorch

    block_eq = init_block_params(kb_eq, 16, 16, 1)   # equalInOut branch (identity residual)
    block_dn = init_block_params(kb_dn, 16, 32, 2)   # down-sampling branch (1x1 shortcut)

    @jax.jit
    def fwd(inp):
        out = basic_block_forward(block_eq, inp)
        out = basic_block_forward(block_dn, out)
        return out

    out = fwd(x)
    jax.block_until_ready(out)
    assert out.shape == (2, 32, 8, 8) and out.dtype == jnp.float32

    # correctness check against a pure-JAX reference (bf16 MXU operands => loose tol)
    ref = basic_block_reference(block_dn, basic_block_reference(block_eq, x))
    max_err = float(jnp.max(jnp.abs(out - ref)))
    max_ref = float(jnp.max(jnp.abs(ref)))
    assert max_err <= 0.05 * (1.0 + max_ref), f"mismatch: max_err={max_err}, ref_scale={max_ref}"

    print("KERNEL_OK")
</pallas_src>

<mosaic_0001>
module attributes {stable_mosaic.version = 11 : i64} {
  func.func @_conv1_kernel(%arg0: i32, %arg1: memref<1x16x16x16xf32, #tpu.memory_space<vmem>>, %arg2: memref<1x1x16xf32, #tpu.memory_space<vmem>>, %arg3: memref<1x1x16xf32, #tpu.memory_space<vmem>>, %arg4: memref<144x16xbf16, #tpu.memory_space<vmem>>, %arg5: memref<1x16xf32, #tpu.memory_space<vmem>>, %arg6: memref<1x16xf32, #tpu.memory_space<vmem>>, %arg7: memref<1x16x16x16xbf16, #tpu.memory_space<vmem>>, %arg8: memref<1x18x18x16xf32, #tpu.memory_space<vmem>>) attributes {dimension_semantics = [#tpu.dimension_semantics<parallel>], iteration_bounds = array<i64: 2>, scalar_prefetch = 0 : i64, scratch_operands = 1 : i64, tpu.core_type = #tpu.core_type<tc>, window_params = [{transform_indices = @transform_0, window_bounds = array<i64: 1, 16, 16, 16>}, {pipeline_mode = #tpu.pipeline_mode<synchronous>, transform_indices = @transform_1, window_bounds = array<i64: 1, 1, 16>}, {pipeline_mode = #tpu.pipeline_mode<synchronous>, transform_indices = @transform_2, window_bounds = array<i64: 1, 1, 16>}, {pipeline_mode = #tpu.pipeline_mode<synchronous>, transform_indices = @transform_3, window_bounds = array<i64: 144, 16>}, {pipeline_mode = #tpu.pipeline_mode<synchronous>, transform_indices = @transform_4, window_bounds = array<i64: 1, 16>}, {pipeline_mode = #tpu.pipeline_mode<synchronous>, transform_indices = @transform_5, window_bounds = array<i64: 1, 16>}, {transform_indices = @transform_6, window_bounds = array<i64: 1, 16, 16, 16>}]} {
    %cst = arith.constant 0.000000e+00 : f32
    %0 = vector.broadcast %cst : f32 to vector<1x18x18x16xf32>
    %c0 = arith.constant 0 : index
    %c0_0 = arith.constant 0 : index
    %c0_1 = arith.constant 0 : index
    %c0_2 = arith.constant 0 : index
    %1 = vector.load %arg8[%c0, %c0_0, %c0_1, %c0_2] : memref<1x18x18x16xf32, #tpu.memory_space<vmem>>, vector<1x18x18x16xf32>
    tpu.vector_store %arg8[%c0, %c0_0, %c0_1, %c0_2], %0 {strides = array<i32>} : memref<1x18x18x16xf32, #tpu.memory_space<vmem>>, vector<1x18x18x16xf32>,
    %c0_3 = arith.constant 0 : index
    %c0_4 = arith.constant 0 : index
    %c0_5 = arith.constant 0 : index
    %c0_6 = arith.constant 0 : index
    %2 = vector.load %arg1[%c0_3, %c0_4, %c0_5, %c0_6] : memref<1x16x16x16xf32, #tpu.memory_space<vmem>>, vector<1x16x16x16xf32>
    %c0_7 = arith.constant 0 : index
    %c0_8 = arith.constant 0 : index
    %c0_9 = arith.constant 0 : index
    %3 = vector.load %arg2[%c0_7, %c0_8, %c0_9] : memref<1x1x16xf32, #tpu.memory_space<vmem>>, vector<1x1x16xf32>
    %4 = vector.shape_cast %3 : vector<1x1x16xf32> to vector<1x1x1x16xf32>
    %5 = vector.broadcast %4 : vector<1x1x1x16xf32> to vector<1x16x16x16xf32>
    %6 = arith.mulf %2, %5 : vector<1x16x16x16xf32>
    %c0_10 = arith.constant 0 : index
    %c0_11 = arith.constant 0 : index
    %c0_12 = arith.constant 0 : index
    %7 = vector.load %arg3[%c0_10, %c0_11, %c0_12] : memref<1x1x16xf32, #tpu.memory_space<vmem>>, vector<1x1x16xf32>
    %8 = vector.shape_cast %7 : vector<1x1x16xf32> to vector<1x1x1x16xf32>
    %9 = vector.broadcast %8 : vector<1x1x1x16xf32> to vector<1x16x16x16xf32>
    %10 = arith.addf %6, %9 : vector<1x16x16x16xf32>
    %cst_13 = arith.constant 0.000000e+00 : f32
    %11 = vector.broadcast %cst_13 : f32 to vector<1x16x16x16xf32>
    %12 = arith.maximumf %10, %11 : vector<1x16x16x16xf32>
    %c0_14 = arith.constant 0 : index
    %c1 = arith.constant 1 : index
    %c1_15 = arith.constant 1 : index
    %c0_16 = arith.constant 0 : index
    %13 = vector.load %arg8[%c0_14, %c1, %c1_15, %c0_16] : memref<1x18x18x16xf32, #tpu.memory_space<vmem>>, vector<1x16x16x16xf32>
    tpu.vector_store %arg8[%c0_14, %c1, %c1_15, %c0_16], %12 {strides = array<i32>} : memref<1x18x18x16xf32, #tpu.memory_space<vmem>>, vector<1x16x16x16xf32>,
    %c0_17 = arith.constant 0 : index
    %c0_18 = arith.constant 0 : index
    %c0_19 = arith.constant 0 : index
    %c0_20 = arith.constant 0 : index
    %14 = vector.load %arg8[%c0_17, %c0_18, %c0_19, %c0_20] : memref<1x18x18x16xf32, #tpu.memory_space<vmem>>, vector<1x16x16x16xf32>
    %15 = vector.shape_cast %14 : vector<1x16x16x16xf32> to vector<256x16xf32>
    %c0_21 = arith.constant 0 : index
    %c0_22 = arith.constant 0 : index
    %c1_23 = arith.constant 1 : index
    %c0_24 = arith.constant 0 : index
    %16 = vector.load %arg8[%c0_21, %c0_22, %c1_23, %c0_24] : memref<1x18x18x16xf32, #tpu.memory_space<vmem>>, vector<1x16x16x16xf32>
    %17 = vector.shape_cast %16 : vector<1x16x16x16xf32> to vector<256x16xf32>
    %c0_25 = arith.constant 0 : index
    %c0_26 = arith.constant 0 : index
    %c2 = arith.constant 2 : index
    %c0_27 = arith.constant 0 : index
    %18 = vector.load %arg8[%c0_25, %c0_26, %c2, %c0_27] : memref<1x18x18x16xf32, #tpu.memory_space<vmem>>, vector<1x16x16x16xf32>
    %19 = vector.shape_cast %18 : vector<1x16x16x16xf32> to vector<256x16xf32>
    %c0_28 = arith.constant 0 : index
    %c1_29 = arith.constant 1 : index
    %c0_30 = arith.constant 0 : index
    %c0_31 = arith.constant 0 : index
    %20 = vector.load %arg8[%c0_28, %c1_29, %c0_30, %c0_31] : memref<1x18x18x16xf32, #tpu.memory_space<vmem>>, vector<1x16x16x16xf32>
    %21 = vector.shape_cast %20 : vector<1x16x16x16xf32> to vector<256x16xf32>
    %c0_32 = arith.constant 0 : index
    %c1_33 = arith.constant 1 : index
    %c1_34 = arith.constant 1 : index
    %c0_35 = arith.constant 0 : index
    %22 = vector.load %arg8[%c0_32, %c1_33, %c1_34, %c0_35] : memref<1x18x18x16xf32, #tpu.memory_space<vmem>>, vector<1x16x16x16xf32>
    %23 = vector.shape_cast %22 : vector<1x16x16x16xf32> to vector<256x16xf32>
    %c0_36 = arith.constant 0 : index
    %c1_37 = arith.constant 1 : index
    %c2_38 = arith.constant 2 : index
    %c0_39 = arith.constant 0 : index
    %24 = vector.load %arg8[%c0_36, %c1_37, %c2_38, %c0_39] : memref<1x18x18x16xf32, #tpu.memory_space<vmem>>, vector<1x16x16x16xf32>
    %25 = vector.shape_cast %24 : vector<1x16x16x16xf32> to vector<256x16xf32>
    %c0_40 = arith.constant 0 : index
    %c2_41 = arith.constant 2 : index
    %c0_42 = arith.constant 0 : index
    %c0_43 = arith.constant 0 : index
    %26 = vector.load %arg8[%c0_40, %c2_41, %c0_42, %c0_43] : memref<1x18x18x16xf32, #tpu.memory_space<vmem>>, vector<1x16x16x16xf32>
    %27 = vector.shape_cast %26 : vector<1x16x16x16xf32> to vector<256x16xf32>
    %c0_44 = arith.constant 0 : index
    %c2_45 = arith.constant 2 : index
    %c1_46 = arith.constant 1 : index
    %c0_47 = arith.constant 0 : index
    %28 = vector.load %arg8[%c0_44, %c2_45, %c1_46, %c0_47] : memref<1x18x18x16xf32, #tpu.memory_space<vmem>>, vector<1x16x16x16xf32>
    %29 = vector.shape_cast %28 : vector<1x16x16x16xf32> to vector<256x16xf32>
    %c0_48 = arith.constant 0 : index
    %c2_49 = arith.constant 2 : index
    %c2_50 = arith.constant 2 : index
    %c0_51 = arith.constant 0 : index
    %30 = vector.load %arg8[%c0_48, %c2_49, %c2_50, %c0_51] : memref<1x18x18x16xf32, #tpu.memory_space<vmem>>, vector<1x16x16x16xf32>
    %31 = vector.shape_cast %30 : vector<1x16x16x16xf32> to vector<256x16xf32>
    %32 = tpu.concatenate %15, %17, %19, %21, %23, %25, %27, %29, %31 in 1 : vector<256x16xf32>, vector<256x16xf32>, vector<256x16xf32>, vector<256x16xf32>, vector<256x16xf32>, vector<256x16xf32>, vector<256x16xf32>, vector<256x16xf32>, vector<256x16xf32> -> vector<256x144xf32>
    %33 = arith.truncf %32 : vector<256x144xf32> to vector<256x144xbf16>
    %c0_52 = arith.constant 0 : index
    %c0_53 = arith.constant 0 : index
    %34 = vector.load %arg4[%c0_52, %c0_53] : memref<144x16xbf16, #tpu.memory_space<vmem>>, vector<144x16xbf16>
    %cst_54 = arith.constant dense<0.000000e+00> : vector<256x16xf32>
    %35 = tpu.matmul %33, %34, %cst_54 {dimension_numbers = #tpu.dot_dimension_numbers<[1], [0], [0], [1], [0, 0, 1, 1], [], []>} : vector<256x144xbf16>, vector<144x16xbf16>, vector<256x16xf32> -> vector<256x16xf32>
    %c0_55 = arith.constant 0 : index
    %c0_56 = arith.constant 0 : index
    %36 = vector.load %arg5[%c0_55, %c0_56] : memref<1x16xf32, #tpu.memory_space<vmem>>, vector<1x16xf32>
    %37 = vector.broadcast %36 : vector<1x16xf32> to vector<256x16xf32>
    %38 = arith.mulf %35, %37 : vector<256x16xf32>
    %c0_57 = arith.constant 0 : index
    %c0_58 = arith.constant 0 : index
    %39 = vector.load %arg6[%c0_57, %c0_58] : memref<1x16xf32, #tpu.memory_space<vmem>>, vector<1x16xf32>
    %40 = vector.broadcast %39 : vector<1x16xf32> to vector<256x16xf32>
    %41 = arith.addf %38, %40 : vector<256x16xf32>
    %cst_59 = arith.constant 0.000000e+00 : f32
    %42 = vector.broadcast %cst_59 : f32 to vector<256x16xf32>
    %43 = arith.maximumf %41, %42 : vector<256x16xf32>
    %44 = vector.shape_cast %43 : vector<256x16xf32> to vector<1x16x16x16xf32>
    %45 = arith.truncf %44 : vector<1x16x16x16xf32> to vector<1x16x16x16xbf16>
    %c0_60 = arith.constant 0 : index
    %c0_61 = arith.constant 0 : index
    %c0_62 = arith.constant 0 : index
    %c0_63 = arith.constant 0 : index
    %46 = vector.load %arg7[%c0_60, %c0_61, %c0_62, %c0_63] : memref<1x16x16x16xbf16, #tpu.memory_space<vmem>>, vector<1x16x16x16xbf16>
    tpu.vector_store %arg7[%c0_60, %c0_61, %c0_62, %c0_63], %45 {strides = array<i32>} : memref<1x16x16x16xbf16, #tpu.memory_space<vmem>>, vector<1x16x16x16xbf16>,
    return
  }
  func.func @transform_0(%arg0: i32) -> (i32, i32, i32, i32) {
    %c0_i32 = arith.constant 0 : i32
    %c0_i32_0 = arith.constant 0 : i32
    %c0_i32_1 = arith.constant 0 : i32
    %c0_i32_2 = arith.constant 0 : i32
    return %arg0, %c0_i32, %c0_i32_0, %c0_i32_1 : i32, i32, i32, i32
  }
  func.func @transform_1(%arg0: i32) -> (i32, i32, i32) {
    %c0_i32 = arith.constant 0 : i32
    %c0_i32_0 = arith.constant 0 : i32
    %c0_i32_1 = arith.constant 0 : i32
    %c0_i32_2 = arith.constant 0 : i32
    return %c0_i32, %c0_i32_0, %c0_i32_1 : i32, i32, i32
  }
  func.func @transform_2(%arg0: i32) -> (i32, i32, i32) {
    %c0_i32 = arith.constant 0 : i32
    %c0_i32_0 = arith.constant 0 : i32
    %c0_i32_1 = arith.constant 0 : i32
    %c0_i32_2 = arith.constant 0 : i32
    return %c0_i32, %c0_i32_0, %c0_i32_1 : i32, i32, i32
  }
  func.func @transform_3(%arg0: i32) -> (i32, i32) {
    %c0_i32 = arith.constant 0 : i32
    %c0_i32_0 = arith.constant 0 : i32
    %c0_i32_1 = arith.constant 0 : i32
    return %c0_i32, %c0_i32_0 : i32, i32
  }
  func.func @transform_4(%arg0: i32) -> (i32, i32) {
    %c0_i32 = arith.constant 0 : i32
    %c0_i32_0 = arith.constant 0 : i32
    %c0_i32_1 = arith.constant 0 : i32
    return %c0_i32, %c0_i32_0 : i32, i32
  }
  func.func @transform_5(%arg0: i32) -> (i32, i32) {
    %c0_i32 = arith.constant 0 : i32
    %c0_i32_0 = arith.constant 0 : i32
    %c0_i32_1 = arith.constant 0 : i32
    return %c0_i32, %c0_i32_0 : i32, i32
  }
  func.func @transform_6(%arg0: i32) -> (i32, i32, i32, i32) {
    %c0_i32 = arith.constant 0 : i32
    %c0_i32_0 = arith.constant 0 : i32
    %c0_i32_1 = arith.constant 0 : i32
    %c0_i32_2 = arith.constant 0 : i32
    return %arg0, %c0_i32, %c0_i32_0, %c0_i32_1 : i32, i32, i32, i32
  }
}

module attributes {stable_mosaic.version = 11 : i64} {
  func.func @_conv2_eq_kernel(%arg0: i32, %arg1: memref<1x16x16x16xbf16, #tpu.memory_space<vmem>>, %arg2: memref<1x16x16x16xf32, #tpu.memory_space<vmem>>, %arg3: memref<144x16xbf16, #tpu.memory_space<vmem>>, %arg4: memref<1x16x16x16xf32, #tpu.memory_space<vmem>>, %arg5: memref<1x18x18x16xf32, #tpu.memory_space<vmem>>) attributes {dimension_semantics = [#tpu.dimension_semantics<parallel>], iteration_bounds = array<i64: 2>, scalar_prefetch = 0 : i64, scratch_operands = 1 : i64, tpu.core_type = #tpu.core_type<tc>, window_params = [{transform_indices = @transform_0, window_bounds = array<i64: 1, 16, 16, 16>}, {transform_indices = @transform_1, window_bounds = array<i64: 1, 16, 16, 16>}, {pipeline_mode = #tpu.pipeline_mode<synchronous>, transform_indices = @transform_2, window_bounds = array<i64: 144, 16>}, {transform_indices = @transform_3, window_bounds = array<i64: 1, 16, 16, 16>}]} {
    %cst = arith.constant 0.000000e+00 : f32
    %0 = vector.broadcast %cst : f32 to vector<1x18x18x16xf32>
    %c0 = arith.constant 0 : index
    %c0_0 = arith.constant 0 : index
    %c0_1 = arith.constant 0 : index
    %c0_2 = arith.constant 0 : index
    %1 = vector.load %arg5[%c0, %c0_0, %c0_1, %c0_2] : memref<1x18x18x16xf32, #tpu.memory_space<vmem>>, vector<1x18x18x16xf32>
    tpu.vector_store %arg5[%c0, %c0_0, %c0_1, %c0_2], %0 {strides = array<i32>} : memref<1x18x18x16xf32, #tpu.memory_space<vmem>>, vector<1x18x18x16xf32>,
    %c0_3 = arith.constant 0 : index
    %c0_4 = arith.constant 0 : index
    %c0_5 = arith.constant 0 : index
    %c0_6 = arith.constant 0 : index
    %2 = vector.load %arg1[%c0_3, %c0_4, %c0_5, %c0_6] : memref<1x16x16x16xbf16, #tpu.memory_space<vmem>>, vector<1x16x16x16xbf16>
    %3 = arith.extf %2 : vector<1x16x16x16xbf16> to vector<1x16x16x16xf32>
    %c0_7 = arith.constant 0 : index
    %c1 = arith.constant 1 : index
    %c1_8 = arith.constant 1 : index
    %c0_9 = arith.constant 0 : index
    %4 = vector.load %arg5[%c0_7, %c1, %c1_8, %c0_9] : memref<1x18x18x16xf32, #tpu.memory_space<vmem>>, vector<1x16x16x16xf32>
    tpu.vector_store %arg5[%c0_7, %c1, %c1_8, %c0_9], %3 {strides = array<i32>} : memref<1x18x18x16xf32, #tpu.memory_space<vmem>>, vector<1x16x16x16xf32>,
    %c0_10 = arith.constant 0 : index
    %c0_11 = arith.constant 0 : index
    %c0_12 = arith.constant 0 : index
    %c0_13 = arith.constant 0 : index
    %5 = vector.load %arg5[%c0_10, %c0_11, %c0_12, %c0_13] : memref<1x18x18x16xf32, #tpu.memory_space<vmem>>, vector<1x16x16x16xf32>
    %6 = vector.shape_cast %5 : vector<1x16x16x16xf32> to vector<256x16xf32>
    %c0_14 = arith.constant 0 : index
    %c0_15 = arith.constant 0 : index
    %c1_16 = arith.constant 1 : index
    %c0_17 = arith.constant 0 : index
    %7 = vector.load %arg5[%c0_14, %c0_15, %c1_16, %c0_17] : memref<1x18x18x16xf32, #tpu.memory_space<vmem>>, vector<1x16x16x16xf32>
    %8 = vector.shape_cast %7 : vector<1x16x16x16xf32> to vector<256x16xf32>
    %c0_18 = arith.constant 0 : index
    %c0_19 = arith.constant 0 : index
    %c2 = arith.constant 2 : index
    %c0_20 = arith.constant 0 : index
    %9 = vector.load %arg5[%c0_18, %c0_19, %c2, %c0_20] : memref<1x18x18x16xf32, #tpu.memory_space<vmem>>, vector<1x16x16x16xf32>
    %10 = vector.shape_cast %9 : vector<1x16x16x16xf32> to vector<256x16xf32>
    %c0_21 = arith.constant 0 : index
    %c1_22 = arith.constant 1 : index
    %c0_23 = arith.constant 0 : index
    %c0_24 = arith.constant 0 : index
    %11 = vector.load %arg5[%c0_21, %c1_22, %c0_23, %c0_24] : memref<1x18x18x16xf32, #tpu.memory_space<vmem>>, vector<1x16x16x16xf32>
    %12 = vector.shape_cast %11 : vector<1x16x16x16xf32> to vector<256x16xf32>
    %c0_25 = arith.constant 0 : index
    %c1_26 = arith.constant 1 : index
    %c1_27 = arith.constant 1 : index
    %c0_28 = arith.constant 0 : index
    %13 = vector.load %arg5[%c0_25, %c1_26, %c1_27, %c0_28] : memref<1x18x18x16xf32, #tpu.memory_space<vmem>>, vector<1x16x16x16xf32>
    %14 = vector.shape_cast %13 : vector<1x16x16x16xf32> to vector<256x16xf32>
    %c0_29 = arith.constant 0 : index
    %c1_30 = arith.constant 1 : index
    %c2_31 = arith.constant 2 : index
    %c0_32 = arith.constant 0 : index
    %15 = vector.load %arg5[%c0_29, %c1_30, %c2_31, %c0_32] : memref<1x18x18x16xf32, #tpu.memory_space<vmem>>, vector<1x16x16x16xf32>
    %16 = vector.shape_cast %15 : vector<1x16x16x16xf32> to vector<256x16xf32>
    %c0_33 = arith.constant 0 : index
    %c2_34 = arith.constant 2 : index
    %c0_35 = arith.constant 0 : index
    %c0_36 = arith.constant 0 : index
    %17 = vector.load %arg5[%c0_33, %c2_34, %c0_35, %c0_36] : memref<1x18x18x16xf32, #tpu.memory_space<vmem>>, vector<1x16x16x16xf32>
    %18 = vector.shape_cast %17 : vector<1x16x16x16xf32> to vector<256x16xf32>
    %c0_37 = arith.constant 0 : index
    %c2_38 = arith.constant 2 : index
    %c1_39 = arith.constant 1 : index
    %c0_40 = arith.constant 0 : index
    %19 = vector.load %arg5[%c0_37, %c2_38, %c1_39, %c0_40] : memref<1x18x18x16xf32, #tpu.memory_space<vmem>>, vector<1x16x16x16xf32>
    %20 = vector.shape_cast %19 : vector<1x16x16x16xf32> to vector<256x16xf32>
    %c0_41 = arith.constant 0 : index
    %c2_42 = arith.constant 2 : index
    %c2_43 = arith.constant 2 : index
    %c0_44 = arith.constant 0 : index
    %21 = vector.load %arg5[%c0_41, %c2_42, %c2_43, %c0_44] : memref<1x18x18x16xf32, #tpu.memory_space<vmem>>, vector<1x16x16x16xf32>
    %22 = vector.shape_cast %21 : vector<1x16x16x16xf32> to vector<256x16xf32>
    %23 = tpu.concatenate %6, %8, %10, %12, %14, %16, %18, %20, %22 in 1 : vector<256x16xf32>, vector<256x16xf32>, vector<256x16xf32>, vector<256x16xf32>, vector<256x16xf32>, vector<256x16xf32>, vector<256x16xf32>, vector<256x16xf32>, vector<256x16xf32> -> vector<256x144xf32>
    %24 = arith.truncf %23 : vector<256x144xf32> to vector<256x144xbf16>
    %c0_45 = arith.constant 0 : index
    %c0_46 = arith.constant 0 : index
    %25 = vector.load %arg3[%c0_45, %c0_46] : memref<144x16xbf16, #tpu.memory_space<vmem>>, vector<144x16xbf16>
    %cst_47 = arith.constant dense<0.000000e+00> : vector<256x16xf32>
    %26 = tpu.matmul %24, %25, %cst_47 {dimension_numbers = #tpu.dot_dimension_numbers<[1], [0], [0], [1], [0, 0, 1, 1], [], []>} : vector<256x144xbf16>, vector<144x16xbf16>, vector<256x16xf32> -> vector<256x16xf32>
    %27 = vector.shape_cast %26 : vector<256x16xf32> to vector<1x16x16x16xf32>
    %c0_48 = arith.constant 0 : index
    %c0_49 = arith.constant 0 : index
    %c0_50 = arith.constant 0 : index
    %c0_51 = arith.constant 0 : index
    %28 = vector.load %arg2[%c0_48, %c0_49, %c0_50, %c0_51] : memref<1x16x16x16xf32, #tpu.memory_space<vmem>>, vector<1x16x16x16xf32>
    %29 = arith.addf %27, %28 : vector<1x16x16x16xf32>
    %c0_52 = arith.constant 0 : index
    %c0_53 = arith.constant 0 : index
    %c0_54 = arith.constant 0 : index
    %c0_55 = arith.constant 0 : index
    %30 = vector.load %arg4[%c0_52, %c0_53, %c0_54, %c0_55] : memref<1x16x16x16xf32, #tpu.memory_space<vmem>>, vector<1x16x16x16xf32>
    tpu.vector_store %arg4[%c0_52, %c0_53, %c0_54, %c0_55], %29 {strides = array<i32>} : memref<1x16x16x16xf32, #tpu.memory_space<vmem>>, vector<1x16x16x16xf32>,
    return
  }
  func.func @transform_0(%arg0: i32) -> (i32, i32, i32, i32) {
    %c0_i32 = arith.constant 0 : i32
    %c0_i32_0 = arith.constant 0 : i32
    %c0_i32_1 = arith.constant 0 : i32
    %c0_i32_2 = arith.constant 0 : i32
    return %arg0, %c0_i32, %c0_i32_0, %c0_i32_1 : i32, i32, i32, i32
  }
  func.func @transform_1(%arg0: i32) -> (i32, i32, i32, i32) {
    %c0_i32 = arith.constant 0 : i32
    %c0_i32_0 = arith.constant 0 : i32
    %c0_i32_1 = arith.constant 0 : i32
    %c0_i32_2 = arith.constant 0 : i32
    return %arg0, %c0_i32, %c0_i32_0, %c0_i32_1 : i32, i32, i32, i32
  }
  func.func @transform_2(%arg0: i32) -> (i32, i32) {
    %c0_i32 = arith.constant 0 : i32
    %c0_i32_0 = arith.constant 0 : i32
    %c0_i32_1 = arith.constant 0 : i32
    return %c0_i32, %c0_i32_0 : i32, i32
  }
  func.func @transform_3(%arg0: i32) -> (i32, i32, i32, i32) {
    %c0_i32 = arith.constant 0 : i32
    %c0_i32_0 = arith.constant 0 : i32
    %c0_i32_1 = arith.constant 0 : i32
    %c0_i32_2 = arith.constant 0 : i32
    return %arg0, %c0_i32, %c0_i32_0, %c0_i32_1 : i32, i32, i32, i32
  }
}

module attributes {stable_mosaic.version = 11 : i64} {
  func.func @_conv1_kernel(%arg0: i32, %arg1: memref<1x16x16x16xf32, #tpu.memory_space<vmem>>, %arg2: memref<1x1x16xf32, #tpu.memory_space<vmem>>, %arg3: memref<1x1x16xf32, #tpu.memory_space<vmem>>, %arg4: memref<144x32xbf16, #tpu.memory_space<vmem>>, %arg5: memref<1x32xf32, #tpu.memory_space<vmem>>, %arg6: memref<1x32xf32, #tpu.memory_space<vmem>>, %arg7: memref<1x16x16x32xbf16, #tpu.memory_space<vmem>>, %arg8: memref<1x18x18x16xf32, #tpu.memory_space<vmem>>) attributes {dimension_semantics = [#tpu.dimension_semantics<parallel>], iteration_bounds = array<i64: 2>, scalar_prefetch = 0 : i64, scratch_operands = 1 : i64, tpu.core_type = #tpu.core_type<tc>, window_params = [{transform_indices = @transform_0, window_bounds = array<i64: 1, 16, 16, 16>}, {pipeline_mode = #tpu.pipeline_mode<synchronous>, transform_indices = @transform_1, window_bounds = array<i64: 1, 1, 16>}, {pipeline_mode = #tpu.pipeline_mode<synchronous>, transform_indices = @transform_2, window_bounds = array<i64: 1, 1, 16>}, {pipeline_mode = #tpu.pipeline_mode<synchronous>, transform_indices = @transform_3, window_bounds = array<i64: 144, 32>}, {pipeline_mode = #tpu.pipeline_mode<synchronous>, transform_indices = @transform_4, window_bounds = array<i64: 1, 32>}, {pipeline_mode = #tpu.pipeline_mode<synchronous>, transform_indices = @transform_5, window_bounds = array<i64: 1, 32>}, {transform_indices = @transform_6, window_bounds = array<i64: 1, 16, 16, 32>}]} {
    %cst = arith.constant 0.000000e+00 : f32
    %0 = vector.broadcast %cst : f32 to vector<1x18x18x16xf32>
    %c0 = arith.constant 0 : index
    %c0_0 = arith.constant 0 : index
    %c0_1 = arith.constant 0 : index
    %c0_2 = arith.constant 0 : index
    %1 = vector.load %arg8[%c0, %c0_0, %c0_1, %c0_2] : memref<1x18x18x16xf32, #tpu.memory_space<vmem>>, vector<1x18x18x16xf32>
    tpu.vector_store %arg8[%c0, %c0_0, %c0_1, %c0_2], %0 {strides = array<i32>} : memref<1x18x18x16xf32, #tpu.memory_space<vmem>>, vector<1x18x18x16xf32>,
    %c0_3 = arith.constant 0 : index
    %c0_4 = arith.constant 0 : index
    %c0_5 = arith.constant 0 : index
    %c0_6 = arith.constant 0 : index
    %2 = vector.load %arg1[%c0_3, %c0_4, %c0_5, %c0_6] : memref<1x16x16x16xf32, #tpu.memory_space<vmem>>, vector<1x16x16x16xf32>
    %c0_7 = arith.constant 0 : index
    %c0_8 = arith.constant 0 : index
    %c0_9 = arith.constant 0 : index
    %3 = vector.load %arg2[%c0_7, %c0_8, %c0_9] : memref<1x1x16xf32, #tpu.memory_space<vmem>>, vector<1x1x16xf32>
    %4 = vector.shape_cast %3 : vector<1x1x16xf32> to vector<1x1x1x16xf32>
    %5 = vector.broadcast %4 : vector<1x1x1x16xf32> to vector<1x16x16x16xf32>
    %6 = arith.mulf %2, %5 : vector<1x16x16x16xf32>
    %c0_10 = arith.constant 0 : index
    %c0_11 = arith.constant 0 : index
    %c0_12 = arith.constant 0 : index
    %7 = vector.load %arg3[%c0_10, %c0_11, %c0_12] : memref<1x1x16xf32, #tpu.memory_space<vmem>>, vector<1x1x16xf32>
    %8 = vector.shape_cast %7 : vector<1x1x16xf32> to vector<1x1x1x16xf32>
    %9 = vector.broadcast %8 : vector<1x1x1x16xf32> to vector<1x16x16x16xf32>
    %10 = arith.addf %6, %9 : vector<1x16x16x16xf32>
    %cst_13 = arith.constant 0.000000e+00 : f32
    %11 = vector.broadcast %cst_13 : f32 to vector<1x16x16x16xf32>
    %12 = arith.maximumf %10, %11 : vector<1x16x16x16xf32>
    %c0_14 = arith.constant 0 : index
    %c1 = arith.constant 1 : index
    %c1_15 = arith.constant 1 : index
    %c0_16 = arith.constant 0 : index
    %13 = vector.load %arg8[%c0_14, %c1, %c1_15, %c0_16] : memref<1x18x18x16xf32, #tpu.memory_space<vmem>>, vector<1x16x16x16xf32>
    tpu.vector_store %arg8[%c0_14, %c1, %c1_15, %c0_16], %12 {strides = array<i32>} : memref<1x18x18x16xf32, #tpu.memory_space<vmem>>, vector<1x16x16x16xf32>,
    %c0_17 = arith.constant 0 : index
    %c0_18 = arith.constant 0 : index
    %c0_19 = arith.constant 0 : index
    %c0_20 = arith.constant 0 : index
    %14 = vector.load %arg8[%c0_17, %c0_18, %c0_19, %c0_20] : memref<1x18x18x16xf32, #tpu.memory_space<vmem>>, vector<1x16x16x16xf32>
    %15 = vector.shape_cast %14 : vector<1x16x16x16xf32> to vector<256x16xf32>
    %c0_21 = arith.constant 0 : index
    %c0_22 = arith.constant 0 : index
    %c1_23 = arith.constant 1 : index
    %c0_24 = arith.constant 0 : index
    %16 = vector.load %arg8[%c0_21, %c0_22, %c1_23, %c0_24] : memref<1x18x18x16xf32, #tpu.memory_space<vmem>>, vector<1x16x16x16xf32>
    %17 = vector.shape_cast %16 : vector<1x16x16x16xf32> to vector<256x16xf32>
    %c0_25 = arith.constant 0 : index
    %c0_26 = arith.constant 0 : index
    %c2 = arith.constant 2 : index
    %c0_27 = arith.constant 0 : index
    %18 = vector.load %arg8[%c0_25, %c0_26, %c2, %c0_27] : memref<1x18x18x16xf32, #tpu.memory_space<vmem>>, vector<1x16x16x16xf32>
    %19 = vector.shape_cast %18 : vector<1x16x16x16xf32> to vector<256x16xf32>
    %c0_28 = arith.constant 0 : index
    %c1_29 = arith.constant 1 : index
    %c0_30 = arith.constant 0 : index
    %c0_31 = arith.constant 0 : index
    %20 = vector.load %arg8[%c0_28, %c1_29, %c0_30, %c0_31] : memref<1x18x18x16xf32, #tpu.memory_space<vmem>>, vector<1x16x16x16xf32>
    %21 = vector.shape_cast %20 : vector<1x16x16x16xf32> to vector<256x16xf32>
    %c0_32 = arith.constant 0 : index
    %c1_33 = arith.constant 1 : index
    %c1_34 = arith.constant 1 : index
    %c0_35 = arith.constant 0 : index
    %22 = vector.load %arg8[%c0_32, %c1_33, %c1_34, %c0_35] : memref<1x18x18x16xf32, #tpu.memory_space<vmem>>, vector<1x16x16x16xf32>
    %23 = vector.shape_cast %22 : vector<1x16x16x16xf32> to vector<256x16xf32>
    %c0_36 = arith.constant 0 : index
    %c1_37 = arith.constant 1 : index
    %c2_38 = arith.constant 2 : index
    %c0_39 = arith.constant 0 : index
    %24 = vector.load %arg8[%c0_36, %c1_37, %c2_38, %c0_39] : memref<1x18x18x16xf32, #tpu.memory_space<vmem>>, vector<1x16x16x16xf32>
    %25 = vector.shape_cast %24 : vector<1x16x16x16xf32> to vector<256x16xf32>
    %c0_40 = arith.constant 0 : index
    %c2_41 = arith.constant 2 : index
    %c0_42 = arith.constant 0 : index
    %c0_43 = arith.constant 0 : index
    %26 = vector.load %arg8[%c0_40, %c2_41, %c0_42, %c0_43] : memref<1x18x18x16xf32, #tpu.memory_space<vmem>>, vector<1x16x16x16xf32>
    %27 = vector.shape_cast %26 : vector<1x16x16x16xf32> to vector<256x16xf32>
    %c0_44 = arith.constant 0 : index
    %c2_45 = arith.constant 2 : index
    %c1_46 = arith.constant 1 : index
    %c0_47 = arith.constant 0 : index
    %28 = vector.load %arg8[%c0_44, %c2_45, %c1_46, %c0_47] : memref<1x18x18x16xf32, #tpu.memory_space<vmem>>, vector<1x16x16x16xf32>
    %29 = vector.shape_cast %28 : vector<1x16x16x16xf32> to vector<256x16xf32>
    %c0_48 = arith.constant 0 : index
    %c2_49 = arith.constant 2 : index
    %c2_50 = arith.constant 2 : index
    %c0_51 = arith.constant 0 : index
    %30 = vector.load %arg8[%c0_48, %c2_49, %c2_50, %c0_51] : memref<1x18x18x16xf32, #tpu.memory_space<vmem>>, vector<1x16x16x16xf32>
    %31 = vector.shape_cast %30 : vector<1x16x16x16xf32> to vector<256x16xf32>
    %32 = tpu.concatenate %15, %17, %19, %21, %23, %25, %27, %29, %31 in 1 : vector<256x16xf32>, vector<256x16xf32>, vector<256x16xf32>, vector<256x16xf32>, vector<256x16xf32>, vector<256x16xf32>, vector<256x16xf32>, vector<256x16xf32>, vector<256x16xf32> -> vector<256x144xf32>
    %33 = arith.truncf %32 : vector<256x144xf32> to vector<256x144xbf16>
    %c0_52 = arith.constant 0 : index
    %c0_53 = arith.constant 0 : index
    %34 = vector.load %arg4[%c0_52, %c0_53] : memref<144x32xbf16, #tpu.memory_space<vmem>>, vector<144x32xbf16>
    %cst_54 = arith.constant dense<0.000000e+00> : vector<256x32xf32>
    %35 = tpu.matmul %33, %34, %cst_54 {dimension_numbers = #tpu.dot_dimension_numbers<[1], [0], [0], [1], [0, 0, 1, 1], [], []>} : vector<256x144xbf16>, vector<144x32xbf16>, vector<256x32xf32> -> vector<256x32xf32>
    %c0_55 = arith.constant 0 : index
    %c0_56 = arith.constant 0 : index
    %36 = vector.load %arg5[%c0_55, %c0_56] : memref<1x32xf32, #tpu.memory_space<vmem>>, vector<1x32xf32>
    %37 = vector.broadcast %36 : vector<1x32xf32> to vector<256x32xf32>
    %38 = arith.mulf %35, %37 : vector<256x32xf32>
    %c0_57 = arith.constant 0 : index
    %c0_58 = arith.constant 0 : index
    %39 = vector.load %arg6[%c0_57, %c0_58] : memref<1x32xf32, #tpu.memory_space<vmem>>, vector<1x32xf32>
    %40 = vector.broadcast %39 : vector<1x32xf32> to vector<256x32xf32>
    %41 = arith.addf %38, %40 : vector<256x32xf32>
    %cst_59 = arith.constant 0.000000e+00 : f32
    %42 = vector.broadcast %cst_59 : f32 to vector<256x32xf32>
    %43 = arith.maximumf %41, %42 : vector<256x32xf32>
    %44 = vector.shape_cast %43 : vector<256x32xf32> to vector<1x16x16x32xf32>
    %45 = arith.truncf %44 : vector<1x16x16x32xf32> to vector<1x16x16x32xbf16>
    %c0_60 = arith.constant 0 : index
    %c0_61 = arith.constant 0 : index
    %c0_62 = arith.constant 0 : index
    %c0_63 = arith.constant 0 : index
    %46 = vector.load %arg7[%c0_60, %c0_61, %c0_62, %c0_63] : memref<1x16x16x32xbf16, #tpu.memory_space<vmem>>, vector<1x16x16x32xbf16>
    tpu.vector_store %arg7[%c0_60, %c0_61, %c0_62, %c0_63], %45 {strides = array<i32>} : memref<1x16x16x32xbf16, #tpu.memory_space<vmem>>, vector<1x16x16x32xbf16>,
    return
  }
  func.func @transform_0(%arg0: i32) -> (i32, i32, i32, i32) {
    %c0_i32 = arith.constant 0 : i32
    %c0_i32_0 = arith.constant 0 : i32
    %c0_i32_1 = arith.constant 0 : i32
    %c0_i32_2 = arith.constant 0 : i32
    return %arg0, %c0_i32, %c0_i32_0, %c0_i32_1 : i32, i32, i32, i32
  }
  func.func @transform_1(%arg0: i32) -> (i32, i32, i32) {
    %c0_i32 = arith.constant 0 : i32
    %c0_i32_0 = arith.constant 0 : i32
    %c0_i32_1 = arith.constant 0 : i32
    %c0_i32_2 = arith.constant 0 : i32
    return %c0_i32, %c0_i32_0, %c0_i32_1 : i32, i32, i32
  }
  func.func @transform_2(%arg0: i32) -> (i32, i32, i32) {
    %c0_i32 = arith.constant 0 : i32
    %c0_i32_0 = arith.constant 0 : i32
    %c0_i32_1 = arith.constant 0 : i32
    %c0_i32_2 = arith.constant 0 : i32
    return %c0_i32, %c0_i32_0, %c0_i32_1 : i32, i32, i32
  }
  func.func @transform_3(%arg0: i32) -> (i32, i32) {
    %c0_i32 = arith.constant 0 : i32
    %c0_i32_0 = arith.constant 0 : i32
    %c0_i32_1 = arith.constant 0 : i32
    return %c0_i32, %c0_i32_0 : i32, i32
  }
  func.func @transform_4(%arg0: i32) -> (i32, i32) {
    %c0_i32 = arith.constant 0 : i32
    %c0_i32_0 = arith.constant 0 : i32
    %c0_i32_1 = arith.constant 0 : i32
    return %c0_i32, %c0_i32_0 : i32, i32
  }
  func.func @transform_5(%arg0: i32) -> (i32, i32) {
    %c0_i32 = arith.constant 0 : i32
    %c0_i32_0 = arith.constant 0 : i32
    %c0_i32_1 = arith.constant 0 : i32
    return %c0_i32, %c0_i32_0 : i32, i32
  }
  func.func @transform_6(%arg0: i32) -> (i32, i32, i32, i32) {
    %c0_i32 = arith.constant 0 : i32
    %c0_i32_0 = arith.constant 0 : i32
    %c0_i32_1 = arith.constant 0 : i32
    %c0_i32_2 = arith.constant 0 : i32
    return %arg0, %c0_i32, %c0_i32_0, %c0_i32_1 : i32, i32, i32, i32
  }
}

module attributes {stable_mosaic.version = 11 : i64} {
  func.func @_conv2_proj_kernel(%arg0: i32, %arg1: memref<4x1x9x9x32xbf16, #tpu.memory_space<vmem>>, %arg2: memref<1x8x8x16xf32, #tpu.memory_space<vmem>>, %arg3: memref<288x32xbf16, #tpu.memory_space<vmem>>, %arg4: memref<1x1x16xf32, #tpu.memory_space<vmem>>, %arg5: memref<1x1x16xf32, #tpu.memory_space<vmem>>, %arg6: memref<16x32xbf16, #tpu.memory_space<vmem>>, %arg7: memref<1x8x8x32xf32, #tpu.memory_space<vmem>>) attributes {dimension_semantics = [#tpu.dimension_semantics<parallel>], iteration_bounds = array<i64: 2>, scalar_prefetch = 0 : i64, scratch_operands = 0 : i64, tpu.core_type = #tpu.core_type<tc>, window_params = [{transform_indices = @transform_0, window_bounds = array<i64: 4, 1, 9, 9, 32>}, {transform_indices = @transform_1, window_bounds = array<i64: 1, 8, 8, 16>}, {pipeline_mode = #tpu.pipeline_mode<synchronous>, transform_indices = @transform_2, window_bounds = array<i64: 288, 32>}, {pipeline_mode = #tpu.pipeline_mode<synchronous>, transform_indices = @transform_3, window_bounds = array<i64: 1, 1, 16>}, {pipeline_mode = #tpu.pipeline_mode<synchronous>, transform_indices = @transform_4, window_bounds = array<i64: 1, 1, 16>}, {pipeline_mode = #tpu.pipeline_mode<synchronous>, transform_indices = @transform_5, window_bounds = array<i64: 16, 32>}, {transform_indices = @transform_6, window_bounds = array<i64: 1, 8, 8, 32>}]} {
    %c0 = arith.constant 0 : index
    %c0_0 = arith.constant 0 : index
    %c0_1 = arith.constant 0 : index
    %c0_2 = arith.constant 0 : index
    %c0_3 = arith.constant 0 : index
    %0 = vector.load %arg1[%c0, %c0_0, %c0_1, %c0_2, %c0_3] : memref<4x1x9x9x32xbf16, #tpu.memory_space<vmem>>, vector<1x1x8x8x32xbf16>
    %1 = vector.shape_cast %0 : vector<1x1x8x8x32xbf16> to vector<1x8x8x32xbf16>
    %2 = arith.extf %1 : vector<1x8x8x32xbf16> to vector<1x8x8x32xf32>
    %3 = vector.shape_cast %2 : vector<1x8x8x32xf32> to vector<64x32xf32>
    %c1 = arith.constant 1 : index
    %c0_4 = arith.constant 0 : index
    %c0_5 = arith.constant 0 : index
    %c0_6 = arith.constant 0 : index
    %c0_7 = arith.constant 0 : index
    %4 = vector.load %arg1[%c1, %c0_4, %c0_5, %c0_6, %c0_7] : memref<4x1x9x9x32xbf16, #tpu.memory_space<vmem>>, vector<1x1x8x8x32xbf16>
    %5 = vector.shape_cast %4 : vector<1x1x8x8x32xbf16> to vector<1x8x8x32xbf16>
    %6 = arith.extf %5 : vector<1x8x8x32xbf16> to vector<1x8x8x32xf32>
    %7 = vector.shape_cast %6 : vector<1x8x8x32xf32> to vector<64x32xf32>
    %c0_8 = arith.constant 0 : index
    %c0_9 = arith.constant 0 : index
    %c0_10 = arith.constant 0 : index
    %c1_11 = arith.constant 1 : index
    %c0_12 = arith.constant 0 : index
    %8 = vector.load %arg1[%c0_8, %c0_9, %c0_10, %c1_11, %c0_12] : memref<4x1x9x9x32xbf16, #tpu.memory_space<vmem>>, vector<1x1x8x8x32xbf16>
    %9 = vector.shape_cast %8 : vector<1x1x8x8x32xbf16> to vector<1x8x8x32xbf16>
    %10 = arith.extf %9 : vector<1x8x8x32xbf16> to vector<1x8x8x32xf32>
    %11 = vector.shape_cast %10 : vector<1x8x8x32xf32> to vector<64x32xf32>
    %c2 = arith.constant 2 : index
    %c0_13 = arith.constant 0 : index
    %c0_14 = arith.constant 0 : index
    %c0_15 = arith.constant 0 : index
    %c0_16 = arith.constant 0 : index
    %12 = vector.load %arg1[%c2, %c0_13, %c0_14, %c0_15, %c0_16] : memref<4x1x9x9x32xbf16, #tpu.memory_space<vmem>>, vector<1x1x8x8x32xbf16>
    %13 = vector.shape_cast %12 : vector<1x1x8x8x32xbf16> to vector<1x8x8x32xbf16>
    %14 = arith.extf %13 : vector<1x8x8x32xbf16> to vector<1x8x8x32xf32>
    %15 = vector.shape_cast %14 : vector<1x8x8x32xf32> to vector<64x32xf32>
    %c3 = arith.constant 3 : index
    %c0_17 = arith.constant 0 : index
    %c0_18 = arith.constant 0 : index
    %c0_19 = arith.constant 0 : index
    %c0_20 = arith.constant 0 : index
    %16 = vector.load %arg1[%c3, %c0_17, %c0_18, %c0_19, %c0_20] : memref<4x1x9x9x32xbf16, #tpu.memory_space<vmem>>, vector<1x1x8x8x32xbf16>
    %17 = vector.shape_cast %16 : vector<1x1x8x8x32xbf16> to vector<1x8x8x32xbf16>
    %18 = arith.extf %17 : vector<1x8x8x32xbf16> to vector<1x8x8x32xf32>
    %19 = vector.shape_cast %18 : vector<1x8x8x32xf32> to vector<64x32xf32>
    %c2_21 = arith.constant 2 : index
    %c0_22 = arith.constant 0 : index
    %c0_23 = arith.constant 0 : index
    %c1_24 = arith.constant 1 : index
    %c0_25 = arith.constant 0 : index
    %20 = vector.load %arg1[%c2_21, %c0_22, %c0_23, %c1_24, %c0_25] : memref<4x1x9x9x32xbf16, #tpu.memory_space<vmem>>, vector<1x1x8x8x32xbf16>
    %21 = vector.shape_cast %20 : vector<1x1x8x8x32xbf16> to vector<1x8x8x32xbf16>
    %22 = arith.extf %21 : vector<1x8x8x32xbf16> to vector<1x8x8x32xf32>
    %23 = vector.shape_cast %22 : vector<1x8x8x32xf32> to vector<64x32xf32>
    %c0_26 = arith.constant 0 : index
    %c0_27 = arith.constant 0 : index
    %c1_28 = arith.constant 1 : index
    %c0_29 = arith.constant 0 : index
    %c0_30 = arith.constant 0 : index
    %24 = vector.load %arg1[%c0_26, %c0_27, %c1_28, %c0_29, %c0_30] : memref<4x1x9x9x32xbf16, #tpu.memory_space<vmem>>, vector<1x1x8x8x32xbf16>
    %25 = vector.shape_cast %24 : vector<1x1x8x8x32xbf16> to vector<1x8x8x32xbf16>
    %26 = arith.extf %25 : vector<1x8x8x32xbf16> to vector<1x8x8x32xf32>
    %27 = vector.shape_cast %26 : vector<1x8x8x32xf32> to vector<64x32xf32>
    %c1_31 = arith.constant 1 : index
    %c0_32 = arith.constant 0 : index
    %c1_33 = arith.constant 1 : index
    %c0_34 = arith.constant 0 : index
    %c0_35 = arith.constant 0 : index
    %28 = vector.load %arg1[%c1_31, %c0_32, %c1_33, %c0_34, %c0_35] : memref<4x1x9x9x32xbf16, #tpu.memory_space<vmem>>, vector<1x1x8x8x32xbf16>
    %29 = vector.shape_cast %28 : vector<1x1x8x8x32xbf16> to vector<1x8x8x32xbf16>
    %30 = arith.extf %29 : vector<1x8x8x32xbf16> to vector<1x8x8x32xf32>
    %31 = vector.shape_cast %30 : vector<1x8x8x32xf32> to vector<64x32xf32>
    %c0_36 = arith.constant 0 : index
    %c0_37 = arith.constant 0 : index
    %c1_38 = arith.constant 1 : index
    %c1_39 = arith.constant 1 : index
    %c0_40 = arith.constant 0 : index
    %32 = vector.load %arg1[%c0_36, %c0_37, %c1_38, %c1_39, %c0_40] : memref<4x1x9x9x32xbf16, #tpu.memory_space<vmem>>, vector<1x1x8x8x32xbf16>
    %33 = vector.shape_cast %32 : vector<1x1x8x8x32xbf16> to vector<1x8x8x32xbf16>
    %34 = arith.extf %33 : vector<1x8x8x32xbf16> to vector<1x8x8x32xf32>
    %35 = vector.shape_cast %34 : vector<1x8x8x32xf32> to vector<64x32xf32>
    %36 = tpu.concatenate %3, %7, %11, %15, %19, %23, %27, %31, %35 in 1 : vector<64x32xf32>, vector<64x32xf32>, vector<64x32xf32>, vector<64x32xf32>, vector<64x32xf32>, vector<64x32xf32>, vector<64x32xf32>, vector<64x32xf32>, vector<64x32xf32> -> vector<64x288xf32>
    %37 = arith.truncf %36 : vector<64x288xf32> to vector<64x288xbf16>
    %c0_41 = arith.constant 0 : index
    %c0_42 = arith.constant 0 : index
    %38 = vector.load %arg3[%c0_41, %c0_42] : memref<288x32xbf16, #tpu.memory_space<vmem>>, vector<288x32xbf16>
    %cst = arith.constant dense<0.000000e+00> : vector<64x32xf32>
    %39 = tpu.matmul %37, %38, %cst {dimension_numbers = #tpu.dot_dimension_numbers<[1], [0], [0], [1], [0, 0, 1, 1], [], []>} : vector<64x288xbf16>, vector<288x32xbf16>, vector<64x32xf32> -> vector<64x32xf32>
    %c0_43 = arith.constant 0 : index
    %c0_44 = arith.constant 0 : index
    %c0_45 = arith.constant 0 : index
    %c0_46 = arith.constant 0 : index
    %40 = vector.load %arg2[%c0_43, %c0_44, %c0_45, %c0_46] : memref<1x8x8x16xf32, #tpu.memory_space<vmem>>, vector<1x8x8x16xf32>
    %c0_47 = arith.constant 0 : index
    %c0_48 = arith.constant 0 : index
    %c0_49 = arith.constant 0 : index
    %41 = vector.load %arg4[%c0_47, %c0_48, %c0_49] : memref<1x1x16xf32, #tpu.memory_space<vmem>>, vector<1x1x16xf32>
    %42 = vector.shape_cast %41 : vector<1x1x16xf32> to vector<1x1x1x16xf32>
    %43 = vector.broadcast %42 : vector<1x1x1x16xf32> to vector<1x8x8x16xf32>
    %44 = arith.mulf %40, %43 : vector<1x8x8x16xf32>
    %c0_50 = arith.constant 0 : index
    %c0_51 = arith.constant 0 : index
    %c0_52 = arith.constant 0 : index
    %45 = vector.load %arg5[%c0_50, %c0_51, %c0_52] : memref<1x1x16xf32, #tpu.memory_space<vmem>>, vector<1x1x16xf32>
    %46 = vector.shape_cast %45 : vector<1x1x16xf32> to vector<1x1x1x16xf32>
    %47 = vector.broadcast %46 : vector<1x1x1x16xf32> to vector<1x8x8x16xf32>
    %48 = arith.addf %44, %47 : vector<1x8x8x16xf32>
    %cst_53 = arith.constant 0.000000e+00 : f32
    %49 = vector.broadcast %cst_53 : f32 to vector<1x8x8x16xf32>
    %50 = arith.maximumf %48, %49 : vector<1x8x8x16xf32>
    %51 = vector.shape_cast %50 : vector<1x8x8x16xf32> to vector<64x16xf32>
    %52 = arith.truncf %51 : vector<64x16xf32> to vector<64x16xbf16>
    %c0_54 = arith.constant 0 : index
    %c0_55 = arith.constant 0 : index
    %53 = vector.load %arg6[%c0_54, %c0_55] : memref<16x32xbf16, #tpu.memory_space<vmem>>, vector<16x32xbf16>
    %cst_56 = arith.constant dense<0.000000e+00> : vector<64x32xf32>
    %54 = tpu.matmul %52, %53, %cst_56 {dimension_numbers = #tpu.dot_dimension_numbers<[1], [0], [0], [1], [0, 0, 1, 1], [], []>} : vector<64x16xbf16>, vector<16x32xbf16>, vector<64x32xf32> -> vector<64x32xf32>
    %55 = arith.addf %39, %54 : vector<64x32xf32>
    %56 = vector.shape_cast %55 : vector<64x32xf32> to vector<1x8x8x32xf32>
    %c0_57 = arith.constant 0 : index
    %c0_58 = arith.constant 0 : index
    %c0_59 = arith.constant 0 : index
    %c0_60 = arith.constant 0 : index
    %57 = vector.load %arg7[%c0_57, %c0_58, %c0_59, %c0_60] : memref<1x8x8x32xf32, #tpu.memory_space<vmem>>, vector<1x8x8x32xf32>
    tpu.vector_store %arg7[%c0_57, %c0_58, %c0_59, %c0_60], %56 {strides = array<i32>} : memref<1x8x8x32xf32, #tpu.memory_space<vmem>>, vector<1x8x8x32xf32>,
    return
  }
  func.func @transform_0(%arg0: i32) -> (i32, i32, i32, i32, i32) {
    %c0_i32 = arith.constant 0 : i32
    %c0_i32_0 = arith.constant 0 : i32
    %c0_i32_1 = arith.constant 0 : i32
    %c0_i32_2 = arith.constant 0 : i32
    %c0_i32_3 = arith.constant 0 : i32
    return %c0_i32, %arg0, %c0_i32_0, %c0_i32_1, %c0_i32_2 : i32, i32, i32, i32, i32
  }
  func.func @transform_1(%arg0: i32) -> (i32, i32, i32, i32) {
    %c0_i32 = arith.constant 0 : i32
    %c0_i32_0 = arith.constant 0 : i32
    %c0_i32_1 = arith.constant 0 : i32
    %c0_i32_2 = arith.constant 0 : i32
    return %arg0, %c0_i32, %c0_i32_0, %c0_i32_1 : i32, i32, i32, i32
  }
  func.func @transform_2(%arg0: i32) -> (i32, i32) {
    %c0_i32 = arith.constant 0 : i32
    %c0_i32_0 = arith.constant 0 : i32
    %c0_i32_1 = arith.constant 0 : i32
    return %c0_i32, %c0_i32_0 : i32, i32
  }
  func.func @transform_3(%arg0: i32) -> (i32, i32, i32) {
    %c0_i32 = arith.constant 0 : i32
    %c0_i32_0 = arith.constant 0 : i32
    %c0_i32_1 = arith.constant 0 : i32
    %c0_i32_2 = arith.constant 0 : i32
    return %c0_i32, %c0_i32_0, %c0_i32_1 : i32, i32, i32
  }
  func.func @transform_4(%arg0: i32) -> (i32, i32, i32) {
    %c0_i32 = arith.constant 0 : i32
    %c0_i32_0 = arith.constant 0 : i32
    %c0_i32_1 = arith.constant 0 : i32
    %c0_i32_2 = arith.constant 0 : i32
    return %c0_i32, %c0_i32_0, %c0_i32_1 : i32, i32, i32
  }
  func.func @transform_5(%arg0: i32) -> (i32, i32) {
    %c0_i32 = arith.constant 0 : i32
    %c0_i32_0 = arith.constant 0 : i32
    %c0_i32_1 = arith.constant 0 : i32
    return %c0_i32, %c0_i32_0 : i32, i32
  }
  func.func @transform_6(%arg0: i32) -> (i32, i32, i32, i32) {
    %c0_i32 = arith.constant 0 : i32
    %c0_i32_0 = arith.constant 0 : i32
    %c0_i32_1 = arith.constant 0 : i32
    %c0_i32_2 = arith.constant 0 : i32
    return %arg0, %c0_i32, %c0_i32_0, %c0_i32_1 : i32, i32, i32, i32
  }
}

</mosaic_0001>

<bundles_post_ra>
// kernel: fwd.5
= control target key start
LH: loop header
LB: loop body
LE: loop exit
PB: predicated region body
PF: predicated region fallthrough
CT: control target
= control target key end

     0   :  { %s3009_s12 = smov 0   ;;  %s4063_s0 = inlined_call_operand.vmem [shape: bf16[2,16,16,16], index: 0, kind: input, shape index: {}]   ;;  %s4064_s1 = inlined_call_operand.vmem [shape: f32[2,16,16,16], index: 1, kind: input, shape index: {}]   ;;  %s4065_s2 = inlined_call_operand.vmem [shape: bf16[144,16], index: 2, kind: input, shape index: {}]   ;;  %s4066_s3 = inlined_call_operand.vmem [shape: f32[2,16,16,16], index: 3, kind: output, shape index: {}]  }
   0x1 LB: > { %s2236_s13 = sadd.s32 4294967295, %s2978_s12   ;;  %p2240_p0 = scmp.ge.s32.totalorder %s2978_s12, 1  ;;  %s2978_s12 = sphi %s3009_s12, %s13_s12  }
   0x2   : > { %p147_p1 = scmp.lt.s32.totalorder %s2978_s12, 3 }
   0x4   : > { %p148_p2 = pnand %p2240_p0, %p147_p1 }
   0x6   : > { %151 = sbr.rel (%p148_p2) target bundleno = 608 (0x260), region = 32 }
   0xd   : > { %vm192_vm0 = vcmask 130048   ;;  %vm195_vm1 = vcmask 123904   ;;  %p3019_p3 = scmp.lt.s32.totalorder %s2236_s13, 1  ;;  %v2980_v0 = vmov 0.0   ;;  %s2981_s19 = smov 16   ;;  %vm1562_vm2 = vcmask 261120  }
   0xe   : > { %193 = vst.msk [vmem:[#allocation2] sm:$0xff] %vm192_vm0, %v2980_v0  ;;  %194 = vst.msk [vmem:[#allocation2 + $0x8] sm:$0xff] %vm192_vm0, %v2980_v0  ;;  %s2983_s24 = smov 32   ;;  %s2984_s10 = smov 48   ;;  %vm1595_vm3 = vcmask 392192   ;;  %vm1628_vm4 = vcmask 523264  }
   0xf   : > { %196 = vst.msk [vmem:[#allocation2 + $0x10] sm:$0x3] %vm195_vm1, %v2980_v0  ;;  %199 = vst.msk [vmem:[#allocation2 + $0x28] sm:$0x3] %vm195_vm1, %v2980_v0  ;;  %s4125_s13 = smov (!%p3019_p3, %s2236_s13), 1  ;;  %s2986_s16 = smov 80  }
  0x10   : > { %197 = vst.msk [vmem:[#allocation2 + $0x18] sm:$0xff] %vm192_vm0, %v2980_v0  ;;  %198 = vst.msk [vmem:[#allocation2 + $0x20] sm:$0xff] %vm192_vm0, %v2980_v0  ;;  %s2274_s15 = sshll.u32 %s4125_s13, 7  ;;  %s2987_s17 = smov 96   ;;  %vm1661_vm5 = vcmask 654336   ;;  %vm1694_vm6 = vcmask 785408  }
  0x11   : > { %200 = vst.msk [vmem:[#allocation2 + $0x30] sm:$0xff] %vm192_vm0, %v2980_v0  ;;  %201 = vst.msk [vmem:[#allocation2 + $0x38] sm:$0xff] %vm192_vm0, %v2980_v0  ;;  %s3087_s18 = scalar_lea.vmem %s4063_s0, %s2274_s15  ;;  %s2985_s15 = smov 64   ;;  %vm1727_vm7 = vcmask 916480  }
  0x12   : > { %202 = vst.msk [vmem:[#allocation2 + $0x40] sm:$0x3] %vm195_vm1, %v2980_v0  ;;  %205 = vst.msk [vmem:[#allocation2 + $0x58] sm:$0x3] %vm195_vm1, %v2980_v0  ;;  %v2341_v1 = vld [vmem:[%s3087_s18 + $0x8] sm:$0xff]   ;;  %v2278_v2 = vld [vmem:[%s3087_s18] sm:$0xff]  }
  0x13   : > { %203 = vst.msk [vmem:[#allocation2 + $0x48] sm:$0xff] %vm192_vm0, %v2980_v0  ;;  %204 = vst.msk [vmem:[#allocation2 + $0x50] sm:$0xff] %vm192_vm0, %v2980_v0  ;;  %v2342_v3 = vld [vmem:[%s3087_s18 + $0x10] sm:$0xff]   ;;  %v2283_v4 = vunpack.c.l.bf16 %v2341_v1  ;;  %v2284_v5 = vunpack.c.h.bf16 %v2341_v1  ;;  %v2279_v6 = vunpack.c.l.bf16 %v2278_v2  ;;  %v2280_v7 = vunpack.c.h.bf16 %v2278_v2  ;;  %v2343_v8 = vld [vmem:[%s3087_s18 + $0x18] sm:$0xff]  }
  0x14   : > { %206 = vst.msk [vmem:[#allocation2 + $0x60] sm:$0xff] %vm192_vm0, %v2980_v0  ;;  %207 = vst.msk [vmem:[#allocation2 + $0x68] sm:$0xff] %vm192_vm0, %v2980_v0  ;;  %v2344_v9 = vld [vmem:[%s3087_s18 + $0x20] sm:$0xff]   ;;  %v2345_v10 = vld [vmem:[%s3087_s18 + $0x28] sm:$0xff]   ;;  %v2287_v13 = vunpack.c.l.bf16 %v2342_v3  ;;  %v2288_v14 = vunpack.c.h.bf16 %v2342_v3  ;;  %v2291_v15 = vunpack.c.l.bf16 %v2343_v8  ;;  %v2292_v16 = vunpack.c.h.bf16 %v2343_v8 }
  0x15   : > { %208 = vst.msk [vmem:[#allocation2 + $0x70] sm:$0x3] %vm195_vm1, %v2980_v0  ;;  %211 = vst.msk [vmem:[#allocation2 + $0x88] sm:$0x3] %vm195_vm1, %v2980_v0  ;;  %v377_v11 = vld [vmem:[#allocation2 + $0x1] sm:$0xff]  ;;  %v2346_v17 = vld [vmem:[%s3087_s18 + $0x30] sm:$0xff]   ;;  %v2295_v19 = vunpack.c.l.bf16 %v2344_v9  ;;  %v2296_v20 = vunpack.c.h.bf16 %v2344_v9  ;;  %v2299_v21 = vunpack.c.l.bf16 %v2345_v10  ;;  %v2300_v25 = vunpack.c.h.bf16 %v2345_v10 }
  0x16   : > { %209 = vst.msk [vmem:[#allocation2 + $0x78] sm:$0xff] %vm192_vm0, %v2980_v0  ;;  %210 = vst.msk [vmem:[#allocation2 + $0x80] sm:$0xff] %vm192_vm0, %v2980_v0  ;;  %v378_v12 = vld [vmem:[#allocation2 + $0x9] sm:$0xff]  ;;  %v2347_v22 = vld [vmem:[%s3087_s18 + $0x38] sm:$0xff]   ;;  %v2303_v26 = vunpack.c.l.bf16 %v2346_v17  ;;  %v2304_v27 = vunpack.c.h.bf16 %v2346_v17 }
  0x17   : > { %212 = vst.msk [vmem:[#allocation2 + $0x90] sm:$0xff] %vm192_vm0, %v2980_v0  ;;  %213 = vst.msk [vmem:[#allocation2 + $0x98] sm:$0xff] %vm192_vm0, %v2980_v0  ;;  %v2391_v18 = vpack.i.bf16 %v378_v12, %v377_v11  ;;  %v2348_v23 = vld [vmem:[%s3087_s18 + $0x40] sm:$0xff]   ;;  %v2349_v24 = vld [vmem:[%s3087_s18 + $0x48] sm:$0xff]   ;;  %v2307_v28 = vunpack.c.l.bf16 %v2347_v22  ;;  %v2308_v32 = vunpack.c.h.bf16 %v2347_v22 }
  0x18   : > { %214 = vst.msk [vmem:[#allocation2 + $0xa0] sm:$0x3] %vm195_vm1, %v2980_v0  ;;  %217 = vst.msk [vmem:[#allocation2 + $0xb8] sm:$0x3] %vm195_vm1, %v2980_v0  ;;  %v2350_v29 = vld [vmem:[%s3087_s18 + $0x50] sm:$0xff]   ;;  %v2351_v30 = vld [vmem:[%s3087_s18 + $0x58] sm:$0xff]   ;;  %v2311_v33 = vunpack.c.l.bf16 %v2348_v23  ;;  %v2312_v34 = vunpack.c.h.bf16 %v2348_v23  ;;  %v2315_v35 = vunpack.c.l.bf16 %v2349_v24  ;;  %v2316_v38 = vunpack.c.h.bf16 %v2349_v24 }
  0x19   : > { %215 = vst.msk [vmem:[#allocation2 + $0xa8] sm:$0xff] %vm192_vm0, %v2980_v0  ;;  %216 = vst.msk [vmem:[#allocation2 + $0xb0] sm:$0xff] %vm192_vm0, %v2980_v0  ;;  %v2352_v31 = vld [vmem:[%s3087_s18 + $0x60] sm:$0xff]   ;;  %2392 = vrot.lane.b32.xlu0 %v2391_v18, %s2981_s19  ;;  %v2353_v36 = vld [vmem:[%s3087_s18 + $0x68] sm:$0xff]   ;;  %v2319_v39 = vunpack.c.l.bf16 %v2350_v29  ;;  %v2320_v40 = vunpack.c.h.bf16 %v2350_v29  ;;  %v2323_v41 = vunpack.c.l.bf16 %v2351_v30  ;;  %v2324_v42 = vunpack.c.h.bf16 %v2351_v30 }
  0x1a   : > { %218 = vst.msk [vmem:[#allocation2 + $0xc0] sm:$0xff] %vm192_vm0, %v2980_v0  ;;  %219 = vst.msk [vmem:[#allocation2 + $0xc8] sm:$0xff] %vm192_vm0, %v2980_v0  ;;  %v2354_v37 = vld [vmem:[%s3087_s18 + $0x70] sm:$0xff]   ;;  %v2327_v43 = vunpack.c.l.bf16 %v2352_v31  ;;  %v2328_v44 = vunpack.c.h.bf16 %v2352_v31  ;;  %v2331_v45 = vunpack.c.l.bf16 %v2353_v36  ;;  %v2332_v46 = vunpack.c.h.bf16 %v2353_v36  ;;  %v409_v29 = vld [vmem:[#allocation2 + $0x2] sm:$0xff] }
  0x1b   : > { %220 = vst.msk [vmem:[#allocation2 + $0xd0] sm:$0x3] %vm195_vm1, %v2980_v0  ;;  %223 = vst.msk [vmem:[#allocation2 + $0xe8] sm:$0x3] %vm195_vm1, %v2980_v0  ;;  %v2335_v47 = vunpack.c.l.bf16 %v2354_v37  ;;  %v2336_v48 = vunpack.c.h.bf16 %v2354_v37  ;;  %v410_v30 = vld [vmem:[#allocation2 + $0xa] sm:$0xff]  ;;  %v2951_v36 = vld [vmem:[%s4065_s2] sm:$0xff]  }
  0x1c   : > { %221 = vst.msk [vmem:[#allocation2 + $0xd8] sm:$0xff] %vm192_vm0, %v2980_v0  ;;  %222 = vst.msk [vmem:[#allocation2 + $0xe0] sm:$0xff] %vm192_vm0, %v2980_v0 }
  0x1d   : > { %224 = vst.msk [vmem:[#allocation2 + $0xf0] sm:$0xff] %vm192_vm0, %v2980_v0  ;;  %225 = vst.msk [vmem:[#allocation2 + $0xf8] sm:$0xff] %vm192_vm0, %v2980_v0 }
  0x1e   : > { %226 = vst.msk [vmem:[#allocation2 + $0x100] sm:$0x3] %vm195_vm1, %v2980_v0  ;;  %229 = vst.msk [vmem:[#allocation2 + $0x118] sm:$0x3] %vm195_vm1, %v2980_v0 }
  0x1f   : > { %227 = vst.msk [vmem:[#allocation2 + $0x108] sm:$0xff] %vm192_vm0, %v2980_v0  ;;  %228 = vst.msk [vmem:[#allocation2 + $0x110] sm:$0xff] %vm192_vm0, %v2980_v0 }
  0x20   : > { %230 = vst.msk [vmem:[#allocation2 + $0x120] sm:$0xff] %vm192_vm0, %v2980_v0  ;;  %231 = vst.msk [vmem:[#allocation2 + $0x128] sm:$0xff] %vm192_vm0, %v2980_v0 }
  0x21   : > { %232 = vst.msk [vmem:[#allocation2 + $0x130] sm:$0x3] %vm195_vm1, %v2980_v0  ;;  %235 = vst.msk [vmem:[#allocation2 + $0x148] sm:$0x3] %vm195_vm1, %v2980_v0 }
  0x22   : > { %233 = vst.msk [vmem:[#allocation2 + $0x138] sm:$0xff] %vm192_vm0, %v2980_v0  ;;  %234 = vst.msk [vmem:[#allocation2 + $0x140] sm:$0xff] %vm192_vm0, %v2980_v0 }
  0x23   : > { %236 = vst.msk [vmem:[#allocation2 + $0x150] sm:$0xff] %vm192_vm0, %v2980_v0  ;;  %237 = vst.msk [vmem:[#allocation2 + $0x158] sm:$0xff] %vm192_vm0, %v2980_v0 }
  0x24   : > { %238 = vst.msk [vmem:[#allocation2 + $0x160] sm:$0x3] %vm195_vm1, %v2980_v0  ;;  %241 = vst.msk [vmem:[#allocation2 + $0x178] sm:$0x3] %vm195_vm1, %v2980_v0 }
  0x25   : > { %239 = vst.msk [vmem:[#allocation2 + $0x168] sm:$0xff] %vm192_vm0, %v2980_v0  ;;  %240 = vst.msk [vmem:[#allocation2 + $0x170] sm:$0xff] %vm192_vm0, %v2980_v0 }
  0x26   : > { %242 = vst.msk [vmem:[#allocation2 + $0x180] sm:$0xff] %vm192_vm0, %v2980_v0  ;;  %243 = vst.msk [vmem:[#allocation2 + $0x188] sm:$0xff] %vm192_vm0, %v2980_v0 }
  0x27   : > { %244 = vst.msk [vmem:[#allocation2 + $0x190] sm:$0x3] %vm195_vm1, %v2980_v0  ;;  %247 = vst.msk [vmem:[#allocation2 + $0x1a8] sm:$0x3] %vm195_vm1, %v2980_v0 }
  0x28   : > { %245 = vst.msk [vmem:[#allocation2 + $0x198] sm:$0xff] %vm192_vm0, %v2980_v0  ;;  %246 = vst.msk [vmem:[#allocation2 + $0x1a0] sm:$0xff] %vm192_vm0, %v2980_v0 }
  0x29   : > { %315 = vst.msk [vmem:[#allocation2 + $0x31] sm:$0xff] %vm192_vm0, %v2283_v4  ;;  %316 = vst.msk [vmem:[#allocation2 + $0x39] sm:$0xff] %vm192_vm0, %v2284_v5 }
  0x2a   : > { %313 = vst.msk [vmem:[#allocation2 + $0x19] sm:$0xff] %vm192_vm0, %v2279_v6  ;;  %314 = vst.msk [vmem:[#allocation2 + $0x21] sm:$0xff] %vm192_vm0, %v2280_v7 }
  0x2b   : > { %317 = vst.msk [vmem:[#allocation2 + $0x49] sm:$0xff] %vm192_vm0, %v2287_v13  ;;  %318 = vst.msk [vmem:[#allocation2 + $0x51] sm:$0xff] %vm192_vm0, %v2288_v14 }
  0x2c   : > { %319 = vst.msk [vmem:[#allocation2 + $0x61] sm:$0xff] %vm192_vm0, %v2291_v15  ;;  %320 = vst.msk [vmem:[#allocation2 + $0x69] sm:$0xff] %vm192_vm0, %v2292_v16 }
  0x2d   : > { %321 = vst.msk [vmem:[#allocation2 + $0x79] sm:$0xff] %vm192_vm0, %v2295_v19  ;;  %322 = vst.msk [vmem:[#allocation2 + $0x81] sm:$0xff] %vm192_vm0, %v2296_v20 }
  0x2e   : > { %323 = vst.msk [vmem:[#allocation2 + $0x91] sm:$0xff] %vm192_vm0, %v2299_v21  ;;  %324 = vst.msk [vmem:[#allocation2 + $0x99] sm:$0xff] %vm192_vm0, %v2300_v25 }
  0x2f   : > { %325 = vst.msk [vmem:[#allocation2 + $0xa9] sm:$0xff] %vm192_vm0, %v2303_v26  ;;  %326 = vst.msk [vmem:[#allocation2 + $0xb1] sm:$0xff] %vm192_vm0, %v2304_v27 }
  0x30   : > { %327 = vst.msk [vmem:[#allocation2 + $0xc1] sm:$0xff] %vm192_vm0, %v2307_v28  ;;  %328 = vst.msk [vmem:[#allocation2 + $0xc9] sm:$0xff] %vm192_vm0, %v2308_v32  ;;  %v381_v49 = vld [vmem:[#allocation2 + $0x31] sm:$0xff]  ;;  %v382_v50 = vld [vmem:[#allocation2 + $0x39] sm:$0xff]  ;;  %v2471_v32 = vpack.i.bf16 %v410_v30, %v409_v29 }
  0x31   : > { %329 = vst.msk [vmem:[#allocation2 + $0xd9] sm:$0xff] %vm192_vm0, %v2311_v33  ;;  %330 = vst.msk [vmem:[#allocation2 + $0xe1] sm:$0xff] %vm192_vm0, %v2312_v34  ;;  %v379_v51 = vld [vmem:[#allocation2 + $0x19] sm:$0xff]  ;;  %v3135_v52 = vpack.i.bf16 %v382_v50, %v381_v49  ;;  %v380_v53 = vld [vmem:[#allocation2 + $0x21] sm:$0xff] }
  0x32   : > { %331 = vst.msk [vmem:[#allocation2 + $0xf1] sm:$0xff] %vm192_vm0, %v2315_v35  ;;  %332 = vst.msk [vmem:[#allocation2 + $0xf9] sm:$0xff] %vm192_vm0, %v2316_v38  ;;  %v383_v54 = vld [vmem:[#allocation2 + $0x49] sm:$0xff]  ;;  %v384_v55 = vld [vmem:[#allocation2 + $0x51] sm:$0xff]  ;;  %v3137_v56 = vpack.i.bf16 %v380_v53, %v379_v51  ;;  %v2982_v35 = vmov 0  }
  0x33   : > { %333 = vst.msk [vmem:[#allocation2 + $0x109] sm:$0xff] %vm192_vm0, %v2319_v39  ;;  %334 = vst.msk [vmem:[#allocation2 + $0x111] sm:$0xff] %vm192_vm0, %v2320_v40  ;;  %v385_v57 = vld [vmem:[#allocation2 + $0x61] sm:$0xff]  ;;  %v386_v58 = vld [vmem:[#allocation2 + $0x69] sm:$0xff]  ;;  %2402 = vrot.lane.b32.xlu1 %v3135_v52, %s2981_s19  ;;  %v3141_v59 = vpack.i.bf16 %v384_v55, %v383_v54  ;;  %1912 = vmatprep.subr.bf16.mxu0 %v2982_v35 }
  0x34   : > { %335 = vst.msk [vmem:[#allocation2 + $0x121] sm:$0xff] %vm192_vm0, %v2323_v41  ;;  %336 = vst.msk [vmem:[#allocation2 + $0x129] sm:$0xff] %vm192_vm0, %v2324_v42  ;;  %2397 = vrot.lane.b32.xlu0 %v3137_v56, %s2981_s19  ;;  %v3145_v60 = vpack.i.bf16 %v386_v58, %v385_v57  ;;  %v387_v61 = vld [vmem:[#allocation2 + $0x79] sm:$0xff]  ;;  %v388_v62 = vld [vmem:[#allocation2 + $0x81] sm:$0xff]  ;;  %2356 = vmatprep.subr.bf16.mxu1 %v2982_v35 }
  0x35   : > { %337 = vst.msk [vmem:[#allocation2 + $0x139] sm:$0xff] %vm192_vm0, %v2327_v43  ;;  %338 = vst.msk [vmem:[#allocation2 + $0x141] sm:$0xff] %vm192_vm0, %v2328_v44  ;;  %v389_v63 = vld [vmem:[#allocation2 + $0x91] sm:$0xff]  ;;  %v390_v0 = vld [vmem:[#allocation2 + $0x99] sm:$0xff]  ;;  %v3149_v1 = vpack.i.bf16 %v388_v62, %v387_v61  ;;  %1913 = vmatpush1.bf16.msra.mxu0 %v2951_v36  ;;  %2365 = vmatpush1.bf16.msra.mxu1 %v2951_v36 }
  0x36   : > { %339 = vst.msk [vmem:[#allocation2 + $0x151] sm:$0xff] %vm192_vm0, %v2331_v45  ;;  %340 = vst.msk [vmem:[#allocation2 + $0x159] sm:$0xff] %vm192_vm0, %v2332_v46  ;;  %v3153_v2 = vpack.i.bf16 %v390_v0, %v389_v63  ;;  %v391_v3 = vld [vmem:[#allocation2 + $0xa9] sm:$0xff]  ;;  %v392_v4 = vld [vmem:[#allocation2 + $0xb1] sm:$0xff]  ;;  %1914 = vmatprep.subr.bf16.mxu0 %v2982_v35  ;;  %2357 = vmatprep.subr.bf16.mxu1 %v2982_v35 }
  0x37   : > { %341 = vst.msk [vmem:[#allocation2 + $0x169] sm:$0xff] %vm192_vm0, %v2335_v47  ;;  %342 = vst.msk [vmem:[#allocation2 + $0x171] sm:$0xff] %vm192_vm0, %v2336_v48  ;;  %2407 = vrot.lane.b32.xlu1 %v3141_v59, %s2981_s19  ;;  %v393_v5 = vld [vmem:[#allocation2 + $0xc1] sm:$0xff]  ;;  %v394_v6 = vld [vmem:[#allocation2 + $0xc9] sm:$0xff]  ;;  %v2426_v7 = vpack.i.bf16 %v392_v4, %v391_v3 }
  0x38   : > { %2412 = vrot.lane.b32.xlu0 %v3145_v60, %s2981_s19  ;;  %v2431_v8 = vpack.i.bf16 %v394_v6, %v393_v5  ;;  %v395_v9 = vld [vmem:[#allocation2 + $0xd9] sm:$0xff]  ;;  %v396_v10 = vld [vmem:[#allocation2 + $0xe1] sm:$0xff]  ;;  %v415_v42 = vld [vmem:[#allocation2 + $0x4a] sm:$0xff] }
  0x39   : > { %v397_v11 = vld [vmem:[#allocation2 + $0xf1] sm:$0xff]  ;;  %v398_v12 = vld [vmem:[#allocation2 + $0xf9] sm:$0xff]  ;;  %v3160_v13 = vpack.i.bf16 %v396_v10, %v395_v9  ;;  %v412_v34 = vld [vmem:[#allocation2 + $0x22] sm:$0xff] }
  0x3a   : > { %v3163_v14 = vpack.i.bf16 %v398_v12, %v397_v11  ;;  %v399_v15 = vld [vmem:[#allocation2 + $0x109] sm:$0xff]  ;;  %v400_v16 = vld [vmem:[#allocation2 + $0x111] sm:$0xff]  ;;  %v411_v33 = vld [vmem:[#allocation2 + $0x1a] sm:$0xff] }
  0x3b   : > { %2417 = vrot.lane.b32.xlu1 %v3149_v1, %s2981_s19  ;;  %v401_v17 = vld [vmem:[#allocation2 + $0x121] sm:$0xff]  ;;  %v402_v18 = vld [vmem:[#allocation2 + $0x129] sm:$0xff]  ;;  %v3167_v19 = vpack.i.bf16 %v400_v16, %v399_v15  ;;  %v413_v37 = vld [vmem:[#allocation2 + $0x32] sm:$0xff]  ;;  %v3191_v39 = vpack.i.bf16 %v412_v34, %v411_v33 }
  0x3c   : > { %2422 = vrot.lane.b32.xlu0 %v3153_v2, %s2981_s19  ;;  %v3171_v20 = vpack.i.bf16 %v402_v18, %v401_v17  ;;  %v403_v21 = vld [vmem:[#allocation2 + $0x139] sm:$0xff]  ;;  %v404_v22 = vld [vmem:[#allocation2 + $0x141] sm:$0xff]  ;;  %v418_v45 = vld [vmem:[#allocation2 + $0x6a] sm:$0xff] }
  0x3d   : > { %v405_v23 = vld [vmem:[#allocation2 + $0x151] sm:$0xff]  ;;  %v406_v24 = vld [vmem:[#allocation2 + $0x159] sm:$0xff]  ;;  %v3175_v25 = vpack.i.bf16 %v404_v22, %v403_v21  ;;  %v2952_v40 = vld [vmem:[%s4065_s2 + $0x8] sm:$0xff]  }
  0x3e   : > { %v3179_v26 = vpack.i.bf16 %v406_v24, %v405_v23  ;;  %v407_v27 = vld [vmem:[#allocation2 + $0x169] sm:$0xff]  ;;  %v408_v28 = vld [vmem:[#allocation2 + $0x171] sm:$0xff]  ;;  %v414_v38 = vld [vmem:[#allocation2 + $0x3a] sm:$0xff]  ;;  %1915 = vmatpush1.bf16.msra.mxu0 %v2952_v40  ;;  %2366 = vmatpush1.bf16.msra.mxu1 %v2952_v40 }
  0x3f   : > { %2427 = vrot.lane.b32.xlu1 %v2426_v7, %s2981_s19  ;;  %v2466_v31 = vpack.i.bf16 %v408_v28, %v407_v27  ;;  %v3198_v41 = vpack.i.bf16 %v414_v38, %v413_v37  ;;  %v416_v43 = vld [vmem:[#allocation2 + $0x52] sm:$0xff]  ;;  %v417_v44 = vld [vmem:[#allocation2 + $0x62] sm:$0xff]  ;;  %1916 = vmatprep.subr.bf16.mxu0 %v2982_v35  ;;  %v419_v49 = vld [vmem:[#allocation2 + $0x7a] sm:$0xff] }
  0x40   : > { %2432 = vrot.lane.b32.xlu0 %v2431_v8, %s2981_s19  ;;  %v3203_v46 = vpack.i.bf16 %v416_v43, %v415_v42  ;;  %v2953_v47 = vld [vmem:[%s4065_s2 + $0x10] sm:$0xff]   ;;  %v3211_v48 = vpack.i.bf16 %v418_v45, %v417_v44  ;;  %v420_v50 = vld [vmem:[#allocation2 + $0x82] sm:$0xff]  ;;  %2358 = vmatprep.subr.bf16.mxu1 %v2982_v35  ;;  %v422_v53 = vld [vmem:[#allocation2 + $0x9a] sm:$0xff] }
  0x41   : > { %v421_v51 = vld [vmem:[#allocation2 + $0x92] sm:$0xff]  ;;  %v3216_v54 = vpack.i.bf16 %v420_v50, %v419_v49  ;;  %v423_v58 = vld [vmem:[#allocation2 + $0xaa] sm:$0xff]  ;;  %v425_v62 = vld [vmem:[#allocation2 + $0xc2] sm:$0xff] }
  0x42   : > { %1917 = vmatpush1.bf16.msra.mxu0 %v2953_v47  ;;  %2367 = vmatpush1.bf16.msra.mxu1 %v2953_v47  ;;  %v2954_v55 = vld [vmem:[%s4065_s2 + $0x18] sm:$0xff]   ;;  %v3224_v57 = vpack.i.bf16 %v422_v53, %v421_v51  ;;  %v426_v63 = vld [vmem:[#allocation2 + $0xca] sm:$0xff]  ;;  %v2955_v3 = vld [vmem:[%s4065_s2 + $0x20] sm:$0xff]  }
  0x43   : > { %2437 = vrot.lane.b32.xlu1 %v3160_v13, %s2981_s19  ;;  %1918 = vmatprep.subr.bf16.mxu0 %v2982_v35  ;;  %v424_v61 = vld [vmem:[#allocation2 + $0xb2] sm:$0xff]  ;;  %v2511_v4 = vpack.i.bf16 %v426_v63, %v425_v62  ;;  %v427_v5 = vld [vmem:[#allocation2 + $0xda] sm:$0xff]  ;;  %v428_v6 = vld [vmem:[#allocation2 + $0xe2] sm:$0xff] }
  0x44   : > { %2442 = vrot.lane.b32.xlu0 %v3163_v14, %s2981_s19  ;;  %2359 = vmatprep.subr.bf16.mxu1 %v2982_v35  ;;  %v2506_v0 = vpack.i.bf16 %v424_v61, %v423_v58  ;;  %v429_v7 = vld [vmem:[#allocation2 + $0xf2] sm:$0xff]  ;;  %v430_v8 = vld [vmem:[#allocation2 + $0xfa] sm:$0xff]  ;;  %v2516_v9 = vpack.i.bf16 %v428_v6, %v427_v5  ;;  %v2956_v10 = vld [vmem:[%s4065_s2 + $0x28] sm:$0xff]  }
  0x45   : > { %v3242_v11 = vpack.i.bf16 %v430_v8, %v429_v7  ;;  %v431_v12 = vld [vmem:[#allocation2 + $0x10a] sm:$0xff]  ;;  %v432_v15 = vld [vmem:[#allocation2 + $0x112] sm:$0xff]  ;;  %v3247_v17 = vld [vmem:[#allocation2 + $0x20] sm:$0xff] }
  0x46   : > { %1919 = vmatpush1.bf16.msra.mxu0 %v2954_v55  ;;  %2368 = vmatpush1.bf16.msra.mxu1 %v2954_v55  ;;  %v3245_v16 = vld [vmem:[#allocation2 + $0x18] sm:$0xff]  ;;  %v3250_v18 = vpack.i.bf16 %v432_v15, %v431_v12  ;;  %v2957_v21 = vld [vmem:[%s4065_s2 + $0x30] sm:$0xff]   ;;  %v3262_v24 = vld [vmem:[#allocation2 + $0xe0] sm:$0xff] }
  0x47   : > { %2447 = vrot.lane.b32.xlu1 %v3167_v19, %s2981_s19  ;;  %1920 = vmatprep.subr.bf16.mxu0 %v2982_v35  ;;  %v2531_v22 = vpack.i.bf16 %v3247_v17, %v3245_v16  ;;  %v3260_v23 = vld [vmem:[#allocation2 + $0xd8] sm:$0xff]  ;;  %v3286_v36 = vld [vmem:[#allocation2 + $0x30] sm:$0xff]  ;;  %v3325_v49 = vld [vmem:[#allocation2 + $0x108] sm:$0xff] }
  0x48   : > { %2452 = vrot.lane.b32.xlu0 %v3171_v20, %s2981_s19  ;;  %2360 = vmatprep.subr.bf16.mxu1 %v2982_v35  ;;  %v2536_v27 = vpack.i.bf16 %v3262_v24, %v3260_v23  ;;  %v2958_v28 = vld [vmem:[%s4065_s2 + $0x38] sm:$0xff]   ;;  %v3292_v40 = vld [vmem:[#allocation2 + $0xf0] sm:$0xff]  ;;  %v3353_v53 = vld [vmem:[#allocation2 + $0x120] sm:$0xff] }
  0x49   : > { %v2355_v29 = vld [vmem:[%s3087_s18 + $0x78] sm:$0xff]   ;;  %s2988_s18 = smov 112   ;;  %v3317_v45 = vld [vmem:[#allocation2 + $0x50] sm:$0xff]  ;;  %4088 = vst [vmem:[#allocation5_spill] sm:$0xff] %v3353_v53  ;;  %v3355_v55 = vld [vmem:[#allocation2 + $0x128] sm:$0xff] }
  0x4a   : > { %1921 = vmatpush1.bf16.msra.mxu0 %v2955_v3  ;;  %2369 = vmatpush1.bf16.msra.mxu1 %v2955_v3  ;;  %v2339_v30 = vunpack.c.l.bf16 %v2355_v29  ;;  %v602_v33 = vld [vmem:[#allocation2 + $0x32] sm:$0xff]  ;;  %v603_v34 = vld [vmem:[#allocation2 + $0x3a] sm:$0xff]  ;;  %4089 = vst [vmem:[#allocation6_spill] sm:$0xff] %v3355_v55  ;;  %v527_v61 = vld [vmem:[#allocation2 + $0x122] sm:$0xff] }
  0x4b   : > { %2457 = vrot.lane.b32.xlu1 %v3175_v25, %s2981_s19  ;;  %1922 = vmatprep.subr.bf16.mxu0 %v2982_v35  ;;  %v3288_v37 = vld [vmem:[#allocation2 + $0x38] sm:$0xff]  ;;  %v1761_v38 = vpack.c.bf16 %v603_v34, %v602_v33  ;;  %v3327_v50 = vld [vmem:[#allocation2 + $0x110] sm:$0xff]  ;;  %v356_v3 = vld [vmem:[#allocation2 + $0x80] sm:$0xff] }
  0x4c   : > { %2462 = vrot.lane.b32.xlu0 %v3179_v26, %s2981_s19  ;;  %2361 = vmatprep.subr.bf16.mxu1 %v2982_v35  ;;  %343 = vst.msk [vmem:[#allocation2 + $0x181] sm:$0xff] %vm192_vm0, %v2339_v30  ;;  %v618_v42 = vld [vmem:[#allocation2 + $0xf2] sm:$0xff]  ;;  %v619_v43 = vld [vmem:[#allocation2 + $0xfa] sm:$0xff]  ;;  %v528_v62 = vld [vmem:[#allocation2 + $0x12a] sm:$0xff] }
  0x4d   : > { %2256 = vmatprep.mubr.msk.bf16.mxu0 %vm192_vm0, %v1761_v38  ;;  %v1777_v44 = vpack.c.bf16 %v619_v43, %v618_v42  ;;  %v2706_v5 = vpack.i.bf16 %v528_v62, %v527_v61  ;;  %v560_v7 = vld [vmem:[#allocation2 + $0x138] sm:$0xff]  ;;  %v561_v8 = vld [vmem:[#allocation2 + $0x140] sm:$0xff]  ;;  %v373_v30 = vld [vmem:[#allocation2 + $0x150] sm:$0xff] }
  0x4e   : > { %1923 = vmatpush1.bf16.msra.mxu0 %v2956_v10  ;;  %2370 = vmatpush1.bf16.msra.mxu1 %v2956_v10  ;;  %v2716_v10 = vpack.i.bf16 %v561_v8, %v560_v7  ;;  %v357_v33 = vld [vmem:[#allocation2 + $0x90] sm:$0xff]  ;;  %v358_v34 = vld [vmem:[#allocation2 + $0x98] sm:$0xff] }
  0x4f   : > { %2467 = vrot.lane.b32.xlu1 %v2466_v31, %s2981_s19  ;;  %1924 = vmatprep.subr.bf16.mxu0 %v2982_v35  ;;  %v2340_v31 = vunpack.c.h.bf16 %v2355_v29  ;;  %v3454_v62 = vld [vmem:[#allocation2 + $0x15a] sm:$0xff]  ;;  %s2275_s19 = sshll.u32 %s4125_s13, 8 }
  0x50   : > { %2472 = vrot.lane.b32.xlu0 %v2471_v32, %s2983_s24  ;;  %2362 = vmatprep.subr.bf16.mxu1 %v2982_v35  ;;  %v2959_v32 = vld [vmem:[%s4065_s2 + $0x40] sm:$0xff]   ;;  %s3957_s22 = scalar_lea.vmem %s4064_s1, %s2275_s19  ;;  %s3963_s25 = scalar_lea.vmem %s4066_s3, %s2275_s19 }
  0x51   : > { %344 = vst.msk [vmem:[#allocation2 + $0x189] sm:$0xff] %vm192_vm0, %v2340_v31  ;;  %2264 = vmatprep.mubr.msk.bf16.mxu1 %vm192_vm0, %v1777_v44  ;;  %v374_v31 = vld [vmem:[#allocation2 + $0x158] sm:$0xff] }
  0x52   : > { %1925 = vmatpush1.bf16.msra.mxu0 %v2957_v21  ;;  %2371 = vmatpush1.bf16.msra.mxu1 %v2957_v21  ;;  %v2771_v42 = vpack.i.bf16 %v374_v31, %v373_v30  ;;  %v376_v30 = vld [vmem:[#allocation2 + $0x170] sm:$0xff] }
  0x53   : > { %2477 = vrot.lane.b32.xlu1 %v3191_v39, %s2983_s24  ;;  %1926 = vmatprep.subr.bf16.mxu0 %v2982_v35 }
  0x54   : > { %2482 = vrot.lane.b32.xlu0 %v3198_v41, %s2983_s24  ;;  %2363 = vmatprep.subr.bf16.mxu1 %v2982_v35 }
  0x56   : > { %1927 = vmatpush1.bf16.msra.mxu0 %v2958_v28  ;;  %2372 = vmatpush1.bf16.msra.mxu1 %v2958_v28 }
  0x57   : > { %2487 = vrot.lane.b32.xlu1 %v3203_v46, %s2983_s24  ;;  %1928 = vmatprep.subr.bf16.mxu0 %v2982_v35 }
  0x58   : > { %2492 = vrot.lane.b32.xlu0 %v3211_v48, %s2983_s24  ;;  %2364 = vmatprep.subr.bf16.mxu1 %v2982_v35  ;;  %v3299_v35 = vld [vmem:[#allocation2 + $0xf8] sm:$0xff] }
  0x5a   : > { %1929 = vmatpush1.bf16.msra.mxu0 %v2959_v32  ;;  %2373 = vmatpush1.bf16.msra.mxu1 %v2959_v32 }
  0x5b   : > { %2497 = vrot.lane.b32.xlu1 %v3216_v54, %s2983_s24 }
  0x5c   : > { %2502 = vrot.lane.b32.xlu0 %v3224_v57, %s2983_s24 }
  0x5f   : > { %2507 = vrot.lane.b32.xlu1 %v2506_v0, %s2983_s24  ;;  %v355_v0 = vld [vmem:[#allocation2 + $0x78] sm:$0xff] }
  0x60   : > { %2512 = vrot.lane.b32.xlu0 %v2511_v4, %s2983_s24  ;;  %v2711_v6 = vpack.i.bf16 %v356_v3, %v355_v0 }
  0x63   : > { %2517 = vrot.lane.b32.xlu1 %v2516_v9, %s2983_s24 }
  0x64   : > { %2522 = vrot.lane.b32.xlu0 %v3242_v11, %s2983_s24 }
  0x67   : > { %2527 = vrot.lane.b32.xlu1 %v3250_v18, %s2983_s24 }
  0x68   : > { %2532 = vrot.lane.b32.xlu0 %v2531_v22, %s2984_s10  ;;  %v529_v22 = vld [vmem:[#allocation2 + $0x13a] sm:$0xff] }
  0x6b   : > { %2537 = vrot.lane.b32.xlu1 %v2536_v27, %s2984_s10  ;;  %v530_v27 = vld [vmem:[#allocation2 + $0x142] sm:$0xff] }
  0x6c   : > { %2542 = vrot.lane.b32.xlu0 %v3137_v56, %s2985_s15  ;;  %v2561_v56 = vpack.i.bf16 %v3288_v37, %v3286_v36  ;;  %v2761_v29 = vpack.i.bf16 %v530_v27, %v529_v22  ;;  %v580_v22 = vld [vmem:[#allocation2 + $0xa9] sm:$0xff]  ;;  %v581_v27 = vld [vmem:[#allocation2 + $0xb1] sm:$0xff] }
  0x6f   : > { %2547 = vrot.lane.b32.xlu1 %v3160_v13, %s2985_s15  ;;  %v2566_v13 = vpack.i.bf16 %v3299_v35, %v3292_v40 }
  0x70   : > { %2552 = vrot.lane.b32.xlu0 %v3191_v39, %s2986_s16  ;;  %v3315_v39 = vld [vmem:[#allocation2 + $0x48] sm:$0xff] }
  0x71   : > { %v2611_v47 = vpack.i.bf16 %v3317_v45, %v3315_v39 }
  0x73   : > { %2557 = vrot.lane.b32.xlu1 %v2516_v9, %s2986_s16 }
  0x74   : > { %2562 = vrot.lane.b32.xlu0 %v2561_v56, %s2987_s17 }
  0x77   : > { %2567 = vrot.lane.b32.xlu1 %v2566_v13, %s2987_s17 }
  0x78   : > { %2572 = vrot.lane.b32.xlu0 %v3135_v52, %s2988_s18 }
  0x7b   : > { %2577 = vrot.lane.b32.xlu1 %v3163_v14, %s2988_s18 }
  0x7c   : > { %2582 = vrot.lane.b32.xlu0 %v2561_v56, %s2984_s10  ;;  %v2766_v56 = vpack.i.bf16 %v358_v34, %v357_v33  ;;  %v597_v34 = vld [vmem:[#allocation2 + $0x171] sm:$0xff] }
  0x7f   : > { %2587 = vrot.lane.b32.xlu1 %v2566_v13, %s2984_s10  ;;  %v483_v13 = vld [vmem:[#allocation2 + $0x91] sm:$0xff] }
  0x80   : > { %2592 = vrot.lane.b32.xlu0 %v3135_v52, %s2985_s15  ;;  %v2616_v52 = vpack.i.bf16 %v3327_v50, %v3325_v49 }
  0x83   : > { %2597 = vrot.lane.b32.xlu1 %v3163_v14, %s2985_s15  ;;  %v3343_v14 = vld [vmem:[#allocation2 + $0x60] sm:$0xff] }
  0x84   : > { %2602 = vrot.lane.b32.xlu0 %v3198_v41, %s2986_s16  ;;  %4086 = vst [vmem:[#allocation3_spill] sm:$0xff] %v3343_v14  ;;  %v3345_v41 = vld [vmem:[#allocation2 + $0x68] sm:$0xff] }
  0x85   : > { %4087 = vst [vmem:[#allocation4_spill] sm:$0xff] %v3345_v41  ;;  %v2661_v51 = vpack.i.bf16 %v3345_v41, %v3343_v14 }
  0x87   : > { %2607 = vrot.lane.b32.xlu1 %v3242_v11, %s2986_s16 }
  0x88   : > { %2612 = vrot.lane.b32.xlu0 %v2611_v47, %s2987_s17 }
  0x8b   : > { %2617 = vrot.lane.b32.xlu1 %v2616_v52, %s2987_s17 }
  0x8c   : > { %2622 = vrot.lane.b32.xlu0 %v3141_v59, %s2988_s18 }
  0x8f   : > { %2627 = vrot.lane.b32.xlu1 %v3167_v19, %s2988_s18 }
  0x90   : > { %2632 = vrot.lane.b32.xlu0 %v2611_v47, %s2984_s10  ;;  %v484_v47 = vld [vmem:[#allocation2 + $0x99] sm:$0xff] }
  0x93   : > { %2637 = vrot.lane.b32.xlu1 %v2616_v52, %s2984_s10 }
  0x94   : > { %2642 = vrot.lane.b32.xlu0 %v3141_v59, %s2985_s15  ;;  %v2666_v59 = vpack.i.bf16 %v3355_v55, %v3353_v53 }
  0x97   : > { %2647 = vrot.lane.b32.xlu1 %v3167_v19, %s2985_s15  ;;  %v3365_v19 = vpop.permute.xlu0 %2392 }
  0x98   : > { %2652 = vrot.lane.b32.xlu0 %v3203_v46, %s2986_s16 }
  0x9b   : > { %2657 = vrot.lane.b32.xlu1 %v3250_v18, %s2986_s16 }
  0x9c   : > { %2662 = vrot.lane.b32.xlu0 %v2661_v51, %s2987_s17 }
  0x9f   : > { %2667 = vrot.lane.b32.xlu1 %v2666_v59, %s2987_s17 }
  0xa0   : > { %2672 = vrot.lane.b32.xlu0 %v3145_v60, %s2988_s18 }
  0xa3   : > { %2677 = vrot.lane.b32.xlu1 %v3171_v20, %s2988_s18 }
  0xa4   : > { %2682 = vrot.lane.b32.xlu0 %v2661_v51, %s2984_s10  ;;  %v2801_v51 = vpack.i.bf16 %v484_v47, %v483_v13  ;;  %v3483_v13 = vld [vmem:[#allocation2 + $0xaa] sm:$0xff] }
  0xa5   : > { %v3370_v46 = vpop.permute.xlu1 %2402 }
  0xa6   : > { %v3372_v58 = vpop.permute.xlu0 %2397 }
  0xa7   : > { %2687 = vrot.lane.b32.xlu1 %v2666_v59, %s2984_s10 }
  0xa8   : > { %2692 = vrot.lane.b32.xlu0 %v3145_v60, %s2985_s15 }
  0xa9   : > { %v3377_v63 = vpop.permute.xlu1 %2407 }
  0xaa   : > { %v3379_v4 = vpop.permute.xlu0 %2412 }
  0xab   : > { %4090 = vst [vmem:[#allocation7_spill] sm:$0xff] %v3379_v4  ;;  %2697 = vrot.lane.b32.xlu1 %v3171_v20, %s2985_s15 }
  0xac   : > { %2702 = vrot.lane.b32.xlu0 %v3211_v48, %s2986_s16 }
  0xad   : > { %v3385_v9 = vpop.permute.xlu1 %2417 }
  0xae   : > { %4091 = vst [vmem:[#allocation8_spill] sm:$0xff] %v3385_v9  ;;  %v3387_v60 = vpop.permute.xlu0 %2422 }
  0xaf   : > { %4092 = vst [vmem:[#allocation9_spill] sm:$0xff] %v3387_v60  ;;  %2707 = vrot.lane.b32.xlu1 %v2706_v5, %s2986_s16 }
  0xb0   : > { %2712 = vrot.lane.b32.xlu0 %v2711_v6, %s2987_s17 }
  0xb1   : > { %v3391_v11 = vpop.permute.xlu1 %2427 }
  0xb2   : > { %4093 = vst [vmem:[#allocation10_spill] sm:$0xff] %v3391_v11  ;;  %v3393_v12 = vpop.permute.xlu0 %2432 }
  0xb3   : > { %2717 = vrot.lane.b32.xlu1 %v2716_v10, %s2987_s17 }
  0xb4   : > { %2722 = vrot.lane.b32.xlu0 %v3149_v1, %s2988_s18 }
  0xb5   : > { %v3398_v20 = vpop.permute.xlu1 %2437 }
  0xb6   : > { %v3400_v48 = vpop.permute.xlu0 %2442 }
  0xb7   : > { %2727 = vrot.lane.b32.xlu1 %v3175_v25, %s2988_s18 }
  0xb8   : > { %2732 = vrot.lane.b32.xlu0 %v2706_v5, %s2983_s24  ;;  %v359_v5 = vld [vmem:[#allocation2 + $0xa8] sm:$0xff] }
  0xb9   : > { %v3405_v15 = vpop.permute.xlu1 %2447 }
  0xba   : > { %v3407_v18 = vpop.permute.xlu0 %2452 }
  0xbb   : > { %4094 = vst [vmem:[#allocation11_spill] sm:$0xff] %v3407_v18  ;;  %2737 = vrot.lane.b32.xlu1 %v2711_v6, %s2984_s10  ;;  %v360_v6 = vld [vmem:[#allocation2 + $0xb0] sm:$0xff] }
  0xbc   : > { %2742 = vrot.lane.b32.xlu0 %v2716_v10, %s2984_s10  ;;  %v3466_v8 = vpack.i.bf16 %v360_v6, %v359_v5  ;;  %v3491_v5 = vld [vmem:[#allocation2 + $0x16a] sm:$0xff]  ;;  %v3493_v6 = vld [vmem:[#allocation2 + $0x172] sm:$0xff] }
  0xbd   : > { %v3411_v21 = vpop.permute.xlu1 %2457  ;;  %4102 = vst [vmem:[#allocation19_spill] sm:$0xff] %v3491_v5  ;;  %4103 = vst [vmem:[#allocation20_spill] sm:$0xff] %v3493_v6 }
  0xbe   : > { %4095 = vst [vmem:[#allocation12_spill] sm:$0xff] %v3411_v21  ;;  %v3413_v28 = vpop.permute.xlu0 %2462 }
  0xbf   : > { %4096 = vst [vmem:[#allocation13_spill] sm:$0xff] %v3413_v28  ;;  %2747 = vrot.lane.b32.xlu1 %v3149_v1, %s2985_s15  ;;  %v3510_v28 = vld [vmem:[#allocation2 + $0xc0] sm:$0xff] }
  0xc0   : > { %2752 = vrot.lane.b32.xlu0 %v3175_v25, %s2985_s15 }
  0xc1   : > { %v3419_v32 = vpop.permute.xlu1 %2467 }
  0xc2   : > { %4097 = vst [vmem:[#allocation14_spill] sm:$0xff] %v3419_v32  ;;  %v3421_v38 = vpop.permute.xlu0 %2472 }
  0xc3   : > { %2757 = vrot.lane.b32.xlu1 %v3216_v54, %s2986_s16  ;;  %v2475_v32 = vunpack.i.h.bf16 %v3421_v38  ;;  %v2474_v60 = vunpack.i.l.bf16 %v3421_v38 }
  0xc4   : > { %2762 = vrot.lane.b32.xlu0 %v2761_v29, %s2986_s16 }
  0xc5   : > { %v3426_v1 = vpop.permute.xlu1 %2477 }
  0xc6   : > { %v3428_v43 = vpop.permute.xlu0 %2482 }
  0xc7   : > { %2767 = vrot.lane.b32.xlu1 %v2766_v56, %s2987_s17 }
  0xc8   : > { %2772 = vrot.lane.b32.xlu0 %v2771_v42, %s2987_s17 }
  0xc9   : > { %v3432_v25 = vpop.permute.xlu1 %2487 }
  0xca   : > { %v3434_v44 = vpop.permute.xlu0 %2492 }
  0xcb   : > { %4098 = vst [vmem:[#allocation15_spill] sm:$0xff] %v3434_v44  ;;  %2777 = vrot.lane.b32.xlu1 %v3153_v2, %s2988_s18  ;;  %v3452_v2 = vld [vmem:[#allocation2 + $0x152] sm:$0xff] }
  0xcc   : > { %2782 = vrot.lane.b32.xlu0 %v3179_v26, %s2988_s18  ;;  %v2816_v7 = vpack.i.bf16 %v3454_v62, %v3452_v2 }
  0xcd   : > { %v3440_v54 = vpop.permute.xlu1 %2497 }
  0xce   : > { %4099 = vst [vmem:[#allocation16_spill] sm:$0xff] %v3440_v54  ;;  %v3442_v52 = vpop.permute.xlu0 %2502 }
  0xcf   : > { %4100 = vst [vmem:[#allocation17_spill] sm:$0xff] %v3442_v52  ;;  %2787 = vrot.lane.b32.xlu1 %v2761_v29, %s2983_s24  ;;  %v375_v29 = vld [vmem:[#allocation2 + $0x168] sm:$0xff] }
  0xd0   : > { %2792 = vrot.lane.b32.xlu0 %v2766_v56, %s2984_s10  ;;  %v3473_v33 = vpack.i.bf16 %v376_v30, %v375_v29  ;;  %v2394_v29 = vunpack.i.l.bf16 %v3365_v19  ;;  %v345_v30 = vld [vmem:[#allocation2] sm:$0xff]  ;;  %v3506_v52 = vld [vmem:[#allocation2 + $0x4a] sm:$0xff] }
  0xd1   : > { %v3446_v59 = vpop.permute.xlu1 %2507 }
  0xd2   : > { %4101 = vst [vmem:[#allocation18_spill] sm:$0xff] %v3446_v59  ;;  %v3448_v61 = vpop.permute.xlu0 %2512  ;;  %v2435_v59 = vunpack.i.h.bf16 %v3393_v12  ;;  %v1530_v21 = vsel %vm192_vm0, %v345_v30, %v2394_v29 }
  0xd3   : > { %2797 = vrot.lane.b32.xlu1 %v2771_v42, %s2984_s10  ;;  %v2515_v9 = vunpack.i.h.bf16 %v3448_v61  ;;  %v2514_v53 = vunpack.i.l.bf16 %v3448_v61 }
  0xd4   : > { %2802 = vrot.lane.b32.xlu0 %v2801_v51, %s2985_s15  ;;  %v3489_v51 = vld [vmem:[#allocation2 + $0xb2] sm:$0xff] }
  0xd5   : > { %v3456_v0 = vpop.permute.xlu1 %2517 }
  0xd6   : > { %v3458_v3 = vpop.permute.xlu0 %2522 }
  0xd7   : > { %2807 = vrot.lane.b32.xlu1 %v3179_v26, %s2985_s15  ;;  %v3477_v26 = vpack.i.bf16 %v581_v27, %v580_v22  ;;  %v346_v22 = vld [vmem:[#allocation2 + $0x8] sm:$0xff]  ;;  %v2395_v27 = vunpack.i.h.bf16 %v3365_v19  ;;  %v3508_v19 = vld [vmem:[#allocation2 + $0x52] sm:$0xff] }
  0xd8   : > { %2812 = vrot.lane.b32.xlu0 %v3224_v57, %s2986_s16  ;;  %v596_v57 = vld [vmem:[#allocation2 + $0x169] sm:$0xff] }
  0xd9   : > { %v3468_v10 = vpop.permute.xlu1 %2527  ;;  %v3487_v47 = vpack.i.bf16 %v597_v34, %v596_v57  ;;  %v3500_v57 = vld [vmem:[#allocation2 + $0xc8] sm:$0xff]  ;;  %v2434_v34 = vunpack.i.l.bf16 %v3393_v12  ;;  %v3517_v12 = vpack.i.bf16 %v3493_v6, %v3491_v5  ;;  %v1531_v38 = vsel %vm192_vm0, %v346_v22, %v2395_v27 }
  0xda   : > { %v3470_v31 = vpop.permute.xlu0 %2532  ;;  %v1547_v6 = vsel %vm192_vm0, %v3500_v57, %v2435_v59  ;;  %v1563_v27 = vsel %vm1562_vm2, %v1530_v21, %v2474_v60 }
  0xdb   : > { %2817 = vrot.lane.b32.xlu1 %v2816_v7, %s2986_s16  ;;  %v2535_v55 = vunpack.i.h.bf16 %v3470_v31  ;;  %v2534_v14 = vunpack.i.l.bf16 %v3470_v31  ;;  %v1546_v61 = vsel %vm192_vm0, %v3510_v28, %v2434_v34  ;;  %v1564_v31 = vsel %vm1562_vm2, %v1531_v38, %v2475_v32 }
  0xdc   : > { %2822 = vrot.lane.b32.xlu0 %v3466_v8, %s2987_s17  ;;  %v1579_v18 = vsel %vm1562_vm2, %v1546_v61, %v2514_v53  ;;  %v1580_v5 = vsel %vm1562_vm2, %v1547_v6, %v2515_v9 }
  0xdd   : > { %v3479_v56 = vpop.permute.xlu1 %2537  ;;  %v1596_v34 = vsel %vm1595_vm3, %v1563_v27, %v2534_v14  ;;  %v1597_v32 = vsel %vm1595_vm3, %v1564_v31, %v2535_v55 }
  0xde   : > { %v3481_v42 = vpop.permute.xlu0 %2542  ;;  %v2539_v29 = vunpack.i.l.bf16 %v3479_v56 }
  0xdf   : > { %2827 = vrot.lane.b32.xlu1 %v3473_v33, %s2987_s17  ;;  %v2545_v41 = vunpack.i.h.bf16 %v3481_v42  ;;  %v2544_v44 = vunpack.i.l.bf16 %v3481_v42  ;;  %v2540_v42 = vunpack.i.h.bf16 %v3479_v56 }
  0xe0   : > { %2832 = vrot.lane.b32.xlu0 %v3477_v26, %s2988_s18  ;;  %v1612_v6 = vsel %vm1595_vm3, %v1579_v18, %v2539_v29  ;;  %v567_v29 = vld [vmem:[#allocation2 + $0x188] sm:$0xff] }
  0xe1   : > { %v3504_v11 = vpop.permute.xlu1 %2547  ;;  %v1629_v53 = vsel %vm1628_vm4, %v1596_v34, %v2544_v44  ;;  %v1630_v9 = vsel %vm1628_vm4, %v1597_v32, %v2545_v41  ;;  %v1613_v41 = vsel %vm1595_vm3, %v1580_v5, %v2540_v42  ;;  %v620_v32 = vld [vmem:[#allocation2 + $0x10a] sm:$0xff]  ;;  %v621_v42 = vld [vmem:[#allocation2 + $0x112] sm:$0xff] }
  0xe2   : > { %v2553_v54 = vpop.permute.xlu0 %2552  ;;  %v2549_v60 = vunpack.i.l.bf16 %v3504_v11  ;;  %v2550_v14 = vunpack.i.h.bf16 %v3504_v11 }
  0xe3   : > { %2837 = vrot.lane.b32.xlu1 %v3487_v47, %s2988_s18  ;;  %v2555_v59 = vunpack.i.h.bf16 %v2553_v54  ;;  %v2554_v30 = vunpack.i.l.bf16 %v2553_v54 }
  0xe4   : > { %2842 = vrot.lane.b32.xlu0 %v2816_v7, %s2983_s24  ;;  %v1645_v11 = vsel %vm1628_vm4, %v1612_v6, %v2549_v60 }
  0xe5   : > { %v2558_v22 = vpop.permute.xlu1 %2557  ;;  %v1663_v56 = vsel %vm1661_vm5, %v1630_v9, %v2555_v59  ;;  %v1646_v59 = vsel %vm1628_vm4, %v1613_v41, %v2550_v14  ;;  %v599_v41 = vld [vmem:[#allocation2 + $0x189] sm:$0xff] }
  0xe6   : > { %v2563_v7 = vpop.permute.xlu0 %2562  ;;  %v2559_v54 = vunpack.i.l.bf16 %v2558_v22  ;;  %v2560_v61 = vunpack.i.h.bf16 %v2558_v22  ;;  %v566_v22 = vld [vmem:[#allocation2 + $0x180] sm:$0xff] }
  0xe7   : > { %2847 = vrot.lane.b32.xlu1 %v3466_v8, %s2984_s10  ;;  %v2565_v21 = vunpack.i.h.bf16 %v2563_v7  ;;  %v2564_v38 = vunpack.i.l.bf16 %v2563_v7  ;;  %v1662_v8 = vsel %vm1661_vm5, %v1629_v53, %v2554_v30 }
  0xe8   : > { %2852 = vrot.lane.b32.xlu0 %v3473_v33, %s2984_s10  ;;  %v1678_v30 = vsel %vm1661_vm5, %v1645_v11, %v2559_v54  ;;  %v1679_v60 = vsel %vm1661_vm5, %v1646_v59, %v2560_v61  ;;  %v4104_v54 = vpack.i.bf16 %v3489_v51, %v3483_v13  ;;  %v583_v61 = vld [vmem:[#allocation2 + $0xc9] sm:$0xff]  ;;  %v2440_v59 = vunpack.i.h.bf16 %v3398_v20 }
  0xe9   : > { %v2568_v55 = vpop.permute.xlu1 %2567  ;;  %v1695_v44 = vsel %vm1694_vm6, %v1662_v8, %v2564_v38  ;;  %v1696_v18 = vsel %vm1694_vm6, %v1663_v56, %v2565_v21  ;;  %v582_v56 = vld [vmem:[#allocation2 + $0xc1] sm:$0xff] }
  0xea   : > { %v2573_v31 = vpop.permute.xlu0 %2572  ;;  %v2570_v27 = vunpack.i.h.bf16 %v2568_v55  ;;  %v2569_v7 = vunpack.i.l.bf16 %v2568_v55  ;;  %v3578_v55 = vpack.i.bf16 %v567_v29, %v566_v22  ;;  %v3591_v11 = vpack.i.bf16 %v583_v61, %v582_v56 }
  0xeb   : > { %v2575_v4 = vunpack.i.h.bf16 %v2573_v31  ;;  %v2574_v33 = vunpack.i.l.bf16 %v2573_v31  ;;  %2857 = vrot.lane.b32.xlu1 %v3477_v26, %s2985_s15  ;;  %v1779_v31 = vpack.c.bf16 %v621_v42, %v620_v32  ;;  %v2400_v22 = vunpack.i.h.bf16 %v3372_v58 }
  0xec   : > { %2862 = vrot.lane.b32.xlu0 %v3487_v47, %s2985_s15  ;;  %v1711_v9 = vsel %vm1694_vm6, %v1678_v30, %v2569_v7  ;;  %v1712_v14 = vsel %vm1694_vm6, %v1679_v60, %v2570_v27  ;;  %v2399_v29 = vunpack.i.l.bf16 %v3372_v58  ;;  %v2479_v30 = vunpack.i.l.bf16 %v3426_v1 }
  0xed   : > { %v2578_v34 = vpop.permute.xlu1 %2577  ;;  %v1728_v26 = vsel %vm1727_vm7, %v1695_v44, %v2574_v33  ;;  %v1729_v5 = vsel %vm1727_vm7, %v1696_v18, %v2575_v4  ;;  %v2876_v4 = vpack.i.bf16 %v3500_v57, %v3510_v28  ;;  %v598_v33 = vld [vmem:[#allocation2 + $0x181] sm:$0xff]  ;;  %v4105_v28 = vpack.c.bf16 %v3508_v19, %v3506_v52  ;;  %v3595_v18 = vld [vmem:[#allocation2 + $0xca] sm:$0xff] }
  0xee   : > { %v2580_v38 = vunpack.i.h.bf16 %v2578_v34  ;;  %v2579_v21 = vunpack.i.l.bf16 %v2578_v34  ;;  %v3568_v53 = vpop.permute.xlu0 %2582  ;;  %v1760_v47 = vpack.c.bf16 %v1729_v5, %v1728_v26  ;;  %v3593_v44 = vld [vmem:[#allocation2 + $0xc2] sm:$0xff]  ;;  %v3602_v52 = vpack.i.bf16 %v599_v41, %v598_v33  ;;  %v3609_v5 = vld [vmem:[#allocation2 + $0x6a] sm:$0xff] }
  0xef   : > { %2867 = vrot.lane.b32.xlu1 %v4104_v54, %s2986_s16  ;;  %v2439_v19 = vunpack.i.l.bf16 %v3398_v20  ;;  %v3607_v26 = vld [vmem:[#allocation2 + $0x62] sm:$0xff]  ;;  %v2480_v58 = vunpack.i.h.bf16 %v3426_v1  ;;  %v2921_v42 = vpack.i.bf16 %v3595_v18, %v3593_v44  ;;  %v2520_v60 = vunpack.i.h.bf16 %v3456_v0 }
  0xf0   : > { %2872 = vrot.lane.b32.xlu0 %v3517_v12, %s2986_s16  ;;  %1945 = vmatmul.mubr.bf16.vlgmr.msra.gmra.mrb[0].mxu0 %v1760_v47  ;;  %v1744_v6 = vsel %vm1727_vm7, %v1711_v9, %v2579_v21  ;;  %v1745_v8 = vsel %vm1727_vm7, %v1712_v14, %v2580_v38  ;;  %v2519_v38 = vunpack.i.l.bf16 %v3456_v0  ;;  %v2585_v21 = vunpack.i.h.bf16 %v3568_v53 }
  0xf1   : > { %v3584_v27 = vpop.permute.xlu1 %2587  ;;  %v1776_v7 = vpack.c.bf16 %v1745_v8, %v1744_v6  ;;  %2257 = vmatprep.mubr.msk.bf16.mxu0 %vm192_vm0, %v4105_v28  ;;  %v2584_v20 = vunpack.i.l.bf16 %v3568_v53  ;;  %v1532_v47 = vsel %vm192_vm0, %v3245_v16, %v2399_v29  ;;  %v1533_v1 = vsel %vm192_vm0, %v3247_v17, %v2400_v22 }
  0xf2   : > { %v2593_v57 = vpop.permute.xlu0 %2592  ;;  %v1549_v9 = vsel %vm192_vm0, %v3262_v24, %v2440_v59  ;;  %v1765_v0 = vpack.c.bf16 %v3609_v5, %v3607_v26  ;;  %v1548_v53 = vsel %vm192_vm0, %v3260_v23, %v2439_v19  ;;  %v1565_v14 = vsel %vm1562_vm2, %v1532_v47, %v2479_v30 }
  0xf3   : > { %2877 = vrot.lane.b32.xlu1 %v2876_v4, %s2987_s17  ;;  %2009 = vmatmul.mubr.bf16.vlgmr.msra.gmra.mrb[0].mxu1 %v1776_v7  ;;  %v2595_v54 = vunpack.i.h.bf16 %v2593_v57  ;;  %v2594_v6 = vunpack.i.l.bf16 %v2593_v57  ;;  %v1566_v8 = vsel %vm1562_vm2, %v1533_v1, %v2480_v58  ;;  %v2589_v17 = vunpack.i.l.bf16 %v3584_v27 }
  0xf4   : > { %2882 = vrot.lane.b32.xlu0 %v3578_v55, %s2987_s17  ;;  %2265 = vmatprep.mubr.msk.bf16.mxu1 %vm192_vm0, %v1779_v31  ;;  %v1582_v31 = vsel %vm1562_vm2, %v1549_v9, %v2520_v60  ;;  %v1581_v7 = vsel %vm1562_vm2, %v1548_v53, %v2519_v38  ;;  %v1598_v33 = vsel %vm1595_vm3, %v1565_v14, %v2584_v20  ;;  %v2590_v41 = vunpack.i.h.bf16 %v3584_v27 }
  0xf5   : > { %v2598_v34 = vpop.permute.xlu1 %2597  ;;  %v1599_v23 = vsel %vm1595_vm3, %v1566_v8, %v2585_v21  ;;  %v1631_v29 = vsel %vm1628_vm4, %v1598_v33, %v2594_v6  ;;  %v552_v6 = vld [vmem:[#allocation2 + $0xd8] sm:$0xff]  ;;  %v2444_v26 = vunpack.i.l.bf16 %v3400_v48  ;;  %v2485_v5 = vunpack.i.h.bf16 %v3428_v43 }
  0xf6   : > { %v2603_v32 = vpop.permute.xlu0 %2602  ;;  %v2599_v28 = vunpack.i.l.bf16 %v2598_v34  ;;  %v1632_v59 = vsel %vm1628_vm4, %v1599_v23, %v2595_v54  ;;  %v2600_v19 = vunpack.i.h.bf16 %v2598_v34  ;;  %v1615_v34 = vsel %vm1595_vm3, %v1582_v31, %v2590_v41  ;;  %v3658_v54 = vld [vmem:[#allocation2 + $0x18a] sm:$0xff] }
  0xf7   : > { %2887 = vrot.lane.b32.xlu1 %v3591_v11, %s2988_s18  ;;  %v2605_v56 = vunpack.i.h.bf16 %v2603_v32  ;;  %v2604_v24 = vunpack.i.l.bf16 %v2603_v32  ;;  %v1614_v32 = vsel %vm1595_vm3, %v1581_v7, %v2589_v17  ;;  %v623_v31 = vld [vmem:[#allocation2 + $0x12a] sm:$0xff] }
  0xf8   : > { %2892 = vrot.lane.b32.xlu0 %v3602_v52, %s2988_s18  ;;  %v1647_v9 = vsel %vm1628_vm4, %v1614_v32, %v2599_v28  ;;  %v1648_v8 = vsel %vm1628_vm4, %v1615_v34, %v2600_v19  ;;  %v2445_v34 = vunpack.i.h.bf16 %v3400_v48 }
  0xf9   : > { %v2608_v16 = vpop.permute.xlu1 %2607  ;;  %v1664_v60 = vsel %vm1661_vm5, %v1631_v29, %v2604_v24 }
  0xfa   : > { %v2613_v61 = vpop.permute.xlu0 %2612  ;;  %v2609_v30 = vunpack.i.l.bf16 %v2608_v16  ;;  %v2610_v38 = vunpack.i.h.bf16 %v2608_v16  ;;  %v553_v16 = vld [vmem:[#allocation2 + $0xe0] sm:$0xff] }
  0xfb   : > { %2897 = vrot.lane.b32.xlu1 %v3517_v12, %s2983_s24  ;;  %v2615_v57 = vunpack.i.h.bf16 %v2613_v61  ;;  %v2614_v22 = vunpack.i.l.bf16 %v2613_v61  ;;  %v1665_v12 = vsel %vm1661_vm5, %v1632_v59, %v2605_v56  ;;  %v622_v61 = vld [vmem:[#allocation2 + $0x122] sm:$0xff]  ;;  %v2931_v29 = vpack.i.bf16 %v553_v16, %v552_v6 }
  0xfc   : > { %2902 = vrot.lane.b32.xlu0 %v2876_v4, %s2984_s10  ;;  %v3650_v4 = vld [vmem:[#allocation2 + $0x182] sm:$0xff]  ;;  %v1681_v7 = vsel %vm1661_vm5, %v1648_v8, %v2610_v38  ;;  %v1781_v32 = vpack.c.bf16 %v623_v31, %v622_v61  ;;  %v2484_v6 = vunpack.i.l.bf16 %v3428_v43  ;;  %v2525_v8 = vunpack.i.h.bf16 %v3458_v3 }
  0xfd   : > { %v2618_v58 = vpop.permute.xlu1 %2617  ;;  %v1697_v53 = vsel %vm1694_vm6, %v1664_v60, %v2614_v22  ;;  %v1698_v14 = vsel %vm1694_vm6, %v1665_v12, %v2615_v57  ;;  %v2926_v22 = vpack.i.bf16 %v3658_v54, %v3650_v4  ;;  %v584_v12 = vld [vmem:[#allocation2 + $0xd9] sm:$0xff]  ;;  %v585_v38 = vld [vmem:[#allocation2 + $0xe1] sm:$0xff]  ;;  %v1551_v43 = vsel %vm192_vm0, %v3299_v35, %v2445_v34 }
  0xfe   : > { %v2623_v27 = vpop.permute.xlu0 %2622  ;;  %v2620_v21 = vunpack.i.h.bf16 %v2618_v58  ;;  %v2619_v20 = vunpack.i.l.bf16 %v2618_v58  ;;  %v569_v58 = vld [vmem:[#allocation2 + $0x1a0] sm:$0xff]  ;;  %v1550_v61 = vsel %vm192_vm0, %v3292_v40, %v2444_v26 }
  0xff   : > { %v2625_v47 = vunpack.i.h.bf16 %v2623_v27  ;;  %v2624_v1 = vunpack.i.l.bf16 %v2623_v27  ;;  %2907 = vrot.lane.b32.xlu1 %v3578_v55, %s2984_s10  ;;  %v1680_v55 = vsel %vm1661_vm5, %v1647_v9, %v2609_v30  ;;  %v568_v30 = vld [vmem:[#allocation2 + $0x198] sm:$0xff]  ;;  %v2941_v9 = vpack.i.bf16 %v585_v38, %v584_v12 }
 0x100   : > { %2912 = vrot.lane.b32.xlu0 %v3591_v11, %s2985_s15  ;;  %v1713_v28 = vsel %vm1694_vm6, %v1680_v55, %v2619_v20  ;;  %v1714_v57 = vsel %vm1694_vm6, %v1681_v7, %v2620_v21  ;;  %v600_v21 = vld [vmem:[#allocation2 + $0x199] sm:$0xff]  ;;  %v601_v20 = vld [vmem:[#allocation2 + $0x1a1] sm:$0xff]  ;;  %v2524_v55 = vunpack.i.l.bf16 %v3458_v3 }
 0x101   : > { %v2628_v17 = vpop.permute.xlu1 %2627  ;;  %v1730_v56 = vsel %vm1727_vm7, %v1697_v53, %v2624_v1  ;;  %v1731_v24 = vsel %vm1727_vm7, %v1698_v14, %v2625_v47  ;;  %v2405_v47 = vunpack.i.h.bf16 %v3370_v46  ;;  %v2404_v1 = vunpack.i.l.bf16 %v3370_v46  ;;  %v3693_v53 = vld [vmem:[#allocation2 + $0x7a] sm:$0xff]  ;;  %v3695_v14 = vld [vmem:[#allocation2 + $0x82] sm:$0xff] }
 0x102   : > { %v2630_v33 = vunpack.i.h.bf16 %v2628_v17  ;;  %v2629_v23 = vunpack.i.l.bf16 %v2628_v17  ;;  %v3665_v11 = vpop.permute.xlu0 %2632  ;;  %v1762_v41 = vpack.c.bf16 %v1731_v24, %v1730_v56  ;;  %v2946_v46 = vpack.i.bf16 %v601_v20, %v600_v21 }
 0x103   : > { %2917 = vrot.lane.b32.xlu1 %v3602_v52, %s2985_s15  ;;  %v2635_v17 = vunpack.i.h.bf16 %v3665_v11  ;;  %v2634_v56 = vunpack.i.l.bf16 %v3665_v11  ;;  %v1534_v48 = vsel %vm192_vm0, %v3286_v36, %v2404_v1  ;;  %v1535_v24 = vsel %vm192_vm0, %v3288_v37, %v2405_v47 }
 0x104   : > { %2922 = vrot.lane.b32.xlu0 %v2921_v42, %s2986_s16  ;;  %1953 = vmatmul.mubr.bf16.gmra.mrb[4].mxu0 %v1762_v41  ;;  %v1746_v59 = vsel %vm1727_vm7, %v1713_v28, %v2629_v23  ;;  %v1747_v19 = vsel %vm1727_vm7, %v1714_v57, %v2630_v33  ;;  %v2936_v42 = vpack.i.bf16 %v569_v58, %v568_v30 }
 0x105   : > { %v3679_v60 = vpop.permute.xlu1 %2637  ;;  %v1778_v52 = vpack.c.bf16 %v1747_v19, %v1746_v59  ;;  %2258 = vmatprep.mubr.msk.bf16.mxu0 %vm192_vm0, %v1765_v0  ;;  %v1767_v3 = vpack.c.bf16 %v3695_v14, %v3693_v53  ;;  %v1568_v31 = vsel %vm1562_vm2, %v1535_v24, %v2485_v5  ;;  %v1567_v36 = vsel %vm1562_vm2, %v1534_v48, %v2484_v6 }
 0x106   : > { %v2643_v27 = vpop.permute.xlu0 %2642  ;;  %v2639_v37 = vunpack.i.l.bf16 %v3679_v60  ;;  %v1583_v28 = vsel %vm1562_vm2, %v1550_v61, %v2524_v55  ;;  %v1584_v57 = vsel %vm1562_vm2, %v1551_v43, %v2525_v8  ;;  %v1601_v40 = vsel %vm1595_vm3, %v1568_v31, %v2635_v17  ;;  %v624_v55 = vld [vmem:[#allocation2 + $0x13a] sm:$0xff]  ;;  %v625_v17 = vld [vmem:[#allocation2 + $0x142] sm:$0xff] }
 0x107   : > { %2927 = vrot.lane.b32.xlu1 %v2926_v22, %s2986_s16  ;;  %2017 = vmatmul.mubr.bf16.gmra.mrb[4].mxu1 %v1778_v52  ;;  %v2645_v7 = vunpack.i.h.bf16 %v2643_v27  ;;  %v2644_v33 = vunpack.i.l.bf16 %v2643_v27  ;;  %v1600_v22 = vsel %vm1595_vm3, %v1567_v36, %v2634_v56  ;;  %v1783_v36 = vpack.c.bf16 %v625_v17, %v624_v55 }
 0x108   : > { %2932 = vrot.lane.b32.xlu0 %v2931_v29, %s2987_s17  ;;  %2266 = vmatprep.mubr.msk.bf16.mxu1 %vm192_vm0, %v1781_v32  ;;  %v2640_v29 = vunpack.i.h.bf16 %v3679_v60  ;;  %v1616_v27 = vsel %vm1595_vm3, %v1583_v28, %v2639_v37  ;;  %v2409_v28 = vunpack.i.l.bf16 %v3377_v63 }
 0x109   : > { %v2648_v0 = vpop.permute.xlu1 %2647  ;;  %v1633_v58 = vsel %vm1628_vm4, %v1600_v22, %v2644_v33  ;;  %v1634_v32 = vsel %vm1628_vm4, %v1601_v40, %v2645_v7  ;;  %v2449_v22 = vunpack.i.l.bf16 %v3405_v15  ;;  %v2490_v40 = vunpack.i.h.bf16 %v3432_v25 }
 0x10a   : > { %v2653_v16 = vpop.permute.xlu0 %2652  ;;  %v2649_v59 = vunpack.i.l.bf16 %v2648_v0  ;;  %v2650_v52 = vunpack.i.h.bf16 %v2648_v0  ;;  %v1617_v26 = vsel %vm1595_vm3, %v1584_v57, %v2640_v29  ;;  %v2450_v57 = vunpack.i.h.bf16 %v3405_v15 }
 0x10b   : > { %2937 = vrot.lane.b32.xlu1 %v2936_v42, %s2987_s17  ;;  %v2655_v11 = vunpack.i.h.bf16 %v2653_v16  ;;  %v2654_v41 = vunpack.i.l.bf16 %v2653_v16 }
 0x10c   : > { %2942 = vrot.lane.b32.xlu0 %v2941_v9, %s2988_s18  ;;  %v1649_v5 = vsel %vm1628_vm4, %v1616_v27, %v2649_v59  ;;  %v1650_v14 = vsel %vm1628_vm4, %v1617_v26, %v2650_v52  ;;  %v2489_v59 = vunpack.i.l.bf16 %v3432_v25  ;;  %v1553_v25 = vsel %vm192_vm0, %v3327_v50, %v2450_v57 }
 0x10d   : > { %v2658_v23 = vpop.permute.xlu1 %2657  ;;  %v1666_v42 = vsel %vm1661_vm5, %v1633_v58, %v2654_v41  ;;  %v1667_v21 = vsel %vm1661_vm5, %v1634_v32, %v2655_v11  ;;  %v2530_v58 = vunpack.i.h.bf16 %v3468_v10 }
 0x10e   : > { %v2663_v35 = vpop.permute.xlu0 %2662  ;;  %v2659_v12 = vunpack.i.l.bf16 %v2658_v23  ;;  %v2660_v20 = vunpack.i.h.bf16 %v2658_v23 }
 0x10f   : > { %2947 = vrot.lane.b32.xlu1 %v2946_v46, %s2988_s18  ;;  %v2665_v19 = vunpack.i.h.bf16 %v2663_v35  ;;  %v2664_v30 = vunpack.i.l.bf16 %v2663_v35  ;;  %v2410_v35 = vunpack.i.h.bf16 %v3377_v63  ;;  %v2529_v63 = vunpack.i.l.bf16 %v3468_v10 }
 0x110   : > { %v1682_v6 = vsel %vm1661_vm5, %v1649_v5, %v2659_v12  ;;  %v1683_v56 = vsel %vm1661_vm5, %v1650_v14, %v2660_v20  ;;  %v1536_v12 = vsel %vm192_vm0, %v3315_v39, %v2409_v28 }
 0x111   : > { %v2668_v38 = vpop.permute.xlu1 %2667  ;;  %v1699_v0 = vsel %vm1694_vm6, %v1666_v42, %v2664_v30  ;;  %v1700_v53 = vsel %vm1694_vm6, %v1667_v21, %v2665_v19  ;;  %v3749_v30 = vld [vmem:[#allocation2 + $0x92] sm:$0xff]  ;;  %v1537_v15 = vsel %vm192_vm0, %v3317_v45, %v2410_v35 }
 0x112   : > { %v2673_v47 = vpop.permute.xlu0 %2672  ;;  %v2670_v1 = vunpack.i.h.bf16 %v2668_v38  ;;  %v2669_v60 = vunpack.i.l.bf16 %v2668_v38  ;;  %v1552_v38 = vsel %vm192_vm0, %v3325_v49, %v2449_v22  ;;  %v1570_v27 = vsel %vm1562_vm2, %v1537_v15, %v2490_v40 }
 0x113   : > { %v2675_v34 = vunpack.i.h.bf16 %v2673_v47  ;;  %v2674_v9 = vunpack.i.l.bf16 %v2673_v47  ;;  %v1569_v47 = vsel %vm1562_vm2, %v1536_v12, %v2489_v59  ;;  %v1585_v50 = vsel %vm1562_vm2, %v1552_v38, %v2529_v63 }
 0x114   : > { %v1715_v31 = vsel %vm1694_vm6, %v1682_v6, %v2669_v60  ;;  %v1716_v7 = vsel %vm1694_vm6, %v1683_v56, %v2670_v1 }
 0x115   : > { %v2678_v16 = vpop.permute.xlu1 %2677  ;;  %v1732_v46 = vsel %vm1727_vm7, %v1699_v0, %v2674_v9  ;;  %v1733_v8 = vsel %vm1727_vm7, %v1700_v53, %v2675_v34  ;;  %v1586_v34 = vsel %vm1562_vm2, %v1553_v25, %v2530_v58  ;;  %v4106_v25 = vld [vmem:[#allocation7_spill] sm:$0xff] }
 0x116   : > { %v2680_v48 = vunpack.i.h.bf16 %v2678_v16  ;;  %v2679_v24 = vunpack.i.l.bf16 %v2678_v16  ;;  %v2683_v43 = vpop.permute.xlu0 %2682  ;;  %v1764_v61 = vpack.c.bf16 %v1733_v8, %v1732_v46  ;;  %v2415_v38 = vunpack.i.h.bf16 %v4106_v25 }
 0x117   : > { %v2685_v32 = vunpack.i.h.bf16 %v2683_v43  ;;  %v2684_v52 = vunpack.i.l.bf16 %v2683_v43 }
 0x118   : > { %1961 = vmatmul.mubr.bf16.gmra.mrb[8].mxu0 %v1764_v61  ;;  %v1748_v33 = vsel %vm1727_vm7, %v1715_v31, %v2679_v24  ;;  %v1749_v23 = vsel %vm1727_vm7, %v1716_v7, %v2680_v48 }
 0x119   : > { %v2688_v37 = vpop.permute.xlu1 %2687  ;;  %v1780_v11 = vpack.c.bf16 %v1749_v23, %v1748_v33  ;;  %2259 = vmatprep.mubr.msk.bf16.mxu0 %vm192_vm0, %v1767_v3  ;;  %v3751_v3 = vld [vmem:[#allocation2 + $0x9a] sm:$0xff]  ;;  %v1603_v49 = vsel %vm1595_vm3, %v1570_v27, %v2685_v32  ;;  %v1602_v9 = vsel %vm1595_vm3, %v1569_v47, %v2684_v52  ;;  %v1785_v32 = vpack.c.bf16 %v3454_v62, %v3452_v2 }
 0x11a   : > { %v2693_v41 = vpop.permute.xlu0 %2692  ;;  %v1769_v10 = vpack.c.bf16 %v3751_v3, %v3749_v30  ;;  %v2689_v45 = vunpack.i.l.bf16 %v2688_v37  ;;  %v2690_v26 = vunpack.i.h.bf16 %v2688_v37  ;;  %v2414_v27 = vunpack.i.l.bf16 %v4106_v25 }
 0x11b   : > { %2025 = vmatmul.mubr.bf16.gmra.mrb[8].mxu1 %v1780_v11  ;;  %v2695_v42 = vunpack.i.h.bf16 %v2693_v41  ;;  %v2694_v21 = vunpack.i.l.bf16 %v2693_v41 }
 0x11c   : > { %2267 = vmatprep.mubr.msk.bf16.mxu1 %vm192_vm0, %v1783_v36  ;;  %v1618_v55 = vsel %vm1595_vm3, %v1585_v50, %v2689_v45  ;;  %v1619_v33 = vsel %vm1595_vm3, %v1586_v34, %v2690_v26  ;;  %v4108_v45 = vld [vmem:[#allocation15_spill] sm:$0xff] }
 0x11d   : > { %v2698_v29 = vpop.permute.xlu1 %2697  ;;  %v1635_v14 = vsel %vm1628_vm4, %v1602_v9, %v2694_v21  ;;  %v1636_v6 = vsel %vm1628_vm4, %v1603_v49, %v2695_v42  ;;  %v4107_v42 = vld [vmem:[#allocation11_spill] sm:$0xff]  ;;  %v2495_v62 = vunpack.i.h.bf16 %v4108_v45  ;;  %v4111_v9 = vld [vmem:[#allocation6_spill] sm:$0xff] }
 0x11e   : > { %v2703_v19 = vpop.permute.xlu0 %2702  ;;  %v2699_v5 = vunpack.i.l.bf16 %v2698_v29  ;;  %v2700_v16 = vunpack.i.h.bf16 %v2698_v29  ;;  %v2455_v21 = vunpack.i.h.bf16 %v4107_v42  ;;  %v2454_v47 = vunpack.i.l.bf16 %v4107_v42  ;;  %v4110_v50 = vld [vmem:[#allocation3_spill] sm:$0xff] }
 0x11f   : > { %v2705_v1 = vunpack.i.h.bf16 %v2703_v19  ;;  %v2704_v60 = vunpack.i.l.bf16 %v2703_v19  ;;  %v1538_v49 = vsel %vm192_vm0, %v4110_v50, %v2414_v27  ;;  %v4114_v50 = vld [vmem:[#allocation20_spill] sm:$0xff] }
 0x120   : > { %v1651_v23 = vsel %vm1628_vm4, %v1618_v55, %v2699_v5  ;;  %v1652_v11 = vsel %vm1628_vm4, %v1619_v33, %v2700_v16  ;;  %v1555_v26 = vsel %vm192_vm0, %v4111_v9, %v2455_v21 }
 0x121   : > { %v2708_v20 = vpop.permute.xlu1 %2707  ;;  %v1668_v17 = vsel %vm1661_vm5, %v1635_v14, %v2704_v60  ;;  %v1669_v56 = vsel %vm1661_vm5, %v1636_v6, %v2705_v1  ;;  %v2494_v1 = vunpack.i.l.bf16 %v4108_v45 }
 0x122   : > { %v2713_v39 = vpop.permute.xlu0 %2712  ;;  %v2709_v46 = vunpack.i.l.bf16 %v2708_v20  ;;  %v2710_v48 = vunpack.i.h.bf16 %v2708_v20 }
 0x123   : > { %v2715_v0 = vunpack.i.h.bf16 %v2713_v39  ;;  %v2714_v53 = vunpack.i.l.bf16 %v2713_v39  ;;  %v4109_v39 = vld [vmem:[#allocation4_spill] sm:$0xff]  ;;  %v1571_v14 = vsel %vm1562_vm2, %v1538_v49, %v2494_v1 }
 0x124   : > { %v1684_v41 = vsel %vm1661_vm5, %v1651_v23, %v2709_v46  ;;  %v1685_v22 = vsel %vm1661_vm5, %v1652_v11, %v2710_v48  ;;  %v1539_v34 = vsel %vm192_vm0, %v4109_v39, %v2415_v38 }
 0x125   : > { %v2718_v8 = vpop.permute.xlu1 %2717  ;;  %v1701_v36 = vsel %vm1694_vm6, %v1668_v17, %v2714_v53  ;;  %v1702_v37 = vsel %vm1694_vm6, %v1669_v56, %v2715_v0  ;;  %v4112_v0 = vld [vmem:[#allocation5_spill] sm:$0xff]  ;;  %v1771_v56 = vpack.c.bf16 %v3489_v51, %v3483_v13 }
 0x126   : > { %v2723_v24 = vpop.permute.xlu0 %2722  ;;  %v2720_v43 = vunpack.i.h.bf16 %v2718_v8  ;;  %v2719_v61 = vunpack.i.l.bf16 %v2718_v8  ;;  %v1554_v53 = vsel %vm192_vm0, %v4112_v0, %v2454_v47  ;;  %v1572_v8 = vsel %vm1562_vm2, %v1539_v34, %v2495_v62  ;;  %v4113_v34 = vld [vmem:[#allocation19_spill] sm:$0xff] }
 0x127   : > { %v2725_v31 = vunpack.i.h.bf16 %v2723_v24  ;;  %v2724_v7 = vunpack.i.l.bf16 %v2723_v24  ;;  %v1787_v49 = vpack.c.bf16 %v4114_v50, %v4113_v34 }
 0x128   : > { %v1717_v30 = vsel %vm1694_vm6, %v1684_v41, %v2719_v61  ;;  %v1718_v3 = vsel %vm1694_vm6, %v1685_v22, %v2720_v43 }
 0x129   : > { %v2728_v35 = vpop.permute.xlu1 %2727  ;;  %v1734_v28 = vsel %vm1727_vm7, %v1701_v36, %v2724_v7  ;;  %v1735_v57 = vsel %vm1727_vm7, %v1702_v37, %v2725_v31 }
 0x12a   : > { %v2730_v40 = vunpack.i.h.bf16 %v2728_v35  ;;  %v2729_v29 = vunpack.i.l.bf16 %v2728_v35  ;;  %v2733_v59 = vpop.permute.xlu0 %2732  ;;  %v1766_v19 = vpack.c.bf16 %v1735_v57, %v1734_v28 }
 0x12b   : > { %v2735_v60 = vunpack.i.h.bf16 %v2733_v59 }
 0x12c   : > { %1969 = vmatmul.mubr.bf16.gmra.mrb[12].mxu0 %v1766_v19  ;;  %v1750_v58 = vsel %vm1727_vm7, %v1717_v30, %v2729_v29  ;;  %v1751_v63 = vsel %vm1727_vm7, %v1718_v3, %v2730_v40 }
 0x12d   : > { %v2738_v52 = vpop.permute.xlu1 %2737  ;;  %v1782_v15 = vpack.c.bf16 %v1751_v63, %v1750_v58  ;;  %2260 = vmatprep.mubr.msk.bf16.mxu0 %vm192_vm0, %v1769_v10  ;;  %v2734_v10 = vunpack.i.l.bf16 %v2733_v59  ;;  %v1588_v24 = vsel %vm1562_vm2, %v1555_v26, %v2735_v60 }
 0x12e   : > { %v2743_v12 = vpop.permute.xlu0 %2742  ;;  %v2740_v6 = vunpack.i.h.bf16 %v2738_v52  ;;  %v2739_v16 = vunpack.i.l.bf16 %v2738_v52 }
 0x12f   : > { %2033 = vmatmul.mubr.bf16.gmra.mrb[12].mxu1 %v1782_v15  ;;  %v2745_v55 = vunpack.i.h.bf16 %v2743_v12  ;;  %v2744_v17 = vunpack.i.l.bf16 %v2743_v12  ;;  %v1587_v48 = vsel %vm1562_vm2, %v1554_v53, %v2734_v10  ;;  %v4115_v53 = vld [vmem:[#allocation8_spill] sm:$0xff] }
 0x130   : > { %2268 = vmatprep.mubr.msk.bf16.mxu1 %vm192_vm0, %v1785_v32  ;;  %v1604_v37 = vsel %vm1595_vm3, %v1571_v14, %v2739_v16  ;;  %v1605_v11 = vsel %vm1595_vm3, %v1572_v8, %v2740_v6  ;;  %v2420_v14 = vunpack.i.h.bf16 %v4115_v53  ;;  %v2419_v6 = vunpack.i.l.bf16 %v4115_v53  ;;  %v4116_v16 = vld [vmem:[#allocation12_spill] sm:$0xff] }
 0x131   : > { %v2748_v20 = vpop.permute.xlu1 %2747  ;;  %v1620_v13 = vsel %vm1595_vm3, %v1587_v48, %v2744_v17  ;;  %v1621_v51 = vsel %vm1595_vm3, %v1588_v24, %v2745_v55  ;;  %v2459_v8 = vunpack.i.l.bf16 %v4116_v16  ;;  %v4117_v55 = vld [vmem:[#allocation16_spill] sm:$0xff] }
 0x132   : > { %v2753_v2 = vpop.permute.xlu0 %2752  ;;  %v2750_v43 = vunpack.i.h.bf16 %v2748_v20  ;;  %v2749_v61 = vunpack.i.l.bf16 %v2748_v20  ;;  %v2500_v17 = vunpack.i.h.bf16 %v4117_v55  ;;  %v2499_v48 = vunpack.i.l.bf16 %v4117_v55 }
 0x133   : > { %v2755_v31 = vunpack.i.h.bf16 %v2753_v2  ;;  %v2754_v7 = vunpack.i.l.bf16 %v2753_v2 }
 0x134   : > { %v1637_v40 = vsel %vm1628_vm4, %v1604_v37, %v2749_v61  ;;  %v1638_v29 = vsel %vm1628_vm4, %v1605_v11, %v2750_v43  ;;  %v2962_v11 = vld [vmem:[#allocation2 + $0x140] sm:$0xff] }
 0x135   : > { %v2758_v5 = vpop.permute.xlu1 %2757  ;;  %v1653_v30 = vsel %vm1628_vm4, %v1620_v13, %v2754_v7  ;;  %v1654_v3 = vsel %vm1628_vm4, %v1621_v51, %v2755_v31 }
 0x136   : > { %v2763_v46 = vpop.permute.xlu0 %2762  ;;  %v2760_v33 = vunpack.i.h.bf16 %v2758_v5  ;;  %v2759_v23 = vunpack.i.l.bf16 %v2758_v5 }
 0x137   : > { %v2765_v41 = vunpack.i.h.bf16 %v2763_v46  ;;  %v2764_v35 = vunpack.i.l.bf16 %v2763_v46  ;;  %v2460_v46 = vunpack.i.h.bf16 %v4116_v16 }
 0x138   : > { %v1670_v58 = vsel %vm1661_vm5, %v1637_v40, %v2759_v23  ;;  %v1671_v63 = vsel %vm1661_vm5, %v1638_v29, %v2760_v33  ;;  %v2960_v33 = vld [vmem:[#allocation2 + $0x80] sm:$0xff] }
 0x139   : > { %v2768_v36 = vpop.permute.xlu1 %2767  ;;  %v1686_v52 = vsel %vm1661_vm5, %v1653_v30, %v2764_v35  ;;  %v1687_v15 = vsel %vm1661_vm5, %v1654_v3, %v2765_v41  ;;  %v1541_v23 = vsel %vm192_vm0, %v2960_v33, %v2420_v14  ;;  %v1557_v41 = vsel %vm192_vm0, %v2962_v11, %v2460_v46  ;;  %v2963_v35 = vld [vmem:[#allocation2 + $0x138] sm:$0xff]  ;;  %v4118_v33 = vld [vmem:[#allocation9_spill] sm:$0xff] }
 0x13a   : > { %v2773_v28 = vpop.permute.xlu0 %2772  ;;  %v2770_v57 = vunpack.i.h.bf16 %v2768_v36  ;;  %v2769_v22 = vunpack.i.l.bf16 %v2768_v36  ;;  %v2961_v36 = vld [vmem:[#allocation2 + $0x78] sm:$0xff]  ;;  %v1574_v13 = vsel %vm1562_vm2, %v1541_v23, %v2500_v17  ;;  %v1773_v3 = vpack.c.bf16 %v3595_v18, %v3593_v44 }
 0x13b   : > { %v2775_v59 = vunpack.i.h.bf16 %v2773_v28  ;;  %v2774_v19 = vunpack.i.l.bf16 %v2773_v28  ;;  %v1540_v37 = vsel %vm192_vm0, %v2961_v36, %v2419_v6  ;;  %v1556_v28 = vsel %vm192_vm0, %v2963_v35, %v2459_v8 }
 0x13c   : > { %v1703_v27 = vsel %vm1694_vm6, %v1670_v58, %v2769_v22  ;;  %v1704_v42 = vsel %vm1694_vm6, %v1671_v63, %v2770_v57  ;;  %v1573_v51 = vsel %vm1562_vm2, %v1540_v37, %v2499_v48  ;;  %v2425_v23 = vunpack.i.h.bf16 %v4118_v33  ;;  %v4119_v37 = vld [vmem:[#allocation13_spill] sm:$0xff] }
 0x13d   : > { %v2778_v32 = vpop.permute.xlu1 %2777  ;;  %v1719_v47 = vsel %vm1694_vm6, %v1686_v52, %v2774_v19  ;;  %v1720_v45 = vsel %vm1694_vm6, %v1687_v15, %v2775_v59  ;;  %v2424_v36 = vunpack.i.l.bf16 %v4118_v33  ;;  %v2465_v11 = vunpack.i.h.bf16 %v4119_v37  ;;  %v632_v33 = vld [vmem:[#allocation2 + $0x19a] sm:$0xff] }
 0x13e   : > { %v2780_v12 = vunpack.i.h.bf16 %v2778_v32  ;;  %v2779_v25 = vunpack.i.l.bf16 %v2778_v32  ;;  %v2783_v38 = vpop.permute.xlu0 %2782  ;;  %v2464_v35 = vunpack.i.l.bf16 %v4119_v37 }
 0x13f   : > { %v2785_v21 = vunpack.i.h.bf16 %v2783_v38  ;;  %v2784_v20 = vunpack.i.l.bf16 %v2783_v38 }
 0x140   : > { %v1736_v1 = vsel %vm1727_vm7, %v1703_v27, %v2779_v25  ;;  %v1737_v2 = vsel %vm1727_vm7, %v1704_v42, %v2780_v12 }
 0x141   : > { %v2788_v62 = vpop.permute.xlu1 %2787  ;;  %v1768_v60 = vpack.c.bf16 %v1737_v2, %v1736_v1  ;;  %v1752_v10 = vsel %vm1727_vm7, %v1719_v47, %v2784_v20  ;;  %v1753_v39 = vsel %vm1727_vm7, %v1720_v45, %v2785_v21 }
 0x142   : > { %v2793_v9 = vpop.permute.xlu0 %2792  ;;  %v1784_v26 = vpack.c.bf16 %v1753_v39, %v1752_v10  ;;  %v2790_v61 = vunpack.i.h.bf16 %v2788_v62 }
 0x143   : > { %1977 = vmatmul.mubr.bf16.gmra.mrb[16].mxu0 %v1768_v60  ;;  %v2795_v31 = vunpack.i.h.bf16 %v2793_v9  ;;  %v2794_v7 = vunpack.i.l.bf16 %v2793_v9 }
 0x144   : > { %2041 = vmatmul.mubr.bf16.gmra.mrb[16].mxu1 %v1784_v26  ;;  %2261 = vmatprep.mubr.msk.bf16.mxu0 %vm192_vm0, %v1771_v56  ;;  %v2789_v56 = vunpack.i.l.bf16 %v2788_v62  ;;  %v1590_v58 = vsel %vm1562_vm2, %v1557_v41, %v2790_v61  ;;  %v1789_v61 = vpack.c.bf16 %v3658_v54, %v3650_v4 }
 0x145   : > { %v2798_v5 = vpop.permute.xlu1 %2797  ;;  %2269 = vmatprep.mubr.msk.bf16.mxu1 %vm192_vm0, %v1787_v49  ;;  %v1607_v32 = vsel %vm1595_vm3, %v1574_v13, %v2795_v31  ;;  %v1606_v52 = vsel %vm1595_vm3, %v1573_v51, %v2794_v7 }
 0x146   : > { %v2803_v0 = vpop.permute.xlu0 %2802  ;;  %v2799_v29 = vunpack.i.l.bf16 %v2798_v5  ;;  %v1589_v63 = vsel %vm1562_vm2, %v1556_v28, %v2789_v56  ;;  %v2800_v15 = vunpack.i.h.bf16 %v2798_v5  ;;  %v4120_v28 = vld [vmem:[#allocation17_spill] sm:$0xff] }
 0x147   : > { %v2805_v57 = vunpack.i.h.bf16 %v2803_v0  ;;  %v2804_v22 = vunpack.i.l.bf16 %v2803_v0  ;;  %v2504_v13 = vunpack.i.l.bf16 %v4120_v28  ;;  %v2505_v54 = vunpack.i.h.bf16 %v4120_v28 }
 0x148   : > { %v1622_v44 = vsel %vm1595_vm3, %v1589_v63, %v2799_v29  ;;  %v1623_v34 = vsel %vm1595_vm3, %v1590_v58, %v2800_v15  ;;  %v2964_v29 = vld [vmem:[#allocation2 + $0x98] sm:$0xff] }
 0x149   : > { %v2808_v24 = vpop.permute.xlu1 %2807  ;;  %v1639_v27 = vsel %vm1628_vm4, %v1606_v52, %v2804_v22  ;;  %v1640_v42 = vsel %vm1628_vm4, %v1607_v32, %v2805_v57  ;;  %v3883_v22 = vld [vmem:[#allocation2 + $0xda] sm:$0xff]  ;;  %v2967_v32 = vld [vmem:[#allocation2 + $0x150] sm:$0xff] }
 0x14a   : > { %v2813_v43 = vpop.permute.xlu0 %2812  ;;  %v2809_v12 = vunpack.i.l.bf16 %v2808_v24  ;;  %v2810_v21 = vunpack.i.h.bf16 %v2808_v24  ;;  %v1558_v52 = vsel %vm192_vm0, %v2967_v32, %v2464_v35  ;;  %v4122_v32 = vld [vmem:[#allocation14_spill] sm:$0xff] }
 0x14b   : > { %v2815_v59 = vunpack.i.h.bf16 %v2813_v43  ;;  %v2814_v19 = vunpack.i.l.bf16 %v2813_v43 }
 0x14c   : > { %v1655_v50 = vsel %vm1628_vm4, %v1622_v44, %v2809_v12  ;;  %v1656_v26 = vsel %vm1628_vm4, %v1623_v34, %v2810_v21 }
 0x14d   : > { %v2818_v40 = vpop.permute.xlu1 %2817  ;;  %v1672_v18 = vsel %vm1661_vm5, %v1639_v27, %v2814_v19  ;;  %v1673_v45 = vsel %vm1661_vm5, %v1640_v42, %v2815_v59  ;;  %v1543_v59 = vsel %vm192_vm0, %v2964_v29, %v2425_v23  ;;  %v2965_v19 = vld [vmem:[#allocation2 + $0x90] sm:$0xff]  ;;  %v633_v23 = vld [vmem:[#allocation2 + $0x1a2] sm:$0xff] }
 0x14e   : > { %v2823_v30 = vpop.permute.xlu0 %2822  ;;  %v2819_v20 = vunpack.i.l.bf16 %v2818_v40  ;;  %v2820_v1 = vunpack.i.h.bf16 %v2818_v40  ;;  %v3885_v40 = vld [vmem:[#allocation2 + $0xe2] sm:$0xff]  ;;  %v1576_v27 = vsel %vm1562_vm2, %v1543_v59, %v2505_v54 }
 0x14f   : > { %v2825_v25 = vunpack.i.h.bf16 %v2823_v30  ;;  %v2824_v38 = vunpack.i.l.bf16 %v2823_v30  ;;  %v1542_v30 = vsel %vm192_vm0, %v2965_v19, %v2424_v36 }
 0x150   : > { %v1688_v5 = vsel %vm1661_vm5, %v1655_v50, %v2819_v20  ;;  %v1689_v6 = vsel %vm1661_vm5, %v1656_v26, %v2820_v1  ;;  %v1575_v15 = vsel %vm1562_vm2, %v1542_v30, %v2504_v13  ;;  %v1775_v20 = vpack.c.bf16 %v3885_v40, %v3883_v22 }
 0x151   : > { %v2828_v47 = vpop.permute.xlu1 %2827  ;;  %v1705_v49 = vsel %vm1694_vm6, %v1672_v18, %v2824_v38  ;;  %v1706_v9 = vsel %vm1694_vm6, %v1673_v45, %v2825_v25  ;;  %v1791_v40 = vpack.c.bf16 %v633_v23, %v632_v33 }
 0x152   : > { %v2833_v2 = vpop.permute.xlu0 %2832  ;;  %v2830_v62 = vunpack.i.h.bf16 %v2828_v47  ;;  %v2829_v60 = vunpack.i.l.bf16 %v2828_v47 }
 0x153   : > { %v2835_v10 = vunpack.i.h.bf16 %v2833_v2  ;;  %v2834_v39 = vunpack.i.l.bf16 %v2833_v2 }
 0x154   : > { %v1721_v17 = vsel %vm1694_vm6, %v1688_v5, %v2829_v60  ;;  %v1722_v48 = vsel %vm1694_vm6, %v1689_v6, %v2830_v62 }
 0x155   : > { %v2838_v0 = vpop.permute.xlu1 %2837  ;;  %v1738_v53 = vsel %vm1727_vm7, %v1705_v49, %v2834_v39  ;;  %v1739_v14 = vsel %vm1727_vm7, %v1706_v9, %v2835_v10 }
 0x156   : > { %v2840_v16 = vunpack.i.h.bf16 %v2838_v0  ;;  %v2839_v46 = vunpack.i.l.bf16 %v2838_v0  ;;  %v2843_v8 = vpop.permute.xlu0 %2842  ;;  %v1770_v55 = vpack.c.bf16 %v1739_v14, %v1738_v53 }
 0x157   : > { %v2845_v51 = vunpack.i.h.bf16 %v2843_v8  ;;  %v2844_v57 = vunpack.i.l.bf16 %v2843_v8 }
 0x158   : > { %1985 = vmatmul.mubr.bf16.gmra.mrb[20].mxu0 %v1770_v55  ;;  %v1754_v24 = vsel %vm1727_vm7, %v1721_v17, %v2839_v46  ;;  %v1755_v43 = vsel %vm1727_vm7, %v1722_v48, %v2840_v16 }
 0x159   : > { %v2848_v56 = vpop.permute.xlu1 %2847  ;;  %v1786_v31 = vpack.c.bf16 %v1755_v43, %v1754_v24  ;;  %2262 = vmatprep.mubr.msk.bf16.mxu0 %vm192_vm0, %v1773_v3  ;;  %v2966_v3 = vld [vmem:[#allocation2 + $0x158] sm:$0xff]  ;;  %v1591_v47 = vsel %vm1562_vm2, %v1558_v52, %v2844_v57  ;;  %v2470_v52 = vunpack.i.h.bf16 %v4122_v32 }
 0x15a   : > { %v2853_v7 = vpop.permute.xlu0 %2852  ;;  %v1559_v58 = vsel %vm192_vm0, %v2966_v3, %v2465_v11  ;;  %v2850_v12 = vunpack.i.h.bf16 %v2848_v56  ;;  %v2849_v25 = vunpack.i.l.bf16 %v2848_v56  ;;  %v4121_v3 = vld [vmem:[#allocation10_spill] sm:$0xff] }
 0x15b   : > { %2049 = vmatmul.mubr.bf16.gmra.mrb[20].mxu1 %v1786_v31  ;;  %v2855_v42 = vunpack.i.h.bf16 %v2853_v7  ;;  %v2854_v21 = vunpack.i.l.bf16 %v2853_v7  ;;  %v1592_v44 = vsel %vm1562_vm2, %v1559_v58, %v2845_v51  ;;  %v2430_v58 = vunpack.i.h.bf16 %v4121_v3 }
 0x15c   : > { %2270 = vmatprep.mubr.msk.bf16.mxu1 %vm192_vm0, %v1789_v61  ;;  %v1608_v39 = vsel %vm1595_vm3, %v1575_v15, %v2849_v25  ;;  %v1609_v34 = vsel %vm1595_vm3, %v1576_v27, %v2850_v12  ;;  %v2469_v15 = vunpack.i.l.bf16 %v4122_v32  ;;  %v4123_v12 = vld [vmem:[#allocation18_spill] sm:$0xff] }
 0x15d   : > { %v2858_v41 = vpop.permute.xlu1 %2857  ;;  %v1624_v26 = vsel %vm1595_vm3, %v1591_v47, %v2854_v21  ;;  %v1625_v5 = vsel %vm1595_vm3, %v1592_v44, %v2855_v42  ;;  %v2510_v25 = vunpack.i.h.bf16 %v4123_v12  ;;  %v2509_v27 = vunpack.i.l.bf16 %v4123_v12 }
 0x15e   : > { %v2863_v4 = vpop.permute.xlu0 %2862  ;;  %v2860_v18 = vunpack.i.h.bf16 %v2858_v41  ;;  %v2859_v45 = vunpack.i.l.bf16 %v2858_v41 }
 0x15f   : > { %v2865_v1 = vunpack.i.h.bf16 %v2863_v4  ;;  %v2864_v2 = vunpack.i.l.bf16 %v2863_v4 }
 0x160   : > { %v1641_v14 = vsel %vm1628_vm4, %v1608_v39, %v2859_v45  ;;  %v1642_v6 = vsel %vm1628_vm4, %v1609_v34, %v2860_v18  ;;  %v2968_v18 = vld [vmem:[#allocation2 + $0xb0] sm:$0xff] }
 0x161   : > { %v2868_v63 = vpop.permute.xlu1 %2867  ;;  %v1657_v8 = vsel %vm1628_vm4, %v1624_v26, %v2864_v2  ;;  %v1658_v55 = vsel %vm1628_vm4, %v1625_v5, %v2865_v1  ;;  %v1545_v45 = vsel %vm192_vm0, %v2968_v18, %v2430_v58  ;;  %v2969_v1 = vld [vmem:[#allocation2 + $0xa8] sm:$0xff] }
 0x162   : > { %v2873_v38 = vpop.permute.xlu0 %2872  ;;  %v2870_v62 = vunpack.i.h.bf16 %v2868_v63  ;;  %v2869_v60 = vunpack.i.l.bf16 %v2868_v63  ;;  %v2429_v63 = vunpack.i.l.bf16 %v4121_v3  ;;  %v1578_v34 = vsel %vm1562_vm2, %v1545_v45, %v2510_v25 }
 0x163   : > { %v2875_v50 = vunpack.i.h.bf16 %v2873_v38  ;;  %v2874_v49 = vunpack.i.l.bf16 %v2873_v38 }
 0x164   : > { %v1674_v17 = vsel %vm1661_vm5, %v1641_v14, %v2869_v60  ;;  %v1675_v48 = vsel %vm1661_vm5, %v1642_v6, %v2870_v62  ;;  %v1544_v2 = vsel %vm192_vm0, %v2969_v1, %v2429_v63  ;;  %v2970_v62 = vld [vmem:[#allocation2 + $0x170] sm:$0xff] }
 0x165   : > { %v2878_v10 = vpop.permute.xlu1 %2877  ;;  %v1690_v43 = vsel %vm1661_vm5, %v1657_v8, %v2874_v49  ;;  %v1691_v61 = vsel %vm1661_vm5, %v1658_v55, %v2875_v50  ;;  %v1561_v60 = vsel %vm192_vm0, %v2970_v62, %v2470_v52  ;;  %v1577_v26 = vsel %vm1562_vm2, %v1544_v2, %v2509_v27  ;;  %v2090_v2 = vld [vmem:[%s3957_s22 + $0x88] sm:$0xff] }
 0x166   : > { %v2883_v9 = vpop.permute.xlu0 %2882  ;;  %v2880_v0 = vunpack.i.h.bf16 %v2878_v10  ;;  %v2879_v53 = vunpack.i.l.bf16 %v2878_v10  ;;  %v2971_v10 = vld [vmem:[#allocation2 + $0x168] sm:$0xff] }
 0x167   : > { %v2885_v16 = vunpack.i.h.bf16 %v2883_v9  ;;  %v2884_v46 = vunpack.i.l.bf16 %v2883_v9  ;;  %v1560_v39 = vsel %vm192_vm0, %v2971_v10, %v2469_v15 }
 0x168   : > { %v1707_v36 = vsel %vm1694_vm6, %v1674_v17, %v2879_v53  ;;  %v1708_v37 = vsel %vm1694_vm6, %v1675_v48, %v2880_v0 }
 0x169   : > { %v2888_v24 = vpop.permute.xlu1 %2887  ;;  %v1723_v35 = vsel %vm1694_vm6, %v1690_v43, %v2884_v46  ;;  %v1724_v28 = vsel %vm1694_vm6, %v1691_v61, %v2885_v16 }
 0x16a   : > { %v2890_v56 = vunpack.i.h.bf16 %v2888_v24  ;;  %v2889_v31 = vunpack.i.l.bf16 %v2888_v24  ;;  %v2893_v7 = vpop.permute.xlu0 %2892 }
 0x16b   : > { %v2895_v11 = vunpack.i.h.bf16 %v2893_v7  ;;  %v2894_v41 = vunpack.i.l.bf16 %v2893_v7 }
 0x16c   : > { %v1740_v13 = vsel %vm1727_vm7, %v1707_v36, %v2889_v31  ;;  %v1741_v4 = vsel %vm1727_vm7, %v1708_v37, %v2890_v56 }
 0x16d   : > { %v2898_v54 = vpop.permute.xlu1 %2897  ;;  %v1772_v51 = vpack.c.bf16 %v1741_v4, %v1740_v13  ;;  %v1756_v57 = vsel %vm1727_vm7, %v1723_v35, %v2894_v41  ;;  %v1757_v22 = vsel %vm1727_vm7, %v1724_v28, %v2895_v11 }
 0x16e   : > { %v2903_v29 = vpop.permute.xlu0 %2902  ;;  %v1788_v59 = vpack.c.bf16 %v1757_v22, %v1756_v57  ;;  %v2900_v21 = vunpack.i.h.bf16 %v2898_v54 }
 0x16f   : > { %1993 = vmatmul.mubr.bf16.gmra.mrb[24].mxu0 %v1772_v51  ;;  %v2905_v47 = vunpack.i.h.bf16 %v2903_v29  ;;  %v2904_v44 = vunpack.i.l.bf16 %v2903_v29 }
 0x170   : > { %2057 = vmatmul.mubr.bf16.gmra.mrb[24].mxu1 %v1788_v59  ;;  %2263 = vmatprep.mubr.msk.bf16.mxu0 %vm192_vm0, %v1775_v20  ;;  %v2899_v20 = vunpack.i.l.bf16 %v2898_v54  ;;  %v1594_v6 = vsel %vm1562_vm2, %v1561_v60, %v2900_v21 }
 0x171   : > { %v2908_v19 = vpop.permute.xlu1 %2907  ;;  %2271 = vmatprep.mubr.msk.bf16.mxu1 %vm192_vm0, %v1791_v40  ;;  %v1611_v46 = vsel %vm1595_vm3, %v1578_v34, %v2905_v47  ;;  %v1610_v8 = vsel %vm1595_vm3, %v1577_v26, %v2904_v44  ;;  %v2089_v47 = vld [vmem:[%s3957_s22 + $0x80] sm:$0xff] }
 0x172   : > { %v2913_v30 = vpop.permute.xlu0 %2912  ;;  %v2909_v5 = vunpack.i.l.bf16 %v2908_v19  ;;  %v1593_v16 = vsel %vm1562_vm2, %v1560_v39, %v2899_v20  ;;  %v2910_v55 = vunpack.i.h.bf16 %v2908_v19 }
 0x173   : > { %v2915_v50 = vunpack.i.h.bf16 %v2913_v30  ;;  %v2914_v49 = vunpack.i.l.bf16 %v2913_v30 }
 0x174   : > { %v1626_v33 = vsel %vm1595_vm3, %v1593_v16, %v2909_v5  ;;  %v1627_v4 = vsel %vm1595_vm3, %v1594_v6, %v2910_v55 }
 0x175   : > { %v2918_v38 = vpop.permute.xlu1 %2917  ;;  %v1643_v43 = vsel %vm1628_vm4, %v1610_v8, %v2914_v49  ;;  %v1644_v61 = vsel %vm1628_vm4, %v1611_v46, %v2915_v50  ;;  %v2075_v50 = vld [vmem:[%s3957_s22 + $0x10] sm:$0xff]  ;;  %v2092_v46 = vld [vmem:[%s3957_s22 + $0x98] sm:$0xff] }
 0x176   : > { %v2923_v42 = vpop.permute.xlu0 %2922  ;;  %v2919_v17 = vunpack.i.l.bf16 %v2918_v38  ;;  %v2920_v56 = vunpack.i.h.bf16 %v2918_v38  ;;  %v2073_v38 = vld [vmem:[%s3957_s22] sm:$0xff] }
 0x177   : > { %v2925_v0 = vunpack.i.h.bf16 %v2923_v42  ;;  %v2924_v53 = vunpack.i.l.bf16 %v2923_v42  ;;  %v2074_v42 = vld [vmem:[%s3957_s22 + $0x8] sm:$0xff] }
 0x178   : > { %v1659_v54 = vsel %vm1628_vm4, %v1626_v33, %v2919_v17  ;;  %v1660_v22 = vsel %vm1628_vm4, %v1627_v4, %v2920_v56  ;;  %v2078_v56 = vld [vmem:[%s3957_s22 + $0x28] sm:$0xff]  ;;  %v2093_v33 = vld [vmem:[%s3957_s22 + $0xa0] sm:$0xff] }
 0x179   : > { %v2928_v9 = vpop.permute.xlu1 %2927  ;;  %v1676_v23 = vsel %vm1661_vm5, %v1643_v43, %v2924_v53  ;;  %v1677_v36 = vsel %vm1661_vm5, %v1644_v61, %v2925_v0  ;;  %v2091_v0 = vld [vmem:[%s3957_s22 + $0x90] sm:$0xff]  ;;  %v2077_v43 = vld [vmem:[%s3957_s22 + $0x20] sm:$0xff] }
 0x17a   : > { %v2933_v14 = vpop.permute.xlu0 %2932  ;;  %v2929_v31 = vunpack.i.l.bf16 %v2928_v9  ;;  %v2930_v37 = vunpack.i.h.bf16 %v2928_v9  ;;  %v2076_v9 = vld [vmem:[%s3957_s22 + $0x18] sm:$0xff] }
 0x17b   : > { %v2935_v48 = vunpack.i.h.bf16 %v2933_v14  ;;  %v2934_v24 = vunpack.i.l.bf16 %v2933_v14 }
 0x17c   : > { %v1692_v40 = vsel %vm1661_vm5, %v1659_v54, %v2929_v31  ;;  %v1693_v30 = vsel %vm1661_vm5, %v1660_v22, %v2930_v37  ;;  %v2080_v22 = vld [vmem:[%s3957_s22 + $0x38] sm:$0xff] }
 0x17d   : > { %v2938_v7 = vpop.permute.xlu1 %2937  ;;  %v1709_v51 = vsel %vm1694_vm6, %v1676_v23, %v2934_v24  ;;  %v1710_v57 = vsel %vm1694_vm6, %v1677_v36, %v2935_v48 }
 0x17e   : > { %v2943_v11 = vpop.permute.xlu0 %2942  ;;  %v2940_v41 = vunpack.i.h.bf16 %v2938_v7  ;;  %v2939_v35 = vunpack.i.l.bf16 %v2938_v7 }
 0x17f   : > { %v2945_v28 = vunpack.i.h.bf16 %v2943_v11  ;;  %v2944_v13 = vunpack.i.l.bf16 %v2943_v11 }
 0x180   : > { %v1725_v32 = vsel %vm1694_vm6, %v1692_v40, %v2939_v35  ;;  %v1726_v52 = vsel %vm1694_vm6, %v1693_v30, %v2940_v41  ;;  %v2094_v41 = vld [vmem:[%s3957_s22 + $0xa8] sm:$0xff] }
 0x181   : > { %v2948_v29 = vpop.permute.xlu1 %2947  ;;  %v1742_v59 = vsel %vm1727_vm7, %v1709_v51, %v2944_v13  ;;  %v1743_v19 = vsel %vm1727_vm7, %v1710_v57, %v2945_v28  ;;  %v2079_v51 = vld [vmem:[%s3957_s22 + $0x30] sm:$0xff] }
 0x182   : > { %v2950_v3 = vunpack.i.h.bf16 %v2948_v29  ;;  %v2949_v58 = vunpack.i.l.bf16 %v2948_v29  ;;  %v1774_v63 = vpack.c.bf16 %v1743_v19, %v1742_v59  ;;  %v2095_v59 = vld [vmem:[%s3957_s22 + $0xb0] sm:$0xff] }
 0x184   : > { %2001 = vmatmul.mubr.bf16.gmra.mrb[28].mxu0 %v1774_v63  ;;  %v1758_v15 = vsel %vm1727_vm7, %v1725_v32, %v2949_v58  ;;  %v1759_v12 = vsel %vm1727_vm7, %v1726_v52, %v2950_v3  ;;  %v2096_v63 = vld [vmem:[%s3957_s22 + $0xb8] sm:$0xff] }
 0x185   : > { %v1790_v25 = vpack.c.bf16 %v1759_v12, %v1758_v15 }
 0x187   : > { %2065 = vmatmul.mubr.bf16.gmra.mrb[28].mxu1 %v1790_v25 }
 0x1c3   : > { %v1946_v27 = vpop.f32.mrb[0].mxu0 }
 0x1c4   : > { %v2105_v21 = vadd.f32 %v2073_v38, %v1946_v27  ;;  %v1948_v20 = vpop.f32.mrb[1].mxu0  ;;  %v2081_v38 = vld [vmem:[%s3957_s22 + $0x40] sm:$0xff] }
 0x1c5   : > { %v1949_v44 = vpop.f32.mrb[2].mxu0  ;;  %v2097_v27 = vld [vmem:[%s3957_s22 + $0xc0] sm:$0xff] }
 0x1c6   : > { %2137 = vst.msk [vmem:[%s3963_s25] sm:$0xff] %vm192_vm0, %v2105_v21  ;;  %v2106_v18 = vadd.f32 %v2074_v42, %v1949_v44  ;;  %v1951_v45 = vpop.f32.mrb[3].mxu0  ;;  %v2010_v1 = vpop.f32.mrb[0].mxu1  ;;  %v2082_v21 = vld [vmem:[%s3957_s22 + $0x48] sm:$0xff] }
 0x1c7   : > { %v2121_v62 = vadd.f32 %v2089_v47, %v2010_v1  ;;  %v2012_v60 = vpop.f32.mrb[1].mxu1 }
 0x1c8   : > { %2138 = vst.msk [vmem:[%s3963_s25 + $0x8] sm:$0xff] %vm192_vm0, %v2106_v18  ;;  %v2013_v10 = vpop.f32.mrb[2].mxu1  ;;  %v2098_v18 = vld [vmem:[%s3957_s22 + $0xc8] sm:$0xff] }
 0x1c9   : > { %2153 = vst.msk [vmem:[%s3963_s25 + $0x80] sm:$0xff] %vm192_vm0, %v2121_v62  ;;  %v2122_v39 = vadd.f32 %v2090_v2, %v2013_v10  ;;  %v2015_v34 = vpop.f32.mrb[3].mxu1 }
 0x1cb   : > { %2154 = vst.msk [vmem:[%s3963_s25 + $0x88] sm:$0xff] %vm192_vm0, %v2122_v39 }
 0x1d7   : > { %v1954_v49 = vpop.f32.mrb[4].mxu0 }
 0x1d8   : > { %v2107_v26 = vadd.f32 %v2075_v50, %v1954_v49  ;;  %v1956_v5 = vpop.f32.mrb[5].mxu0  ;;  %v2083_v50 = vld [vmem:[%s3957_s22 + $0x50] sm:$0xff] }
 0x1d9   : > { %v1957_v53 = vpop.f32.mrb[6].mxu0 }
 0x1da   : > { %2139 = vst.msk [vmem:[%s3963_s25 + $0x10] sm:$0xff] %vm192_vm0, %v2107_v26  ;;  %v2108_v14 = vadd.f32 %v2076_v9, %v1957_v53  ;;  %v1959_v6 = vpop.f32.mrb[7].mxu0  ;;  %v2018_v16 = vpop.f32.mrb[4].mxu1  ;;  %v2084_v9 = vld [vmem:[%s3957_s22 + $0x58] sm:$0xff] }
 0x1db   : > { %v2123_v8 = vadd.f32 %v2091_v0, %v2018_v16  ;;  %v2020_v55 = vpop.f32.mrb[5].mxu1  ;;  %v2099_v0 = vld [vmem:[%s3957_s22 + $0xd0] sm:$0xff] }
 0x1dc   : > { %2140 = vst.msk [vmem:[%s3963_s25 + $0x18] sm:$0xff] %vm192_vm0, %v2108_v14  ;;  %v2021_v17 = vpop.f32.mrb[6].mxu1 }
 0x1dd   : > { %2155 = vst.msk [vmem:[%s3963_s25 + $0x90] sm:$0xff] %vm192_vm0, %v2123_v8  ;;  %v2124_v48 = vadd.f32 %v2092_v46, %v2021_v17  ;;  %v2023_v24 = vpop.f32.mrb[7].mxu1  ;;  %v2100_v46 = vld [vmem:[%s3957_s22 + $0xd8] sm:$0xff] }
 0x1df   : > { %2156 = vst.msk [vmem:[%s3963_s25 + $0x98] sm:$0xff] %vm192_vm0, %v2124_v48 }
 0x1eb   : > { %v1962_v61 = vpop.f32.mrb[8].mxu0 }
 0x1ec   : > { %v2109_v31 = vadd.f32 %v2077_v43, %v1962_v61  ;;  %v1964_v7 = vpop.f32.mrb[9].mxu0  ;;  %v2085_v43 = vld [vmem:[%s3957_s22 + $0x60] sm:$0xff] }
 0x1ed   : > { %v1965_v23 = vpop.f32.mrb[10].mxu0  ;;  %v2101_v61 = vld [vmem:[%s3957_s22 + $0xe0] sm:$0xff] }
 0x1ee   : > { %2141 = vst.msk [vmem:[%s3963_s25 + $0x20] sm:$0xff] %vm192_vm0, %v2109_v31  ;;  %v2110_v36 = vadd.f32 %v2078_v56, %v1965_v23  ;;  %v1967_v37 = vpop.f32.mrb[11].mxu0  ;;  %v2026_v11 = vpop.f32.mrb[8].mxu1  ;;  %v2086_v31 = vld [vmem:[%s3957_s22 + $0x68] sm:$0xff] }
 0x1ef   : > { %v2125_v35 = vadd.f32 %v2093_v33, %v2026_v11  ;;  %v2028_v28 = vpop.f32.mrb[9].mxu1 }
 0x1f0   : > { %2142 = vst.msk [vmem:[%s3963_s25 + $0x28] sm:$0xff] %vm192_vm0, %v2110_v36  ;;  %v2029_v13 = vpop.f32.mrb[10].mxu1  ;;  %v2102_v36 = vld [vmem:[%s3957_s22 + $0xe8] sm:$0xff] }
 0x1f1   : > { %2157 = vst.msk [vmem:[%s3963_s25 + $0xa0] sm:$0xff] %vm192_vm0, %v2125_v35  ;;  %v2126_v4 = vadd.f32 %v2094_v41, %v2029_v13  ;;  %v2031_v54 = vpop.f32.mrb[11].mxu1 }
 0x1f3   : > { %2158 = vst.msk [vmem:[%s3963_s25 + $0xa8] sm:$0xff] %vm192_vm0, %v2126_v4 }
 0x1ff   : > { %v1970_v57 = vpop.f32.mrb[12].mxu0 }
 0x200   : > { %v2111_v40 = vadd.f32 %v2079_v51, %v1970_v57  ;;  %v1972_v29 = vpop.f32.mrb[13].mxu0  ;;  %v2087_v51 = vld [vmem:[%s3957_s22 + $0x70] sm:$0xff] }
 0x201   : > { %v1973_v19 = vpop.f32.mrb[14].mxu0 }
 0x202   : > { %2143 = vst.msk [vmem:[%s3963_s25 + $0x30] sm:$0xff] %vm192_vm0, %v2111_v40  ;;  %v2112_v30 = vadd.f32 %v2080_v22, %v1973_v19  ;;  %v1975_v3 = vpop.f32.mrb[15].mxu0  ;;  %v2034_v58 = vpop.f32.mrb[12].mxu1  ;;  %v2088_v22 = vld [vmem:[%s3957_s22 + $0x78] sm:$0xff] }
 0x203   : > { %v2127_v32 = vadd.f32 %v2095_v59, %v2034_v58  ;;  %v2036_v52 = vpop.f32.mrb[13].mxu1  ;;  %v2103_v59 = vld [vmem:[%s3957_s22 + $0xf0] sm:$0xff] }
 0x204   : > { %2144 = vst.msk [vmem:[%s3963_s25 + $0x38] sm:$0xff] %vm192_vm0, %v2112_v30  ;;  %v2037_v15 = vpop.f32.mrb[14].mxu1 }
 0x205   : > { %2159 = vst.msk [vmem:[%s3963_s25 + $0xb0] sm:$0xff] %vm192_vm0, %v2127_v32  ;;  %v2128_v12 = vadd.f32 %v2096_v63, %v2037_v15  ;;  %v2039_v25 = vpop.f32.mrb[15].mxu1  ;;  %v2104_v63 = vld [vmem:[%s3957_s22 + $0xf8] sm:$0xff] }
 0x207   : > { %2160 = vst.msk [vmem:[%s3963_s25 + $0xb8] sm:$0xff] %vm192_vm0, %v2128_v12 }
 0x216   : > { %v1978_v42 = vpop.f32.mrb[16].mxu0 }
 0x217   : > { %v2113_v20 = vadd.f32 %v2081_v38, %v1978_v42  ;;  %v2042_v47 = vpop.f32.mrb[16].mxu1  ;;  %v1980_v44 = vpop.f32.mrb[17].mxu0 }
 0x218   : > { %v2129_v45 = vadd.f32 %v2097_v27, %v2042_v47  ;;  %v2044_v1 = vpop.f32.mrb[17].mxu1  ;;  %v1981_v2 = vpop.f32.mrb[18].mxu0 }
 0x219   : > { %2145 = vst.msk [vmem:[%s3963_s25 + $0x40] sm:$0xff] %vm192_vm0, %v2113_v20  ;;  %v2114_v62 = vadd.f32 %v2082_v21, %v1981_v2  ;;  %v2045_v60 = vpop.f32.mrb[18].mxu1  ;;  %v1983_v10 = vpop.f32.mrb[19].mxu0 }
 0x21a   : > { %2161 = vst.msk [vmem:[%s3963_s25 + $0xc0] sm:$0xff] %vm192_vm0, %v2129_v45  ;;  %v2130_v39 = vadd.f32 %v2098_v18, %v2045_v60  ;;  %v2047_v34 = vpop.f32.mrb[19].mxu1 }
 0x21b   : > { %2146 = vst.msk [vmem:[%s3963_s25 + $0x48] sm:$0xff] %vm192_vm0, %v2114_v62 }
 0x21c   : > { %2162 = vst.msk [vmem:[%s3963_s25 + $0xc8] sm:$0xff] %vm192_vm0, %v2130_v39 }
 0x22b   : > { %v1986_v49 = vpop.f32.mrb[20].mxu0 }
 0x22c   : > { %v2115_v26 = vadd.f32 %v2083_v50, %v1986_v49  ;;  %v1988_v5 = vpop.f32.mrb[21].mxu0 }
 0x22d   : > { %v1989_v53 = vpop.f32.mrb[22].mxu0 }
 0x22e   : > { %2147 = vst.msk [vmem:[%s3963_s25 + $0x50] sm:$0xff] %vm192_vm0, %v2115_v26  ;;  %v2116_v14 = vadd.f32 %v2084_v9, %v1989_v53  ;;  %v1991_v6 = vpop.f32.mrb[23].mxu0  ;;  %v2050_v16 = vpop.f32.mrb[20].mxu1 }
 0x22f   : > { %v2131_v8 = vadd.f32 %v2099_v0, %v2050_v16  ;;  %v2052_v55 = vpop.f32.mrb[21].mxu1 }
 0x230   : > { %2148 = vst.msk [vmem:[%s3963_s25 + $0x58] sm:$0xff] %vm192_vm0, %v2116_v14  ;;  %v2053_v17 = vpop.f32.mrb[22].mxu1 }
 0x231   : > { %2163 = vst.msk [vmem:[%s3963_s25 + $0xd0] sm:$0xff] %vm192_vm0, %v2131_v8  ;;  %v2132_v48 = vadd.f32 %v2100_v46, %v2053_v17  ;;  %v2055_v24 = vpop.f32.mrb[23].mxu1 }
 0x233   : > { %2164 = vst.msk [vmem:[%s3963_s25 + $0xd8] sm:$0xff] %vm192_vm0, %v2132_v48 }
 0x242   : > { %v1994_v56 = vpop.f32.mrb[24].mxu0 }
 0x243   : > { %v2117_v7 = vadd.f32 %v2085_v43, %v1994_v56  ;;  %v2058_v33 = vpop.f32.mrb[24].mxu1  ;;  %v1996_v23 = vpop.f32.mrb[25].mxu0 }
 0x244   : > { %v2133_v37 = vadd.f32 %v2101_v61, %v2058_v33  ;;  %v2060_v11 = vpop.f32.mrb[25].mxu1  ;;  %v1997_v41 = vpop.f32.mrb[26].mxu0 }
 0x245   : > { %2149 = vst.msk [vmem:[%s3963_s25 + $0x60] sm:$0xff] %vm192_vm0, %v2117_v7  ;;  %v2118_v35 = vadd.f32 %v2086_v31, %v1997_v41  ;;  %v2061_v28 = vpop.f32.mrb[26].mxu1  ;;  %v1999_v13 = vpop.f32.mrb[27].mxu0 }
 0x246   : > { %2165 = vst.msk [vmem:[%s3963_s25 + $0xe0] sm:$0xff] %vm192_vm0, %v2133_v37  ;;  %v2134_v4 = vadd.f32 %v2102_v36, %v2061_v28  ;;  %v2063_v54 = vpop.f32.mrb[27].mxu1 }
 0x247   : > { %2150 = vst.msk [vmem:[%s3963_s25 + $0x68] sm:$0xff] %vm192_vm0, %v2118_v35 }
 0x248   : > { %2166 = vst.msk [vmem:[%s3963_s25 + $0xe8] sm:$0xff] %vm192_vm0, %v2134_v4 }
 0x257   : > { %v2002_v57 = vpop.f32.mrb[28].mxu0 }
 0x258   : > { %v2119_v40 = vadd.f32 %v2087_v51, %v2002_v57  ;;  %v2004_v29 = vpop.f32.mrb[29].mxu0 }
 0x259   : > { %v2005_v19 = vpop.f32.mrb[30].mxu0 }
 0x25a   : > { %2151 = vst.msk [vmem:[%s3963_s25 + $0x70] sm:$0xff] %vm192_vm0, %v2119_v40  ;;  %v2120_v30 = vadd.f32 %v2088_v22, %v2005_v19  ;;  %v2007_v3 = vpop.f32.mrb[31].mxu0  ;;  %v2066_v58 = vpop.f32.mrb[28].mxu1 }
 0x25b   : > { %v2135_v32 = vadd.f32 %v2103_v59, %v2066_v58  ;;  %v2068_v52 = vpop.f32.mrb[29].mxu1 }
 0x25c   : > { %2152 = vst.msk [vmem:[%s3963_s25 + $0x78] sm:$0xff] %vm192_vm0, %v2120_v30  ;;  %v2069_v15 = vpop.f32.mrb[30].mxu1 }
 0x25d   : > { %2167 = vst.msk [vmem:[%s3963_s25 + $0xf0] sm:$0xff] %vm192_vm0, %v2135_v32  ;;  %v2136_v12 = vadd.f32 %v2104_v63, %v2069_v15  ;;  %v2071_v25 = vpop.f32.mrb[31].mxu1 }
 0x25f   : > { %2168 = vst.msk [vmem:[%s3963_s25 + $0xf8] sm:$0xff] %vm192_vm0, %v2136_v12 }
 0x260 PF: > { %s13_s12 = sadd.s32 1, %s2978_s12  }
 0x261   : > { %p10_p4 = scmp.ge.s32.totalorder %s13_s12, 4  }
 0x263   :  { %12 = sbr.rel (!%p10_p4) target bundleno = 1 (0x1), region = 67 }

// kernel: fwd.4
= control target key start
LH: loop header
LB: loop body
LE: loop exit
PB: predicated region body
PF: predicated region fallthrough
CT: control target
= control target key end

     0   :  { %s3312_s21 = smov 0   ;;  %s4488_s0 = inlined_call_operand.vmem [shape: f32[2,16,16,16], index: 0, kind: input, shape index: {}]   ;;  %s4489_s1 = inlined_call_operand.vmem [shape: f32[1,1,16], index: 1, kind: input, shape index: {}]   ;;  %s4490_s2 = inlined_call_operand.vmem [shape: f32[1,1,16], index: 2, kind: input, shape index: {}]   ;;  %s4491_s3 = inlined_call_operand.vmem [shape: bf16[144,16], index: 3, kind: input, shape index: {}]   ;;  %s4492_s4 = inlined_call_operand.vmem [shape: f32[1,16], index: 4, kind: input, shape index: {}]   ;;  %s4493_s5 = inlined_call_operand.vmem [shape: f32[1,16], index: 5, kind: input, shape index: {}]   ;;  %s4494_s6 = inlined_call_operand.vmem [shape: bf16[2,16,16,16], index: 6, kind: output, shape index: {}]  }
   0x1 LB: > { %s2538_s22 = sadd.s32 4294967295, %s3266_s21   ;;  %p2542_p0 = scmp.ge.s32.totalorder %s3266_s21, 1  ;;  %s3266_s21 = sphi %s3312_s21, %s16_s21  }
   0x2   : > { %p212_p1 = scmp.lt.s32.totalorder %s3266_s21, 3 }
   0x4   : > { %p213_p2 = pnand %p2542_p0, %p212_p1 }
   0x6   : > { %216 = sbr.rel (%p213_p2) target bundleno = 614 (0x266), region = 44 }
   0xd   : > { %vm253_vm0 = vcmask 130048   ;;  %vm256_vm1 = vcmask 123904   ;;  %p3322_p3 = scmp.lt.s32.totalorder %s2538_s22, 1  ;;  %v3268_v0 = vmov 0.0   ;;  %v3389_v1 = vld [vmem:[%s4489_s1] ss:$0 sm:$0xff] }
   0xe   : > { %254 = vst.msk [vmem:[#allocation2] sm:$0xff] %vm253_vm0, %v3268_v0  ;;  %255 = vst.msk [vmem:[#allocation2 + $0x8] sm:$0xff] %vm253_vm0, %v3268_v0  ;;  %v3400_v2 = vld [vmem:[%s4490_s2] ss:$0 sm:$0xff]  ;;  %s3269_s8 = smov 16   ;;  %s3271_s13 = smov 32  }
   0xf   : > { %257 = vst.msk [vmem:[#allocation2 + $0x10] sm:$0x3] %vm256_vm1, %v3268_v0  ;;  %260 = vst.msk [vmem:[#allocation2 + $0x28] sm:$0x3] %vm256_vm1, %v3268_v0  ;;  %s4553_s22 = smov (!%p3322_p3, %s2538_s22), 1  ;;  %s3275_s9 = smov 96  }
  0x10   : > { %258 = vst.msk [vmem:[#allocation2 + $0x18] sm:$0xff] %vm253_vm0, %v3268_v0  ;;  %259 = vst.msk [vmem:[#allocation2 + $0x20] sm:$0xff] %vm253_vm0, %v3268_v0  ;;  %s2610_s26 = sshll.u32 %s4553_s22, 8  ;;  %s3276_s10 = smov 112   ;;  %vm1701_vm2 = vcmask 261120   ;;  %vm1734_vm3 = vcmask 392192  }
  0x11   : > { %261 = vst.msk [vmem:[#allocation2 + $0x30] sm:$0xff] %vm253_vm0, %v3268_v0  ;;  %262 = vst.msk [vmem:[#allocation2 + $0x38] sm:$0xff] %vm253_vm0, %v3268_v0  ;;  %s3395_s29 = scalar_lea.vmem %s4488_s0, %s2610_s26  ;;  %s3272_s26 = smov 48   ;;  %vm1767_vm4 = vcmask 523264   ;;  %vm1800_vm5 = vcmask 654336   ;;  %vm1833_vm6 = vcmask 785408  }
  0x12   : > { %263 = vst.msk [vmem:[#allocation2 + $0x40] sm:$0x3] %vm256_vm1, %v3268_v0  ;;  %266 = vst.msk [vmem:[#allocation2 + $0x58] sm:$0x3] %vm256_vm1, %v3268_v0  ;;  %v311_v3 = vld [vmem:[%s3395_s29 + $0x10] sm:$0xff]  ;;  %v312_v4 = vld [vmem:[%s3395_s29 + $0x18] sm:$0xff] }
  0x13   : > { %264 = vst.msk [vmem:[#allocation2 + $0x48] sm:$0xff] %vm253_vm0, %v3268_v0  ;;  %265 = vst.msk [vmem:[#allocation2 + $0x50] sm:$0xff] %vm253_vm0, %v3268_v0  ;;  %v309_v5 = vld [vmem:[%s3395_s29] sm:$0xff]  ;;  %v350_v6 = vmul.f32 %v3389_v1, %v311_v3  ;;  %v351_v7 = vmul.f32 %v3389_v1, %v312_v4  ;;  %v310_v8 = vld [vmem:[%s3395_s29 + $0x8] sm:$0xff]  ;;  %vm1866_vm7 = vcmask 916480   ;;  %s2611_s15 = sshll.u32 %s4553_s22, 7 }
  0x14   : > { %267 = vst.msk [vmem:[#allocation2 + $0x60] sm:$0xff] %vm253_vm0, %v3268_v0  ;;  %268 = vst.msk [vmem:[#allocation2 + $0x68] sm:$0xff] %vm253_vm0, %v3268_v0  ;;  %v348_v9 = vmul.f32 %v3389_v1, %v309_v5  ;;  %v313_v10 = vld [vmem:[%s3395_s29 + $0x20] sm:$0xff]  ;;  %v314_v11 = vld [vmem:[%s3395_s29 + $0x28] sm:$0xff]  ;;  %v349_v14 = vmul.f32 %v3389_v1, %v310_v8  ;;  %s4362_s18 = scalar_lea.vmem %s4494_s6, %s2611_s15  ;;  %vm2450_vm8 = vcmask 125952  }
  0x15   : > { %269 = vst.msk [vmem:[#allocation2 + $0x70] sm:$0x3] %vm256_vm1, %v3268_v0  ;;  %272 = vst.msk [vmem:[#allocation2 + $0x88] sm:$0x3] %vm256_vm1, %v3268_v0  ;;  %v516_v12 = vld [vmem:[#allocation2 + $0x1] sm:$0xff]  ;;  %v352_v15 = vmul.f32 %v3389_v1, %v313_v10  ;;  %v353_v16 = vmul.f32 %v3389_v1, %v314_v11  ;;  %v315_v17 = vld [vmem:[%s3395_s29 + $0x30] sm:$0xff]  ;;  %v389_v19 = vadd.f32 %v3400_v2, %v350_v6 }
  0x16   : > { %270 = vst.msk [vmem:[#allocation2 + $0x78] sm:$0xff] %vm253_vm0, %v3268_v0  ;;  %271 = vst.msk [vmem:[#allocation2 + $0x80] sm:$0xff] %vm253_vm0, %v3268_v0  ;;  %v517_v13 = vld [vmem:[#allocation2 + $0x9] sm:$0xff]  ;;  %v390_v20 = vadd.f32 %v3400_v2, %v351_v7  ;;  %v387_v21 = vadd.f32 %v3400_v2, %v348_v9  ;;  %v316_v22 = vld [vmem:[%s3395_s29 + $0x38] sm:$0xff]  ;;  %v388_v23 = vadd.f32 %v3400_v2, %v349_v14 }
  0x17   : > { %273 = vst.msk [vmem:[#allocation2 + $0x90] sm:$0xff] %vm253_vm0, %v3268_v0  ;;  %274 = vst.msk [vmem:[#allocation2 + $0x98] sm:$0xff] %vm253_vm0, %v3268_v0  ;;  %v2679_v18 = vpack.i.bf16 %v517_v13, %v516_v12  ;;  %v391_v24 = vadd.f32 %v3400_v2, %v352_v15  ;;  %v392_v25 = vadd.f32 %v3400_v2, %v353_v16  ;;  %v317_v27 = vld [vmem:[%s3395_s29 + $0x40] sm:$0xff]  ;;  %v318_v28 = vld [vmem:[%s3395_s29 + $0x48] sm:$0xff]  ;;  %v421_v30 = vmax.f32 %v389_v19, 0.0 }
  0x18   : > { %275 = vst.msk [vmem:[#allocation2 + $0xa0] sm:$0x3] %vm256_vm1, %v3268_v0  ;;  %278 = vst.msk [vmem:[#allocation2 + $0xb8] sm:$0x3] %vm256_vm1, %v3268_v0  ;;  %v354_v26 = vmul.f32 %v3389_v1, %v315_v17  ;;  %v319_v29 = vld [vmem:[%s3395_s29 + $0x50] sm:$0xff]  ;;  %v422_v31 = vmax.f32 %v390_v20, 0.0  ;;  %v355_v33 = vmul.f32 %v3389_v1, %v316_v22  ;;  %v356_v42 = vmul.f32 %v3389_v1, %v317_v27 }
  0x19   : > { %276 = vst.msk [vmem:[#allocation2 + $0xa8] sm:$0xff] %vm253_vm0, %v3268_v0  ;;  %277 = vst.msk [vmem:[#allocation2 + $0xb0] sm:$0xff] %vm253_vm0, %v3268_v0  ;;  %2680 = vrot.lane.b32.xlu0 %v2679_v18, %s3269_s8  ;;  %v419_v32 = vmax.f32 %v387_v21, 0.0  ;;  %v320_v34 = vld [vmem:[%s3395_s29 + $0x58] sm:$0xff]  ;;  %v321_v35 = vld [vmem:[%s3395_s29 + $0x60] sm:$0xff]  ;;  %v420_v37 = vmax.f32 %v388_v23, 0.0  ;;  %v357_v43 = vmul.f32 %v3389_v1, %v318_v28  ;;  %v358_v44 = vmul.f32 %v3389_v1, %v319_v29 }
  0x1a   : > { %279 = vst.msk [vmem:[#allocation2 + $0xc0] sm:$0xff] %vm253_vm0, %v3268_v0  ;;  %280 = vst.msk [vmem:[#allocation2 + $0xc8] sm:$0xff] %vm253_vm0, %v3268_v0  ;;  %v322_v36 = vld [vmem:[%s3395_s29 + $0x68] sm:$0xff]  ;;  %v423_v38 = vmax.f32 %v391_v24, 0.0  ;;  %v424_v39 = vmax.f32 %v392_v25, 0.0  ;;  %v393_v40 = vadd.f32 %v3400_v2, %v354_v26  ;;  %v394_v41 = vadd.f32 %v3400_v2, %v355_v33  ;;  %v323_v45 = vld [vmem:[%s3395_s29 + $0x70] sm:$0xff] }
  0x1b   : > { %281 = vst.msk [vmem:[#allocation2 + $0xd0] sm:$0x3] %vm256_vm1, %v3268_v0  ;;  %284 = vst.msk [vmem:[#allocation2 + $0xe8] sm:$0x3] %vm256_vm1, %v3268_v0  ;;  %v359_v47 = vmul.f32 %v3389_v1, %v320_v34  ;;  %v360_v48 = vmul.f32 %v3389_v1, %v321_v35  ;;  %v361_v49 = vmul.f32 %v3389_v1, %v322_v36  ;;  %v324_v50 = vld [vmem:[%s3395_s29 + $0x78] sm:$0xff]  ;;  %v325_v59 = vld [vmem:[%s3395_s29 + $0x80] sm:$0xff] }
  0x1c   : > { %282 = vst.msk [vmem:[#allocation2 + $0xd8] sm:$0xff] %vm253_vm0, %v3268_v0  ;;  %283 = vst.msk [vmem:[#allocation2 + $0xe0] sm:$0xff] %vm253_vm0, %v3268_v0  ;;  %v425_v46 = vmax.f32 %v393_v40, 0.0  ;;  %v426_v51 = vmax.f32 %v394_v41, 0.0  ;;  %v395_v52 = vadd.f32 %v3400_v2, %v356_v42  ;;  %v396_v53 = vadd.f32 %v3400_v2, %v357_v43  ;;  %v326_v60 = vld [vmem:[%s3395_s29 + $0x88] sm:$0xff]  ;;  %v327_v61 = vld [vmem:[%s3395_s29 + $0x90] sm:$0xff] }
  0x1d   : > { %285 = vst.msk [vmem:[#allocation2 + $0xf0] sm:$0xff] %vm253_vm0, %v3268_v0  ;;  %286 = vst.msk [vmem:[#allocation2 + $0xf8] sm:$0xff] %vm253_vm0, %v3268_v0  ;;  %v397_v54 = vadd.f32 %v3400_v2, %v358_v44  ;;  %v398_v55 = vadd.f32 %v3400_v2, %v359_v47  ;;  %v399_v56 = vadd.f32 %v3400_v2, %v360_v48  ;;  %v328_v4 = vld [vmem:[%s3395_s29 + $0x98] sm:$0xff]  ;;  %v329_v5 = vld [vmem:[%s3395_s29 + $0xa0] sm:$0xff] }
  0x1e   : > { %287 = vst.msk [vmem:[#allocation2 + $0x100] sm:$0x3] %vm256_vm1, %v3268_v0  ;;  %290 = vst.msk [vmem:[#allocation2 + $0x118] sm:$0x3] %vm256_vm1, %v3268_v0  ;;  %v400_v57 = vadd.f32 %v3400_v2, %v361_v49  ;;  %v362_v58 = vmul.f32 %v3389_v1, %v323_v45  ;;  %v427_v62 = vmax.f32 %v395_v52, 0.0  ;;  %v428_v63 = vmax.f32 %v396_v53, 0.0 }
  0x1f   : > { %288 = vst.msk [vmem:[#allocation2 + $0x108] sm:$0xff] %vm253_vm0, %v3268_v0  ;;  %289 = vst.msk [vmem:[#allocation2 + $0x110] sm:$0xff] %vm253_vm0, %v3268_v0  ;;  %v363_v3 = vmul.f32 %v3389_v1, %v324_v50  ;;  %v330_v6 = vld [vmem:[%s3395_s29 + $0xa8] sm:$0xff]  ;;  %v430_v7 = vmax.f32 %v398_v55, 0.0  ;;  %v431_v8 = vmax.f32 %v399_v56, 0.0  ;;  %v364_v12 = vmul.f32 %v3389_v1, %v325_v59  ;;  %v331_v15 = vld [vmem:[%s3395_s29 + $0xb0] sm:$0xff] }
  0x20   : > { %291 = vst.msk [vmem:[#allocation2 + $0x120] sm:$0xff] %vm253_vm0, %v3268_v0  ;;  %292 = vst.msk [vmem:[#allocation2 + $0x128] sm:$0xff] %vm253_vm0, %v3268_v0  ;;  %v432_v9 = vmax.f32 %v400_v57, 0.0  ;;  %v401_v10 = vadd.f32 %v3400_v2, %v362_v58  ;;  %v365_v13 = vmul.f32 %v3389_v1, %v326_v60  ;;  %v366_v14 = vmul.f32 %v3389_v1, %v327_v61  ;;  %v332_v16 = vld [vmem:[%s3395_s29 + $0xb8] sm:$0xff]  ;;  %v333_v35 = vld [vmem:[%s3395_s29 + $0xc0] sm:$0xff] }
  0x21   : > { %293 = vst.msk [vmem:[#allocation2 + $0x130] sm:$0x3] %vm256_vm1, %v3268_v0  ;;  %296 = vst.msk [vmem:[#allocation2 + $0x148] sm:$0x3] %vm256_vm1, %v3268_v0  ;;  %v402_v11 = vadd.f32 %v3400_v2, %v363_v3  ;;  %v367_v21 = vmul.f32 %v3389_v1, %v328_v4  ;;  %v368_v22 = vmul.f32 %v3389_v1, %v329_v5  ;;  %v334_v41 = vld [vmem:[%s3395_s29 + $0xc8] sm:$0xff]  ;;  %v335_v42 = vld [vmem:[%s3395_s29 + $0xd0] sm:$0xff] }
  0x22   : > { %294 = vst.msk [vmem:[#allocation2 + $0x138] sm:$0xff] %vm253_vm0, %v3268_v0  ;;  %295 = vst.msk [vmem:[#allocation2 + $0x140] sm:$0xff] %vm253_vm0, %v3268_v0  ;;  %v433_v20 = vmax.f32 %v401_v10, 0.0  ;;  %v369_v23 = vmul.f32 %v3389_v1, %v330_v6  ;;  %v403_v29 = vadd.f32 %v3400_v2, %v364_v12  ;;  %v405_v33 = vadd.f32 %v3400_v2, %v366_v14  ;;  %v336_v48 = vld [vmem:[%s3395_s29 + $0xd8] sm:$0xff]  ;;  %v337_v49 = vld [vmem:[%s3395_s29 + $0xe0] sm:$0xff] }
  0x23   : > { %297 = vst.msk [vmem:[#allocation2 + $0x150] sm:$0xff] %vm253_vm0, %v3268_v0  ;;  %298 = vst.msk [vmem:[#allocation2 + $0x158] sm:$0xff] %vm253_vm0, %v3268_v0  ;;  %v434_v28 = vmax.f32 %v402_v11, 0.0  ;;  %v406_v34 = vadd.f32 %v3400_v2, %v367_v21  ;;  %v371_v47 = vmul.f32 %v3389_v1, %v332_v16  ;;  %v372_v53 = vmul.f32 %v3389_v1, %v333_v35  ;;  %v338_v3 = vld [vmem:[%s3395_s29 + $0xe8] sm:$0xff] }
  0x24   : > { %299 = vst.msk [vmem:[#allocation2 + $0x160] sm:$0x3] %vm256_vm1, %v3268_v0  ;;  %302 = vst.msk [vmem:[#allocation2 + $0x178] sm:$0x3] %vm256_vm1, %v3268_v0  ;;  %v408_v40 = vadd.f32 %v3400_v2, %v369_v23  ;;  %v437_v44 = vmax.f32 %v405_v33, 0.0  ;;  %v373_v59 = vmul.f32 %v3389_v1, %v334_v41  ;;  %v374_v60 = vmul.f32 %v3389_v1, %v335_v42 }
  0x25   : > { %300 = vst.msk [vmem:[#allocation2 + $0x168] sm:$0xff] %vm253_vm0, %v3268_v0  ;;  %301 = vst.msk [vmem:[#allocation2 + $0x170] sm:$0xff] %vm253_vm0, %v3268_v0  ;;  %v438_v45 = vmax.f32 %v406_v34, 0.0  ;;  %v410_v58 = vadd.f32 %v3400_v2, %v371_v47  ;;  %v376_v4 = vmul.f32 %v3389_v1, %v337_v49  ;;  %v377_v16 = vmul.f32 %v3389_v1, %v338_v3  ;;  %v548_v49 = vld [vmem:[#allocation2 + $0x2] sm:$0xff] }
  0x26   : > { %303 = vst.msk [vmem:[#allocation2 + $0x180] sm:$0xff] %vm253_vm0, %v3268_v0  ;;  %304 = vst.msk [vmem:[#allocation2 + $0x188] sm:$0xff] %vm253_vm0, %v3268_v0  ;;  %v440_v52 = vmax.f32 %v408_v40, 0.0  ;;  %v412_v11 = vadd.f32 %v3400_v2, %v373_v59  ;;  %v3239_v59 = vld [vmem:[%s4491_s3] sm:$0xff]  }
  0x27   : > { %305 = vst.msk [vmem:[#allocation2 + $0x190] sm:$0x3] %vm256_vm1, %v3268_v0  ;;  %308 = vst.msk [vmem:[#allocation2 + $0x1a8] sm:$0x3] %vm256_vm1, %v3268_v0 }
  0x28   : > { %306 = vst.msk [vmem:[#allocation2 + $0x198] sm:$0xff] %vm253_vm0, %v3268_v0  ;;  %307 = vst.msk [vmem:[#allocation2 + $0x1a0] sm:$0xff] %vm253_vm0, %v3268_v0  ;;  %v429_v0 = vmax.f32 %v397_v54, 0.0 }
  0x29   : > { %454 = vst.msk [vmem:[#allocation2 + $0x31] sm:$0xff] %vm253_vm0, %v421_v30  ;;  %455 = vst.msk [vmem:[#allocation2 + $0x39] sm:$0xff] %vm253_vm0, %v422_v31  ;;  %v404_v30 = vadd.f32 %v3400_v2, %v365_v13  ;;  %v413_v13 = vadd.f32 %v3400_v2, %v374_v60 }
  0x2a   : > { %452 = vst.msk [vmem:[#allocation2 + $0x19] sm:$0xff] %vm253_vm0, %v419_v32  ;;  %453 = vst.msk [vmem:[#allocation2 + $0x21] sm:$0xff] %vm253_vm0, %v420_v37  ;;  %v435_v37 = vmax.f32 %v403_v29, 0.0 }
  0x2b   : > { %456 = vst.msk [vmem:[#allocation2 + $0x49] sm:$0xff] %vm253_vm0, %v423_v38  ;;  %457 = vst.msk [vmem:[#allocation2 + $0x51] sm:$0xff] %vm253_vm0, %v424_v39  ;;  %v436_v38 = vmax.f32 %v404_v30, 0.0  ;;  %v407_v39 = vadd.f32 %v3400_v2, %v368_v22 }
  0x2c   : > { %458 = vst.msk [vmem:[#allocation2 + $0x61] sm:$0xff] %vm253_vm0, %v425_v46  ;;  %459 = vst.msk [vmem:[#allocation2 + $0x69] sm:$0xff] %vm253_vm0, %v426_v51  ;;  %v370_v46 = vmul.f32 %v3389_v1, %v331_v15 }
  0x2d   : > { %460 = vst.msk [vmem:[#allocation2 + $0x79] sm:$0xff] %vm253_vm0, %v427_v62  ;;  %461 = vst.msk [vmem:[#allocation2 + $0x81] sm:$0xff] %vm253_vm0, %v428_v63  ;;  %v439_v51 = vmax.f32 %v407_v39, 0.0  ;;  %v411_v63 = vadd.f32 %v3400_v2, %v372_v53 }
  0x2e   : > { %462 = vst.msk [vmem:[#allocation2 + $0x91] sm:$0xff] %vm253_vm0, %v429_v0  ;;  %463 = vst.msk [vmem:[#allocation2 + $0x99] sm:$0xff] %vm253_vm0, %v430_v7  ;;  %v409_v57 = vadd.f32 %v3400_v2, %v370_v46  ;;  %v375_v0 = vmul.f32 %v3389_v1, %v336_v48 }
  0x2f   : > { %464 = vst.msk [vmem:[#allocation2 + $0xa9] sm:$0xff] %vm253_vm0, %v431_v8  ;;  %465 = vst.msk [vmem:[#allocation2 + $0xb1] sm:$0xff] %vm253_vm0, %v432_v9  ;;  %v442_v9 = vmax.f32 %v410_v58, 0.0  ;;  %v443_v12 = vmax.f32 %v411_v63, 0.0 }
  0x30   : > { %v520_v17 = vld [vmem:[#allocation2 + $0x31] sm:$0xff]  ;;  %v521_v18 = vld [vmem:[#allocation2 + $0x39] sm:$0xff]  ;;  %466 = vst.msk [vmem:[#allocation2 + $0xc1] sm:$0xff] %vm253_vm0, %v433_v20  ;;  %467 = vst.msk [vmem:[#allocation2 + $0xc9] sm:$0xff] %vm253_vm0, %v434_v28  ;;  %v441_v8 = vmax.f32 %v409_v57, 0.0  ;;  %v414_v14 = vadd.f32 %v3400_v2, %v375_v0  ;;  %v445_v20 = vmax.f32 %v413_v13, 0.0 }
  0x31   : > { %v518_v19 = vld [vmem:[#allocation2 + $0x19] sm:$0xff]  ;;  %v3479_v24 = vpack.i.bf16 %v521_v18, %v520_v17  ;;  %v519_v25 = vld [vmem:[#allocation2 + $0x21] sm:$0xff]  ;;  %468 = vst.msk [vmem:[#allocation2 + $0xd9] sm:$0xff] %vm253_vm0, %v435_v37  ;;  %469 = vst.msk [vmem:[#allocation2 + $0xe1] sm:$0xff] %vm253_vm0, %v436_v38  ;;  %v415_v17 = vadd.f32 %v3400_v2, %v376_v4  ;;  %v3270_v57 = vmov 0  }
  0x32   : > { %v522_v26 = vld [vmem:[#allocation2 + $0x49] sm:$0xff]  ;;  %v523_v27 = vld [vmem:[#allocation2 + $0x51] sm:$0xff]  ;;  %v3483_v31 = vpack.i.bf16 %v519_v25, %v518_v19  ;;  %470 = vst.msk [vmem:[#allocation2 + $0xf1] sm:$0xff] %vm253_vm0, %v437_v44  ;;  %471 = vst.msk [vmem:[#allocation2 + $0xf9] sm:$0xff] %vm253_vm0, %v438_v45  ;;  %v444_v19 = vmax.f32 %v412_v11, 0.0  ;;  %v446_v21 = vmax.f32 %v414_v14, 0.0  ;;  %2051 = vmatprep.subr.bf16.mxu0 %v3270_v57  ;;  %2644 = vmatprep.subr.bf16.mxu1 %v3270_v57 }
  0x33   : > { %v3485_v32 = vpack.i.bf16 %v523_v27, %v522_v26  ;;  %2690 = vrot.lane.b32.xlu1 %v3479_v24, %s3269_s8  ;;  %v524_v36 = vld [vmem:[#allocation2 + $0x61] sm:$0xff]  ;;  %v525_v43 = vld [vmem:[#allocation2 + $0x69] sm:$0xff]  ;;  %472 = vst.msk [vmem:[#allocation2 + $0x109] sm:$0xff] %vm253_vm0, %v439_v51  ;;  %473 = vst.msk [vmem:[#allocation2 + $0x111] sm:$0xff] %vm253_vm0, %v440_v52  ;;  %v416_v26 = vadd.f32 %v3400_v2, %v377_v16  ;;  %v447_v27 = vmax.f32 %v415_v17, 0.0  ;;  %2052 = vmatpush1.bf16.msra.mxu0 %v3239_v59 }
  0x34   : > { %2685 = vrot.lane.b32.xlu0 %v3483_v31, %s3269_s8  ;;  %v3504_v50 = vpack.i.bf16 %v525_v43, %v524_v36  ;;  %v526_v54 = vld [vmem:[#allocation2 + $0x79] sm:$0xff]  ;;  %v527_v55 = vld [vmem:[#allocation2 + $0x81] sm:$0xff]  ;;  %474 = vst.msk [vmem:[#allocation2 + $0x121] sm:$0xff] %vm253_vm0, %v441_v8  ;;  %475 = vst.msk [vmem:[#allocation2 + $0x129] sm:$0xff] %vm253_vm0, %v442_v9  ;;  %2653 = vmatpush1.bf16.msra.mxu1 %v3239_v59 }
  0x35   : > { %v528_v56 = vld [vmem:[#allocation2 + $0x91] sm:$0xff]  ;;  %v3517_v61 = vpack.i.bf16 %v527_v55, %v526_v54  ;;  %v529_v62 = vld [vmem:[#allocation2 + $0x99] sm:$0xff]  ;;  %476 = vst.msk [vmem:[#allocation2 + $0x139] sm:$0xff] %vm253_vm0, %v443_v12  ;;  %477 = vst.msk [vmem:[#allocation2 + $0x141] sm:$0xff] %vm253_vm0, %v444_v19  ;;  %v448_v30 = vmax.f32 %v416_v26, 0.0  ;;  %2053 = vmatprep.subr.bf16.mxu0 %v3270_v57  ;;  %2645 = vmatprep.subr.bf16.mxu1 %v3270_v57 }
  0x36   : > { %v2709_v5 = vpack.i.bf16 %v529_v62, %v528_v56  ;;  %v530_v6 = vld [vmem:[#allocation2 + $0xa9] sm:$0xff]  ;;  %v531_v7 = vld [vmem:[#allocation2 + $0xb1] sm:$0xff]  ;;  %478 = vst.msk [vmem:[#allocation2 + $0x151] sm:$0xff] %vm253_vm0, %v445_v20  ;;  %479 = vst.msk [vmem:[#allocation2 + $0x159] sm:$0xff] %vm253_vm0, %v446_v21 }
  0x37   : > { %2695 = vrot.lane.b32.xlu1 %v3485_v32, %s3269_s8  ;;  %v532_v10 = vld [vmem:[#allocation2 + $0xc1] sm:$0xff]  ;;  %v533_v15 = vld [vmem:[#allocation2 + $0xc9] sm:$0xff]  ;;  %v2714_v18 = vpack.i.bf16 %v531_v7, %v530_v6  ;;  %480 = vst.msk [vmem:[#allocation2 + $0x169] sm:$0xff] %vm253_vm0, %v447_v27  ;;  %481 = vst.msk [vmem:[#allocation2 + $0x171] sm:$0xff] %vm253_vm0, %v448_v30 }
  0x38   : > { %2700 = vrot.lane.b32.xlu0 %v3504_v50, %s3269_s8  ;;  %v2719_v22 = vpack.i.bf16 %v533_v15, %v532_v10  ;;  %v534_v23 = vld [vmem:[#allocation2 + $0xd9] sm:$0xff]  ;;  %v535_v25 = vld [vmem:[#allocation2 + $0xe1] sm:$0xff]  ;;  %v549_v51 = vld [vmem:[#allocation2 + $0xa] sm:$0xff] }
  0x39   : > { %v536_v28 = vld [vmem:[#allocation2 + $0xf1] sm:$0xff]  ;;  %v537_v29 = vld [vmem:[#allocation2 + $0xf9] sm:$0xff]  ;;  %v3544_v33 = vpack.i.bf16 %v535_v25, %v534_v23  ;;  %v2759_v53 = vpack.i.bf16 %v549_v51, %v548_v49  ;;  %v551_v55 = vld [vmem:[#allocation2 + $0x22] sm:$0xff] }
  0x3a   : > { %v3547_v34 = vpack.i.bf16 %v537_v29, %v536_v28  ;;  %v538_v35 = vld [vmem:[#allocation2 + $0x109] sm:$0xff]  ;;  %v539_v36 = vld [vmem:[#allocation2 + $0x111] sm:$0xff]  ;;  %v550_v54 = vld [vmem:[#allocation2 + $0x1a] sm:$0xff] }
  0x3b   : > { %2705 = vrot.lane.b32.xlu1 %v3517_v61, %s3269_s8  ;;  %v540_v37 = vld [vmem:[#allocation2 + $0x121] sm:$0xff]  ;;  %v541_v38 = vld [vmem:[#allocation2 + $0x129] sm:$0xff]  ;;  %v3552_v39 = vpack.i.bf16 %v539_v36, %v538_v35  ;;  %v552_v56 = vld [vmem:[#allocation2 + $0x32] sm:$0xff]  ;;  %v3576_v60 = vpack.i.bf16 %v551_v55, %v550_v54 }
  0x3c   : > { %2710 = vrot.lane.b32.xlu0 %v2709_v5, %s3269_s8  ;;  %v3556_v40 = vpack.i.bf16 %v541_v38, %v540_v37  ;;  %v542_v41 = vld [vmem:[#allocation2 + $0x139] sm:$0xff]  ;;  %v543_v42 = vld [vmem:[#allocation2 + $0x141] sm:$0xff]  ;;  %v554_v0 = vld [vmem:[#allocation2 + $0x4a] sm:$0xff] }
  0x3d   : > { %v544_v43 = vld [vmem:[#allocation2 + $0x151] sm:$0xff]  ;;  %v545_v44 = vld [vmem:[#allocation2 + $0x159] sm:$0xff]  ;;  %v3560_v45 = vpack.i.bf16 %v543_v42, %v542_v41  ;;  %v3240_v62 = vld [vmem:[%s4491_s3 + $0x8] sm:$0xff]  }
  0x3e   : > { %v3564_v46 = vpack.i.bf16 %v545_v44, %v544_v43  ;;  %v546_v47 = vld [vmem:[#allocation2 + $0x169] sm:$0xff]  ;;  %v547_v48 = vld [vmem:[#allocation2 + $0x171] sm:$0xff]  ;;  %v553_v58 = vld [vmem:[#allocation2 + $0x3a] sm:$0xff]  ;;  %2054 = vmatpush1.bf16.msra.mxu0 %v3240_v62  ;;  %2654 = vmatpush1.bf16.msra.mxu1 %v3240_v62 }
  0x3f   : > { %2715 = vrot.lane.b32.xlu1 %v2714_v18, %s3269_s8  ;;  %v2754_v52 = vpack.i.bf16 %v547_v48, %v546_v47  ;;  %v3582_v63 = vpack.i.bf16 %v553_v58, %v552_v56  ;;  %v555_v3 = vld [vmem:[#allocation2 + $0x52] sm:$0xff]  ;;  %v556_v4 = vld [vmem:[#allocation2 + $0x62] sm:$0xff]  ;;  %v557_v5 = vld [vmem:[#allocation2 + $0x6a] sm:$0xff]  ;;  %2055 = vmatprep.subr.bf16.mxu0 %v3270_v57 }
  0x40   : > { %2720 = vrot.lane.b32.xlu0 %v2719_v22, %s3269_s8  ;;  %v3588_v6 = vpack.i.bf16 %v555_v3, %v554_v0  ;;  %v3241_v7 = vld [vmem:[%s4491_s3 + $0x10] sm:$0xff]   ;;  %v3595_v8 = vpack.i.bf16 %v557_v5, %v556_v4  ;;  %v558_v9 = vld [vmem:[#allocation2 + $0x7a] sm:$0xff]  ;;  %v559_v10 = vld [vmem:[#allocation2 + $0x82] sm:$0xff]  ;;  %2646 = vmatprep.subr.bf16.mxu1 %v3270_v57 }
  0x41   : > { %v560_v11 = vld [vmem:[#allocation2 + $0x92] sm:$0xff]  ;;  %v561_v12 = vld [vmem:[#allocation2 + $0x9a] sm:$0xff]  ;;  %v3601_v13 = vpack.i.bf16 %v559_v10, %v558_v9  ;;  %v562_v16 = vld [vmem:[#allocation2 + $0xaa] sm:$0xff] }
  0x42   : > { %2056 = vmatpush1.bf16.msra.mxu0 %v3241_v7  ;;  %v3242_v14 = vld [vmem:[%s4491_s3 + $0x18] sm:$0xff]   ;;  %v3608_v15 = vpack.i.bf16 %v561_v12, %v560_v11  ;;  %2655 = vmatpush1.bf16.msra.mxu1 %v3241_v7  ;;  %v564_v18 = vld [vmem:[#allocation2 + $0xc2] sm:$0xff]  ;;  %v565_v19 = vld [vmem:[#allocation2 + $0xca] sm:$0xff] }
  0x43   : > { %2725 = vrot.lane.b32.xlu1 %v3544_v33, %s3269_s8  ;;  %v563_v17 = vld [vmem:[#allocation2 + $0xb2] sm:$0xff]  ;;  %2057 = vmatprep.subr.bf16.mxu0 %v3270_v57  ;;  %v3243_v21 = vld [vmem:[%s4491_s3 + $0x20] sm:$0xff]   ;;  %v2799_v22 = vpack.i.bf16 %v565_v19, %v564_v18  ;;  %v3244_v29 = vld [vmem:[%s4491_s3 + $0x28] sm:$0xff]  }
  0x44   : > { %2730 = vrot.lane.b32.xlu0 %v3547_v34, %s3269_s8  ;;  %2647 = vmatprep.subr.bf16.mxu1 %v3270_v57  ;;  %v2794_v20 = vpack.i.bf16 %v563_v17, %v562_v16  ;;  %v566_v23 = vld [vmem:[#allocation2 + $0xda] sm:$0xff]  ;;  %v567_v25 = vld [vmem:[#allocation2 + $0xe2] sm:$0xff]  ;;  %v568_v26 = vld [vmem:[#allocation2 + $0xf2] sm:$0xff] }
  0x45   : > { %v569_v27 = vld [vmem:[#allocation2 + $0xfa] sm:$0xff]  ;;  %v2804_v28 = vpack.i.bf16 %v567_v25, %v566_v23  ;;  %v3245_v42 = vld [vmem:[%s4491_s3 + $0x30] sm:$0xff]   ;;  %v3707_v9 = vld [vmem:[#allocation2 + $0x108] sm:$0xff] }
  0x46   : > { %2058 = vmatpush1.bf16.msra.mxu0 %v3242_v14  ;;  %2656 = vmatpush1.bf16.msra.mxu1 %v3242_v14  ;;  %v3626_v30 = vpack.i.bf16 %v569_v27, %v568_v26  ;;  %v3628_v35 = vld [vmem:[#allocation2 + $0x18] sm:$0xff]  ;;  %v3630_v36 = vld [vmem:[#allocation2 + $0x20] sm:$0xff]  ;;  %v339_v43 = vld [vmem:[%s3395_s29 + $0xf0] sm:$0xff] }
  0x47   : > { %2735 = vrot.lane.b32.xlu1 %v3552_v39, %s3269_s8  ;;  %2059 = vmatprep.subr.bf16.mxu0 %v3270_v57  ;;  %v3632_v37 = vld [vmem:[#allocation2 + $0xd8] sm:$0xff]  ;;  %v3634_v38 = vld [vmem:[#allocation2 + $0xe0] sm:$0xff]  ;;  %v2814_v41 = vpack.i.bf16 %v3630_v36, %v3628_v35  ;;  %v378_v48 = vmul.f32 %v3389_v1, %v339_v43  ;;  %v3676_v0 = vld [vmem:[#allocation2 + $0xf0] sm:$0xff] }
  0x48   : > { %2740 = vrot.lane.b32.xlu0 %v3556_v40, %s3269_s8  ;;  %2648 = vmatprep.subr.bf16.mxu1 %v3270_v57  ;;  %v340_v44 = vld [vmem:[%s3395_s29 + $0xf8] sm:$0xff]  ;;  %v2819_v47 = vpack.i.bf16 %v3634_v38, %v3632_v37  ;;  %s3273_s29 = smov 64   ;;  %v3247_v56 = vld [vmem:[%s4491_s3 + $0x40] sm:$0xff]   ;;  %v3709_v10 = vld [vmem:[#allocation2 + $0x110] sm:$0xff] }
  0x49   : > { %v379_v49 = vmul.f32 %v3389_v1, %v340_v44  ;;  %v417_v51 = vadd.f32 %v3400_v2, %v378_v48  ;;  %v3669_v55 = vld [vmem:[#allocation2 + $0x38] sm:$0xff]  ;;  %v3731_v14 = vld [vmem:[#allocation2 + $0x60] sm:$0xff]  ;;  %v3733_v16 = vld [vmem:[#allocation2 + $0x68] sm:$0xff] }
  0x4a   : > { %2060 = vmatpush1.bf16.msra.mxu0 %v3243_v21  ;;  %2657 = vmatpush1.bf16.msra.mxu1 %v3243_v21  ;;  %v741_v58 = vld [vmem:[#allocation2 + $0x32] sm:$0xff]  ;;  %v742_v59 = vld [vmem:[#allocation2 + $0x3a] sm:$0xff]  ;;  %4514 = vst [vmem:[#allocation3_spill] sm:$0xff] %v3731_v14  ;;  %4515 = vst [vmem:[#allocation4_spill] sm:$0xff] %v3733_v16  ;;  %v2944_v19 = vpack.i.bf16 %v3733_v16, %v3731_v14 }
  0x4b   : > { %2745 = vrot.lane.b32.xlu1 %v3560_v45, %s3269_s8  ;;  %2061 = vmatprep.subr.bf16.mxu0 %v3270_v57  ;;  %v449_v1 = vmax.f32 %v417_v51, 0.0  ;;  %v757_v62 = vld [vmem:[#allocation2 + $0xf2] sm:$0xff]  ;;  %v758_v4 = vld [vmem:[#allocation2 + $0xfa] sm:$0xff]  ;;  %v3737_v18 = vld [vmem:[#allocation2 + $0x128] sm:$0xff] }
  0x4c   : > { %2750 = vrot.lane.b32.xlu0 %v3564_v46, %s3269_s8  ;;  %2649 = vmatprep.subr.bf16.mxu1 %v3270_v57  ;;  %v3678_v3 = vld [vmem:[#allocation2 + $0xf8] sm:$0xff]  ;;  %v1916_v5 = vpack.c.bf16 %v758_v4, %v757_v62  ;;  %v3735_v17 = vld [vmem:[#allocation2 + $0x120] sm:$0xff]  ;;  %4517 = vst [vmem:[#allocation6_spill] sm:$0xff] %v3737_v18  ;;  %v496_v62 = vld [vmem:[#allocation2 + $0x90] sm:$0xff] }
  0x4d   : > { %482 = vst.msk [vmem:[#allocation2 + $0x181] sm:$0xff] %vm253_vm0, %v449_v1  ;;  %v2849_v7 = vpack.i.bf16 %v3678_v3, %v3676_v0  ;;  %4516 = vst [vmem:[#allocation5_spill] sm:$0xff] %v3735_v17  ;;  %v666_v21 = vld [vmem:[#allocation2 + $0x122] sm:$0xff]  ;;  %v494_v25 = vld [vmem:[#allocation2 + $0x78] sm:$0xff] }
  0x4e   : > { %2062 = vmatpush1.bf16.msra.mxu0 %v3244_v29  ;;  %2658 = vmatpush1.bf16.msra.mxu1 %v3244_v29  ;;  %v495_v26 = vld [vmem:[#allocation2 + $0x80] sm:$0xff] }
  0x4f   : > { %2755 = vrot.lane.b32.xlu1 %v2754_v52, %s3269_s8  ;;  %2063 = vmatprep.subr.bf16.mxu0 %v3270_v57  ;;  %v418_v52 = vadd.f32 %v3400_v2, %v379_v49  ;;  %v3667_v2 = vld [vmem:[#allocation2 + $0x30] sm:$0xff]  ;;  %s3274_s8 = smov 80   ;;  %v2999_v29 = vpack.i.bf16 %v495_v26, %v494_v25 }
  0x50   : > { %2760 = vrot.lane.b32.xlu0 %v2759_v53, %s3271_s13  ;;  %2650 = vmatprep.subr.bf16.mxu1 %v3270_v57  ;;  %v3246_v53 = vld [vmem:[%s4491_s3 + $0x38] sm:$0xff]  }
  0x51   : > { %v450_v54 = vmax.f32 %v418_v52, 0.0  ;;  %2566 = vmatprep.mubr.msk.bf16.mxu1 %vm253_vm0, %v1916_v5  ;;  %v668_v52 = vld [vmem:[#allocation2 + $0x13a] sm:$0xff] }
  0x52   : > { %2064 = vmatpush1.bf16.msra.mxu0 %v3245_v42  ;;  %2659 = vmatpush1.bf16.msra.mxu1 %v3245_v42 }
  0x53   : > { %2765 = vrot.lane.b32.xlu1 %v3576_v60, %s3271_s13  ;;  %2065 = vmatprep.subr.bf16.mxu0 %v3270_v57  ;;  %483 = vst.msk [vmem:[#allocation2 + $0x189] sm:$0xff] %vm253_vm0, %v450_v54 }
  0x54   : > { %2770 = vrot.lane.b32.xlu0 %v3582_v63, %s3271_s13  ;;  %2651 = vmatprep.subr.bf16.mxu1 %v3270_v57 }
  0x56   : > { %2066 = vmatpush1.bf16.msra.mxu0 %v3246_v53  ;;  %2660 = vmatpush1.bf16.msra.mxu1 %v3246_v53  ;;  %v669_v53 = vld [vmem:[#allocation2 + $0x142] sm:$0xff] }
  0x57   : > { %2775 = vrot.lane.b32.xlu1 %v3588_v6, %s3271_s13  ;;  %2067 = vmatprep.subr.bf16.mxu0 %v3270_v57  ;;  %v3049_v54 = vpack.i.bf16 %v669_v53, %v668_v52  ;;  %v719_v52 = vld [vmem:[#allocation2 + $0xa9] sm:$0xff]  ;;  %v720_v53 = vld [vmem:[#allocation2 + $0xb1] sm:$0xff] }
  0x58   : > { %2780 = vrot.lane.b32.xlu0 %v3595_v8, %s3271_s13  ;;  %2652 = vmatprep.subr.bf16.mxu1 %v3270_v57  ;;  %v3703_v57 = vld [vmem:[#allocation2 + $0x48] sm:$0xff] }
  0x5a   : > { %2068 = vmatpush1.bf16.msra.mxu0 %v3247_v56  ;;  %2661 = vmatpush1.bf16.msra.mxu1 %v3247_v56  ;;  %v512_v56 = vld [vmem:[#allocation2 + $0x150] sm:$0xff] }
  0x5b   : > { %2785 = vrot.lane.b32.xlu1 %v3601_v13, %s3271_s13 }
  0x5c   : > { %2790 = vrot.lane.b32.xlu0 %v3608_v15, %s3271_s13 }
  0x5f   : > { %2795 = vrot.lane.b32.xlu1 %v2794_v20, %s3271_s13 }
  0x60   : > { %2800 = vrot.lane.b32.xlu0 %v2799_v22, %s3271_s13  ;;  %v667_v22 = vld [vmem:[#allocation2 + $0x12a] sm:$0xff] }
  0x63   : > { %2805 = vrot.lane.b32.xlu1 %v2804_v28, %s3271_s13 }
  0x64   : > { %2810 = vrot.lane.b32.xlu0 %v3626_v30, %s3271_s13 }
  0x67   : > { %2815 = vrot.lane.b32.xlu1 %v2814_v41, %s3272_s26  ;;  %v700_v41 = vld [vmem:[#allocation2 + $0x140] sm:$0xff] }
  0x68   : > { %2820 = vrot.lane.b32.xlu0 %v2819_v47, %s3272_s26 }
  0x6b   : > { %2825 = vrot.lane.b32.xlu1 %v3483_v31, %s3273_s29  ;;  %v1900_v31 = vpack.c.bf16 %v742_v59, %v741_v58  ;;  %v513_v58 = vld [vmem:[#allocation2 + $0x158] sm:$0xff] }
  0x6c   : > { %2830 = vrot.lane.b32.xlu0 %v3544_v33, %s3273_s29  ;;  %v2844_v33 = vpack.i.bf16 %v3669_v55, %v3667_v2 }
  0x6d   : > { %2558 = vmatprep.mubr.msk.bf16.mxu0 %vm253_vm0, %v1900_v31  ;;  %v497_v31 = vld [vmem:[#allocation2 + $0x98] sm:$0xff] }
  0x6e   : > { %v3054_v5 = vpack.i.bf16 %v497_v31, %v496_v62  ;;  %v485_v62 = vld [vmem:[#allocation2 + $0x8] sm:$0xff]  ;;  %v484_v31 = vld [vmem:[#allocation2] sm:$0xff] }
  0x6f   : > { %2835 = vrot.lane.b32.xlu1 %v3576_v60, %s3274_s8  ;;  %v3705_v60 = vld [vmem:[#allocation2 + $0x50] sm:$0xff] }
  0x70   : > { %2840 = vrot.lane.b32.xlu0 %v2804_v28, %s3274_s8  ;;  %v2894_v11 = vpack.i.bf16 %v3705_v60, %v3703_v57  ;;  %v2994_v28 = vpack.i.bf16 %v667_v22, %v666_v21  ;;  %v3837_v21 = vld [vmem:[#allocation2 + $0x152] sm:$0xff]  ;;  %v3839_v22 = vld [vmem:[#allocation2 + $0x15a] sm:$0xff] }
  0x73   : > { %2845 = vrot.lane.b32.xlu1 %v2844_v33, %s3275_s9 }
  0x74   : > { %2850 = vrot.lane.b32.xlu0 %v2849_v7, %s3275_s9 }
  0x77   : > { %2855 = vrot.lane.b32.xlu1 %v3479_v24, %s3276_s10 }
  0x78   : > { %2860 = vrot.lane.b32.xlu0 %v3547_v34, %s3276_s10 }
  0x7b   : > { %2865 = vrot.lane.b32.xlu1 %v2844_v33, %s3272_s26  ;;  %v3059_v33 = vpack.i.bf16 %v513_v58, %v512_v56  ;;  %v515_v56 = vld [vmem:[#allocation2 + $0x170] sm:$0xff] }
  0x7c   : > { %2870 = vrot.lane.b32.xlu0 %v2849_v7, %s3272_s26  ;;  %v718_v7 = vld [vmem:[#allocation2 + $0x99] sm:$0xff] }
  0x7f   : > { %2875 = vrot.lane.b32.xlu1 %v3479_v24, %s3273_s29  ;;  %v2899_v24 = vpack.i.bf16 %v3709_v10, %v3707_v9 }
  0x80   : > { %2880 = vrot.lane.b32.xlu0 %v3547_v34, %s3273_s29  ;;  %v664_v34 = vld [vmem:[#allocation2 + $0x10a] sm:$0xff] }
  0x83   : > { %2885 = vrot.lane.b32.xlu1 %v3582_v63, %s3274_s8  ;;  %v665_v63 = vld [vmem:[#allocation2 + $0x112] sm:$0xff] }
  0x84   : > { %2890 = vrot.lane.b32.xlu0 %v3626_v30, %s3274_s8  ;;  %v2939_v12 = vpack.i.bf16 %v665_v63, %v664_v34  ;;  %v699_v30 = vld [vmem:[#allocation2 + $0x138] sm:$0xff] }
  0x85   : > { %v3004_v43 = vpack.i.bf16 %v700_v41, %v699_v30  ;;  %v3849_v30 = vpack.i.bf16 %v3839_v22, %v3837_v21 }
  0x87   : > { %2895 = vrot.lane.b32.xlu1 %v2894_v11, %s3275_s9 }
  0x88   : > { %2900 = vrot.lane.b32.xlu0 %v2899_v24, %s3275_s9 }
  0x8b   : > { %2905 = vrot.lane.b32.xlu1 %v3485_v32, %s3276_s10 }
  0x8c   : > { %2910 = vrot.lane.b32.xlu0 %v3552_v39, %s3276_s10 }
  0x8f   : > { %2915 = vrot.lane.b32.xlu1 %v2894_v11, %s3272_s26 }
  0x90   : > { %2920 = vrot.lane.b32.xlu0 %v2899_v24, %s3272_s26 }
  0x93   : > { %2925 = vrot.lane.b32.xlu1 %v3485_v32, %s3273_s29  ;;  %v2949_v32 = vpack.i.bf16 %v3737_v18, %v3735_v17 }
  0x94   : > { %2930 = vrot.lane.b32.xlu0 %v3552_v39, %s3273_s29  ;;  %v3752_v39 = vpop.permute.xlu0 %2680 }
  0x97   : > { %2935 = vrot.lane.b32.xlu1 %v3588_v6, %s3274_s8 }
  0x98   : > { %2940 = vrot.lane.b32.xlu0 %v2939_v12, %s3274_s8 }
  0x9b   : > { %2945 = vrot.lane.b32.xlu1 %v2944_v19, %s3275_s9 }
  0x9c   : > { %2950 = vrot.lane.b32.xlu0 %v2949_v32, %s3275_s9 }
  0x9f   : > { %2955 = vrot.lane.b32.xlu1 %v3504_v50, %s3276_s10 }
  0xa0   : > { %2960 = vrot.lane.b32.xlu0 %v3556_v40, %s3276_s10 }
  0xa3   : > { %2965 = vrot.lane.b32.xlu1 %v2939_v12, %s3271_s13 }
  0xa4   : > { %2970 = vrot.lane.b32.xlu0 %v2944_v19, %s3272_s26 }
  0xa5   : > { %v3756_v6 = vpop.permute.xlu1 %2690 }
  0xa6   : > { %v3758_v20 = vpop.permute.xlu0 %2685 }
  0xa7   : > { %2975 = vrot.lane.b32.xlu1 %v2949_v32, %s3272_s26 }
  0xa8   : > { %2980 = vrot.lane.b32.xlu0 %v3504_v50, %s3273_s29 }
  0xa9   : > { %v3763_v23 = vpop.permute.xlu1 %2695 }
  0xaa   : > { %v3765_v27 = vpop.permute.xlu0 %2700 }
  0xab   : > { %4518 = vst [vmem:[#allocation7_spill] sm:$0xff] %v3765_v27  ;;  %2985 = vrot.lane.b32.xlu1 %v3556_v40, %s3273_s29 }
  0xac   : > { %2990 = vrot.lane.b32.xlu0 %v3595_v8, %s3274_s8 }
  0xad   : > { %v3771_v42 = vpop.permute.xlu1 %2705 }
  0xae   : > { %4519 = vst [vmem:[#allocation8_spill] sm:$0xff] %v3771_v42  ;;  %v3773_v50 = vpop.permute.xlu0 %2710 }
  0xaf   : > { %4520 = vst [vmem:[#allocation9_spill] sm:$0xff] %v3773_v50  ;;  %2995 = vrot.lane.b32.xlu1 %v2994_v28, %s3274_s8 }
  0xb0   : > { %3000 = vrot.lane.b32.xlu0 %v2999_v29, %s3275_s9 }
  0xb1   : > { %v3777_v44 = vpop.permute.xlu1 %2715 }
  0xb2   : > { %4521 = vst [vmem:[#allocation10_spill] sm:$0xff] %v3777_v44  ;;  %v3779_v47 = vpop.permute.xlu0 %2720  ;;  %v3885_v44 = vld [vmem:[#allocation2 + $0xc0] sm:$0xff] }
  0xb3   : > { %3005 = vrot.lane.b32.xlu1 %v3004_v43, %s3275_s9 }
  0xb4   : > { %3010 = vrot.lane.b32.xlu0 %v3517_v61, %s3276_s10 }
  0xb5   : > { %v3784_v40 = vpop.permute.xlu1 %2725 }
  0xb6   : > { %v3786_v8 = vpop.permute.xlu0 %2730 }
  0xb7   : > { %3015 = vrot.lane.b32.xlu1 %v3560_v45, %s3276_s10 }
  0xb8   : > { %3020 = vrot.lane.b32.xlu0 %v2994_v28, %s3271_s13  ;;  %v498_v28 = vld [vmem:[#allocation2 + $0xa8] sm:$0xff] }
  0xb9   : > { %v3791_v48 = vpop.permute.xlu1 %2735 }
  0xba   : > { %v3793_v49 = vpop.permute.xlu0 %2740 }
  0xbb   : > { %4522 = vst [vmem:[#allocation11_spill] sm:$0xff] %v3793_v49  ;;  %3025 = vrot.lane.b32.xlu1 %v2999_v29, %s3272_s26  ;;  %v499_v29 = vld [vmem:[#allocation2 + $0xb0] sm:$0xff] }
  0xbc   : > { %3030 = vrot.lane.b32.xlu0 %v3004_v43, %s3272_s26  ;;  %v3853_v41 = vpack.i.bf16 %v499_v29, %v498_v28  ;;  %v3871_v28 = vld [vmem:[#allocation2 + $0xaa] sm:$0xff]  ;;  %v3873_v29 = vld [vmem:[#allocation2 + $0xb2] sm:$0xff] }
  0xbd   : > { %v3797_v51 = vpop.permute.xlu1 %2745 }
  0xbe   : > { %4523 = vst [vmem:[#allocation12_spill] sm:$0xff] %v3797_v51  ;;  %v3799_v1 = vpop.permute.xlu0 %2750 }
  0xbf   : > { %4524 = vst [vmem:[#allocation13_spill] sm:$0xff] %v3799_v1  ;;  %3035 = vrot.lane.b32.xlu1 %v3517_v61, %s3273_s29  ;;  %v717_v61 = vld [vmem:[#allocation2 + $0x91] sm:$0xff] }
  0xc0   : > { %3040 = vrot.lane.b32.xlu0 %v3560_v45, %s3273_s29  ;;  %v3064_v24 = vpack.i.bf16 %v718_v7, %v717_v61  ;;  %v2683_v61 = vunpack.i.h.bf16 %v3752_v39  ;;  %v2682_v7 = vunpack.i.l.bf16 %v3752_v39  ;;  %v3883_v39 = vld [vmem:[#allocation2 + $0x52] sm:$0xff] }
  0xc1   : > { %v3805_v59 = vpop.permute.xlu1 %2755 }
  0xc2   : > { %4525 = vst [vmem:[#allocation14_spill] sm:$0xff] %v3805_v59  ;;  %v3807_v4 = vpop.permute.xlu0 %2760  ;;  %v3881_v59 = vld [vmem:[#allocation2 + $0x4a] sm:$0xff]  ;;  %v1670_v17 = vsel %vm253_vm0, %v485_v62, %v2683_v61 }
  0xc3   : > { %3045 = vrot.lane.b32.xlu1 %v3601_v13, %s3274_s8  ;;  %v2763_v1 = vunpack.i.h.bf16 %v3807_v4  ;;  %v2762_v50 = vunpack.i.l.bf16 %v3807_v4  ;;  %v1669_v4 = vsel %vm253_vm0, %v484_v31, %v2682_v7 }
  0xc4   : > { %3050 = vrot.lane.b32.xlu0 %v3049_v54, %s3274_s8 }
  0xc5   : > { %v3812_v11 = vpop.permute.xlu1 %2765  ;;  %v1703_v61 = vsel %vm1701_vm2, %v1670_v17, %v2763_v1  ;;  %v1702_v7 = vsel %vm1701_vm2, %v1669_v4, %v2762_v50 }
  0xc6   : > { %v3814_v45 = vpop.permute.xlu0 %2770 }
  0xc7   : > { %3055 = vrot.lane.b32.xlu1 %v3054_v5, %s3275_s9 }
  0xc8   : > { %3060 = vrot.lane.b32.xlu0 %v3059_v33, %s3275_s9 }
  0xc9   : > { %v3818_v34 = vpop.permute.xlu1 %2775 }
  0xca   : > { %v3820_v63 = vpop.permute.xlu0 %2780 }
  0xcb   : > { %4526 = vst [vmem:[#allocation15_spill] sm:$0xff] %v3820_v63  ;;  %3065 = vrot.lane.b32.xlu1 %v3064_v24, %s3276_s10 }
  0xcc   : > { %3070 = vrot.lane.b32.xlu0 %v3564_v46, %s3276_s10 }
  0xcd   : > { %v3825_v13 = vpop.permute.xlu1 %2785 }
  0xce   : > { %4527 = vst [vmem:[#allocation16_spill] sm:$0xff] %v3825_v13  ;;  %v3827_v12 = vpop.permute.xlu0 %2790 }
  0xcf   : > { %4528 = vst [vmem:[#allocation17_spill] sm:$0xff] %v3827_v12  ;;  %3075 = vrot.lane.b32.xlu1 %v3049_v54, %s3271_s13  ;;  %v514_v54 = vld [vmem:[#allocation2 + $0x168] sm:$0xff] }
  0xd0   : > { %3080 = vrot.lane.b32.xlu0 %v3054_v5, %s3272_s26  ;;  %v735_v5 = vld [vmem:[#allocation2 + $0x169] sm:$0xff] }
  0xd1   : > { %v3831_v19 = vpop.permute.xlu1 %2795  ;;  %v3887_v12 = vld [vmem:[#allocation2 + $0xc8] sm:$0xff] }
  0xd2   : > { %4529 = vst [vmem:[#allocation18_spill] sm:$0xff] %v3831_v19  ;;  %v3833_v32 = vpop.permute.xlu0 %2800  ;;  %v3879_v19 = vld [vmem:[#allocation2 + $0x172] sm:$0xff] }
  0xd3   : > { %3085 = vrot.lane.b32.xlu1 %v3059_v33, %s3272_s26  ;;  %v736_v33 = vld [vmem:[#allocation2 + $0x171] sm:$0xff]  ;;  %4531 = vst [vmem:[#allocation20_spill] sm:$0xff] %v3879_v19  ;;  %v2803_v13 = vunpack.i.h.bf16 %v3833_v32  ;;  %v2802_v51 = vunpack.i.l.bf16 %v3833_v32 }
  0xd4   : > { %3090 = vrot.lane.b32.xlu0 %v3064_v24, %s3273_s29 }
  0xd5   : > { %v3841_v25 = vpop.permute.xlu1 %2805 }
  0xd6   : > { %v3843_v26 = vpop.permute.xlu0 %2810 }
  0xd7   : > { %3095 = vrot.lane.b32.xlu1 %v3564_v46, %s3273_s29  ;;  %v3861_v46 = vpack.i.bf16 %v515_v56, %v514_v54  ;;  %v3875_v54 = vld [vmem:[#allocation2 + $0x16a] sm:$0xff]  ;;  %v2723_v56 = vunpack.i.h.bf16 %v3779_v47 }
  0xd8   : > { %3100 = vrot.lane.b32.xlu0 %v3608_v15, %s3274_s8  ;;  %v3865_v15 = vpack.i.bf16 %v720_v53, %v719_v52  ;;  %4530 = vst [vmem:[#allocation19_spill] sm:$0xff] %v3875_v54  ;;  %v2722_v52 = vunpack.i.l.bf16 %v3779_v47  ;;  %v3893_v47 = vpack.i.bf16 %v736_v33, %v735_v5  ;;  %v3905_v5 = vpack.i.bf16 %v3879_v19, %v3875_v54 }
  0xd9   : > { %v3855_v43 = vpop.permute.xlu1 %2815  ;;  %v1686_v33 = vsel %vm253_vm0, %v3887_v12, %v2723_v56 }
  0xda   : > { %v3857_v58 = vpop.permute.xlu0 %2820  ;;  %v1685_v14 = vsel %vm253_vm0, %v3885_v44, %v2722_v52  ;;  %v2818_v42 = vunpack.i.h.bf16 %v3855_v43  ;;  %v2817_v62 = vunpack.i.l.bf16 %v3855_v43  ;;  %v1719_v52 = vsel %vm1701_vm2, %v1686_v33, %v2803_v13 }
  0xdb   : > { %3105 = vrot.lane.b32.xlu1 %v3849_v30, %s3274_s8  ;;  %v2823_v19 = vunpack.i.h.bf16 %v3857_v58  ;;  %v2822_v54 = vunpack.i.l.bf16 %v3857_v58  ;;  %v1718_v56 = vsel %vm1701_vm2, %v1685_v14, %v2802_v51 }
  0xdc   : > { %3110 = vrot.lane.b32.xlu0 %v3853_v41, %s3275_s9  ;;  %v1735_v58 = vsel %vm1734_vm3, %v1702_v7, %v2817_v62  ;;  %v1736_v63 = vsel %vm1734_vm3, %v1703_v61, %v2818_v42 }
  0xdd   : > { %v3869_v24 = vpop.permute.xlu1 %2825  ;;  %v1751_v13 = vsel %vm1734_vm3, %v1718_v56, %v2822_v54  ;;  %v1752_v33 = vsel %vm1734_vm3, %v1719_v52, %v2823_v19  ;;  %v759_v56 = vld [vmem:[#allocation2 + $0x10a] sm:$0xff]  ;;  %v760_v52 = vld [vmem:[#allocation2 + $0x112] sm:$0xff] }
  0xde   : > { %v2831_v53 = vpop.permute.xlu0 %2830  ;;  %v2828_v32 = vunpack.i.h.bf16 %v3869_v24  ;;  %v2827_v43 = vunpack.i.l.bf16 %v3869_v24 }
  0xdf   : > { %3115 = vrot.lane.b32.xlu1 %v3861_v46, %s3275_s9  ;;  %v2833_v17 = vunpack.i.h.bf16 %v2831_v53  ;;  %v2832_v50 = vunpack.i.l.bf16 %v2831_v53 }
  0xe0   : > { %3120 = vrot.lane.b32.xlu0 %v3865_v15, %s3276_s10 }
  0xe1   : > { %v2836_v18 = vpop.permute.xlu1 %2835  ;;  %v1784_v42 = vsel %vm1767_vm4, %v1751_v13, %v2832_v50  ;;  %v1785_v54 = vsel %vm1767_vm4, %v1752_v33, %v2833_v17  ;;  %v705_v33 = vld [vmem:[#allocation2 + $0x180] sm:$0xff] }
  0xe2   : > { %v2841_v31 = vpop.permute.xlu0 %2840  ;;  %v2838_v1 = vunpack.i.h.bf16 %v2836_v18  ;;  %v2837_v4 = vunpack.i.l.bf16 %v2836_v18  ;;  %v1769_v18 = vsel %vm1767_vm4, %v1736_v63, %v2828_v32 }
  0xe3   : > { %3125 = vrot.lane.b32.xlu1 %v3893_v47, %s3276_s10  ;;  %v2843_v49 = vunpack.i.h.bf16 %v2841_v31  ;;  %v2842_v14 = vunpack.i.l.bf16 %v2841_v31 }
  0xe4   : > { %3130 = vrot.lane.b32.xlu0 %v3849_v30, %s3271_s13  ;;  %v1768_v30 = vsel %vm1767_vm4, %v1735_v58, %v2827_v43 }
  0xe5   : > { %v2846_v16 = vpop.permute.xlu1 %2845  ;;  %v1801_v19 = vsel %vm1800_vm5, %v1768_v30, %v2837_v4  ;;  %v1818_v61 = vsel %vm1800_vm5, %v1785_v54, %v2843_v49  ;;  %v722_v54 = vld [vmem:[#allocation2 + $0xc9] sm:$0xff] }
  0xe6   : > { %v2851_v51 = vpop.permute.xlu0 %2850  ;;  %v2848_v24 = vunpack.i.h.bf16 %v2846_v16  ;;  %v2847_v27 = vunpack.i.l.bf16 %v2846_v16  ;;  %v1802_v16 = vsel %vm1800_vm5, %v1769_v18, %v2838_v1 }
  0xe7   : > { %3135 = vrot.lane.b32.xlu1 %v3853_v41, %s3272_s26  ;;  %v2853_v53 = vunpack.i.h.bf16 %v2851_v51  ;;  %v2852_v62 = vunpack.i.l.bf16 %v2851_v51  ;;  %v1817_v41 = vsel %vm1800_vm5, %v1784_v42, %v2842_v14  ;;  %v721_v42 = vld [vmem:[#allocation2 + $0xc1] sm:$0xff] }
  0xe8   : > { %3140 = vrot.lane.b32.xlu0 %v3861_v46, %s3272_s26  ;;  %v1834_v46 = vsel %vm1833_vm6, %v1801_v19, %v2847_v27  ;;  %v1835_v43 = vsel %vm1833_vm6, %v1802_v16, %v2848_v24  ;;  %v1918_v24 = vpack.c.bf16 %v760_v52, %v759_v56  ;;  %v2688_v19 = vunpack.i.h.bf16 %v3758_v20  ;;  %v3982_v56 = vld [vmem:[#allocation2 + $0xca] sm:$0xff] }
  0xe9   : > { %v2856_v31 = vpop.permute.xlu1 %2855  ;;  %v1850_v1 = vsel %vm1833_vm6, %v1817_v41, %v2852_v62  ;;  %v1851_v4 = vsel %vm1833_vm6, %v1818_v61, %v2853_v53  ;;  %v3965_v53 = vpack.i.bf16 %v3887_v12, %v3885_v44  ;;  %v2687_v16 = vunpack.i.l.bf16 %v3758_v20  ;;  %v737_v41 = vld [vmem:[#allocation2 + $0x181] sm:$0xff]  ;;  %v738_v61 = vld [vmem:[#allocation2 + $0x189] sm:$0xff] }
  0xea   : > { %v2858_v7 = vunpack.i.h.bf16 %v2856_v31  ;;  %v2857_v63 = vunpack.i.l.bf16 %v2856_v31  ;;  %v2861_v32 = vpop.permute.xlu0 %2860  ;;  %v3978_v44 = vld [vmem:[#allocation2 + $0xc2] sm:$0xff]  ;;  %v2728_v12 = vunpack.i.h.bf16 %v3784_v40  ;;  %v3986_v52 = vld [vmem:[#allocation2 + $0x6a] sm:$0xff] }
  0xeb   : > { %v2863_v50 = vunpack.i.h.bf16 %v2861_v32  ;;  %v2862_v17 = vunpack.i.l.bf16 %v2861_v32  ;;  %3145 = vrot.lane.b32.xlu1 %v3865_v15, %s3273_s29  ;;  %v706_v15 = vld [vmem:[#allocation2 + $0x188] sm:$0xff] }
  0xec   : > { %3150 = vrot.lane.b32.xlu0 %v3893_v47, %s3273_s29  ;;  %v1867_v49 = vsel %vm1866_vm7, %v1834_v46, %v2857_v63  ;;  %v1868_v58 = vsel %vm1866_vm7, %v1835_v43, %v2858_v7  ;;  %v4532_v47 = vpack.i.bf16 %v3873_v29, %v3871_v28  ;;  %v3969_v62 = vpack.i.bf16 %v706_v15, %v705_v33  ;;  %v3984_v20 = vld [vmem:[#allocation2 + $0x62] sm:$0xff] }
  0xed   : > { %v3953_v14 = vpop.permute.xlu1 %2865  ;;  %v1899_v27 = vpack.c.bf16 %v1868_v58, %v1867_v49  ;;  %v1883_v51 = vsel %vm1866_vm7, %v1850_v1, %v2862_v17  ;;  %v1884_v13 = vsel %vm1866_vm7, %v1851_v4, %v2863_v50  ;;  %v4533_v7 = vpack.c.bf16 %v3883_v39, %v3881_v59 }
  0xee   : > { %v3957_v30 = vpop.permute.xlu0 %2870  ;;  %v1915_v18 = vpack.c.bf16 %v1884_v13, %v1883_v51  ;;  %v2727_v63 = vunpack.i.l.bf16 %v3784_v40  ;;  %v2768_v46 = vunpack.i.h.bf16 %v3812_v11  ;;  %v2767_v59 = vunpack.i.l.bf16 %v3812_v11 }
  0xef   : > { %3155 = vrot.lane.b32.xlu1 %v4532_v47, %s3274_s8  ;;  %2084 = vmatmul.mubr.bf16.vlgmr.msra.gmra.mrb[0].mxu0 %v1899_v27  ;;  %v3992_v39 = vpack.i.bf16 %v722_v54, %v721_v42  ;;  %v2808_v43 = vunpack.i.h.bf16 %v3841_v25  ;;  %v2807_v40 = vunpack.i.l.bf16 %v3841_v25  ;;  %v3998_v50 = vpack.i.bf16 %v738_v61, %v737_v41 }
  0xf0   : > { %3160 = vrot.lane.b32.xlu0 %v3905_v5, %s3274_s8  ;;  %2148 = vmatmul.mubr.bf16.vlgmr.msra.gmra.mrb[0].mxu1 %v1915_v18  ;;  %v1671_v17 = vsel %vm253_vm0, %v3628_v35, %v2687_v16  ;;  %v1672_v11 = vsel %vm253_vm0, %v3630_v36, %v2688_v19  ;;  %v3209_v4 = vpack.i.bf16 %v3982_v56, %v3978_v44  ;;  %v2868_v27 = vunpack.i.h.bf16 %v3953_v14 }
  0xf1   : > { %v2876_v31 = vpop.permute.xlu1 %2875  ;;  %2559 = vmatprep.mubr.msk.bf16.mxu0 %vm253_vm0, %v4533_v7  ;;  %2567 = vmatprep.mubr.msk.bf16.mxu1 %vm253_vm0, %v1918_v24  ;;  %v1904_v49 = vpack.c.bf16 %v3986_v52, %v3984_v20  ;;  %v1688_v25 = vsel %vm253_vm0, %v3634_v38, %v2728_v12  ;;  %v1687_v58 = vsel %vm253_vm0, %v3632_v37, %v2727_v63  ;;  %v2867_v35 = vunpack.i.l.bf16 %v3953_v14 }
  0xf2   : > { %v2881_v32 = vpop.permute.xlu0 %2880  ;;  %v1704_v36 = vsel %vm1701_vm2, %v1671_v17, %v2767_v59  ;;  %v1705_v13 = vsel %vm1701_vm2, %v1672_v11, %v2768_v46  ;;  %v2873_v33 = vunpack.i.h.bf16 %v3957_v30  ;;  %v2872_v15 = vunpack.i.l.bf16 %v3957_v30 }
  0xf3   : > { %3165 = vrot.lane.b32.xlu1 %v3965_v53, %s3275_s9  ;;  %v1721_v38 = vsel %vm1701_vm2, %v1688_v25, %v2808_v43  ;;  %v1720_v37 = vsel %vm1701_vm2, %v1687_v58, %v2807_v40  ;;  %v2878_v24 = vunpack.i.h.bf16 %v2876_v31  ;;  %v2877_v18 = vunpack.i.l.bf16 %v2876_v31 }
  0xf4   : > { %3170 = vrot.lane.b32.xlu0 %v3969_v62, %s3275_s9  ;;  %v2883_v14 = vunpack.i.h.bf16 %v2881_v32  ;;  %v2882_v47 = vunpack.i.l.bf16 %v2881_v32  ;;  %v1737_v16 = vsel %vm1734_vm3, %v1704_v36, %v2867_v35  ;;  %v1738_v30 = vsel %vm1734_vm3, %v1705_v13, %v2868_v27  ;;  %v761_v13 = vld [vmem:[#allocation2 + $0x122] sm:$0xff] }
  0xf5   : > { %v2886_v1 = vpop.permute.xlu1 %2885  ;;  %v1754_v12 = vsel %vm1734_vm3, %v1721_v38, %v2873_v33  ;;  %v1753_v63 = vsel %vm1734_vm3, %v1720_v37, %v2872_v15  ;;  %v1770_v32 = vsel %vm1767_vm4, %v1737_v16, %v2877_v18  ;;  %v1771_v59 = vsel %vm1767_vm4, %v1738_v30, %v2878_v24  ;;  %v762_v33 = vld [vmem:[#allocation2 + $0x12a] sm:$0xff] }
  0xf6   : > { %v2891_v51 = vpop.permute.xlu0 %2890  ;;  %v2888_v42 = vunpack.i.h.bf16 %v2886_v1  ;;  %v2887_v54 = vunpack.i.l.bf16 %v2886_v1  ;;  %v1786_v17 = vsel %vm1767_vm4, %v1753_v63, %v2882_v47  ;;  %v1787_v11 = vsel %vm1767_vm4, %v1754_v12, %v2883_v14 }
  0xf7   : > { %3175 = vrot.lane.b32.xlu1 %v3992_v39, %s3276_s10  ;;  %v2893_v41 = vunpack.i.h.bf16 %v2891_v51  ;;  %v2892_v61 = vunpack.i.l.bf16 %v2891_v51  ;;  %v2813_v52 = vunpack.i.h.bf16 %v3843_v26 }
  0xf8   : > { %3180 = vrot.lane.b32.xlu0 %v3998_v50, %s3276_s10  ;;  %v1803_v1 = vsel %vm1800_vm5, %v1770_v32, %v2887_v54  ;;  %v1804_v25 = vsel %vm1800_vm5, %v1771_v59, %v2888_v42  ;;  %v4050_v42 = vld [vmem:[#allocation2 + $0x182] sm:$0xff]  ;;  %v4052_v54 = vld [vmem:[#allocation2 + $0x18a] sm:$0xff]  ;;  %v2693_v59 = vunpack.i.h.bf16 %v3756_v6 }
  0xf9   : > { %v2896_v19 = vpop.permute.xlu1 %2895  ;;  %v1820_v27 = vsel %vm1800_vm5, %v1787_v11, %v2893_v41  ;;  %v691_v41 = vld [vmem:[#allocation2 + $0xd8] sm:$0xff]  ;;  %v3214_v63 = vpack.i.bf16 %v4052_v54, %v4050_v42  ;;  %v708_v32 = vld [vmem:[#allocation2 + $0x1a0] sm:$0xff] }
  0xfa   : > { %v2901_v7 = vpop.permute.xlu0 %2900  ;;  %v2898_v31 = vunpack.i.h.bf16 %v2896_v19  ;;  %v2897_v46 = vunpack.i.l.bf16 %v2896_v19  ;;  %v739_v11 = vld [vmem:[#allocation2 + $0x199] sm:$0xff] }
  0xfb   : > { %3185 = vrot.lane.b32.xlu1 %v3905_v5, %s3271_s13  ;;  %v2903_v43 = vunpack.i.h.bf16 %v2901_v7  ;;  %v2902_v40 = vunpack.i.l.bf16 %v2901_v7  ;;  %v1819_v5 = vsel %vm1800_vm5, %v1786_v17, %v2892_v61  ;;  %v692_v61 = vld [vmem:[#allocation2 + $0xe0] sm:$0xff]  ;;  %v1920_v7 = vpack.c.bf16 %v762_v33, %v761_v13 }
  0xfc   : > { %3190 = vrot.lane.b32.xlu0 %v3965_v53, %s3272_s26  ;;  %v1836_v53 = vsel %vm1833_vm6, %v1803_v1, %v2897_v46  ;;  %v1837_v15 = vsel %vm1833_vm6, %v1804_v25, %v2898_v31  ;;  %v3219_v31 = vpack.i.bf16 %v692_v61, %v691_v41  ;;  %v707_v46 = vld [vmem:[#allocation2 + $0x198] sm:$0xff]  ;;  %v2732_v1 = vunpack.i.l.bf16 %v3786_v8 }
  0xfd   : > { %v2906_v58 = vpop.permute.xlu1 %2905  ;;  %v1852_v24 = vsel %vm1833_vm6, %v1819_v5, %v2902_v40  ;;  %v1853_v18 = vsel %vm1833_vm6, %v1820_v27, %v2903_v43  ;;  %v2692_v43 = vunpack.i.l.bf16 %v3756_v6  ;;  %v723_v17 = vld [vmem:[#allocation2 + $0xd9] sm:$0xff]  ;;  %v4079_v6 = vld [vmem:[#allocation2 + $0x82] sm:$0xff]  ;;  %v2773_v27 = vunpack.i.h.bf16 %v3814_v45 }
  0xfe   : > { %v2908_v35 = vunpack.i.h.bf16 %v2906_v58  ;;  %v2907_v51 = vunpack.i.l.bf16 %v2906_v58  ;;  %v2911_v36 = vpop.permute.xlu0 %2910  ;;  %v740_v58 = vld [vmem:[#allocation2 + $0x1a1] sm:$0xff]  ;;  %v3224_v20 = vpack.i.bf16 %v708_v32, %v707_v46 }
  0xff   : > { %v2913_v38 = vunpack.i.h.bf16 %v2911_v36  ;;  %v2912_v37 = vunpack.i.l.bf16 %v2911_v36  ;;  %3195 = vrot.lane.b32.xlu1 %v3969_v62, %s3272_s26  ;;  %v4077_v5 = vld [vmem:[#allocation2 + $0x7a] sm:$0xff]  ;;  %v1674_v36 = vsel %vm253_vm0, %v3669_v55, %v2693_v59  ;;  %v3234_v33 = vpack.i.bf16 %v740_v58, %v739_v11 }
 0x100   : > { %3200 = vrot.lane.b32.xlu0 %v3992_v39, %s3273_s29  ;;  %v1869_v14 = vsel %vm1866_vm7, %v1836_v53, %v2907_v51  ;;  %v1870_v47 = vsel %vm1866_vm7, %v1837_v15, %v2908_v35  ;;  %v2772_v35 = vunpack.i.l.bf16 %v3814_v45  ;;  %v1673_v51 = vsel %vm253_vm0, %v3667_v2, %v2692_v43 }
 0x101   : > { %v4054_v19 = vpop.permute.xlu1 %2915  ;;  %v1901_v16 = vpack.c.bf16 %v1870_v47, %v1869_v14  ;;  %v1885_v62 = vsel %vm1866_vm7, %v1852_v24, %v2912_v37  ;;  %v1886_v30 = vsel %vm1866_vm7, %v1853_v18, %v2913_v38  ;;  %v1906_v45 = vpack.c.bf16 %v4079_v6, %v4077_v5  ;;  %v4139_v6 = vld [vmem:[#allocation2 + $0x92] sm:$0xff] }
 0x102   : > { %v4058_v12 = vpop.permute.xlu0 %2920  ;;  %v1917_v39 = vpack.c.bf16 %v1886_v30, %v1885_v62  ;;  %v2918_v15 = vunpack.i.h.bf16 %v4054_v19  ;;  %v2917_v38 = vunpack.i.l.bf16 %v4054_v19  ;;  %v1707_v2 = vsel %vm1701_vm2, %v1674_v36, %v2773_v27 }
 0x103   : > { %3205 = vrot.lane.b32.xlu1 %v3998_v50, %s3273_s29  ;;  %2092 = vmatmul.mubr.bf16.gmra.mrb[4].mxu0 %v1901_v16  ;;  %v724_v50 = vld [vmem:[#allocation2 + $0xe1] sm:$0xff]  ;;  %v1706_v55 = vsel %vm1701_vm2, %v1673_v51, %v2772_v35  ;;  %v2923_v24 = vunpack.i.h.bf16 %v4058_v12  ;;  %v2922_v18 = vunpack.i.l.bf16 %v4058_v12 }
 0x104   : > { %3210 = vrot.lane.b32.xlu0 %v3209_v4, %s3274_s8  ;;  %2156 = vmatmul.mubr.bf16.gmra.mrb[4].mxu1 %v1917_v39  ;;  %v2733_v4 = vunpack.i.h.bf16 %v3786_v8  ;;  %v3229_v8 = vpack.i.bf16 %v724_v50, %v723_v17  ;;  %v1739_v61 = vsel %vm1734_vm3, %v1706_v55, %v2917_v38  ;;  %v764_v51 = vld [vmem:[#allocation2 + $0x142] sm:$0xff] }
 0x105   : > { %v2926_v40 = vpop.permute.xlu1 %2925  ;;  %2560 = vmatprep.mubr.msk.bf16.mxu0 %vm253_vm0, %v1904_v49  ;;  %2568 = vmatprep.mubr.msk.bf16.mxu1 %vm253_vm0, %v1920_v7  ;;  %v2812_v49 = vunpack.i.l.bf16 %v3843_v26  ;;  %v1689_v26 = vsel %vm253_vm0, %v3676_v0, %v2732_v1  ;;  %v1740_v7 = vsel %vm1734_vm3, %v1707_v2, %v2918_v15 }
 0x106   : > { %v2931_v25 = vpop.permute.xlu0 %2930  ;;  %v1690_v53 = vsel %vm253_vm0, %v3678_v3, %v2733_v4  ;;  %v2928_v0 = vunpack.i.h.bf16 %v2926_v40  ;;  %v2927_v47 = vunpack.i.l.bf16 %v2926_v40 }
 0x107   : > { %3215 = vrot.lane.b32.xlu1 %v3214_v63, %s3274_s8  ;;  %v1722_v3 = vsel %vm1701_vm2, %v1689_v26, %v2812_v49  ;;  %v1723_v14 = vsel %vm1701_vm2, %v1690_v53, %v2813_v52  ;;  %v2933_v19 = vunpack.i.h.bf16 %v2931_v25  ;;  %v2932_v16 = vunpack.i.l.bf16 %v2931_v25 }
 0x108   : > { %3220 = vrot.lane.b32.xlu0 %v3219_v31, %s3275_s9  ;;  %v1755_v31 = vsel %vm1734_vm3, %v1722_v3, %v2922_v18  ;;  %v1756_v46 = vsel %vm1734_vm3, %v1723_v14, %v2923_v24  ;;  %v1772_v43 = vsel %vm1767_vm4, %v1739_v61, %v2927_v47  ;;  %v1773_v40 = vsel %vm1767_vm4, %v1740_v7, %v2928_v0 }
 0x109   : > { %v2936_v13 = vpop.permute.xlu1 %2935  ;;  %v1788_v11 = vsel %vm1767_vm4, %v1755_v31, %v2932_v16  ;;  %v1789_v4 = vsel %vm1767_vm4, %v1756_v46, %v2933_v19  ;;  %v2698_v16 = vunpack.i.h.bf16 %v3763_v23  ;;  %v2778_v61 = vunpack.i.h.bf16 %v3818_v34 }
 0x10a   : > { %v2941_v37 = vpop.permute.xlu0 %2940  ;;  %v2938_v62 = vunpack.i.h.bf16 %v2936_v13  ;;  %v2937_v30 = vunpack.i.l.bf16 %v2936_v13 }
 0x10b   : > { %3225 = vrot.lane.b32.xlu1 %v3224_v20, %s3275_s9  ;;  %v2943_v12 = vunpack.i.h.bf16 %v2941_v37  ;;  %v2942_v39 = vunpack.i.l.bf16 %v2941_v37 }
 0x10c   : > { %3230 = vrot.lane.b32.xlu0 %v3229_v8, %s3276_s10  ;;  %v1805_v1 = vsel %vm1800_vm5, %v1772_v43, %v2937_v30  ;;  %v1806_v25 = vsel %vm1800_vm5, %v1773_v40, %v2938_v62  ;;  %v763_v8 = vld [vmem:[#allocation2 + $0x13a] sm:$0xff]  ;;  %v2697_v62 = vunpack.i.l.bf16 %v3763_v23  ;;  %v2738_v30 = vunpack.i.h.bf16 %v3791_v48 }
 0x10d   : > { %v2946_v41 = vpop.permute.xlu1 %2945  ;;  %v1821_v27 = vsel %vm1800_vm5, %v1788_v11, %v2942_v39  ;;  %v1822_v35 = vsel %vm1800_vm5, %v1789_v4, %v2943_v12  ;;  %v1922_v3 = vpack.c.bf16 %v764_v51, %v763_v8  ;;  %v2777_v12 = vunpack.i.l.bf16 %v3818_v34 }
 0x10e   : > { %v2951_v63 = vpop.permute.xlu0 %2950  ;;  %v2948_v32 = vunpack.i.h.bf16 %v2946_v41  ;;  %v2947_v59 = vunpack.i.l.bf16 %v2946_v41  ;;  %v2737_v41 = vunpack.i.l.bf16 %v3791_v48  ;;  %v1676_v23 = vsel %vm253_vm0, %v3705_v60, %v2698_v16 }
 0x10f   : > { %3235 = vrot.lane.b32.xlu1 %v3234_v33, %s3276_s10  ;;  %v2953_v17 = vunpack.i.h.bf16 %v2951_v63  ;;  %v2952_v50 = vunpack.i.l.bf16 %v2951_v63  ;;  %v1675_v48 = vsel %vm253_vm0, %v3703_v57, %v2697_v62 }
 0x110   : > { %v1838_v36 = vsel %vm1833_vm6, %v1805_v1, %v2947_v59  ;;  %v1839_v13 = vsel %vm1833_vm6, %v1806_v25, %v2948_v32  ;;  %v1692_v32 = vsel %vm253_vm0, %v3709_v10, %v2738_v30  ;;  %v1691_v34 = vsel %vm253_vm0, %v3707_v9, %v2737_v41 }
 0x111   : > { %v2956_v58 = vpop.permute.xlu1 %2955  ;;  %v1854_v26 = vsel %vm1833_vm6, %v1821_v27, %v2952_v50  ;;  %v1855_v15 = vsel %vm1833_vm6, %v1822_v35, %v2953_v17  ;;  %v1709_v59 = vsel %vm1701_vm2, %v1676_v23, %v2778_v61  ;;  %v1708_v11 = vsel %vm1701_vm2, %v1675_v48, %v2777_v12 }
 0x112   : > { %v2958_v20 = vunpack.i.h.bf16 %v2956_v58  ;;  %v2957_v52 = vunpack.i.l.bf16 %v2956_v58  ;;  %v2961_v49 = vpop.permute.xlu0 %2960 }
 0x113   : > { %v2963_v33 = vunpack.i.h.bf16 %v2961_v49  ;;  %v2962_v53 = vunpack.i.l.bf16 %v2961_v49 }
 0x114   : > { %v1871_v38 = vsel %vm1866_vm7, %v1838_v36, %v2957_v52  ;;  %v1872_v37 = vsel %vm1866_vm7, %v1839_v13, %v2958_v20 }
 0x115   : > { %v2966_v2 = vpop.permute.xlu1 %2965  ;;  %v1903_v55 = vpack.c.bf16 %v1872_v37, %v1871_v38  ;;  %v1887_v24 = vsel %vm1866_vm7, %v1854_v26, %v2962_v53  ;;  %v1888_v18 = vsel %vm1866_vm7, %v1855_v15, %v2963_v33 }
 0x116   : > { %v2971_v14 = vpop.permute.xlu0 %2970  ;;  %v1919_v0 = vpack.c.bf16 %v1888_v18, %v1887_v24  ;;  %v2968_v39 = vunpack.i.h.bf16 %v2966_v2  ;;  %v2967_v63 = vunpack.i.l.bf16 %v2966_v2 }
 0x117   : > { %2100 = vmatmul.mubr.bf16.gmra.mrb[8].mxu0 %v1903_v55  ;;  %v2973_v31 = vunpack.i.h.bf16 %v2971_v14  ;;  %v2972_v46 = vunpack.i.l.bf16 %v2971_v14 }
 0x118   : > { %2164 = vmatmul.mubr.bf16.gmra.mrb[8].mxu1 %v1919_v0  ;;  %2561 = vmatprep.mubr.msk.bf16.mxu0 %vm253_vm0, %v1906_v45  ;;  %v4141_v45 = vld [vmem:[#allocation2 + $0x9a] sm:$0xff]  ;;  %v1725_v25 = vsel %vm1701_vm2, %v1692_v32, %v2968_v39  ;;  %v1724_v10 = vsel %vm1701_vm2, %v1691_v34, %v2967_v63  ;;  %v4534_v32 = vld [vmem:[#allocation7_spill] sm:$0xff] }
 0x119   : > { %v2976_v47 = vpop.permute.xlu1 %2975  ;;  %2569 = vmatprep.mubr.msk.bf16.mxu1 %vm253_vm0, %v1922_v3  ;;  %v1908_v50 = vpack.c.bf16 %v4141_v45, %v4139_v6  ;;  %v1742_v9 = vsel %vm1734_vm3, %v1709_v59, %v2973_v31  ;;  %v1741_v58 = vsel %vm1734_vm3, %v1708_v11, %v2972_v46  ;;  %v1924_v31 = vpack.c.bf16 %v3839_v22, %v3837_v21 }
 0x11a   : > { %v2981_v19 = vpop.permute.xlu0 %2980  ;;  %v2977_v60 = vunpack.i.l.bf16 %v2976_v47  ;;  %v2978_v27 = vunpack.i.h.bf16 %v2976_v47  ;;  %v2703_v34 = vunpack.i.h.bf16 %v4534_v32  ;;  %v2702_v59 = vunpack.i.l.bf16 %v4534_v32 }
 0x11b   : > { %v2983_v43 = vunpack.i.h.bf16 %v2981_v19  ;;  %v2982_v40 = vunpack.i.l.bf16 %v2981_v19 }
 0x11c   : > { %v1757_v33 = vsel %vm1734_vm3, %v1724_v10, %v2977_v60  ;;  %v1758_v18 = vsel %vm1734_vm3, %v1725_v25, %v2978_v27  ;;  %v4536_v60 = vld [vmem:[#allocation15_spill] sm:$0xff] }
 0x11d   : > { %v2986_v7 = vpop.permute.xlu1 %2985  ;;  %v1774_v49 = vsel %vm1767_vm4, %v1741_v58, %v2982_v40  ;;  %v1775_v8 = vsel %vm1767_vm4, %v1742_v9, %v2983_v43  ;;  %v4535_v43 = vld [vmem:[#allocation11_spill] sm:$0xff]  ;;  %v2783_v22 = vunpack.i.h.bf16 %v4536_v60  ;;  %v4539_v58 = vld [vmem:[#allocation6_spill] sm:$0xff] }
 0x11e   : > { %v2991_v5 = vpop.permute.xlu0 %2990  ;;  %v2987_v35 = vunpack.i.l.bf16 %v2986_v7  ;;  %v2988_v51 = vunpack.i.h.bf16 %v2986_v7  ;;  %v2743_v40 = vunpack.i.h.bf16 %v4535_v43  ;;  %v2742_v11 = vunpack.i.l.bf16 %v4535_v43  ;;  %v4538_v10 = vld [vmem:[#allocation3_spill] sm:$0xff] }
 0x11f   : > { %v2993_v4 = vunpack.i.h.bf16 %v2991_v5  ;;  %v2992_v1 = vunpack.i.l.bf16 %v2991_v5  ;;  %v1677_v9 = vsel %vm253_vm0, %v4538_v10, %v2702_v59  ;;  %v4542_v10 = vld [vmem:[#allocation20_spill] sm:$0xff] }
 0x120   : > { %v1790_v3 = vsel %vm1767_vm4, %v1757_v33, %v2987_v35  ;;  %v1791_v47 = vsel %vm1767_vm4, %v1758_v18, %v2988_v51  ;;  %v1694_v27 = vsel %vm253_vm0, %v4539_v58, %v2743_v40 }
 0x121   : > { %v2996_v17 = vpop.permute.xlu1 %2995  ;;  %v1807_v53 = vsel %vm1800_vm5, %v1774_v49, %v2992_v1  ;;  %v1808_v26 = vsel %vm1800_vm5, %v1775_v8, %v2993_v4  ;;  %v2782_v4 = vunpack.i.l.bf16 %v4536_v60 }
 0x122   : > { %v3001_v57 = vpop.permute.xlu0 %3000  ;;  %v2997_v36 = vunpack.i.l.bf16 %v2996_v17  ;;  %v2998_v15 = vunpack.i.h.bf16 %v2996_v17 }
 0x123   : > { %v3003_v20 = vunpack.i.h.bf16 %v3001_v57  ;;  %v3002_v52 = vunpack.i.l.bf16 %v3001_v57  ;;  %v4537_v57 = vld [vmem:[#allocation4_spill] sm:$0xff]  ;;  %v1710_v49 = vsel %vm1701_vm2, %v1677_v9, %v2782_v4 }
 0x124   : > { %v1823_v19 = vsel %vm1800_vm5, %v1790_v3, %v2997_v36  ;;  %v1824_v41 = vsel %vm1800_vm5, %v1791_v47, %v2998_v15  ;;  %v1678_v25 = vsel %vm253_vm0, %v4537_v57, %v2703_v34 }
 0x125   : > { %v3006_v13 = vpop.permute.xlu1 %3005  ;;  %v1840_v14 = vsel %vm1833_vm6, %v1807_v53, %v3002_v52  ;;  %v1841_v0 = vsel %vm1833_vm6, %v1808_v26, %v3003_v20  ;;  %v4540_v20 = vld [vmem:[#allocation5_spill] sm:$0xff]  ;;  %v1910_v26 = vpack.c.bf16 %v3873_v29, %v3871_v28 }
 0x126   : > { %v3011_v38 = vpop.permute.xlu0 %3010  ;;  %v3008_v37 = vunpack.i.h.bf16 %v3006_v13  ;;  %v3007_v2 = vunpack.i.l.bf16 %v3006_v13  ;;  %v1693_v52 = vsel %vm253_vm0, %v4540_v20, %v2742_v11  ;;  %v1711_v13 = vsel %vm1701_vm2, %v1678_v25, %v2783_v22  ;;  %v4541_v25 = vld [vmem:[#allocation19_spill] sm:$0xff] }
 0x127   : > { %v3013_v55 = vunpack.i.h.bf16 %v3011_v38  ;;  %v3012_v24 = vunpack.i.l.bf16 %v3011_v38  ;;  %v1926_v9 = vpack.c.bf16 %v4542_v10, %v4541_v25 }
 0x128   : > { %v1856_v6 = vsel %vm1833_vm6, %v1823_v19, %v3007_v2  ;;  %v1857_v45 = vsel %vm1833_vm6, %v1824_v41, %v3008_v37 }
 0x129   : > { %v3016_v16 = vpop.permute.xlu1 %3015  ;;  %v1873_v62 = vsel %vm1866_vm7, %v1840_v14, %v3012_v24  ;;  %v1874_v30 = vsel %vm1866_vm7, %v1841_v0, %v3013_v55 }
 0x12a   : > { %v3018_v61 = vunpack.i.h.bf16 %v3016_v16  ;;  %v3017_v7 = vunpack.i.l.bf16 %v3016_v16  ;;  %v3021_v12 = vpop.permute.xlu0 %3020  ;;  %v1905_v5 = vpack.c.bf16 %v1874_v30, %v1873_v62 }
 0x12b   : > { %v3023_v1 = vunpack.i.h.bf16 %v3021_v12 }
 0x12c   : > { %2108 = vmatmul.mubr.bf16.gmra.mrb[12].mxu0 %v1905_v5  ;;  %v1889_v39 = vsel %vm1866_vm7, %v1856_v6, %v3017_v7  ;;  %v1890_v63 = vsel %vm1866_vm7, %v1857_v45, %v3018_v61 }
 0x12d   : > { %v3026_v46 = vpop.permute.xlu1 %3025  ;;  %v1921_v23 = vpack.c.bf16 %v1890_v63, %v1889_v39  ;;  %2562 = vmatprep.mubr.msk.bf16.mxu0 %vm253_vm0, %v1908_v50  ;;  %v3022_v50 = vunpack.i.l.bf16 %v3021_v12  ;;  %v1727_v38 = vsel %vm1701_vm2, %v1694_v27, %v3023_v1 }
 0x12e   : > { %v3031_v48 = vpop.permute.xlu0 %3030  ;;  %v3028_v8 = vunpack.i.h.bf16 %v3026_v46  ;;  %v3027_v51 = vunpack.i.l.bf16 %v3026_v46 }
 0x12f   : > { %2172 = vmatmul.mubr.bf16.gmra.mrb[12].mxu1 %v1921_v23  ;;  %v3033_v33 = vunpack.i.h.bf16 %v3031_v48  ;;  %v3032_v53 = vunpack.i.l.bf16 %v3031_v48  ;;  %v1726_v15 = vsel %vm1701_vm2, %v1693_v52, %v3022_v50  ;;  %v4543_v52 = vld [vmem:[#allocation8_spill] sm:$0xff] }
 0x130   : > { %2570 = vmatprep.mubr.msk.bf16.mxu1 %vm253_vm0, %v1924_v31  ;;  %v1743_v0 = vsel %vm1734_vm3, %v1710_v49, %v3027_v51  ;;  %v1744_v47 = vsel %vm1734_vm3, %v1711_v13, %v3028_v8  ;;  %v2708_v49 = vunpack.i.h.bf16 %v4543_v52  ;;  %v2707_v8 = vunpack.i.l.bf16 %v4543_v52  ;;  %v4544_v51 = vld [vmem:[#allocation12_spill] sm:$0xff] }
 0x131   : > { %v3036_v17 = vpop.permute.xlu1 %3035  ;;  %v1759_v28 = vsel %vm1734_vm3, %v1726_v15, %v3032_v53  ;;  %v1760_v29 = vsel %vm1734_vm3, %v1727_v38, %v3033_v33  ;;  %v2747_v13 = vunpack.i.l.bf16 %v4544_v51  ;;  %v4545_v33 = vld [vmem:[#allocation16_spill] sm:$0xff] }
 0x132   : > { %v3041_v21 = vpop.permute.xlu0 %3040  ;;  %v3038_v37 = vunpack.i.h.bf16 %v3036_v17  ;;  %v3037_v2 = vunpack.i.l.bf16 %v3036_v17  ;;  %v2788_v53 = vunpack.i.h.bf16 %v4545_v33  ;;  %v2787_v15 = vunpack.i.l.bf16 %v4545_v33 }
 0x133   : > { %v3043_v55 = vunpack.i.h.bf16 %v3041_v21  ;;  %v3042_v24 = vunpack.i.l.bf16 %v3041_v21 }
 0x134   : > { %v1776_v61 = vsel %vm1767_vm4, %v1743_v0, %v3037_v2  ;;  %v1777_v7 = vsel %vm1767_vm4, %v1744_v47, %v3038_v37  ;;  %v3250_v47 = vld [vmem:[#allocation2 + $0x140] sm:$0xff] }
 0x135   : > { %v3046_v35 = vpop.permute.xlu1 %3045  ;;  %v1792_v6 = vsel %vm1767_vm4, %v1759_v28, %v3042_v24  ;;  %v1793_v45 = vsel %vm1767_vm4, %v1760_v29, %v3043_v55 }
 0x136   : > { %v3051_v36 = vpop.permute.xlu0 %3050  ;;  %v3048_v18 = vunpack.i.h.bf16 %v3046_v35  ;;  %v3047_v3 = vunpack.i.l.bf16 %v3046_v35 }
 0x137   : > { %v3053_v19 = vunpack.i.h.bf16 %v3051_v36  ;;  %v3052_v16 = vunpack.i.l.bf16 %v3051_v36  ;;  %v2748_v36 = vunpack.i.h.bf16 %v4544_v51 }
 0x138   : > { %v1809_v39 = vsel %vm1800_vm5, %v1776_v61, %v3047_v3  ;;  %v1810_v63 = vsel %vm1800_vm5, %v1777_v7, %v3048_v18  ;;  %v3248_v18 = vld [vmem:[#allocation2 + $0x80] sm:$0xff] }
 0x139   : > { %v3056_v14 = vpop.permute.xlu1 %3055  ;;  %v1825_v46 = vsel %vm1800_vm5, %v1792_v6, %v3052_v16  ;;  %v1826_v23 = vsel %vm1800_vm5, %v1793_v45, %v3053_v19  ;;  %v1680_v3 = vsel %vm253_vm0, %v3248_v18, %v2708_v49  ;;  %v1696_v19 = vsel %vm253_vm0, %v3250_v47, %v2748_v36  ;;  %v3251_v16 = vld [vmem:[#allocation2 + $0x138] sm:$0xff]  ;;  %v4546_v18 = vld [vmem:[#allocation9_spill] sm:$0xff] }
 0x13a   : > { %v3061_v62 = vpop.permute.xlu0 %3060  ;;  %v3058_v30 = vunpack.i.h.bf16 %v3056_v14  ;;  %v3057_v41 = vunpack.i.l.bf16 %v3056_v14  ;;  %v3249_v14 = vld [vmem:[#allocation2 + $0x78] sm:$0xff]  ;;  %v1713_v28 = vsel %vm1701_vm2, %v1680_v3, %v2788_v53  ;;  %v1912_v45 = vpack.c.bf16 %v3982_v56, %v3978_v44 }
 0x13b   : > { %v3063_v12 = vunpack.i.h.bf16 %v3061_v62  ;;  %v3062_v5 = vunpack.i.l.bf16 %v3061_v62  ;;  %v1679_v0 = vsel %vm253_vm0, %v3249_v14, %v2707_v8  ;;  %v1695_v62 = vsel %vm253_vm0, %v3251_v16, %v2747_v13 }
 0x13c   : > { %v1842_v59 = vsel %vm1833_vm6, %v1809_v39, %v3057_v41  ;;  %v1843_v43 = vsel %vm1833_vm6, %v1810_v63, %v3058_v30  ;;  %v1712_v29 = vsel %vm1701_vm2, %v1679_v0, %v2787_v15  ;;  %v2713_v3 = vunpack.i.h.bf16 %v4546_v18  ;;  %v4547_v0 = vld [vmem:[#allocation13_spill] sm:$0xff] }
 0x13d   : > { %v3066_v31 = vpop.permute.xlu1 %3065  ;;  %v1858_v11 = vsel %vm1833_vm6, %v1825_v46, %v3062_v5  ;;  %v1859_v60 = vsel %vm1833_vm6, %v1826_v23, %v3063_v12  ;;  %v2712_v14 = vunpack.i.l.bf16 %v4546_v18  ;;  %v2753_v47 = vunpack.i.h.bf16 %v4547_v0  ;;  %v771_v18 = vld [vmem:[#allocation2 + $0x19a] sm:$0xff] }
 0x13e   : > { %v3068_v48 = vunpack.i.h.bf16 %v3066_v31  ;;  %v3067_v32 = vunpack.i.l.bf16 %v3066_v31  ;;  %v3071_v34 = vpop.permute.xlu0 %3070  ;;  %v2752_v16 = vunpack.i.l.bf16 %v4547_v0 }
 0x13f   : > { %v3073_v40 = vunpack.i.h.bf16 %v3071_v34  ;;  %v3072_v17 = vunpack.i.l.bf16 %v3071_v34 }
 0x140   : > { %v1875_v4 = vsel %vm1866_vm7, %v1842_v59, %v3067_v32  ;;  %v1876_v21 = vsel %vm1866_vm7, %v1843_v43, %v3068_v48 }
 0x141   : > { %v3076_v22 = vpop.permute.xlu1 %3075  ;;  %v1907_v1 = vpack.c.bf16 %v1876_v21, %v1875_v4  ;;  %v1891_v50 = vsel %vm1866_vm7, %v1858_v11, %v3072_v17  ;;  %v1892_v57 = vsel %vm1866_vm7, %v1859_v60, %v3073_v40 }
 0x142   : > { %v3081_v58 = vpop.permute.xlu0 %3080  ;;  %v1923_v27 = vpack.c.bf16 %v1892_v57, %v1891_v50  ;;  %v3078_v2 = vunpack.i.h.bf16 %v3076_v22 }
 0x143   : > { %2116 = vmatmul.mubr.bf16.gmra.mrb[16].mxu0 %v1907_v1  ;;  %v3083_v55 = vunpack.i.h.bf16 %v3081_v58  ;;  %v3082_v24 = vunpack.i.l.bf16 %v3081_v58 }
 0x144   : > { %2180 = vmatmul.mubr.bf16.gmra.mrb[16].mxu1 %v1923_v27  ;;  %2563 = vmatprep.mubr.msk.bf16.mxu0 %vm253_vm0, %v1910_v26  ;;  %v3077_v26 = vunpack.i.l.bf16 %v3076_v22  ;;  %v1729_v39 = vsel %vm1701_vm2, %v1696_v19, %v3078_v2  ;;  %v1928_v2 = vpack.c.bf16 %v4052_v54, %v4050_v42 }
 0x145   : > { %v3086_v35 = vpop.permute.xlu1 %3085  ;;  %2571 = vmatprep.mubr.msk.bf16.mxu1 %vm253_vm0, %v1926_v9  ;;  %v1746_v31 = vsel %vm1734_vm3, %v1713_v28, %v3083_v55  ;;  %v1745_v46 = vsel %vm1734_vm3, %v1712_v29, %v3082_v24 }
 0x146   : > { %v3091_v20 = vpop.permute.xlu0 %3090  ;;  %v3087_v7 = vunpack.i.l.bf16 %v3086_v35  ;;  %v1728_v63 = vsel %vm1701_vm2, %v1695_v62, %v3077_v26  ;;  %v3088_v23 = vunpack.i.h.bf16 %v3086_v35  ;;  %v4548_v62 = vld [vmem:[#allocation17_spill] sm:$0xff] }
 0x147   : > { %v3093_v30 = vunpack.i.h.bf16 %v3091_v20  ;;  %v3092_v41 = vunpack.i.l.bf16 %v3091_v20  ;;  %v2792_v28 = vunpack.i.l.bf16 %v4548_v62  ;;  %v2793_v54 = vunpack.i.h.bf16 %v4548_v62 }
 0x148   : > { %v1761_v44 = vsel %vm1734_vm3, %v1728_v63, %v3087_v7  ;;  %v1762_v25 = vsel %vm1734_vm3, %v1729_v39, %v3088_v23  ;;  %v3252_v7 = vld [vmem:[#allocation2 + $0x98] sm:$0xff] }
 0x149   : > { %v3096_v38 = vpop.permute.xlu1 %3095  ;;  %v1778_v59 = vsel %vm1767_vm4, %v1745_v46, %v3092_v41  ;;  %v1779_v43 = vsel %vm1767_vm4, %v1746_v31, %v3093_v30  ;;  %v4271_v41 = vld [vmem:[#allocation2 + $0xda] sm:$0xff]  ;;  %v3255_v31 = vld [vmem:[#allocation2 + $0x150] sm:$0xff] }
 0x14a   : > { %v3101_v37 = vpop.permute.xlu0 %3100  ;;  %v3097_v48 = vunpack.i.l.bf16 %v3096_v38  ;;  %v3098_v40 = vunpack.i.h.bf16 %v3096_v38  ;;  %v1697_v46 = vsel %vm253_vm0, %v3255_v31, %v2752_v16  ;;  %v4550_v31 = vld [vmem:[#allocation14_spill] sm:$0xff] }
 0x14b   : > { %v3103_v12 = vunpack.i.h.bf16 %v3101_v37  ;;  %v3102_v5 = vunpack.i.l.bf16 %v3101_v37 }
 0x14c   : > { %v1794_v10 = vsel %vm1767_vm4, %v1761_v44, %v3097_v48  ;;  %v1795_v27 = vsel %vm1767_vm4, %v1762_v25, %v3098_v40 }
 0x14d   : > { %v3106_v61 = vpop.permute.xlu1 %3105  ;;  %v1811_v56 = vsel %vm1800_vm5, %v1778_v59, %v3102_v5  ;;  %v1812_v60 = vsel %vm1800_vm5, %v1779_v43, %v3103_v12  ;;  %v1682_v12 = vsel %vm253_vm0, %v3252_v7, %v2713_v3  ;;  %v3253_v5 = vld [vmem:[#allocation2 + $0x90] sm:$0xff]  ;;  %v772_v3 = vld [vmem:[#allocation2 + $0x1a2] sm:$0xff] }
 0x14e   : > { %v3111_v6 = vpop.permute.xlu0 %3110  ;;  %v3107_v17 = vunpack.i.l.bf16 %v3106_v61  ;;  %v3108_v4 = vunpack.i.h.bf16 %v3106_v61  ;;  %v4273_v61 = vld [vmem:[#allocation2 + $0xe2] sm:$0xff]  ;;  %v1715_v59 = vsel %vm1701_vm2, %v1682_v12, %v2793_v54 }
 0x14f   : > { %v3113_v32 = vunpack.i.h.bf16 %v3111_v6  ;;  %v3112_v34 = vunpack.i.l.bf16 %v3111_v6  ;;  %v1681_v6 = vsel %vm253_vm0, %v3253_v5, %v2712_v14 }
 0x150   : > { %v1827_v35 = vsel %vm1800_vm5, %v1794_v10, %v3107_v17  ;;  %v1828_v8 = vsel %vm1800_vm5, %v1795_v27, %v3108_v4  ;;  %v1714_v23 = vsel %vm1701_vm2, %v1681_v6, %v2792_v28  ;;  %v1914_v17 = vpack.c.bf16 %v4273_v61, %v4271_v41 }
 0x151   : > { %v3116_v11 = vpop.permute.xlu1 %3115  ;;  %v1844_v9 = vsel %vm1833_vm6, %v1811_v56, %v3112_v34  ;;  %v1845_v58 = vsel %vm1833_vm6, %v1812_v60, %v3113_v32  ;;  %v1930_v61 = vpack.c.bf16 %v772_v3, %v771_v18 }
 0x152   : > { %v3121_v21 = vpop.permute.xlu0 %3120  ;;  %v3118_v22 = vunpack.i.h.bf16 %v3116_v11  ;;  %v3117_v1 = vunpack.i.l.bf16 %v3116_v11 }
 0x153   : > { %v3123_v50 = vunpack.i.h.bf16 %v3121_v21  ;;  %v3122_v57 = vunpack.i.l.bf16 %v3121_v21 }
 0x154   : > { %v1860_v53 = vsel %vm1833_vm6, %v1827_v35, %v3117_v1  ;;  %v1861_v15 = vsel %vm1833_vm6, %v1828_v8, %v3118_v22 }
 0x155   : > { %v3126_v20 = vpop.permute.xlu1 %3125  ;;  %v1877_v52 = vsel %vm1866_vm7, %v1844_v9, %v3122_v57  ;;  %v1878_v49 = vsel %vm1866_vm7, %v1845_v58, %v3123_v50 }
 0x156   : > { %v3128_v51 = vunpack.i.h.bf16 %v3126_v20  ;;  %v3127_v36 = vunpack.i.l.bf16 %v3126_v20  ;;  %v3131_v13 = vpop.permute.xlu0 %3130  ;;  %v1909_v33 = vpack.c.bf16 %v1878_v49, %v1877_v52 }
 0x157   : > { %v3133_v29 = vunpack.i.h.bf16 %v3131_v13  ;;  %v3132_v30 = vunpack.i.l.bf16 %v3131_v13 }
 0x158   : > { %2124 = vmatmul.mubr.bf16.gmra.mrb[20].mxu0 %v1909_v33  ;;  %v1893_v38 = vsel %vm1866_vm7, %v1860_v53, %v3127_v36  ;;  %v1894_v37 = vsel %vm1866_vm7, %v1861_v15, %v3128_v51 }
 0x159   : > { %v3136_v26 = vpop.permute.xlu1 %3135  ;;  %v1925_v55 = vpack.c.bf16 %v1894_v37, %v1893_v38  ;;  %2564 = vmatprep.mubr.msk.bf16.mxu0 %vm253_vm0, %v1912_v45  ;;  %v3254_v45 = vld [vmem:[#allocation2 + $0x158] sm:$0xff]  ;;  %v1730_v11 = vsel %vm1701_vm2, %v1697_v46, %v3132_v30  ;;  %v2758_v46 = vunpack.i.h.bf16 %v4550_v31 }
 0x15a   : > { %v3141_v24 = vpop.permute.xlu0 %3140  ;;  %v1698_v39 = vsel %vm253_vm0, %v3254_v45, %v2753_v47  ;;  %v3138_v48 = vunpack.i.h.bf16 %v3136_v26  ;;  %v3137_v32 = vunpack.i.l.bf16 %v3136_v26  ;;  %v4549_v45 = vld [vmem:[#allocation10_spill] sm:$0xff] }
 0x15b   : > { %2188 = vmatmul.mubr.bf16.gmra.mrb[20].mxu1 %v1925_v55  ;;  %v3143_v43 = vunpack.i.h.bf16 %v3141_v24  ;;  %v3142_v40 = vunpack.i.l.bf16 %v3141_v24  ;;  %v1731_v44 = vsel %vm1701_vm2, %v1698_v39, %v3133_v29  ;;  %v2718_v39 = vunpack.i.h.bf16 %v4549_v45 }
 0x15c   : > { %2572 = vmatprep.mubr.msk.bf16.mxu1 %vm253_vm0, %v1928_v2  ;;  %v1747_v57 = vsel %vm1734_vm3, %v1714_v23, %v3137_v32  ;;  %v1748_v25 = vsel %vm1734_vm3, %v1715_v59, %v3138_v48  ;;  %v2757_v23 = vunpack.i.l.bf16 %v4550_v31  ;;  %v4551_v48 = vld [vmem:[#allocation18_spill] sm:$0xff] }
 0x15d   : > { %v3146_v19 = vpop.permute.xlu1 %3145  ;;  %v1763_v27 = vsel %vm1734_vm3, %v1730_v11, %v3142_v40  ;;  %v1764_v35 = vsel %vm1734_vm3, %v1731_v44, %v3143_v43  ;;  %v2798_v32 = vunpack.i.h.bf16 %v4551_v48  ;;  %v2797_v59 = vunpack.i.l.bf16 %v4551_v48 }
 0x15e   : > { %v3151_v42 = vpop.permute.xlu0 %3150  ;;  %v3148_v56 = vunpack.i.h.bf16 %v3146_v19  ;;  %v3147_v60 = vunpack.i.l.bf16 %v3146_v19 }
 0x15f   : > { %v3153_v4 = vunpack.i.h.bf16 %v3151_v42  ;;  %v3152_v21 = vunpack.i.l.bf16 %v3151_v42 }
 0x160   : > { %v1780_v49 = vsel %vm1767_vm4, %v1747_v57, %v3147_v60  ;;  %v1781_v8 = vsel %vm1767_vm4, %v1748_v25, %v3148_v56  ;;  %v3256_v56 = vld [vmem:[#allocation2 + $0xb0] sm:$0xff] }
 0x161   : > { %v3156_v63 = vpop.permute.xlu1 %3155  ;;  %v1796_v13 = vsel %vm1767_vm4, %v1763_v27, %v3152_v21  ;;  %v1797_v33 = vsel %vm1767_vm4, %v1764_v35, %v3153_v4  ;;  %v1684_v60 = vsel %vm253_vm0, %v3256_v56, %v2718_v39  ;;  %v3257_v4 = vld [vmem:[#allocation2 + $0xa8] sm:$0xff] }
 0x162   : > { %v3161_v34 = vpop.permute.xlu0 %3160  ;;  %v3158_v22 = vunpack.i.h.bf16 %v3156_v63  ;;  %v3157_v1 = vunpack.i.l.bf16 %v3156_v63  ;;  %v2717_v63 = vunpack.i.l.bf16 %v4549_v45  ;;  %v1717_v25 = vsel %vm1701_vm2, %v1684_v60, %v2798_v32 }
 0x163   : > { %v3163_v10 = vunpack.i.h.bf16 %v3161_v34  ;;  %v3162_v9 = vunpack.i.l.bf16 %v3161_v34 }
 0x164   : > { %v1813_v53 = vsel %vm1800_vm5, %v1780_v49, %v3157_v1  ;;  %v1814_v15 = vsel %vm1800_vm5, %v1781_v8, %v3158_v22  ;;  %v1683_v21 = vsel %vm253_vm0, %v3257_v4, %v2717_v63  ;;  %v3258_v22 = vld [vmem:[#allocation2 + $0x170] sm:$0xff] }
 0x165   : > { %v3166_v50 = vpop.permute.xlu1 %3165  ;;  %v1829_v37 = vsel %vm1800_vm5, %v1796_v13, %v3162_v9  ;;  %v1830_v2 = vsel %vm1800_vm5, %v1797_v33, %v3163_v10  ;;  %v1700_v1 = vsel %vm253_vm0, %v3258_v22, %v2758_v46  ;;  %v1716_v27 = vsel %vm1701_vm2, %v1683_v21, %v2797_v59 }
 0x166   : > { %v3171_v58 = vpop.permute.xlu0 %3170  ;;  %v3168_v20 = vunpack.i.h.bf16 %v3166_v50  ;;  %v3167_v52 = vunpack.i.l.bf16 %v3166_v50  ;;  %v3259_v50 = vld [vmem:[#allocation2 + $0x168] sm:$0xff] }
 0x167   : > { %v3173_v51 = vunpack.i.h.bf16 %v3171_v58  ;;  %v3172_v36 = vunpack.i.l.bf16 %v3171_v58  ;;  %v1699_v57 = vsel %vm253_vm0, %v3259_v50, %v2757_v23 }
 0x168   : > { %v1846_v14 = vsel %vm1833_vm6, %v1813_v53, %v3167_v52  ;;  %v1847_v0 = vsel %vm1833_vm6, %v1814_v15, %v3168_v20 }
 0x169   : > { %v3176_v38 = vpop.permute.xlu1 %3175  ;;  %v1862_v16 = vsel %vm1833_vm6, %v1829_v37, %v3172_v36  ;;  %v1863_v62 = vsel %vm1833_vm6, %v1830_v2, %v3173_v51 }
 0x16a   : > { %v3178_v26 = vunpack.i.h.bf16 %v3176_v38  ;;  %v3177_v55 = vunpack.i.l.bf16 %v3176_v38  ;;  %v3181_v24 = vpop.permute.xlu0 %3180 }
 0x16b   : > { %v3183_v47 = vunpack.i.h.bf16 %v3181_v24  ;;  %v3182_v19 = vunpack.i.l.bf16 %v3181_v24 }
 0x16c   : > { %v1879_v28 = vsel %vm1866_vm7, %v1846_v14, %v3177_v55  ;;  %v1880_v42 = vsel %vm1866_vm7, %v1847_v0, %v3178_v26 }
 0x16d   : > { %v3186_v54 = vpop.permute.xlu1 %3185  ;;  %v1911_v29 = vpack.c.bf16 %v1880_v42, %v1879_v28  ;;  %v1895_v30 = vsel %vm1866_vm7, %v1862_v16, %v3182_v19  ;;  %v1896_v41 = vsel %vm1866_vm7, %v1863_v62, %v3183_v47 }
 0x16e   : > { %v3191_v7 = vpop.permute.xlu0 %3190  ;;  %v1927_v12 = vpack.c.bf16 %v1896_v41, %v1895_v30  ;;  %v3188_v40 = vunpack.i.h.bf16 %v3186_v54 }
 0x16f   : > { %2132 = vmatmul.mubr.bf16.gmra.mrb[24].mxu0 %v1911_v29  ;;  %v3193_v11 = vunpack.i.h.bf16 %v3191_v7  ;;  %v3192_v44 = vunpack.i.l.bf16 %v3191_v7 }
 0x170   : > { %2196 = vmatmul.mubr.bf16.gmra.mrb[24].mxu1 %v1927_v12  ;;  %2565 = vmatprep.mubr.msk.bf16.mxu0 %vm253_vm0, %v1914_v17  ;;  %v3187_v17 = vunpack.i.l.bf16 %v3186_v54  ;;  %v1733_v8 = vsel %vm1701_vm2, %v1700_v1, %v3188_v40 }
 0x171   : > { %v3196_v5 = vpop.permute.xlu1 %3195  ;;  %2573 = vmatprep.mubr.msk.bf16.mxu1 %vm253_vm0, %v1930_v61  ;;  %v1750_v36 = vsel %vm1734_vm3, %v1717_v25, %v3193_v11  ;;  %v1749_v13 = vsel %vm1734_vm3, %v1716_v27, %v3192_v44 }
 0x172   : > { %v3201_v6 = vpop.permute.xlu0 %3200  ;;  %v3197_v35 = vunpack.i.l.bf16 %v3196_v5  ;;  %v1732_v51 = vsel %vm1701_vm2, %v1699_v57, %v3187_v17  ;;  %v3198_v33 = vunpack.i.h.bf16 %v3196_v5 }
 0x173   : > { %v3203_v10 = vunpack.i.h.bf16 %v3201_v6  ;;  %v3202_v9 = vunpack.i.l.bf16 %v3201_v6 }
 0x174   : > { %v1765_v18 = vsel %vm1734_vm3, %v1732_v51, %v3197_v35  ;;  %v1766_v42 = vsel %vm1734_vm3, %v1733_v8, %v3198_v33 }
 0x175   : > { %v3206_v34 = vpop.permute.xlu1 %3205  ;;  %v1782_v37 = vsel %vm1767_vm4, %v1749_v13, %v3202_v9  ;;  %v1783_v2 = vsel %vm1767_vm4, %v1750_v36, %v3203_v10 }
 0x176   : > { %v3211_v43 = vpop.permute.xlu0 %3210  ;;  %v3207_v53 = vunpack.i.l.bf16 %v3206_v34  ;;  %v3208_v26 = vunpack.i.h.bf16 %v3206_v34  ;;  %v4344_v34 = vld [vmem:[%s4492_s4] ss:$0 sm:$0xff] }
 0x177   : > { %v3213_v20 = vunpack.i.h.bf16 %v3211_v43  ;;  %v3212_v52 = vunpack.i.l.bf16 %v3211_v43  ;;  %v4349_v43 = vld [vmem:[%s4493_s5] ss:$0 sm:$0xff] }
 0x178   : > { %v1798_v54 = vsel %vm1767_vm4, %v1765_v18, %v3207_v53  ;;  %v1799_v41 = vsel %vm1767_vm4, %v1766_v42, %v3208_v26 }
 0x179   : > { %v3216_v58 = vpop.permute.xlu1 %3215  ;;  %v1815_v3 = vsel %vm1800_vm5, %v1782_v37, %v3212_v52  ;;  %v1816_v14 = vsel %vm1800_vm5, %v1783_v2, %v3213_v20 }
 0x17a   : > { %v3221_v49 = vpop.permute.xlu0 %3220  ;;  %v3217_v55 = vunpack.i.l.bf16 %v3216_v58  ;;  %v3218_v0 = vunpack.i.h.bf16 %v3216_v58 }
 0x17b   : > { %v3223_v15 = vunpack.i.h.bf16 %v3221_v49  ;;  %v3222_v38 = vunpack.i.l.bf16 %v3221_v49 }
 0x17c   : > { %v1831_v61 = vsel %vm1800_vm5, %v1798_v54, %v3217_v55  ;;  %v1832_v6 = vsel %vm1800_vm5, %v1799_v41, %v3218_v0 }
 0x17d   : > { %v3226_v24 = vpop.permute.xlu1 %3225  ;;  %v1848_v29 = vsel %vm1833_vm6, %v1815_v3, %v3222_v38  ;;  %v1849_v30 = vsel %vm1833_vm6, %v1816_v14, %v3223_v15 }
 0x17e   : > { %v3231_v47 = vpop.permute.xlu0 %3230  ;;  %v3228_v19 = vunpack.i.h.bf16 %v3226_v24  ;;  %v3227_v16 = vunpack.i.l.bf16 %v3226_v24 }
 0x17f   : > { %v3233_v62 = vunpack.i.h.bf16 %v3231_v47  ;;  %v3232_v28 = vunpack.i.l.bf16 %v3231_v47 }
 0x180   : > { %v1864_v31 = vsel %vm1833_vm6, %v1831_v61, %v3227_v16  ;;  %v1865_v46 = vsel %vm1833_vm6, %v1832_v6, %v3228_v19 }
 0x181   : > { %v3236_v7 = vpop.permute.xlu1 %3235  ;;  %v1881_v12 = vsel %vm1866_vm7, %v1848_v29, %v3232_v28  ;;  %v1882_v5 = vsel %vm1866_vm7, %v1849_v30, %v3233_v62 }
 0x182   : > { %v3238_v45 = vunpack.i.h.bf16 %v3236_v7  ;;  %v3237_v39 = vunpack.i.l.bf16 %v3236_v7  ;;  %v1913_v63 = vpack.c.bf16 %v1882_v5, %v1881_v12 }
 0x184   : > { %2140 = vmatmul.mubr.bf16.gmra.mrb[28].mxu0 %v1913_v63  ;;  %v1897_v23 = vsel %vm1866_vm7, %v1864_v31, %v3237_v39  ;;  %v1898_v48 = vsel %vm1866_vm7, %v1865_v46, %v3238_v45 }
 0x185   : > { %v1929_v32 = vpack.c.bf16 %v1898_v48, %v1897_v23 }
 0x187   : > { %2204 = vmatmul.mubr.bf16.gmra.mrb[28].mxu1 %v1929_v32 }
 0x1c2   : > { %v2085_v59 = vpop.f32.mrb[0].mxu0 }
 0x1c3   : > { %v2219_v40 = vmul.f32 %v4344_v34, %v2085_v59  ;;  %v2149_v17 = vpop.f32.mrb[0].mxu1  ;;  %v2087_v11 = vpop.f32.mrb[1].mxu0 }
 0x1c4   : > { %v2235_v44 = vmul.f32 %v4344_v34, %v2149_v17  ;;  %v2151_v56 = vpop.f32.mrb[1].mxu1  ;;  %v2088_v60 = vpop.f32.mrb[2].mxu0 }
 0x1c5   : > { %v2258_v4 = vadd.f32 %v4349_v43, %v2219_v40  ;;  %v2220_v21 = vmul.f32 %v4344_v34, %v2088_v60  ;;  %v2152_v22 = vpop.f32.mrb[2].mxu1  ;;  %v2090_v1 = vpop.f32.mrb[3].mxu0 }
 0x1c6   : > { %v2274_v50 = vadd.f32 %v4349_v43, %v2235_v44  ;;  %v2236_v57 = vmul.f32 %v4344_v34, %v2152_v22  ;;  %v2154_v25 = vpop.f32.mrb[3].mxu1 }
 0x1c7   : > { %v2290_v10 = vmax.f32 %v2258_v4, 0.0  ;;  %v2259_v9 = vadd.f32 %v4349_v43, %v2220_v21 }
 0x1c8   : > { %v2306_v58 = vmax.f32 %v2274_v50, 0.0  ;;  %v2275_v27 = vadd.f32 %v4349_v43, %v2236_v57 }
 0x1c9   : > { %v2612_v35 = vpack.c.bf16 %v2290_v10, %v2290_v10  ;;  %v2291_v20 = vmax.f32 %v2259_v9, 0.0 }
 0x1ca   : > { %v2628_v52 = vpack.c.bf16 %v2306_v58, %v2306_v58  ;;  %v2307_v49 = vmax.f32 %v2275_v27, 0.0 }
 0x1cb   : > { %2451 = vst.msk [vmem:[%s4362_s18] sm:$0xf] %vm2450_vm8, %v2612_v35  ;;  %v2613_v8 = vpack.c.bf16 %v2291_v20, %v2291_v20 }
 0x1cc   : > { %2467 = vst.msk [vmem:[%s4362_s18 + $0x40] sm:$0xf] %vm2450_vm8, %v2628_v52  ;;  %v2629_v51 = vpack.c.bf16 %v2307_v49, %v2307_v49 }
 0x1cd   : > { %2452 = vst.msk [vmem:[%s4362_s18 + $0x4] sm:$0xf] %vm2450_vm8, %v2613_v8 }
 0x1ce   : > { %2468 = vst.msk [vmem:[%s4362_s18 + $0x44] sm:$0xf] %vm2450_vm8, %v2629_v51 }
 0x1d6   : > { %v2093_v36 = vpop.f32.mrb[4].mxu0 }
 0x1d7   : > { %v2221_v13 = vmul.f32 %v4344_v34, %v2093_v36  ;;  %v2157_v33 = vpop.f32.mrb[4].mxu1  ;;  %v2095_v53 = vpop.f32.mrb[5].mxu0 }
 0x1d8   : > { %v2237_v15 = vmul.f32 %v4344_v34, %v2157_v33  ;;  %v2159_v38 = vpop.f32.mrb[5].mxu1  ;;  %v2096_v37 = vpop.f32.mrb[6].mxu0 }
 0x1d9   : > { %v2260_v2 = vadd.f32 %v4349_v43, %v2221_v13  ;;  %v2222_v26 = vmul.f32 %v4344_v34, %v2096_v37  ;;  %v2160_v55 = vpop.f32.mrb[6].mxu1  ;;  %v2098_v24 = vpop.f32.mrb[7].mxu0 }
 0x1da   : > { %v2276_v18 = vadd.f32 %v4349_v43, %v2237_v15  ;;  %v2238_v3 = vmul.f32 %v4344_v34, %v2160_v55  ;;  %v2162_v14 = vpop.f32.mrb[7].mxu1 }
 0x1db   : > { %v2292_v0 = vmax.f32 %v2260_v2, 0.0  ;;  %v2261_v47 = vadd.f32 %v4349_v43, %v2222_v26 }
 0x1dc   : > { %v2308_v19 = vmax.f32 %v2276_v18, 0.0  ;;  %v2277_v16 = vadd.f32 %v4349_v43, %v2238_v3 }
 0x1dd   : > { %v2614_v62 = vpack.c.bf16 %v2292_v0, %v2292_v0  ;;  %v2293_v28 = vmax.f32 %v2261_v47, 0.0 }
 0x1de   : > { %v2630_v42 = vpack.c.bf16 %v2308_v19, %v2308_v19  ;;  %v2309_v54 = vmax.f32 %v2277_v16, 0.0 }
 0x1df   : > { %2453 = vst.msk [vmem:[%s4362_s18 + $0x8] sm:$0xf] %vm2450_vm8, %v2614_v62  ;;  %v2615_v29 = vpack.c.bf16 %v2293_v28, %v2293_v28 }
 0x1e0   : > { %2469 = vst.msk [vmem:[%s4362_s18 + $0x48] sm:$0xf] %vm2450_vm8, %v2630_v42  ;;  %v2631_v30 = vpack.c.bf16 %v2309_v54, %v2309_v54 }
 0x1e1   : > { %2454 = vst.msk [vmem:[%s4362_s18 + $0xc] sm:$0xf] %vm2450_vm8, %v2615_v29 }
 0x1e2   : > { %2470 = vst.msk [vmem:[%s4362_s18 + $0x4c] sm:$0xf] %vm2450_vm8, %v2631_v30 }
 0x1ea   : > { %v2101_v41 = vpop.f32.mrb[8].mxu0 }
 0x1eb   : > { %v2223_v61 = vmul.f32 %v4344_v34, %v2101_v41  ;;  %v2165_v7 = vpop.f32.mrb[8].mxu1  ;;  %v2103_v12 = vpop.f32.mrb[9].mxu0 }
 0x1ec   : > { %v2239_v5 = vmul.f32 %v4344_v34, %v2165_v7  ;;  %v2167_v6 = vpop.f32.mrb[9].mxu1  ;;  %v2104_v45 = vpop.f32.mrb[10].mxu0 }
 0x1ed   : > { %v2262_v39 = vadd.f32 %v4349_v43, %v2223_v61  ;;  %v2224_v63 = vmul.f32 %v4344_v34, %v2104_v45  ;;  %v2168_v31 = vpop.f32.mrb[10].mxu1  ;;  %v2106_v46 = vpop.f32.mrb[11].mxu0 }
 0x1ee   : > { %v2278_v23 = vadd.f32 %v4349_v43, %v2239_v5  ;;  %v2240_v48 = vmul.f32 %v4344_v34, %v2168_v31  ;;  %v2170_v32 = vpop.f32.mrb[11].mxu1 }
 0x1ef   : > { %v2294_v59 = vmax.f32 %v2262_v39, 0.0  ;;  %v2263_v40 = vadd.f32 %v4349_v43, %v2224_v63 }
 0x1f0   : > { %v2310_v17 = vmax.f32 %v2278_v23, 0.0  ;;  %v2279_v11 = vadd.f32 %v4349_v43, %v2240_v48 }
 0x1f1   : > { %v2616_v44 = vpack.c.bf16 %v2294_v59, %v2294_v59  ;;  %v2295_v56 = vmax.f32 %v2263_v40, 0.0 }
 0x1f2   : > { %v2632_v60 = vpack.c.bf16 %v2310_v17, %v2310_v17  ;;  %v2311_v4 = vmax.f32 %v2279_v11, 0.0 }
 0x1f3   : > { %2455 = vst.msk [vmem:[%s4362_s18 + $0x10] sm:$0xf] %vm2450_vm8, %v2616_v44  ;;  %v2617_v21 = vpack.c.bf16 %v2295_v56, %v2295_v56 }
 0x1f4   : > { %2471 = vst.msk [vmem:[%s4362_s18 + $0x50] sm:$0xf] %vm2450_vm8, %v2632_v60  ;;  %v2633_v22 = vpack.c.bf16 %v2311_v4, %v2311_v4 }
 0x1f5   : > { %2456 = vst.msk [vmem:[%s4362_s18 + $0x14] sm:$0xf] %vm2450_vm8, %v2617_v21 }
 0x1f6   : > { %2472 = vst.msk [vmem:[%s4362_s18 + $0x54] sm:$0xf] %vm2450_vm8, %v2633_v22 }
 0x1ff   : > { %v2109_v1 = vpop.f32.mrb[12].mxu0 }
 0x200   : > { %v2225_v50 = vmul.f32 %v4344_v34, %v2109_v1  ;;  %v2111_v57 = vpop.f32.mrb[13].mxu0 }
 0x201   : > { %v2112_v25 = vpop.f32.mrb[14].mxu0 }
 0x202   : > { %v2264_v10 = vadd.f32 %v4349_v43, %v2225_v50  ;;  %v2226_v9 = vmul.f32 %v4344_v34, %v2112_v25  ;;  %v2114_v58 = vpop.f32.mrb[15].mxu0  ;;  %v2173_v27 = vpop.f32.mrb[12].mxu1 }
 0x203   : > { %v2241_v35 = vmul.f32 %v4344_v34, %v2173_v27  ;;  %v2175_v20 = vpop.f32.mrb[13].mxu1 }
 0x204   : > { %v2296_v52 = vmax.f32 %v2264_v10, 0.0  ;;  %v2265_v49 = vadd.f32 %v4349_v43, %v2226_v9  ;;  %v2176_v8 = vpop.f32.mrb[14].mxu1 }
 0x205   : > { %v2280_v51 = vadd.f32 %v4349_v43, %v2241_v35  ;;  %v2242_v36 = vmul.f32 %v4344_v34, %v2176_v8  ;;  %v2178_v13 = vpop.f32.mrb[15].mxu1 }
 0x206   : > { %v2618_v33 = vpack.c.bf16 %v2296_v52, %v2296_v52  ;;  %v2297_v53 = vmax.f32 %v2265_v49, 0.0 }
 0x207   : > { %v2312_v15 = vmax.f32 %v2280_v51, 0.0  ;;  %v2281_v38 = vadd.f32 %v4349_v43, %v2242_v36 }
 0x208   : > { %2457 = vst.msk [vmem:[%s4362_s18 + $0x18] sm:$0xf] %vm2450_vm8, %v2618_v33  ;;  %v2619_v37 = vpack.c.bf16 %v2297_v53, %v2297_v53 }
 0x209   : > { %v2634_v2 = vpack.c.bf16 %v2312_v15, %v2312_v15  ;;  %v2313_v26 = vmax.f32 %v2281_v38, 0.0 }
 0x20a   : > { %2458 = vst.msk [vmem:[%s4362_s18 + $0x1c] sm:$0xf] %vm2450_vm8, %v2619_v37 }
 0x20b   : > { %2473 = vst.msk [vmem:[%s4362_s18 + $0x58] sm:$0xf] %vm2450_vm8, %v2634_v2  ;;  %v2635_v55 = vpack.c.bf16 %v2313_v26, %v2313_v26 }
 0x20d   : > { %2474 = vst.msk [vmem:[%s4362_s18 + $0x5c] sm:$0xf] %vm2450_vm8, %v2635_v55 }
 0x216   : > { %v2117_v24 = vpop.f32.mrb[16].mxu0 }
 0x217   : > { %v2227_v18 = vmul.f32 %v4344_v34, %v2117_v24  ;;  %v2181_v3 = vpop.f32.mrb[16].mxu1  ;;  %v2119_v14 = vpop.f32.mrb[17].mxu0 }
 0x218   : > { %v2243_v0 = vmul.f32 %v4344_v34, %v2181_v3  ;;  %v2183_v47 = vpop.f32.mrb[17].mxu1  ;;  %v2120_v19 = vpop.f32.mrb[18].mxu0 }
 0x219   : > { %v2266_v16 = vadd.f32 %v4349_v43, %v2227_v18  ;;  %v2228_v62 = vmul.f32 %v4344_v34, %v2120_v19  ;;  %v2184_v28 = vpop.f32.mrb[18].mxu1  ;;  %v2122_v42 = vpop.f32.mrb[19].mxu0 }
 0x21a   : > { %v2282_v54 = vadd.f32 %v4349_v43, %v2243_v0  ;;  %v2244_v29 = vmul.f32 %v4344_v34, %v2184_v28  ;;  %v2186_v30 = vpop.f32.mrb[19].mxu1 }
 0x21b   : > { %v2298_v41 = vmax.f32 %v2266_v16, 0.0  ;;  %v2267_v61 = vadd.f32 %v4349_v43, %v2228_v62 }
 0x21c   : > { %v2314_v7 = vmax.f32 %v2282_v54, 0.0  ;;  %v2283_v12 = vadd.f32 %v4349_v43, %v2244_v29 }
 0x21d   : > { %v2620_v5 = vpack.c.bf16 %v2298_v41, %v2298_v41  ;;  %v2299_v6 = vmax.f32 %v2267_v61, 0.0 }
 0x21e   : > { %v2636_v45 = vpack.c.bf16 %v2314_v7, %v2314_v7  ;;  %v2315_v39 = vmax.f32 %v2283_v12, 0.0 }
 0x21f   : > { %2459 = vst.msk [vmem:[%s4362_s18 + $0x20] sm:$0xf] %vm2450_vm8, %v2620_v5  ;;  %v2621_v63 = vpack.c.bf16 %v2299_v6, %v2299_v6 }
 0x220   : > { %2475 = vst.msk [vmem:[%s4362_s18 + $0x60] sm:$0xf] %vm2450_vm8, %v2636_v45  ;;  %v2637_v31 = vpack.c.bf16 %v2315_v39, %v2315_v39 }
 0x221   : > { %2460 = vst.msk [vmem:[%s4362_s18 + $0x24] sm:$0xf] %vm2450_vm8, %v2621_v63 }
 0x222   : > { %2476 = vst.msk [vmem:[%s4362_s18 + $0x64] sm:$0xf] %vm2450_vm8, %v2637_v31 }
 0x22b   : > { %v2125_v46 = vpop.f32.mrb[20].mxu0 }
 0x22c   : > { %v2229_v23 = vmul.f32 %v4344_v34, %v2125_v46  ;;  %v2127_v48 = vpop.f32.mrb[21].mxu0 }
 0x22d   : > { %v2128_v32 = vpop.f32.mrb[22].mxu0 }
 0x22e   : > { %v2268_v59 = vadd.f32 %v4349_v43, %v2229_v23  ;;  %v2230_v40 = vmul.f32 %v4344_v34, %v2128_v32  ;;  %v2130_v17 = vpop.f32.mrb[23].mxu0  ;;  %v2189_v11 = vpop.f32.mrb[20].mxu1 }
 0x22f   : > { %v2245_v44 = vmul.f32 %v4344_v34, %v2189_v11  ;;  %v2191_v56 = vpop.f32.mrb[21].mxu1 }
 0x230   : > { %v2300_v60 = vmax.f32 %v2268_v59, 0.0  ;;  %v2269_v4 = vadd.f32 %v4349_v43, %v2230_v40  ;;  %v2192_v21 = vpop.f32.mrb[22].mxu1 }
 0x231   : > { %v2284_v22 = vadd.f32 %v4349_v43, %v2245_v44  ;;  %v2246_v1 = vmul.f32 %v4344_v34, %v2192_v21  ;;  %v2194_v50 = vpop.f32.mrb[23].mxu1 }
 0x232   : > { %v2622_v57 = vpack.c.bf16 %v2300_v60, %v2300_v60  ;;  %v2301_v25 = vmax.f32 %v2269_v4, 0.0 }
 0x233   : > { %v2316_v10 = vmax.f32 %v2284_v22, 0.0  ;;  %v2285_v9 = vadd.f32 %v4349_v43, %v2246_v1 }
 0x234   : > { %2461 = vst.msk [vmem:[%s4362_s18 + $0x28] sm:$0xf] %vm2450_vm8, %v2622_v57  ;;  %v2623_v58 = vpack.c.bf16 %v2301_v25, %v2301_v25 }
 0x235   : > { %v2638_v27 = vpack.c.bf16 %v2316_v10, %v2316_v10  ;;  %v2317_v35 = vmax.f32 %v2285_v9, 0.0 }
 0x236   : > { %2462 = vst.msk [vmem:[%s4362_s18 + $0x2c] sm:$0xf] %vm2450_vm8, %v2623_v58 }
 0x237   : > { %2477 = vst.msk [vmem:[%s4362_s18 + $0x68] sm:$0xf] %vm2450_vm8, %v2638_v27  ;;  %v2639_v20 = vpack.c.bf16 %v2317_v35, %v2317_v35 }
 0x239   : > { %2478 = vst.msk [vmem:[%s4362_s18 + $0x6c] sm:$0xf] %vm2450_vm8, %v2639_v20 }
 0x242   : > { %v2133_v52 = vpop.f32.mrb[24].mxu0 }
 0x243   : > { %v2231_v49 = vmul.f32 %v4344_v34, %v2133_v52  ;;  %v2197_v8 = vpop.f32.mrb[24].mxu1  ;;  %v2135_v51 = vpop.f32.mrb[25].mxu0 }
 0x244   : > { %v2247_v36 = vmul.f32 %v4344_v34, %v2197_v8  ;;  %v2199_v13 = vpop.f32.mrb[25].mxu1  ;;  %v2136_v33 = vpop.f32.mrb[26].mxu0 }
 0x245   : > { %v2270_v53 = vadd.f32 %v4349_v43, %v2231_v49  ;;  %v2232_v15 = vmul.f32 %v4344_v34, %v2136_v33  ;;  %v2200_v38 = vpop.f32.mrb[26].mxu1  ;;  %v2138_v37 = vpop.f32.mrb[27].mxu0 }
 0x246   : > { %v2286_v2 = vadd.f32 %v4349_v43, %v2247_v36  ;;  %v2248_v26 = vmul.f32 %v4344_v34, %v2200_v38  ;;  %v2202_v55 = vpop.f32.mrb[27].mxu1 }
 0x247   : > { %v2302_v24 = vmax.f32 %v2270_v53, 0.0  ;;  %v2271_v18 = vadd.f32 %v4349_v43, %v2232_v15 }
 0x248   : > { %v2318_v3 = vmax.f32 %v2286_v2, 0.0  ;;  %v2287_v14 = vadd.f32 %v4349_v43, %v2248_v26 }
 0x249   : > { %v2624_v0 = vpack.c.bf16 %v2302_v24, %v2302_v24  ;;  %v2303_v47 = vmax.f32 %v2271_v18, 0.0 }
 0x24a   : > { %v2640_v19 = vpack.c.bf16 %v2318_v3, %v2318_v3  ;;  %v2319_v16 = vmax.f32 %v2287_v14, 0.0 }
 0x24b   : > { %2463 = vst.msk [vmem:[%s4362_s18 + $0x30] sm:$0xf] %vm2450_vm8, %v2624_v0  ;;  %v2625_v62 = vpack.c.bf16 %v2303_v47, %v2303_v47 }
 0x24c   : > { %2479 = vst.msk [vmem:[%s4362_s18 + $0x70] sm:$0xf] %vm2450_vm8, %v2640_v19  ;;  %v2641_v28 = vpack.c.bf16 %v2319_v16, %v2319_v16 }
 0x24d   : > { %2464 = vst.msk [vmem:[%s4362_s18 + $0x34] sm:$0xf] %vm2450_vm8, %v2625_v62 }
 0x24e   : > { %2480 = vst.msk [vmem:[%s4362_s18 + $0x74] sm:$0xf] %vm2450_vm8, %v2641_v28 }
 0x257   : > { %v2141_v42 = vpop.f32.mrb[28].mxu0 }
 0x258   : > { %v2233_v54 = vmul.f32 %v4344_v34, %v2141_v42  ;;  %v2143_v29 = vpop.f32.mrb[29].mxu0 }
 0x259   : > { %v2144_v30 = vpop.f32.mrb[30].mxu0 }
 0x25a   : > { %v2272_v41 = vadd.f32 %v4349_v43, %v2233_v54  ;;  %v2234_v61 = vmul.f32 %v4344_v34, %v2144_v30  ;;  %v2146_v7 = vpop.f32.mrb[31].mxu0  ;;  %v2205_v12 = vpop.f32.mrb[28].mxu1 }
 0x25b   : > { %v2249_v5 = vmul.f32 %v4344_v34, %v2205_v12  ;;  %v2207_v6 = vpop.f32.mrb[29].mxu1 }
 0x25c   : > { %v2304_v45 = vmax.f32 %v2272_v41, 0.0  ;;  %v2273_v39 = vadd.f32 %v4349_v43, %v2234_v61  ;;  %v2208_v63 = vpop.f32.mrb[30].mxu1 }
 0x25d   : > { %v2288_v31 = vadd.f32 %v4349_v43, %v2249_v5  ;;  %v2250_v46 = vmul.f32 %v4344_v34, %v2208_v63  ;;  %v2210_v23 = vpop.f32.mrb[31].mxu1 }
 0x25e   : > { %v2626_v48 = vpack.c.bf16 %v2304_v45, %v2304_v45  ;;  %v2305_v32 = vmax.f32 %v2273_v39, 0.0 }
 0x25f   : > { %v2320_v59 = vmax.f32 %v2288_v31, 0.0  ;;  %v2289_v40 = vadd.f32 %v4349_v43, %v2250_v46 }
 0x260   : > { %2465 = vst.msk [vmem:[%s4362_s18 + $0x38] sm:$0xf] %vm2450_vm8, %v2626_v48  ;;  %v2627_v17 = vpack.c.bf16 %v2305_v32, %v2305_v32 }
 0x261   : > { %v2642_v11 = vpack.c.bf16 %v2320_v59, %v2320_v59  ;;  %v2321_v44 = vmax.f32 %v2289_v40, 0.0 }
 0x262   : > { %2466 = vst.msk [vmem:[%s4362_s18 + $0x3c] sm:$0xf] %vm2450_vm8, %v2627_v17 }
 0x263   : > { %2481 = vst.msk [vmem:[%s4362_s18 + $0x78] sm:$0xf] %vm2450_vm8, %v2642_v11  ;;  %v2643_v56 = vpack.c.bf16 %v2321_v44, %v2321_v44 }
 0x265   : > { %2482 = vst.msk [vmem:[%s4362_s18 + $0x7c] sm:$0xf] %vm2450_vm8, %v2643_v56 }
 0x266 PF: > { %s16_s21 = sadd.s32 1, %s3266_s21  }
 0x267   : > { %p13_p4 = scmp.ge.s32.totalorder %s16_s21, 4  }
 0x269   :  { %15 = sbr.rel (!%p13_p4) target bundleno = 1 (0x1), region = 76 }

// kernel: fwd.6
= control target key start
LH: loop header
LB: loop body
LE: loop exit
PB: predicated region body
PF: predicated region fallthrough
CT: control target
= control target key end

     0   :  { %s3312_s21 = smov 0   ;;  %s4488_s0 = inlined_call_operand.vmem [shape: f32[2,16,16,16], index: 0, kind: input, shape index: {}]   ;;  %s4489_s1 = inlined_call_operand.vmem [shape: f32[1,1,16], index: 1, kind: input, shape index: {}]   ;;  %s4490_s2 = inlined_call_operand.vmem [shape: f32[1,1,16], index: 2, kind: input, shape index: {}]   ;;  %s4491_s3 = inlined_call_operand.vmem [shape: bf16[144,32], index: 3, kind: input, shape index: {}]   ;;  %s4492_s4 = inlined_call_operand.vmem [shape: f32[1,32], index: 4, kind: input, shape index: {}]   ;;  %s4493_s5 = inlined_call_operand.vmem [shape: f32[1,32], index: 5, kind: input, shape index: {}]   ;;  %s4494_s6 = inlined_call_operand.vmem [shape: bf16[2,16,16,32], index: 6, kind: output, shape index: {}]  }
   0x1 LB: > { %s2538_s22 = sadd.s32 4294967295, %s3266_s21   ;;  %p2542_p0 = scmp.ge.s32.totalorder %s3266_s21, 1  ;;  %s3266_s21 = sphi %s3312_s21, %s16_s21  }
   0x2   : > { %p212_p1 = scmp.lt.s32.totalorder %s3266_s21, 3 }
   0x4   : > { %p213_p2 = pnand %p2542_p0, %p212_p1 }
   0x6   : > { %216 = sbr.rel (%p213_p2) target bundleno = 614 (0x266), region = 44 }
   0xd   : > { %vm253_vm0 = vcmask 130048   ;;  %vm256_vm1 = vcmask 123904   ;;  %p3322_p3 = scmp.lt.s32.totalorder %s2538_s22, 1  ;;  %v3268_v0 = vmov 0.0   ;;  %v3389_v1 = vld [vmem:[%s4489_s1] ss:$0 sm:$0xff] }
   0xe   : > { %254 = vst.msk [vmem:[#allocation2] sm:$0xff] %vm253_vm0, %v3268_v0  ;;  %255 = vst.msk [vmem:[#allocation2 + $0x8] sm:$0xff] %vm253_vm0, %v3268_v0  ;;  %v3400_v2 = vld [vmem:[%s4490_s2] ss:$0 sm:$0xff]  ;;  %s3269_s8 = smov 16   ;;  %s3271_s13 = smov 32  }
   0xf   : > { %257 = vst.msk [vmem:[#allocation2 + $0x10] sm:$0x3] %vm256_vm1, %v3268_v0  ;;  %260 = vst.msk [vmem:[#allocation2 + $0x28] sm:$0x3] %vm256_vm1, %v3268_v0  ;;  %s4553_s22 = smov (!%p3322_p3, %s2538_s22), 1  ;;  %s3275_s9 = smov 96  }
  0x10   : > { %258 = vst.msk [vmem:[#allocation2 + $0x18] sm:$0xff] %vm253_vm0, %v3268_v0  ;;  %259 = vst.msk [vmem:[#allocation2 + $0x20] sm:$0xff] %vm253_vm0, %v3268_v0  ;;  %s2610_s26 = sshll.u32 %s4553_s22, 8  ;;  %s3276_s10 = smov 112   ;;  %vm1701_vm2 = vcmask 261120   ;;  %vm1734_vm3 = vcmask 392192  }
  0x11   : > { %261 = vst.msk [vmem:[#allocation2 + $0x30] sm:$0xff] %vm253_vm0, %v3268_v0  ;;  %262 = vst.msk [vmem:[#allocation2 + $0x38] sm:$0xff] %vm253_vm0, %v3268_v0  ;;  %s3395_s29 = scalar_lea.vmem %s4488_s0, %s2610_s26  ;;  %s3272_s26 = smov 48   ;;  %vm1767_vm4 = vcmask 523264   ;;  %vm1800_vm5 = vcmask 654336   ;;  %vm1833_vm6 = vcmask 785408  }
  0x12   : > { %263 = vst.msk [vmem:[#allocation2 + $0x40] sm:$0x3] %vm256_vm1, %v3268_v0  ;;  %266 = vst.msk [vmem:[#allocation2 + $0x58] sm:$0x3] %vm256_vm1, %v3268_v0  ;;  %v311_v3 = vld [vmem:[%s3395_s29 + $0x10] sm:$0xff]  ;;  %v312_v4 = vld [vmem:[%s3395_s29 + $0x18] sm:$0xff] }
  0x13   : > { %264 = vst.msk [vmem:[#allocation2 + $0x48] sm:$0xff] %vm253_vm0, %v3268_v0  ;;  %265 = vst.msk [vmem:[#allocation2 + $0x50] sm:$0xff] %vm253_vm0, %v3268_v0  ;;  %v309_v5 = vld [vmem:[%s3395_s29] sm:$0xff]  ;;  %v350_v6 = vmul.f32 %v3389_v1, %v311_v3  ;;  %v351_v7 = vmul.f32 %v3389_v1, %v312_v4  ;;  %v310_v8 = vld [vmem:[%s3395_s29 + $0x8] sm:$0xff]  ;;  %vm1866_vm7 = vcmask 916480   ;;  %s2611_s15 = sshll.u32 %s4553_s22, 7 }
  0x14   : > { %267 = vst.msk [vmem:[#allocation2 + $0x60] sm:$0xff] %vm253_vm0, %v3268_v0  ;;  %268 = vst.msk [vmem:[#allocation2 + $0x68] sm:$0xff] %vm253_vm0, %v3268_v0  ;;  %v348_v9 = vmul.f32 %v3389_v1, %v309_v5  ;;  %v313_v10 = vld [vmem:[%s3395_s29 + $0x20] sm:$0xff]  ;;  %v314_v11 = vld [vmem:[%s3395_s29 + $0x28] sm:$0xff]  ;;  %v349_v14 = vmul.f32 %v3389_v1, %v310_v8  ;;  %s4362_s18 = scalar_lea.vmem %s4494_s6, %s2611_s15  ;;  %vm2450_vm8 = vcmask 257024  }
  0x15   : > { %269 = vst.msk [vmem:[#allocation2 + $0x70] sm:$0x3] %vm256_vm1, %v3268_v0  ;;  %272 = vst.msk [vmem:[#allocation2 + $0x88] sm:$0x3] %vm256_vm1, %v3268_v0  ;;  %v516_v12 = vld [vmem:[#allocation2 + $0x1] sm:$0xff]  ;;  %v352_v15 = vmul.f32 %v3389_v1, %v313_v10  ;;  %v353_v16 = vmul.f32 %v3389_v1, %v314_v11  ;;  %v315_v17 = vld [vmem:[%s3395_s29 + $0x30] sm:$0xff]  ;;  %v389_v19 = vadd.f32 %v3400_v2, %v350_v6 }
  0x16   : > { %270 = vst.msk [vmem:[#allocation2 + $0x78] sm:$0xff] %vm253_vm0, %v3268_v0  ;;  %271 = vst.msk [vmem:[#allocation2 + $0x80] sm:$0xff] %vm253_vm0, %v3268_v0  ;;  %v517_v13 = vld [vmem:[#allocation2 + $0x9] sm:$0xff]  ;;  %v390_v20 = vadd.f32 %v3400_v2, %v351_v7  ;;  %v387_v21 = vadd.f32 %v3400_v2, %v348_v9  ;;  %v316_v22 = vld [vmem:[%s3395_s29 + $0x38] sm:$0xff]  ;;  %v388_v23 = vadd.f32 %v3400_v2, %v349_v14 }
  0x17   : > { %273 = vst.msk [vmem:[#allocation2 + $0x90] sm:$0xff] %vm253_vm0, %v3268_v0  ;;  %274 = vst.msk [vmem:[#allocation2 + $0x98] sm:$0xff] %vm253_vm0, %v3268_v0  ;;  %v2679_v18 = vpack.i.bf16 %v517_v13, %v516_v12  ;;  %v391_v24 = vadd.f32 %v3400_v2, %v352_v15  ;;  %v392_v25 = vadd.f32 %v3400_v2, %v353_v16  ;;  %v317_v27 = vld [vmem:[%s3395_s29 + $0x40] sm:$0xff]  ;;  %v318_v28 = vld [vmem:[%s3395_s29 + $0x48] sm:$0xff]  ;;  %v421_v30 = vmax.f32 %v389_v19, 0.0 }
  0x18   : > { %275 = vst.msk [vmem:[#allocation2 + $0xa0] sm:$0x3] %vm256_vm1, %v3268_v0  ;;  %278 = vst.msk [vmem:[#allocation2 + $0xb8] sm:$0x3] %vm256_vm1, %v3268_v0  ;;  %v354_v26 = vmul.f32 %v3389_v1, %v315_v17  ;;  %v319_v29 = vld [vmem:[%s3395_s29 + $0x50] sm:$0xff]  ;;  %v422_v31 = vmax.f32 %v390_v20, 0.0  ;;  %v355_v33 = vmul.f32 %v3389_v1, %v316_v22  ;;  %v356_v42 = vmul.f32 %v3389_v1, %v317_v27 }
  0x19   : > { %276 = vst.msk [vmem:[#allocation2 + $0xa8] sm:$0xff] %vm253_vm0, %v3268_v0  ;;  %277 = vst.msk [vmem:[#allocation2 + $0xb0] sm:$0xff] %vm253_vm0, %v3268_v0  ;;  %2680 = vrot.lane.b32.xlu0 %v2679_v18, %s3269_s8  ;;  %v419_v32 = vmax.f32 %v387_v21, 0.0  ;;  %v320_v34 = vld [vmem:[%s3395_s29 + $0x58] sm:$0xff]  ;;  %v321_v35 = vld [vmem:[%s3395_s29 + $0x60] sm:$0xff]  ;;  %v420_v37 = vmax.f32 %v388_v23, 0.0  ;;  %v357_v43 = vmul.f32 %v3389_v1, %v318_v28  ;;  %v358_v44 = vmul.f32 %v3389_v1, %v319_v29 }
  0x1a   : > { %279 = vst.msk [vmem:[#allocation2 + $0xc0] sm:$0xff] %vm253_vm0, %v3268_v0  ;;  %280 = vst.msk [vmem:[#allocation2 + $0xc8] sm:$0xff] %vm253_vm0, %v3268_v0  ;;  %v322_v36 = vld [vmem:[%s3395_s29 + $0x68] sm:$0xff]  ;;  %v423_v38 = vmax.f32 %v391_v24, 0.0  ;;  %v424_v39 = vmax.f32 %v392_v25, 0.0  ;;  %v393_v40 = vadd.f32 %v3400_v2, %v354_v26  ;;  %v394_v41 = vadd.f32 %v3400_v2, %v355_v33  ;;  %v323_v45 = vld [vmem:[%s3395_s29 + $0x70] sm:$0xff] }
  0x1b   : > { %281 = vst.msk [vmem:[#allocation2 + $0xd0] sm:$0x3] %vm256_vm1, %v3268_v0  ;;  %284 = vst.msk [vmem:[#allocation2 + $0xe8] sm:$0x3] %vm256_vm1, %v3268_v0  ;;  %v359_v47 = vmul.f32 %v3389_v1, %v320_v34  ;;  %v360_v48 = vmul.f32 %v3389_v1, %v321_v35  ;;  %v361_v49 = vmul.f32 %v3389_v1, %v322_v36  ;;  %v324_v50 = vld [vmem:[%s3395_s29 + $0x78] sm:$0xff]  ;;  %v325_v59 = vld [vmem:[%s3395_s29 + $0x80] sm:$0xff] }
  0x1c   : > { %282 = vst.msk [vmem:[#allocation2 + $0xd8] sm:$0xff] %vm253_vm0, %v3268_v0  ;;  %283 = vst.msk [vmem:[#allocation2 + $0xe0] sm:$0xff] %vm253_vm0, %v3268_v0  ;;  %v425_v46 = vmax.f32 %v393_v40, 0.0  ;;  %v426_v51 = vmax.f32 %v394_v41, 0.0  ;;  %v395_v52 = vadd.f32 %v3400_v2, %v356_v42  ;;  %v396_v53 = vadd.f32 %v3400_v2, %v357_v43  ;;  %v326_v60 = vld [vmem:[%s3395_s29 + $0x88] sm:$0xff]  ;;  %v327_v61 = vld [vmem:[%s3395_s29 + $0x90] sm:$0xff] }
  0x1d   : > { %285 = vst.msk [vmem:[#allocation2 + $0xf0] sm:$0xff] %vm253_vm0, %v3268_v0  ;;  %286 = vst.msk [vmem:[#allocation2 + $0xf8] sm:$0xff] %vm253_vm0, %v3268_v0  ;;  %v397_v54 = vadd.f32 %v3400_v2, %v358_v44  ;;  %v398_v55 = vadd.f32 %v3400_v2, %v359_v47  ;;  %v399_v56 = vadd.f32 %v3400_v2, %v360_v48  ;;  %v328_v4 = vld [vmem:[%s3395_s29 + $0x98] sm:$0xff]  ;;  %v329_v5 = vld [vmem:[%s3395_s29 + $0xa0] sm:$0xff] }
  0x1e   : > { %287 = vst.msk [vmem:[#allocation2 + $0x100] sm:$0x3] %vm256_vm1, %v3268_v0  ;;  %290 = vst.msk [vmem:[#allocation2 + $0x118] sm:$0x3] %vm256_vm1, %v3268_v0  ;;  %v400_v57 = vadd.f32 %v3400_v2, %v361_v49  ;;  %v362_v58 = vmul.f32 %v3389_v1, %v323_v45  ;;  %v427_v62 = vmax.f32 %v395_v52, 0.0  ;;  %v428_v63 = vmax.f32 %v396_v53, 0.0 }
  0x1f   : > { %288 = vst.msk [vmem:[#allocation2 + $0x108] sm:$0xff] %vm253_vm0, %v3268_v0  ;;  %289 = vst.msk [vmem:[#allocation2 + $0x110] sm:$0xff] %vm253_vm0, %v3268_v0  ;;  %v363_v3 = vmul.f32 %v3389_v1, %v324_v50  ;;  %v330_v6 = vld [vmem:[%s3395_s29 + $0xa8] sm:$0xff]  ;;  %v430_v7 = vmax.f32 %v398_v55, 0.0  ;;  %v431_v8 = vmax.f32 %v399_v56, 0.0  ;;  %v364_v12 = vmul.f32 %v3389_v1, %v325_v59  ;;  %v331_v15 = vld [vmem:[%s3395_s29 + $0xb0] sm:$0xff] }
  0x20   : > { %291 = vst.msk [vmem:[#allocation2 + $0x120] sm:$0xff] %vm253_vm0, %v3268_v0  ;;  %292 = vst.msk [vmem:[#allocation2 + $0x128] sm:$0xff] %vm253_vm0, %v3268_v0  ;;  %v432_v9 = vmax.f32 %v400_v57, 0.0  ;;  %v401_v10 = vadd.f32 %v3400_v2, %v362_v58  ;;  %v365_v13 = vmul.f32 %v3389_v1, %v326_v60  ;;  %v366_v14 = vmul.f32 %v3389_v1, %v327_v61  ;;  %v332_v16 = vld [vmem:[%s3395_s29 + $0xb8] sm:$0xff]  ;;  %v333_v35 = vld [vmem:[%s3395_s29 + $0xc0] sm:$0xff] }
  0x21   : > { %293 = vst.msk [vmem:[#allocation2 + $0x130] sm:$0x3] %vm256_vm1, %v3268_v0  ;;  %296 = vst.msk [vmem:[#allocation2 + $0x148] sm:$0x3] %vm256_vm1, %v3268_v0  ;;  %v402_v11 = vadd.f32 %v3400_v2, %v363_v3  ;;  %v367_v21 = vmul.f32 %v3389_v1, %v328_v4  ;;  %v368_v22 = vmul.f32 %v3389_v1, %v329_v5  ;;  %v334_v41 = vld [vmem:[%s3395_s29 + $0xc8] sm:$0xff]  ;;  %v335_v42 = vld [vmem:[%s3395_s29 + $0xd0] sm:$0xff] }
  0x22   : > { %294 = vst.msk [vmem:[#allocation2 + $0x138] sm:$0xff] %vm253_vm0, %v3268_v0  ;;  %295 = vst.msk [vmem:[#allocation2 + $0x140] sm:$0xff] %vm253_vm0, %v3268_v0  ;;  %v433_v20 = vmax.f32 %v401_v10, 0.0  ;;  %v369_v23 = vmul.f32 %v3389_v1, %v330_v6  ;;  %v403_v29 = vadd.f32 %v3400_v2, %v364_v12  ;;  %v405_v33 = vadd.f32 %v3400_v2, %v366_v14  ;;  %v336_v48 = vld [vmem:[%s3395_s29 + $0xd8] sm:$0xff]  ;;  %v337_v49 = vld [vmem:[%s3395_s29 + $0xe0] sm:$0xff] }
  0x23   : > { %297 = vst.msk [vmem:[#allocation2 + $0x150] sm:$0xff] %vm253_vm0, %v3268_v0  ;;  %298 = vst.msk [vmem:[#allocation2 + $0x158] sm:$0xff] %vm253_vm0, %v3268_v0  ;;  %v434_v28 = vmax.f32 %v402_v11, 0.0  ;;  %v406_v34 = vadd.f32 %v3400_v2, %v367_v21  ;;  %v371_v47 = vmul.f32 %v3389_v1, %v332_v16  ;;  %v372_v53 = vmul.f32 %v3389_v1, %v333_v35  ;;  %v338_v3 = vld [vmem:[%s3395_s29 + $0xe8] sm:$0xff] }
  0x24   : > { %299 = vst.msk [vmem:[#allocation2 + $0x160] sm:$0x3] %vm256_vm1, %v3268_v0  ;;  %302 = vst.msk [vmem:[#allocation2 + $0x178] sm:$0x3] %vm256_vm1, %v3268_v0  ;;  %v408_v40 = vadd.f32 %v3400_v2, %v369_v23  ;;  %v437_v44 = vmax.f32 %v405_v33, 0.0  ;;  %v373_v59 = vmul.f32 %v3389_v1, %v334_v41  ;;  %v374_v60 = vmul.f32 %v3389_v1, %v335_v42 }
  0x25   : > { %300 = vst.msk [vmem:[#allocation2 + $0x168] sm:$0xff] %vm253_vm0, %v3268_v0  ;;  %301 = vst.msk [vmem:[#allocation2 + $0x170] sm:$0xff] %vm253_vm0, %v3268_v0  ;;  %v438_v45 = vmax.f32 %v406_v34, 0.0  ;;  %v410_v58 = vadd.f32 %v3400_v2, %v371_v47  ;;  %v376_v4 = vmul.f32 %v3389_v1, %v337_v49  ;;  %v377_v16 = vmul.f32 %v3389_v1, %v338_v3  ;;  %v548_v49 = vld [vmem:[#allocation2 + $0x2] sm:$0xff] }
  0x26   : > { %303 = vst.msk [vmem:[#allocation2 + $0x180] sm:$0xff] %vm253_vm0, %v3268_v0  ;;  %304 = vst.msk [vmem:[#allocation2 + $0x188] sm:$0xff] %vm253_vm0, %v3268_v0  ;;  %v440_v52 = vmax.f32 %v408_v40, 0.0  ;;  %v412_v11 = vadd.f32 %v3400_v2, %v373_v59  ;;  %v3239_v59 = vld [vmem:[%s4491_s3] sm:$0xff]  }
  0x27   : > { %305 = vst.msk [vmem:[#allocation2 + $0x190] sm:$0x3] %vm256_vm1, %v3268_v0  ;;  %308 = vst.msk [vmem:[#allocation2 + $0x1a8] sm:$0x3] %vm256_vm1, %v3268_v0 }
  0x28   : > { %306 = vst.msk [vmem:[#allocation2 + $0x198] sm:$0xff] %vm253_vm0, %v3268_v0  ;;  %307 = vst.msk [vmem:[#allocation2 + $0x1a0] sm:$0xff] %vm253_vm0, %v3268_v0  ;;  %v429_v0 = vmax.f32 %v397_v54, 0.0 }
  0x29   : > { %454 = vst.msk [vmem:[#allocation2 + $0x31] sm:$0xff] %vm253_vm0, %v421_v30  ;;  %455 = vst.msk [vmem:[#allocation2 + $0x39] sm:$0xff] %vm253_vm0, %v422_v31  ;;  %v404_v30 = vadd.f32 %v3400_v2, %v365_v13  ;;  %v413_v13 = vadd.f32 %v3400_v2, %v374_v60 }
  0x2a   : > { %452 = vst.msk [vmem:[#allocation2 + $0x19] sm:$0xff] %vm253_vm0, %v419_v32  ;;  %453 = vst.msk [vmem:[#allocation2 + $0x21] sm:$0xff] %vm253_vm0, %v420_v37  ;;  %v435_v37 = vmax.f32 %v403_v29, 0.0 }
  0x2b   : > { %456 = vst.msk [vmem:[#allocation2 + $0x49] sm:$0xff] %vm253_vm0, %v423_v38  ;;  %457 = vst.msk [vmem:[#allocation2 + $0x51] sm:$0xff] %vm253_vm0, %v424_v39  ;;  %v436_v38 = vmax.f32 %v404_v30, 0.0  ;;  %v407_v39 = vadd.f32 %v3400_v2, %v368_v22 }
  0x2c   : > { %458 = vst.msk [vmem:[#allocation2 + $0x61] sm:$0xff] %vm253_vm0, %v425_v46  ;;  %459 = vst.msk [vmem:[#allocation2 + $0x69] sm:$0xff] %vm253_vm0, %v426_v51  ;;  %v370_v46 = vmul.f32 %v3389_v1, %v331_v15 }
  0x2d   : > { %460 = vst.msk [vmem:[#allocation2 + $0x79] sm:$0xff] %vm253_vm0, %v427_v62  ;;  %461 = vst.msk [vmem:[#allocation2 + $0x81] sm:$0xff] %vm253_vm0, %v428_v63  ;;  %v439_v51 = vmax.f32 %v407_v39, 0.0  ;;  %v411_v63 = vadd.f32 %v3400_v2, %v372_v53 }
  0x2e   : > { %462 = vst.msk [vmem:[#allocation2 + $0x91] sm:$0xff] %vm253_vm0, %v429_v0  ;;  %463 = vst.msk [vmem:[#allocation2 + $0x99] sm:$0xff] %vm253_vm0, %v430_v7  ;;  %v409_v57 = vadd.f32 %v3400_v2, %v370_v46  ;;  %v375_v0 = vmul.f32 %v3389_v1, %v336_v48 }
  0x2f   : > { %464 = vst.msk [vmem:[#allocation2 + $0xa9] sm:$0xff] %vm253_vm0, %v431_v8  ;;  %465 = vst.msk [vmem:[#allocation2 + $0xb1] sm:$0xff] %vm253_vm0, %v432_v9  ;;  %v442_v9 = vmax.f32 %v410_v58, 0.0  ;;  %v443_v12 = vmax.f32 %v411_v63, 0.0 }
  0x30   : > { %v520_v17 = vld [vmem:[#allocation2 + $0x31] sm:$0xff]  ;;  %v521_v18 = vld [vmem:[#allocation2 + $0x39] sm:$0xff]  ;;  %466 = vst.msk [vmem:[#allocation2 + $0xc1] sm:$0xff] %vm253_vm0, %v433_v20  ;;  %467 = vst.msk [vmem:[#allocation2 + $0xc9] sm:$0xff] %vm253_vm0, %v434_v28  ;;  %v441_v8 = vmax.f32 %v409_v57, 0.0  ;;  %v414_v14 = vadd.f32 %v3400_v2, %v375_v0  ;;  %v445_v20 = vmax.f32 %v413_v13, 0.0 }
  0x31   : > { %v518_v19 = vld [vmem:[#allocation2 + $0x19] sm:$0xff]  ;;  %v3479_v24 = vpack.i.bf16 %v521_v18, %v520_v17  ;;  %v519_v25 = vld [vmem:[#allocation2 + $0x21] sm:$0xff]  ;;  %468 = vst.msk [vmem:[#allocation2 + $0xd9] sm:$0xff] %vm253_vm0, %v435_v37  ;;  %469 = vst.msk [vmem:[#allocation2 + $0xe1] sm:$0xff] %vm253_vm0, %v436_v38  ;;  %v415_v17 = vadd.f32 %v3400_v2, %v376_v4  ;;  %v3270_v57 = vmov 0  }
  0x32   : > { %v522_v26 = vld [vmem:[#allocation2 + $0x49] sm:$0xff]  ;;  %v523_v27 = vld [vmem:[#allocation2 + $0x51] sm:$0xff]  ;;  %v3483_v31 = vpack.i.bf16 %v519_v25, %v518_v19  ;;  %470 = vst.msk [vmem:[#allocation2 + $0xf1] sm:$0xff] %vm253_vm0, %v437_v44  ;;  %471 = vst.msk [vmem:[#allocation2 + $0xf9] sm:$0xff] %vm253_vm0, %v438_v45  ;;  %v444_v19 = vmax.f32 %v412_v11, 0.0  ;;  %v446_v21 = vmax.f32 %v414_v14, 0.0  ;;  %2051 = vmatprep.subr.bf16.mxu0 %v3270_v57  ;;  %2644 = vmatprep.subr.bf16.mxu1 %v3270_v57 }
  0x33   : > { %v3485_v32 = vpack.i.bf16 %v523_v27, %v522_v26  ;;  %2690 = vrot.lane.b32.xlu1 %v3479_v24, %s3269_s8  ;;  %v524_v36 = vld [vmem:[#allocation2 + $0x61] sm:$0xff]  ;;  %v525_v43 = vld [vmem:[#allocation2 + $0x69] sm:$0xff]  ;;  %472 = vst.msk [vmem:[#allocation2 + $0x109] sm:$0xff] %vm253_vm0, %v439_v51  ;;  %473 = vst.msk [vmem:[#allocation2 + $0x111] sm:$0xff] %vm253_vm0, %v440_v52  ;;  %v416_v26 = vadd.f32 %v3400_v2, %v377_v16  ;;  %v447_v27 = vmax.f32 %v415_v17, 0.0  ;;  %2052 = vmatpush1.bf16.msra.mxu0 %v3239_v59 }
  0x34   : > { %2685 = vrot.lane.b32.xlu0 %v3483_v31, %s3269_s8  ;;  %v3504_v50 = vpack.i.bf16 %v525_v43, %v524_v36  ;;  %v526_v54 = vld [vmem:[#allocation2 + $0x79] sm:$0xff]  ;;  %v527_v55 = vld [vmem:[#allocation2 + $0x81] sm:$0xff]  ;;  %474 = vst.msk [vmem:[#allocation2 + $0x121] sm:$0xff] %vm253_vm0, %v441_v8  ;;  %475 = vst.msk [vmem:[#allocation2 + $0x129] sm:$0xff] %vm253_vm0, %v442_v9  ;;  %2653 = vmatpush1.bf16.msra.mxu1 %v3239_v59 }
  0x35   : > { %v528_v56 = vld [vmem:[#allocation2 + $0x91] sm:$0xff]  ;;  %v3517_v61 = vpack.i.bf16 %v527_v55, %v526_v54  ;;  %v529_v62 = vld [vmem:[#allocation2 + $0x99] sm:$0xff]  ;;  %476 = vst.msk [vmem:[#allocation2 + $0x139] sm:$0xff] %vm253_vm0, %v443_v12  ;;  %477 = vst.msk [vmem:[#allocation2 + $0x141] sm:$0xff] %vm253_vm0, %v444_v19  ;;  %v448_v30 = vmax.f32 %v416_v26, 0.0  ;;  %2053 = vmatprep.subr.bf16.mxu0 %v3270_v57  ;;  %2645 = vmatprep.subr.bf16.mxu1 %v3270_v57 }
  0x36   : > { %v2709_v5 = vpack.i.bf16 %v529_v62, %v528_v56  ;;  %v530_v6 = vld [vmem:[#allocation2 + $0xa9] sm:$0xff]  ;;  %v531_v7 = vld [vmem:[#allocation2 + $0xb1] sm:$0xff]  ;;  %478 = vst.msk [vmem:[#allocation2 + $0x151] sm:$0xff] %vm253_vm0, %v445_v20  ;;  %479 = vst.msk [vmem:[#allocation2 + $0x159] sm:$0xff] %vm253_vm0, %v446_v21 }
  0x37   : > { %2695 = vrot.lane.b32.xlu1 %v3485_v32, %s3269_s8  ;;  %v532_v10 = vld [vmem:[#allocation2 + $0xc1] sm:$0xff]  ;;  %v533_v15 = vld [vmem:[#allocation2 + $0xc9] sm:$0xff]  ;;  %v2714_v18 = vpack.i.bf16 %v531_v7, %v530_v6  ;;  %480 = vst.msk [vmem:[#allocation2 + $0x169] sm:$0xff] %vm253_vm0, %v447_v27  ;;  %481 = vst.msk [vmem:[#allocation2 + $0x171] sm:$0xff] %vm253_vm0, %v448_v30 }
  0x38   : > { %2700 = vrot.lane.b32.xlu0 %v3504_v50, %s3269_s8  ;;  %v2719_v22 = vpack.i.bf16 %v533_v15, %v532_v10  ;;  %v534_v23 = vld [vmem:[#allocation2 + $0xd9] sm:$0xff]  ;;  %v535_v25 = vld [vmem:[#allocation2 + $0xe1] sm:$0xff]  ;;  %v549_v51 = vld [vmem:[#allocation2 + $0xa] sm:$0xff] }
  0x39   : > { %v536_v28 = vld [vmem:[#allocation2 + $0xf1] sm:$0xff]  ;;  %v537_v29 = vld [vmem:[#allocation2 + $0xf9] sm:$0xff]  ;;  %v3544_v33 = vpack.i.bf16 %v535_v25, %v534_v23  ;;  %v2759_v53 = vpack.i.bf16 %v549_v51, %v548_v49  ;;  %v551_v55 = vld [vmem:[#allocation2 + $0x22] sm:$0xff] }
  0x3a   : > { %v3547_v34 = vpack.i.bf16 %v537_v29, %v536_v28  ;;  %v538_v35 = vld [vmem:[#allocation2 + $0x109] sm:$0xff]  ;;  %v539_v36 = vld [vmem:[#allocation2 + $0x111] sm:$0xff]  ;;  %v550_v54 = vld [vmem:[#allocation2 + $0x1a] sm:$0xff] }
  0x3b   : > { %2705 = vrot.lane.b32.xlu1 %v3517_v61, %s3269_s8  ;;  %v540_v37 = vld [vmem:[#allocation2 + $0x121] sm:$0xff]  ;;  %v541_v38 = vld [vmem:[#allocation2 + $0x129] sm:$0xff]  ;;  %v3552_v39 = vpack.i.bf16 %v539_v36, %v538_v35  ;;  %v552_v56 = vld [vmem:[#allocation2 + $0x32] sm:$0xff]  ;;  %v3576_v60 = vpack.i.bf16 %v551_v55, %v550_v54 }
  0x3c   : > { %2710 = vrot.lane.b32.xlu0 %v2709_v5, %s3269_s8  ;;  %v3556_v40 = vpack.i.bf16 %v541_v38, %v540_v37  ;;  %v542_v41 = vld [vmem:[#allocation2 + $0x139] sm:$0xff]  ;;  %v543_v42 = vld [vmem:[#allocation2 + $0x141] sm:$0xff]  ;;  %v554_v0 = vld [vmem:[#allocation2 + $0x4a] sm:$0xff] }
  0x3d   : > { %v544_v43 = vld [vmem:[#allocation2 + $0x151] sm:$0xff]  ;;  %v545_v44 = vld [vmem:[#allocation2 + $0x159] sm:$0xff]  ;;  %v3560_v45 = vpack.i.bf16 %v543_v42, %v542_v41  ;;  %v3240_v62 = vld [vmem:[%s4491_s3 + $0x8] sm:$0xff]  }
  0x3e   : > { %v3564_v46 = vpack.i.bf16 %v545_v44, %v544_v43  ;;  %v546_v47 = vld [vmem:[#allocation2 + $0x169] sm:$0xff]  ;;  %v547_v48 = vld [vmem:[#allocation2 + $0x171] sm:$0xff]  ;;  %v553_v58 = vld [vmem:[#allocation2 + $0x3a] sm:$0xff]  ;;  %2054 = vmatpush1.bf16.msra.mxu0 %v3240_v62  ;;  %2654 = vmatpush1.bf16.msra.mxu1 %v3240_v62 }
  0x3f   : > { %2715 = vrot.lane.b32.xlu1 %v2714_v18, %s3269_s8  ;;  %v2754_v52 = vpack.i.bf16 %v547_v48, %v546_v47  ;;  %v3582_v63 = vpack.i.bf16 %v553_v58, %v552_v56  ;;  %v555_v3 = vld [vmem:[#allocation2 + $0x52] sm:$0xff]  ;;  %v556_v4 = vld [vmem:[#allocation2 + $0x62] sm:$0xff]  ;;  %v557_v5 = vld [vmem:[#allocation2 + $0x6a] sm:$0xff]  ;;  %2055 = vmatprep.subr.bf16.mxu0 %v3270_v57 }
  0x40   : > { %2720 = vrot.lane.b32.xlu0 %v2719_v22, %s3269_s8  ;;  %v3588_v6 = vpack.i.bf16 %v555_v3, %v554_v0  ;;  %v3241_v7 = vld [vmem:[%s4491_s3 + $0x10] sm:$0xff]   ;;  %v3595_v8 = vpack.i.bf16 %v557_v5, %v556_v4  ;;  %v558_v9 = vld [vmem:[#allocation2 + $0x7a] sm:$0xff]  ;;  %v559_v10 = vld [vmem:[#allocation2 + $0x82] sm:$0xff]  ;;  %2646 = vmatprep.subr.bf16.mxu1 %v3270_v57 }
  0x41   : > { %v560_v11 = vld [vmem:[#allocation2 + $0x92] sm:$0xff]  ;;  %v561_v12 = vld [vmem:[#allocation2 + $0x9a] sm:$0xff]  ;;  %v3601_v13 = vpack.i.bf16 %v559_v10, %v558_v9  ;;  %v562_v16 = vld [vmem:[#allocation2 + $0xaa] sm:$0xff] }
  0x42   : > { %2056 = vmatpush1.bf16.msra.mxu0 %v3241_v7  ;;  %v3242_v14 = vld [vmem:[%s4491_s3 + $0x18] sm:$0xff]   ;;  %v3608_v15 = vpack.i.bf16 %v561_v12, %v560_v11  ;;  %2655 = vmatpush1.bf16.msra.mxu1 %v3241_v7  ;;  %v564_v18 = vld [vmem:[#allocation2 + $0xc2] sm:$0xff]  ;;  %v565_v19 = vld [vmem:[#allocation2 + $0xca] sm:$0xff] }
  0x43   : > { %2725 = vrot.lane.b32.xlu1 %v3544_v33, %s3269_s8  ;;  %v563_v17 = vld [vmem:[#allocation2 + $0xb2] sm:$0xff]  ;;  %2057 = vmatprep.subr.bf16.mxu0 %v3270_v57  ;;  %v3243_v21 = vld [vmem:[%s4491_s3 + $0x20] sm:$0xff]   ;;  %v2799_v22 = vpack.i.bf16 %v565_v19, %v564_v18  ;;  %v3244_v29 = vld [vmem:[%s4491_s3 + $0x28] sm:$0xff]  }
  0x44   : > { %2730 = vrot.lane.b32.xlu0 %v3547_v34, %s3269_s8  ;;  %2647 = vmatprep.subr.bf16.mxu1 %v3270_v57  ;;  %v2794_v20 = vpack.i.bf16 %v563_v17, %v562_v16  ;;  %v566_v23 = vld [vmem:[#allocation2 + $0xda] sm:$0xff]  ;;  %v567_v25 = vld [vmem:[#allocation2 + $0xe2] sm:$0xff]  ;;  %v568_v26 = vld [vmem:[#allocation2 + $0xf2] sm:$0xff] }
  0x45   : > { %v569_v27 = vld [vmem:[#allocation2 + $0xfa] sm:$0xff]  ;;  %v2804_v28 = vpack.i.bf16 %v567_v25, %v566_v23  ;;  %v3245_v42 = vld [vmem:[%s4491_s3 + $0x30] sm:$0xff]   ;;  %v3707_v9 = vld [vmem:[#allocation2 + $0x108] sm:$0xff] }
  0x46   : > { %2058 = vmatpush1.bf16.msra.mxu0 %v3242_v14  ;;  %2656 = vmatpush1.bf16.msra.mxu1 %v3242_v14  ;;  %v3626_v30 = vpack.i.bf16 %v569_v27, %v568_v26  ;;  %v3628_v35 = vld [vmem:[#allocation2 + $0x18] sm:$0xff]  ;;  %v3630_v36 = vld [vmem:[#allocation2 + $0x20] sm:$0xff]  ;;  %v339_v43 = vld [vmem:[%s3395_s29 + $0xf0] sm:$0xff] }
  0x47   : > { %2735 = vrot.lane.b32.xlu1 %v3552_v39, %s3269_s8  ;;  %2059 = vmatprep.subr.bf16.mxu0 %v3270_v57  ;;  %v3632_v37 = vld [vmem:[#allocation2 + $0xd8] sm:$0xff]  ;;  %v3634_v38 = vld [vmem:[#allocation2 + $0xe0] sm:$0xff]  ;;  %v2814_v41 = vpack.i.bf16 %v3630_v36, %v3628_v35  ;;  %v378_v48 = vmul.f32 %v3389_v1, %v339_v43  ;;  %v3676_v0 = vld [vmem:[#allocation2 + $0xf0] sm:$0xff] }
  0x48   : > { %2740 = vrot.lane.b32.xlu0 %v3556_v40, %s3269_s8  ;;  %2648 = vmatprep.subr.bf16.mxu1 %v3270_v57  ;;  %v340_v44 = vld [vmem:[%s3395_s29 + $0xf8] sm:$0xff]  ;;  %v2819_v47 = vpack.i.bf16 %v3634_v38, %v3632_v37  ;;  %s3273_s29 = smov 64   ;;  %v3247_v56 = vld [vmem:[%s4491_s3 + $0x40] sm:$0xff]   ;;  %v3709_v10 = vld [vmem:[#allocation2 + $0x110] sm:$0xff] }
  0x49   : > { %v379_v49 = vmul.f32 %v3389_v1, %v340_v44  ;;  %v417_v51 = vadd.f32 %v3400_v2, %v378_v48  ;;  %v3669_v55 = vld [vmem:[#allocation2 + $0x38] sm:$0xff]  ;;  %v3731_v14 = vld [vmem:[#allocation2 + $0x60] sm:$0xff]  ;;  %v3733_v16 = vld [vmem:[#allocation2 + $0x68] sm:$0xff] }
  0x4a   : > { %2060 = vmatpush1.bf16.msra.mxu0 %v3243_v21  ;;  %2657 = vmatpush1.bf16.msra.mxu1 %v3243_v21  ;;  %v741_v58 = vld [vmem:[#allocation2 + $0x32] sm:$0xff]  ;;  %v742_v59 = vld [vmem:[#allocation2 + $0x3a] sm:$0xff]  ;;  %4514 = vst [vmem:[#allocation3_spill] sm:$0xff] %v3731_v14  ;;  %4515 = vst [vmem:[#allocation4_spill] sm:$0xff] %v3733_v16  ;;  %v2944_v19 = vpack.i.bf16 %v3733_v16, %v3731_v14 }
  0x4b   : > { %2745 = vrot.lane.b32.xlu1 %v3560_v45, %s3269_s8  ;;  %2061 = vmatprep.subr.bf16.mxu0 %v3270_v57  ;;  %v449_v1 = vmax.f32 %v417_v51, 0.0  ;;  %v757_v62 = vld [vmem:[#allocation2 + $0xf2] sm:$0xff]  ;;  %v758_v4 = vld [vmem:[#allocation2 + $0xfa] sm:$0xff]  ;;  %v3737_v18 = vld [vmem:[#allocation2 + $0x128] sm:$0xff] }
  0x4c   : > { %2750 = vrot.lane.b32.xlu0 %v3564_v46, %s3269_s8  ;;  %2649 = vmatprep.subr.bf16.mxu1 %v3270_v57  ;;  %v3678_v3 = vld [vmem:[#allocation2 + $0xf8] sm:$0xff]  ;;  %v1916_v5 = vpack.c.bf16 %v758_v4, %v757_v62  ;;  %v3735_v17 = vld [vmem:[#allocation2 + $0x120] sm:$0xff]  ;;  %4517 = vst [vmem:[#allocation6_spill] sm:$0xff] %v3737_v18  ;;  %v496_v62 = vld [vmem:[#allocation2 + $0x90] sm:$0xff] }
  0x4d   : > { %482 = vst.msk [vmem:[#allocation2 + $0x181] sm:$0xff] %vm253_vm0, %v449_v1  ;;  %v2849_v7 = vpack.i.bf16 %v3678_v3, %v3676_v0  ;;  %4516 = vst [vmem:[#allocation5_spill] sm:$0xff] %v3735_v17  ;;  %v666_v21 = vld [vmem:[#allocation2 + $0x122] sm:$0xff]  ;;  %v494_v25 = vld [vmem:[#allocation2 + $0x78] sm:$0xff] }
  0x4e   : > { %2062 = vmatpush1.bf16.msra.mxu0 %v3244_v29  ;;  %2658 = vmatpush1.bf16.msra.mxu1 %v3244_v29  ;;  %v495_v26 = vld [vmem:[#allocation2 + $0x80] sm:$0xff] }
  0x4f   : > { %2755 = vrot.lane.b32.xlu1 %v2754_v52, %s3269_s8  ;;  %2063 = vmatprep.subr.bf16.mxu0 %v3270_v57  ;;  %v418_v52 = vadd.f32 %v3400_v2, %v379_v49  ;;  %v3667_v2 = vld [vmem:[#allocation2 + $0x30] sm:$0xff]  ;;  %s3274_s8 = smov 80   ;;  %v2999_v29 = vpack.i.bf16 %v495_v26, %v494_v25 }
  0x50   : > { %2760 = vrot.lane.b32.xlu0 %v2759_v53, %s3271_s13  ;;  %2650 = vmatprep.subr.bf16.mxu1 %v3270_v57  ;;  %v3246_v53 = vld [vmem:[%s4491_s3 + $0x38] sm:$0xff]  }
  0x51   : > { %v450_v54 = vmax.f32 %v418_v52, 0.0  ;;  %2566 = vmatprep.mubr.msk.bf16.mxu1 %vm253_vm0, %v1916_v5  ;;  %v668_v52 = vld [vmem:[#allocation2 + $0x13a] sm:$0xff] }
  0x52   : > { %2064 = vmatpush1.bf16.msra.mxu0 %v3245_v42  ;;  %2659 = vmatpush1.bf16.msra.mxu1 %v3245_v42 }
  0x53   : > { %2765 = vrot.lane.b32.xlu1 %v3576_v60, %s3271_s13  ;;  %2065 = vmatprep.subr.bf16.mxu0 %v3270_v57  ;;  %483 = vst.msk [vmem:[#allocation2 + $0x189] sm:$0xff] %vm253_vm0, %v450_v54 }
  0x54   : > { %2770 = vrot.lane.b32.xlu0 %v3582_v63, %s3271_s13  ;;  %2651 = vmatprep.subr.bf16.mxu1 %v3270_v57 }
  0x56   : > { %2066 = vmatpush1.bf16.msra.mxu0 %v3246_v53  ;;  %2660 = vmatpush1.bf16.msra.mxu1 %v3246_v53  ;;  %v669_v53 = vld [vmem:[#allocation2 + $0x142] sm:$0xff] }
  0x57   : > { %2775 = vrot.lane.b32.xlu1 %v3588_v6, %s3271_s13  ;;  %2067 = vmatprep.subr.bf16.mxu0 %v3270_v57  ;;  %v3049_v54 = vpack.i.bf16 %v669_v53, %v668_v52  ;;  %v719_v52 = vld [vmem:[#allocation2 + $0xa9] sm:$0xff]  ;;  %v720_v53 = vld [vmem:[#allocation2 + $0xb1] sm:$0xff] }
  0x58   : > { %2780 = vrot.lane.b32.xlu0 %v3595_v8, %s3271_s13  ;;  %2652 = vmatprep.subr.bf16.mxu1 %v3270_v57  ;;  %v3703_v57 = vld [vmem:[#allocation2 + $0x48] sm:$0xff] }
  0x5a   : > { %2068 = vmatpush1.bf16.msra.mxu0 %v3247_v56  ;;  %2661 = vmatpush1.bf16.msra.mxu1 %v3247_v56  ;;  %v512_v56 = vld [vmem:[#allocation2 + $0x150] sm:$0xff] }
  0x5b   : > { %2785 = vrot.lane.b32.xlu1 %v3601_v13, %s3271_s13 }
  0x5c   : > { %2790 = vrot.lane.b32.xlu0 %v3608_v15, %s3271_s13 }
  0x5f   : > { %2795 = vrot.lane.b32.xlu1 %v2794_v20, %s3271_s13 }
  0x60   : > { %2800 = vrot.lane.b32.xlu0 %v2799_v22, %s3271_s13  ;;  %v667_v22 = vld [vmem:[#allocation2 + $0x12a] sm:$0xff] }
  0x63   : > { %2805 = vrot.lane.b32.xlu1 %v2804_v28, %s3271_s13 }
  0x64   : > { %2810 = vrot.lane.b32.xlu0 %v3626_v30, %s3271_s13 }
  0x67   : > { %2815 = vrot.lane.b32.xlu1 %v2814_v41, %s3272_s26  ;;  %v700_v41 = vld [vmem:[#allocation2 + $0x140] sm:$0xff] }
  0x68   : > { %2820 = vrot.lane.b32.xlu0 %v2819_v47, %s3272_s26 }
  0x6b   : > { %2825 = vrot.lane.b32.xlu1 %v3483_v31, %s3273_s29  ;;  %v1900_v31 = vpack.c.bf16 %v742_v59, %v741_v58  ;;  %v513_v58 = vld [vmem:[#allocation2 + $0x158] sm:$0xff] }
  0x6c   : > { %2830 = vrot.lane.b32.xlu0 %v3544_v33, %s3273_s29  ;;  %v2844_v33 = vpack.i.bf16 %v3669_v55, %v3667_v2 }
  0x6d   : > { %2558 = vmatprep.mubr.msk.bf16.mxu0 %vm253_vm0, %v1900_v31  ;;  %v497_v31 = vld [vmem:[#allocation2 + $0x98] sm:$0xff] }
  0x6e   : > { %v3054_v5 = vpack.i.bf16 %v497_v31, %v496_v62  ;;  %v485_v62 = vld [vmem:[#allocation2 + $0x8] sm:$0xff]  ;;  %v484_v31 = vld [vmem:[#allocation2] sm:$0xff] }
  0x6f   : > { %2835 = vrot.lane.b32.xlu1 %v3576_v60, %s3274_s8  ;;  %v3705_v60 = vld [vmem:[#allocation2 + $0x50] sm:$0xff] }
  0x70   : > { %2840 = vrot.lane.b32.xlu0 %v2804_v28, %s3274_s8  ;;  %v2894_v11 = vpack.i.bf16 %v3705_v60, %v3703_v57  ;;  %v2994_v28 = vpack.i.bf16 %v667_v22, %v666_v21  ;;  %v3837_v21 = vld [vmem:[#allocation2 + $0x152] sm:$0xff]  ;;  %v3839_v22 = vld [vmem:[#allocation2 + $0x15a] sm:$0xff] }
  0x73   : > { %2845 = vrot.lane.b32.xlu1 %v2844_v33, %s3275_s9 }
  0x74   : > { %2850 = vrot.lane.b32.xlu0 %v2849_v7, %s3275_s9 }
  0x77   : > { %2855 = vrot.lane.b32.xlu1 %v3479_v24, %s3276_s10 }
  0x78   : > { %2860 = vrot.lane.b32.xlu0 %v3547_v34, %s3276_s10 }
  0x7b   : > { %2865 = vrot.lane.b32.xlu1 %v2844_v33, %s3272_s26  ;;  %v3059_v33 = vpack.i.bf16 %v513_v58, %v512_v56  ;;  %v515_v56 = vld [vmem:[#allocation2 + $0x170] sm:$0xff] }
  0x7c   : > { %2870 = vrot.lane.b32.xlu0 %v2849_v7, %s3272_s26  ;;  %v718_v7 = vld [vmem:[#allocation2 + $0x99] sm:$0xff] }
  0x7f   : > { %2875 = vrot.lane.b32.xlu1 %v3479_v24, %s3273_s29  ;;  %v2899_v24 = vpack.i.bf16 %v3709_v10, %v3707_v9 }
  0x80   : > { %2880 = vrot.lane.b32.xlu0 %v3547_v34, %s3273_s29  ;;  %v664_v34 = vld [vmem:[#allocation2 + $0x10a] sm:$0xff] }
  0x83   : > { %2885 = vrot.lane.b32.xlu1 %v3582_v63, %s3274_s8  ;;  %v665_v63 = vld [vmem:[#allocation2 + $0x112] sm:$0xff] }
  0x84   : > { %2890 = vrot.lane.b32.xlu0 %v3626_v30, %s3274_s8  ;;  %v2939_v12 = vpack.i.bf16 %v665_v63, %v664_v34  ;;  %v699_v30 = vld [vmem:[#allocation2 + $0x138] sm:$0xff] }
  0x85   : > { %v3004_v43 = vpack.i.bf16 %v700_v41, %v699_v30  ;;  %v3849_v30 = vpack.i.bf16 %v3839_v22, %v3837_v21 }
  0x87   : > { %2895 = vrot.lane.b32.xlu1 %v2894_v11, %s3275_s9 }
  0x88   : > { %2900 = vrot.lane.b32.xlu0 %v2899_v24, %s3275_s9 }
  0x8b   : > { %2905 = vrot.lane.b32.xlu1 %v3485_v32, %s3276_s10 }
  0x8c   : > { %2910 = vrot.lane.b32.xlu0 %v3552_v39, %s3276_s10 }
  0x8f   : > { %2915 = vrot.lane.b32.xlu1 %v2894_v11, %s3272_s26 }
  0x90   : > { %2920 = vrot.lane.b32.xlu0 %v2899_v24, %s3272_s26 }
  0x93   : > { %2925 = vrot.lane.b32.xlu1 %v3485_v32, %s3273_s29  ;;  %v2949_v32 = vpack.i.bf16 %v3737_v18, %v3735_v17 }
  0x94   : > { %2930 = vrot.lane.b32.xlu0 %v3552_v39, %s3273_s29  ;;  %v3752_v39 = vpop.permute.xlu0 %2680 }
  0x97   : > { %2935 = vrot.lane.b32.xlu1 %v3588_v6, %s3274_s8 }
  0x98   : > { %2940 = vrot.lane.b32.xlu0 %v2939_v12, %s3274_s8 }
  0x9b   : > { %2945 = vrot.lane.b32.xlu1 %v2944_v19, %s3275_s9 }
  0x9c   : > { %2950 = vrot.lane.b32.xlu0 %v2949_v32, %s3275_s9 }
  0x9f   : > { %2955 = vrot.lane.b32.xlu1 %v3504_v50, %s3276_s10 }
  0xa0   : > { %2960 = vrot.lane.b32.xlu0 %v3556_v40, %s3276_s10 }
  0xa3   : > { %2965 = vrot.lane.b32.xlu1 %v2939_v12, %s3271_s13 }
  0xa4   : > { %2970 = vrot.lane.b32.xlu0 %v2944_v19, %s3272_s26 }
  0xa5   : > { %v3756_v6 = vpop.permute.xlu1 %2690 }
  0xa6   : > { %v3758_v20 = vpop.permute.xlu0 %2685 }
  0xa7   : > { %2975 = vrot.lane.b32.xlu1 %v2949_v32, %s3272_s26 }
  0xa8   : > { %2980 = vrot.lane.b32.xlu0 %v3504_v50, %s3273_s29 }
  0xa9   : > { %v3763_v23 = vpop.permute.xlu1 %2695 }
  0xaa   : > { %v3765_v27 = vpop.permute.xlu0 %2700 }
  0xab   : > { %4518 = vst [vmem:[#allocation7_spill] sm:$0xff] %v3765_v27  ;;  %2985 = vrot.lane.b32.xlu1 %v3556_v40, %s3273_s29 }
  0xac   : > { %2990 = vrot.lane.b32.xlu0 %v3595_v8, %s3274_s8 }
  0xad   : > { %v3771_v42 = vpop.permute.xlu1 %2705 }
  0xae   : > { %4519 = vst [vmem:[#allocation8_spill] sm:$0xff] %v3771_v42  ;;  %v3773_v50 = vpop.permute.xlu0 %2710 }
  0xaf   : > { %4520 = vst [vmem:[#allocation9_spill] sm:$0xff] %v3773_v50  ;;  %2995 = vrot.lane.b32.xlu1 %v2994_v28, %s3274_s8 }
  0xb0   : > { %3000 = vrot.lane.b32.xlu0 %v2999_v29, %s3275_s9 }
  0xb1   : > { %v3777_v44 = vpop.permute.xlu1 %2715 }
  0xb2   : > { %4521 = vst [vmem:[#allocation10_spill] sm:$0xff] %v3777_v44  ;;  %v3779_v47 = vpop.permute.xlu0 %2720  ;;  %v3885_v44 = vld [vmem:[#allocation2 + $0xc0] sm:$0xff] }
  0xb3   : > { %3005 = vrot.lane.b32.xlu1 %v3004_v43, %s3275_s9 }
  0xb4   : > { %3010 = vrot.lane.b32.xlu0 %v3517_v61, %s3276_s10 }
  0xb5   : > { %v3784_v40 = vpop.permute.xlu1 %2725 }
  0xb6   : > { %v3786_v8 = vpop.permute.xlu0 %2730 }
  0xb7   : > { %3015 = vrot.lane.b32.xlu1 %v3560_v45, %s3276_s10 }
  0xb8   : > { %3020 = vrot.lane.b32.xlu0 %v2994_v28, %s3271_s13  ;;  %v498_v28 = vld [vmem:[#allocation2 + $0xa8] sm:$0xff] }
  0xb9   : > { %v3791_v48 = vpop.permute.xlu1 %2735 }
  0xba   : > { %v3793_v49 = vpop.permute.xlu0 %2740 }
  0xbb   : > { %4522 = vst [vmem:[#allocation11_spill] sm:$0xff] %v3793_v49  ;;  %3025 = vrot.lane.b32.xlu1 %v2999_v29, %s3272_s26  ;;  %v499_v29 = vld [vmem:[#allocation2 + $0xb0] sm:$0xff] }
  0xbc   : > { %3030 = vrot.lane.b32.xlu0 %v3004_v43, %s3272_s26  ;;  %v3853_v41 = vpack.i.bf16 %v499_v29, %v498_v28  ;;  %v3871_v28 = vld [vmem:[#allocation2 + $0xaa] sm:$0xff]  ;;  %v3873_v29 = vld [vmem:[#allocation2 + $0xb2] sm:$0xff] }
  0xbd   : > { %v3797_v51 = vpop.permute.xlu1 %2745 }
  0xbe   : > { %4523 = vst [vmem:[#allocation12_spill] sm:$0xff] %v3797_v51  ;;  %v3799_v1 = vpop.permute.xlu0 %2750 }
  0xbf   : > { %4524 = vst [vmem:[#allocation13_spill] sm:$0xff] %v3799_v1  ;;  %3035 = vrot.lane.b32.xlu1 %v3517_v61, %s3273_s29  ;;  %v717_v61 = vld [vmem:[#allocation2 + $0x91] sm:$0xff] }
  0xc0   : > { %3040 = vrot.lane.b32.xlu0 %v3560_v45, %s3273_s29  ;;  %v3064_v24 = vpack.i.bf16 %v718_v7, %v717_v61  ;;  %v2683_v61 = vunpack.i.h.bf16 %v3752_v39  ;;  %v2682_v7 = vunpack.i.l.bf16 %v3752_v39  ;;  %v3883_v39 = vld [vmem:[#allocation2 + $0x52] sm:$0xff] }
  0xc1   : > { %v3805_v59 = vpop.permute.xlu1 %2755 }
  0xc2   : > { %4525 = vst [vmem:[#allocation14_spill] sm:$0xff] %v3805_v59  ;;  %v3807_v4 = vpop.permute.xlu0 %2760  ;;  %v3881_v59 = vld [vmem:[#allocation2 + $0x4a] sm:$0xff]  ;;  %v1670_v17 = vsel %vm253_vm0, %v485_v62, %v2683_v61 }
  0xc3   : > { %3045 = vrot.lane.b32.xlu1 %v3601_v13, %s3274_s8  ;;  %v2763_v1 = vunpack.i.h.bf16 %v3807_v4  ;;  %v2762_v50 = vunpack.i.l.bf16 %v3807_v4  ;;  %v1669_v4 = vsel %vm253_vm0, %v484_v31, %v2682_v7 }
  0xc4   : > { %3050 = vrot.lane.b32.xlu0 %v3049_v54, %s3274_s8 }
  0xc5   : > { %v3812_v11 = vpop.permute.xlu1 %2765  ;;  %v1703_v61 = vsel %vm1701_vm2, %v1670_v17, %v2763_v1  ;;  %v1702_v7 = vsel %vm1701_vm2, %v1669_v4, %v2762_v50 }
  0xc6   : > { %v3814_v45 = vpop.permute.xlu0 %2770 }
  0xc7   : > { %3055 = vrot.lane.b32.xlu1 %v3054_v5, %s3275_s9 }
  0xc8   : > { %3060 = vrot.lane.b32.xlu0 %v3059_v33, %s3275_s9 }
  0xc9   : > { %v3818_v34 = vpop.permute.xlu1 %2775 }
  0xca   : > { %v3820_v63 = vpop.permute.xlu0 %2780 }
  0xcb   : > { %4526 = vst [vmem:[#allocation15_spill] sm:$0xff] %v3820_v63  ;;  %3065 = vrot.lane.b32.xlu1 %v3064_v24, %s3276_s10 }
  0xcc   : > { %3070 = vrot.lane.b32.xlu0 %v3564_v46, %s3276_s10 }
  0xcd   : > { %v3825_v13 = vpop.permute.xlu1 %2785 }
  0xce   : > { %4527 = vst [vmem:[#allocation16_spill] sm:$0xff] %v3825_v13  ;;  %v3827_v12 = vpop.permute.xlu0 %2790 }
  0xcf   : > { %4528 = vst [vmem:[#allocation17_spill] sm:$0xff] %v3827_v12  ;;  %3075 = vrot.lane.b32.xlu1 %v3049_v54, %s3271_s13  ;;  %v514_v54 = vld [vmem:[#allocation2 + $0x168] sm:$0xff] }
  0xd0   : > { %3080 = vrot.lane.b32.xlu0 %v3054_v5, %s3272_s26  ;;  %v735_v5 = vld [vmem:[#allocation2 + $0x169] sm:$0xff] }
  0xd1   : > { %v3831_v19 = vpop.permute.xlu1 %2795  ;;  %v3887_v12 = vld [vmem:[#allocation2 + $0xc8] sm:$0xff] }
  0xd2   : > { %4529 = vst [vmem:[#allocation18_spill] sm:$0xff] %v3831_v19  ;;  %v3833_v32 = vpop.permute.xlu0 %2800  ;;  %v3879_v19 = vld [vmem:[#allocation2 + $0x172] sm:$0xff] }
  0xd3   : > { %3085 = vrot.lane.b32.xlu1 %v3059_v33, %s3272_s26  ;;  %v736_v33 = vld [vmem:[#allocation2 + $0x171] sm:$0xff]  ;;  %4531 = vst [vmem:[#allocation20_spill] sm:$0xff] %v3879_v19  ;;  %v2803_v13 = vunpack.i.h.bf16 %v3833_v32  ;;  %v2802_v51 = vunpack.i.l.bf16 %v3833_v32 }
  0xd4   : > { %3090 = vrot.lane.b32.xlu0 %v3064_v24, %s3273_s29 }
  0xd5   : > { %v3841_v25 = vpop.permute.xlu1 %2805 }
  0xd6   : > { %v3843_v26 = vpop.permute.xlu0 %2810 }
  0xd7   : > { %3095 = vrot.lane.b32.xlu1 %v3564_v46, %s3273_s29  ;;  %v3861_v46 = vpack.i.bf16 %v515_v56, %v514_v54  ;;  %v3875_v54 = vld [vmem:[#allocation2 + $0x16a] sm:$0xff]  ;;  %v2723_v56 = vunpack.i.h.bf16 %v3779_v47 }
  0xd8   : > { %3100 = vrot.lane.b32.xlu0 %v3608_v15, %s3274_s8  ;;  %v3865_v15 = vpack.i.bf16 %v720_v53, %v719_v52  ;;  %4530 = vst [vmem:[#allocation19_spill] sm:$0xff] %v3875_v54  ;;  %v2722_v52 = vunpack.i.l.bf16 %v3779_v47  ;;  %v3893_v47 = vpack.i.bf16 %v736_v33, %v735_v5  ;;  %v3905_v5 = vpack.i.bf16 %v3879_v19, %v3875_v54 }
  0xd9   : > { %v3855_v43 = vpop.permute.xlu1 %2815  ;;  %v1686_v33 = vsel %vm253_vm0, %v3887_v12, %v2723_v56 }
  0xda   : > { %v3857_v58 = vpop.permute.xlu0 %2820  ;;  %v1685_v14 = vsel %vm253_vm0, %v3885_v44, %v2722_v52  ;;  %v2818_v42 = vunpack.i.h.bf16 %v3855_v43  ;;  %v2817_v62 = vunpack.i.l.bf16 %v3855_v43  ;;  %v1719_v52 = vsel %vm1701_vm2, %v1686_v33, %v2803_v13 }
  0xdb   : > { %3105 = vrot.lane.b32.xlu1 %v3849_v30, %s3274_s8  ;;  %v2823_v19 = vunpack.i.h.bf16 %v3857_v58  ;;  %v2822_v54 = vunpack.i.l.bf16 %v3857_v58  ;;  %v1718_v56 = vsel %vm1701_vm2, %v1685_v14, %v2802_v51 }
  0xdc   : > { %3110 = vrot.lane.b32.xlu0 %v3853_v41, %s3275_s9  ;;  %v1735_v58 = vsel %vm1734_vm3, %v1702_v7, %v2817_v62  ;;  %v1736_v63 = vsel %vm1734_vm3, %v1703_v61, %v2818_v42 }
  0xdd   : > { %v3869_v24 = vpop.permute.xlu1 %2825  ;;  %v1751_v13 = vsel %vm1734_vm3, %v1718_v56, %v2822_v54  ;;  %v1752_v33 = vsel %vm1734_vm3, %v1719_v52, %v2823_v19  ;;  %v759_v56 = vld [vmem:[#allocation2 + $0x10a] sm:$0xff]  ;;  %v760_v52 = vld [vmem:[#allocation2 + $0x112] sm:$0xff] }
  0xde   : > { %v2831_v53 = vpop.permute.xlu0 %2830  ;;  %v2828_v32 = vunpack.i.h.bf16 %v3869_v24  ;;  %v2827_v43 = vunpack.i.l.bf16 %v3869_v24 }
  0xdf   : > { %3115 = vrot.lane.b32.xlu1 %v3861_v46, %s3275_s9  ;;  %v2833_v17 = vunpack.i.h.bf16 %v2831_v53  ;;  %v2832_v50 = vunpack.i.l.bf16 %v2831_v53 }
  0xe0   : > { %3120 = vrot.lane.b32.xlu0 %v3865_v15, %s3276_s10 }
  0xe1   : > { %v2836_v18 = vpop.permute.xlu1 %2835  ;;  %v1784_v42 = vsel %vm1767_vm4, %v1751_v13, %v2832_v50  ;;  %v1785_v54 = vsel %vm1767_vm4, %v1752_v33, %v2833_v17  ;;  %v705_v33 = vld [vmem:[#allocation2 + $0x180] sm:$0xff] }
  0xe2   : > { %v2841_v31 = vpop.permute.xlu0 %2840  ;;  %v2838_v1 = vunpack.i.h.bf16 %v2836_v18  ;;  %v2837_v4 = vunpack.i.l.bf16 %v2836_v18  ;;  %v1769_v18 = vsel %vm1767_vm4, %v1736_v63, %v2828_v32 }
  0xe3   : > { %3125 = vrot.lane.b32.xlu1 %v3893_v47, %s3276_s10  ;;  %v2843_v49 = vunpack.i.h.bf16 %v2841_v31  ;;  %v2842_v14 = vunpack.i.l.bf16 %v2841_v31 }
  0xe4   : > { %3130 = vrot.lane.b32.xlu0 %v3849_v30, %s3271_s13  ;;  %v1768_v30 = vsel %vm1767_vm4, %v1735_v58, %v2827_v43 }
  0xe5   : > { %v2846_v16 = vpop.permute.xlu1 %2845  ;;  %v1801_v19 = vsel %vm1800_vm5, %v1768_v30, %v2837_v4  ;;  %v1818_v61 = vsel %vm1800_vm5, %v1785_v54, %v2843_v49  ;;  %v722_v54 = vld [vmem:[#allocation2 + $0xc9] sm:$0xff] }
  0xe6   : > { %v2851_v51 = vpop.permute.xlu0 %2850  ;;  %v2848_v24 = vunpack.i.h.bf16 %v2846_v16  ;;  %v2847_v27 = vunpack.i.l.bf16 %v2846_v16  ;;  %v1802_v16 = vsel %vm1800_vm5, %v1769_v18, %v2838_v1 }
  0xe7   : > { %3135 = vrot.lane.b32.xlu1 %v3853_v41, %s3272_s26  ;;  %v2853_v53 = vunpack.i.h.bf16 %v2851_v51  ;;  %v2852_v62 = vunpack.i.l.bf16 %v2851_v51  ;;  %v1817_v41 = vsel %vm1800_vm5, %v1784_v42, %v2842_v14  ;;  %v721_v42 = vld [vmem:[#allocation2 + $0xc1] sm:$0xff] }
  0xe8   : > { %3140 = vrot.lane.b32.xlu0 %v3861_v46, %s3272_s26  ;;  %v1834_v46 = vsel %vm1833_vm6, %v1801_v19, %v2847_v27  ;;  %v1835_v43 = vsel %vm1833_vm6, %v1802_v16, %v2848_v24  ;;  %v1918_v24 = vpack.c.bf16 %v760_v52, %v759_v56  ;;  %v2688_v19 = vunpack.i.h.bf16 %v3758_v20  ;;  %v3982_v56 = vld [vmem:[#allocation2 + $0xca] sm:$0xff] }
  0xe9   : > { %v2856_v31 = vpop.permute.xlu1 %2855  ;;  %v1850_v1 = vsel %vm1833_vm6, %v1817_v41, %v2852_v62  ;;  %v1851_v4 = vsel %vm1833_vm6, %v1818_v61, %v2853_v53  ;;  %v3965_v53 = vpack.i.bf16 %v3887_v12, %v3885_v44  ;;  %v2687_v16 = vunpack.i.l.bf16 %v3758_v20  ;;  %v737_v41 = vld [vmem:[#allocation2 + $0x181] sm:$0xff]  ;;  %v738_v61 = vld [vmem:[#allocation2 + $0x189] sm:$0xff] }
  0xea   : > { %v2858_v7 = vunpack.i.h.bf16 %v2856_v31  ;;  %v2857_v63 = vunpack.i.l.bf16 %v2856_v31  ;;  %v2861_v32 = vpop.permute.xlu0 %2860  ;;  %v3978_v44 = vld [vmem:[#allocation2 + $0xc2] sm:$0xff]  ;;  %v2728_v12 = vunpack.i.h.bf16 %v3784_v40  ;;  %v3986_v52 = vld [vmem:[#allocation2 + $0x6a] sm:$0xff] }
  0xeb   : > { %v2863_v50 = vunpack.i.h.bf16 %v2861_v32  ;;  %v2862_v17 = vunpack.i.l.bf16 %v2861_v32  ;;  %3145 = vrot.lane.b32.xlu1 %v3865_v15, %s3273_s29  ;;  %v706_v15 = vld [vmem:[#allocation2 + $0x188] sm:$0xff] }
  0xec   : > { %3150 = vrot.lane.b32.xlu0 %v3893_v47, %s3273_s29  ;;  %v1867_v49 = vsel %vm1866_vm7, %v1834_v46, %v2857_v63  ;;  %v1868_v58 = vsel %vm1866_vm7, %v1835_v43, %v2858_v7  ;;  %v4532_v47 = vpack.i.bf16 %v3873_v29, %v3871_v28  ;;  %v3969_v62 = vpack.i.bf16 %v706_v15, %v705_v33  ;;  %v3984_v20 = vld [vmem:[#allocation2 + $0x62] sm:$0xff] }
  0xed   : > { %v3953_v14 = vpop.permute.xlu1 %2865  ;;  %v1899_v27 = vpack.c.bf16 %v1868_v58, %v1867_v49  ;;  %v1883_v51 = vsel %vm1866_vm7, %v1850_v1, %v2862_v17  ;;  %v1884_v13 = vsel %vm1866_vm7, %v1851_v4, %v2863_v50  ;;  %v4533_v7 = vpack.c.bf16 %v3883_v39, %v3881_v59 }
  0xee   : > { %v3957_v30 = vpop.permute.xlu0 %2870  ;;  %v1915_v18 = vpack.c.bf16 %v1884_v13, %v1883_v51  ;;  %v2727_v63 = vunpack.i.l.bf16 %v3784_v40  ;;  %v2768_v46 = vunpack.i.h.bf16 %v3812_v11  ;;  %v2767_v59 = vunpack.i.l.bf16 %v3812_v11 }
  0xef   : > { %3155 = vrot.lane.b32.xlu1 %v4532_v47, %s3274_s8  ;;  %2084 = vmatmul.mubr.bf16.vlgmr.msra.gmra.mrb[0].mxu0 %v1899_v27  ;;  %v3992_v39 = vpack.i.bf16 %v722_v54, %v721_v42  ;;  %v2808_v43 = vunpack.i.h.bf16 %v3841_v25  ;;  %v2807_v40 = vunpack.i.l.bf16 %v3841_v25  ;;  %v3998_v50 = vpack.i.bf16 %v738_v61, %v737_v41 }
  0xf0   : > { %3160 = vrot.lane.b32.xlu0 %v3905_v5, %s3274_s8  ;;  %2148 = vmatmul.mubr.bf16.vlgmr.msra.gmra.mrb[0].mxu1 %v1915_v18  ;;  %v1671_v17 = vsel %vm253_vm0, %v3628_v35, %v2687_v16  ;;  %v1672_v11 = vsel %vm253_vm0, %v3630_v36, %v2688_v19  ;;  %v3209_v4 = vpack.i.bf16 %v3982_v56, %v3978_v44  ;;  %v2868_v27 = vunpack.i.h.bf16 %v3953_v14 }
  0xf1   : > { %v2876_v31 = vpop.permute.xlu1 %2875  ;;  %2559 = vmatprep.mubr.msk.bf16.mxu0 %vm253_vm0, %v4533_v7  ;;  %2567 = vmatprep.mubr.msk.bf16.mxu1 %vm253_vm0, %v1918_v24  ;;  %v1904_v49 = vpack.c.bf16 %v3986_v52, %v3984_v20  ;;  %v1688_v25 = vsel %vm253_vm0, %v3634_v38, %v2728_v12  ;;  %v1687_v58 = vsel %vm253_vm0, %v3632_v37, %v2727_v63  ;;  %v2867_v35 = vunpack.i.l.bf16 %v3953_v14 }
  0xf2   : > { %v2881_v32 = vpop.permute.xlu0 %2880  ;;  %v1704_v36 = vsel %vm1701_vm2, %v1671_v17, %v2767_v59  ;;  %v1705_v13 = vsel %vm1701_vm2, %v1672_v11, %v2768_v46  ;;  %v2873_v33 = vunpack.i.h.bf16 %v3957_v30  ;;  %v2872_v15 = vunpack.i.l.bf16 %v3957_v30 }
  0xf3   : > { %3165 = vrot.lane.b32.xlu1 %v3965_v53, %s3275_s9  ;;  %v1721_v38 = vsel %vm1701_vm2, %v1688_v25, %v2808_v43  ;;  %v1720_v37 = vsel %vm1701_vm2, %v1687_v58, %v2807_v40  ;;  %v2878_v24 = vunpack.i.h.bf16 %v2876_v31  ;;  %v2877_v18 = vunpack.i.l.bf16 %v2876_v31 }
  0xf4   : > { %3170 = vrot.lane.b32.xlu0 %v3969_v62, %s3275_s9  ;;  %v2883_v14 = vunpack.i.h.bf16 %v2881_v32  ;;  %v2882_v47 = vunpack.i.l.bf16 %v2881_v32  ;;  %v1737_v16 = vsel %vm1734_vm3, %v1704_v36, %v2867_v35  ;;  %v1738_v30 = vsel %vm1734_vm3, %v1705_v13, %v2868_v27  ;;  %v761_v13 = vld [vmem:[#allocation2 + $0x122] sm:$0xff] }
  0xf5   : > { %v2886_v1 = vpop.permute.xlu1 %2885  ;;  %v1754_v12 = vsel %vm1734_vm3, %v1721_v38, %v2873_v33  ;;  %v1753_v63 = vsel %vm1734_vm3, %v1720_v37, %v2872_v15  ;;  %v1770_v32 = vsel %vm1767_vm4, %v1737_v16, %v2877_v18  ;;  %v1771_v59 = vsel %vm1767_vm4, %v1738_v30, %v2878_v24  ;;  %v762_v33 = vld [vmem:[#allocation2 + $0x12a] sm:$0xff] }
  0xf6   : > { %v2891_v51 = vpop.permute.xlu0 %2890  ;;  %v2888_v42 = vunpack.i.h.bf16 %v2886_v1  ;;  %v2887_v54 = vunpack.i.l.bf16 %v2886_v1  ;;  %v1786_v17 = vsel %vm1767_vm4, %v1753_v63, %v2882_v47  ;;  %v1787_v11 = vsel %vm1767_vm4, %v1754_v12, %v2883_v14 }
  0xf7   : > { %3175 = vrot.lane.b32.xlu1 %v3992_v39, %s3276_s10  ;;  %v2893_v41 = vunpack.i.h.bf16 %v2891_v51  ;;  %v2892_v61 = vunpack.i.l.bf16 %v2891_v51  ;;  %v2813_v52 = vunpack.i.h.bf16 %v3843_v26 }
  0xf8   : > { %3180 = vrot.lane.b32.xlu0 %v3998_v50, %s3276_s10  ;;  %v1803_v1 = vsel %vm1800_vm5, %v1770_v32, %v2887_v54  ;;  %v1804_v25 = vsel %vm1800_vm5, %v1771_v59, %v2888_v42  ;;  %v4050_v42 = vld [vmem:[#allocation2 + $0x182] sm:$0xff]  ;;  %v4052_v54 = vld [vmem:[#allocation2 + $0x18a] sm:$0xff]  ;;  %v2693_v59 = vunpack.i.h.bf16 %v3756_v6 }
  0xf9   : > { %v2896_v19 = vpop.permute.xlu1 %2895  ;;  %v1820_v27 = vsel %vm1800_vm5, %v1787_v11, %v2893_v41  ;;  %v691_v41 = vld [vmem:[#allocation2 + $0xd8] sm:$0xff]  ;;  %v3214_v63 = vpack.i.bf16 %v4052_v54, %v4050_v42  ;;  %v708_v32 = vld [vmem:[#allocation2 + $0x1a0] sm:$0xff] }
  0xfa   : > { %v2901_v7 = vpop.permute.xlu0 %2900  ;;  %v2898_v31 = vunpack.i.h.bf16 %v2896_v19  ;;  %v2897_v46 = vunpack.i.l.bf16 %v2896_v19  ;;  %v739_v11 = vld [vmem:[#allocation2 + $0x199] sm:$0xff] }
  0xfb   : > { %3185 = vrot.lane.b32.xlu1 %v3905_v5, %s3271_s13  ;;  %v2903_v43 = vunpack.i.h.bf16 %v2901_v7  ;;  %v2902_v40 = vunpack.i.l.bf16 %v2901_v7  ;;  %v1819_v5 = vsel %vm1800_vm5, %v1786_v17, %v2892_v61  ;;  %v692_v61 = vld [vmem:[#allocation2 + $0xe0] sm:$0xff]  ;;  %v1920_v7 = vpack.c.bf16 %v762_v33, %v761_v13 }
  0xfc   : > { %3190 = vrot.lane.b32.xlu0 %v3965_v53, %s3272_s26  ;;  %v1836_v53 = vsel %vm1833_vm6, %v1803_v1, %v2897_v46  ;;  %v1837_v15 = vsel %vm1833_vm6, %v1804_v25, %v2898_v31  ;;  %v3219_v31 = vpack.i.bf16 %v692_v61, %v691_v41  ;;  %v707_v46 = vld [vmem:[#allocation2 + $0x198] sm:$0xff]  ;;  %v2732_v1 = vunpack.i.l.bf16 %v3786_v8 }
  0xfd   : > { %v2906_v58 = vpop.permute.xlu1 %2905  ;;  %v1852_v24 = vsel %vm1833_vm6, %v1819_v5, %v2902_v40  ;;  %v1853_v18 = vsel %vm1833_vm6, %v1820_v27, %v2903_v43  ;;  %v2692_v43 = vunpack.i.l.bf16 %v3756_v6  ;;  %v723_v17 = vld [vmem:[#allocation2 + $0xd9] sm:$0xff]  ;;  %v4079_v6 = vld [vmem:[#allocation2 + $0x82] sm:$0xff]  ;;  %v2773_v27 = vunpack.i.h.bf16 %v3814_v45 }
  0xfe   : > { %v2908_v35 = vunpack.i.h.bf16 %v2906_v58  ;;  %v2907_v51 = vunpack.i.l.bf16 %v2906_v58  ;;  %v2911_v36 = vpop.permute.xlu0 %2910  ;;  %v740_v58 = vld [vmem:[#allocation2 + $0x1a1] sm:$0xff]  ;;  %v3224_v20 = vpack.i.bf16 %v708_v32, %v707_v46 }
  0xff   : > { %v2913_v38 = vunpack.i.h.bf16 %v2911_v36  ;;  %v2912_v37 = vunpack.i.l.bf16 %v2911_v36  ;;  %3195 = vrot.lane.b32.xlu1 %v3969_v62, %s3272_s26  ;;  %v4077_v5 = vld [vmem:[#allocation2 + $0x7a] sm:$0xff]  ;;  %v1674_v36 = vsel %vm253_vm0, %v3669_v55, %v2693_v59  ;;  %v3234_v33 = vpack.i.bf16 %v740_v58, %v739_v11 }
 0x100   : > { %3200 = vrot.lane.b32.xlu0 %v3992_v39, %s3273_s29  ;;  %v1869_v14 = vsel %vm1866_vm7, %v1836_v53, %v2907_v51  ;;  %v1870_v47 = vsel %vm1866_vm7, %v1837_v15, %v2908_v35  ;;  %v2772_v35 = vunpack.i.l.bf16 %v3814_v45  ;;  %v1673_v51 = vsel %vm253_vm0, %v3667_v2, %v2692_v43 }
 0x101   : > { %v4054_v19 = vpop.permute.xlu1 %2915  ;;  %v1901_v16 = vpack.c.bf16 %v1870_v47, %v1869_v14  ;;  %v1885_v62 = vsel %vm1866_vm7, %v1852_v24, %v2912_v37  ;;  %v1886_v30 = vsel %vm1866_vm7, %v1853_v18, %v2913_v38  ;;  %v1906_v45 = vpack.c.bf16 %v4079_v6, %v4077_v5  ;;  %v4139_v6 = vld [vmem:[#allocation2 + $0x92] sm:$0xff] }
 0x102   : > { %v4058_v12 = vpop.permute.xlu0 %2920  ;;  %v1917_v39 = vpack.c.bf16 %v1886_v30, %v1885_v62  ;;  %v2918_v15 = vunpack.i.h.bf16 %v4054_v19  ;;  %v2917_v38 = vunpack.i.l.bf16 %v4054_v19  ;;  %v1707_v2 = vsel %vm1701_vm2, %v1674_v36, %v2773_v27 }
 0x103   : > { %3205 = vrot.lane.b32.xlu1 %v3998_v50, %s3273_s29  ;;  %2092 = vmatmul.mubr.bf16.gmra.mrb[4].mxu0 %v1901_v16  ;;  %v724_v50 = vld [vmem:[#allocation2 + $0xe1] sm:$0xff]  ;;  %v1706_v55 = vsel %vm1701_vm2, %v1673_v51, %v2772_v35  ;;  %v2923_v24 = vunpack.i.h.bf16 %v4058_v12  ;;  %v2922_v18 = vunpack.i.l.bf16 %v4058_v12 }
 0x104   : > { %3210 = vrot.lane.b32.xlu0 %v3209_v4, %s3274_s8  ;;  %2156 = vmatmul.mubr.bf16.gmra.mrb[4].mxu1 %v1917_v39  ;;  %v2733_v4 = vunpack.i.h.bf16 %v3786_v8  ;;  %v3229_v8 = vpack.i.bf16 %v724_v50, %v723_v17  ;;  %v1739_v61 = vsel %vm1734_vm3, %v1706_v55, %v2917_v38  ;;  %v764_v51 = vld [vmem:[#allocation2 + $0x142] sm:$0xff] }
 0x105   : > { %v2926_v40 = vpop.permute.xlu1 %2925  ;;  %2560 = vmatprep.mubr.msk.bf16.mxu0 %vm253_vm0, %v1904_v49  ;;  %2568 = vmatprep.mubr.msk.bf16.mxu1 %vm253_vm0, %v1920_v7  ;;  %v2812_v49 = vunpack.i.l.bf16 %v3843_v26  ;;  %v1689_v26 = vsel %vm253_vm0, %v3676_v0, %v2732_v1  ;;  %v1740_v7 = vsel %vm1734_vm3, %v1707_v2, %v2918_v15 }
 0x106   : > { %v2931_v25 = vpop.permute.xlu0 %2930  ;;  %v1690_v53 = vsel %vm253_vm0, %v3678_v3, %v2733_v4  ;;  %v2928_v0 = vunpack.i.h.bf16 %v2926_v40  ;;  %v2927_v47 = vunpack.i.l.bf16 %v2926_v40 }
 0x107   : > { %3215 = vrot.lane.b32.xlu1 %v3214_v63, %s3274_s8  ;;  %v1722_v3 = vsel %vm1701_vm2, %v1689_v26, %v2812_v49  ;;  %v1723_v14 = vsel %vm1701_vm2, %v1690_v53, %v2813_v52  ;;  %v2933_v19 = vunpack.i.h.bf16 %v2931_v25  ;;  %v2932_v16 = vunpack.i.l.bf16 %v2931_v25 }
 0x108   : > { %3220 = vrot.lane.b32.xlu0 %v3219_v31, %s3275_s9  ;;  %v1755_v31 = vsel %vm1734_vm3, %v1722_v3, %v2922_v18  ;;  %v1756_v46 = vsel %vm1734_vm3, %v1723_v14, %v2923_v24  ;;  %v1772_v43 = vsel %vm1767_vm4, %v1739_v61, %v2927_v47  ;;  %v1773_v40 = vsel %vm1767_vm4, %v1740_v7, %v2928_v0 }
 0x109   : > { %v2936_v13 = vpop.permute.xlu1 %2935  ;;  %v1788_v11 = vsel %vm1767_vm4, %v1755_v31, %v2932_v16  ;;  %v1789_v4 = vsel %vm1767_vm4, %v1756_v46, %v2933_v19  ;;  %v2698_v16 = vunpack.i.h.bf16 %v3763_v23  ;;  %v2778_v61 = vunpack.i.h.bf16 %v3818_v34 }
 0x10a   : > { %v2941_v37 = vpop.permute.xlu0 %2940  ;;  %v2938_v62 = vunpack.i.h.bf16 %v2936_v13  ;;  %v2937_v30 = vunpack.i.l.bf16 %v2936_v13 }
 0x10b   : > { %3225 = vrot.lane.b32.xlu1 %v3224_v20, %s3275_s9  ;;  %v2943_v12 = vunpack.i.h.bf16 %v2941_v37  ;;  %v2942_v39 = vunpack.i.l.bf16 %v2941_v37 }
 0x10c   : > { %3230 = vrot.lane.b32.xlu0 %v3229_v8, %s3276_s10  ;;  %v1805_v1 = vsel %vm1800_vm5, %v1772_v43, %v2937_v30  ;;  %v1806_v25 = vsel %vm1800_vm5, %v1773_v40, %v2938_v62  ;;  %v763_v8 = vld [vmem:[#allocation2 + $0x13a] sm:$0xff]  ;;  %v2697_v62 = vunpack.i.l.bf16 %v3763_v23  ;;  %v2738_v30 = vunpack.i.h.bf16 %v3791_v48 }
 0x10d   : > { %v2946_v41 = vpop.permute.xlu1 %2945  ;;  %v1821_v27 = vsel %vm1800_vm5, %v1788_v11, %v2942_v39  ;;  %v1822_v35 = vsel %vm1800_vm5, %v1789_v4, %v2943_v12  ;;  %v1922_v3 = vpack.c.bf16 %v764_v51, %v763_v8  ;;  %v2777_v12 = vunpack.i.l.bf16 %v3818_v34 }
 0x10e   : > { %v2951_v63 = vpop.permute.xlu0 %2950  ;;  %v2948_v32 = vunpack.i.h.bf16 %v2946_v41  ;;  %v2947_v59 = vunpack.i.l.bf16 %v2946_v41  ;;  %v2737_v41 = vunpack.i.l.bf16 %v3791_v48  ;;  %v1676_v23 = vsel %vm253_vm0, %v3705_v60, %v2698_v16 }
 0x10f   : > { %3235 = vrot.lane.b32.xlu1 %v3234_v33, %s3276_s10  ;;  %v2953_v17 = vunpack.i.h.bf16 %v2951_v63  ;;  %v2952_v50 = vunpack.i.l.bf16 %v2951_v63  ;;  %v1675_v48 = vsel %vm253_vm0, %v3703_v57, %v2697_v62 }
 0x110   : > { %v1838_v36 = vsel %vm1833_vm6, %v1805_v1, %v2947_v59  ;;  %v1839_v13 = vsel %vm1833_vm6, %v1806_v25, %v2948_v32  ;;  %v1692_v32 = vsel %vm253_vm0, %v3709_v10, %v2738_v30  ;;  %v1691_v34 = vsel %vm253_vm0, %v3707_v9, %v2737_v41 }
 0x111   : > { %v2956_v58 = vpop.permute.xlu1 %2955  ;;  %v1854_v26 = vsel %vm1833_vm6, %v1821_v27, %v2952_v50  ;;  %v1855_v15 = vsel %vm1833_vm6, %v1822_v35, %v2953_v17  ;;  %v1709_v59 = vsel %vm1701_vm2, %v1676_v23, %v2778_v61  ;;  %v1708_v11 = vsel %vm1701_vm2, %v1675_v48, %v2777_v12 }
 0x112   : > { %v2958_v20 = vunpack.i.h.bf16 %v2956_v58  ;;  %v2957_v52 = vunpack.i.l.bf16 %v2956_v58  ;;  %v2961_v49 = vpop.permute.xlu0 %2960 }
 0x113   : > { %v2963_v33 = vunpack.i.h.bf16 %v2961_v49  ;;  %v2962_v53 = vunpack.i.l.bf16 %v2961_v49 }
 0x114   : > { %v1871_v38 = vsel %vm1866_vm7, %v1838_v36, %v2957_v52  ;;  %v1872_v37 = vsel %vm1866_vm7, %v1839_v13, %v2958_v20 }
 0x115   : > { %v2966_v2 = vpop.permute.xlu1 %2965  ;;  %v1903_v55 = vpack.c.bf16 %v1872_v37, %v1871_v38  ;;  %v1887_v24 = vsel %vm1866_vm7, %v1854_v26, %v2962_v53  ;;  %v1888_v18 = vsel %vm1866_vm7, %v1855_v15, %v2963_v33 }
 0x116   : > { %v2971_v14 = vpop.permute.xlu0 %2970  ;;  %v1919_v0 = vpack.c.bf16 %v1888_v18, %v1887_v24  ;;  %v2968_v39 = vunpack.i.h.bf16 %v2966_v2  ;;  %v2967_v63 = vunpack.i.l.bf16 %v2966_v2 }
 0x117   : > { %2100 = vmatmul.mubr.bf16.gmra.mrb[8].mxu0 %v1903_v55  ;;  %v2973_v31 = vunpack.i.h.bf16 %v2971_v14  ;;  %v2972_v46 = vunpack.i.l.bf16 %v2971_v14 }
 0x118   : > { %2164 = vmatmul.mubr.bf16.gmra.mrb[8].mxu1 %v1919_v0  ;;  %2561 = vmatprep.mubr.msk.bf16.mxu0 %vm253_vm0, %v1906_v45  ;;  %v4141_v45 = vld [vmem:[#allocation2 + $0x9a] sm:$0xff]  ;;  %v1725_v25 = vsel %vm1701_vm2, %v1692_v32, %v2968_v39  ;;  %v1724_v10 = vsel %vm1701_vm2, %v1691_v34, %v2967_v63  ;;  %v4534_v32 = vld [vmem:[#allocation7_spill] sm:$0xff] }
 0x119   : > { %v2976_v47 = vpop.permute.xlu1 %2975  ;;  %2569 = vmatprep.mubr.msk.bf16.mxu1 %vm253_vm0, %v1922_v3  ;;  %v1908_v50 = vpack.c.bf16 %v4141_v45, %v4139_v6  ;;  %v1742_v9 = vsel %vm1734_vm3, %v1709_v59, %v2973_v31  ;;  %v1741_v58 = vsel %vm1734_vm3, %v1708_v11, %v2972_v46  ;;  %v1924_v31 = vpack.c.bf16 %v3839_v22, %v3837_v21 }
 0x11a   : > { %v2981_v19 = vpop.permute.xlu0 %2980  ;;  %v2977_v60 = vunpack.i.l.bf16 %v2976_v47  ;;  %v2978_v27 = vunpack.i.h.bf16 %v2976_v47  ;;  %v2703_v34 = vunpack.i.h.bf16 %v4534_v32  ;;  %v2702_v59 = vunpack.i.l.bf16 %v4534_v32 }
 0x11b   : > { %v2983_v43 = vunpack.i.h.bf16 %v2981_v19  ;;  %v2982_v40 = vunpack.i.l.bf16 %v2981_v19 }
 0x11c   : > { %v1757_v33 = vsel %vm1734_vm3, %v1724_v10, %v2977_v60  ;;  %v1758_v18 = vsel %vm1734_vm3, %v1725_v25, %v2978_v27  ;;  %v4536_v60 = vld [vmem:[#allocation15_spill] sm:$0xff] }
 0x11d   : > { %v2986_v7 = vpop.permute.xlu1 %2985  ;;  %v1774_v49 = vsel %vm1767_vm4, %v1741_v58, %v2982_v40  ;;  %v1775_v8 = vsel %vm1767_vm4, %v1742_v9, %v2983_v43  ;;  %v4535_v43 = vld [vmem:[#allocation11_spill] sm:$0xff]  ;;  %v2783_v22 = vunpack.i.h.bf16 %v4536_v60  ;;  %v4539_v58 = vld [vmem:[#allocation6_spill] sm:$0xff] }
 0x11e   : > { %v2991_v5 = vpop.permute.xlu0 %2990  ;;  %v2987_v35 = vunpack.i.l.bf16 %v2986_v7  ;;  %v2988_v51 = vunpack.i.h.bf16 %v2986_v7  ;;  %v2743_v40 = vunpack.i.h.bf16 %v4535_v43  ;;  %v2742_v11 = vunpack.i.l.bf16 %v4535_v43  ;;  %v4538_v10 = vld [vmem:[#allocation3_spill] sm:$0xff] }
 0x11f   : > { %v2993_v4 = vunpack.i.h.bf16 %v2991_v5  ;;  %v2992_v1 = vunpack.i.l.bf16 %v2991_v5  ;;  %v1677_v9 = vsel %vm253_vm0, %v4538_v10, %v2702_v59  ;;  %v4542_v10 = vld [vmem:[#allocation20_spill] sm:$0xff] }
 0x120   : > { %v1790_v3 = vsel %vm1767_vm4, %v1757_v33, %v2987_v35  ;;  %v1791_v47 = vsel %vm1767_vm4, %v1758_v18, %v2988_v51  ;;  %v1694_v27 = vsel %vm253_vm0, %v4539_v58, %v2743_v40 }
 0x121   : > { %v2996_v17 = vpop.permute.xlu1 %2995  ;;  %v1807_v53 = vsel %vm1800_vm5, %v1774_v49, %v2992_v1  ;;  %v1808_v26 = vsel %vm1800_vm5, %v1775_v8, %v2993_v4  ;;  %v2782_v4 = vunpack.i.l.bf16 %v4536_v60 }
 0x122   : > { %v3001_v57 = vpop.permute.xlu0 %3000  ;;  %v2997_v36 = vunpack.i.l.bf16 %v2996_v17  ;;  %v2998_v15 = vunpack.i.h.bf16 %v2996_v17 }
 0x123   : > { %v3003_v20 = vunpack.i.h.bf16 %v3001_v57  ;;  %v3002_v52 = vunpack.i.l.bf16 %v3001_v57  ;;  %v4537_v57 = vld [vmem:[#allocation4_spill] sm:$0xff]  ;;  %v1710_v49 = vsel %vm1701_vm2, %v1677_v9, %v2782_v4 }
 0x124   : > { %v1823_v19 = vsel %vm1800_vm5, %v1790_v3, %v2997_v36  ;;  %v1824_v41 = vsel %vm1800_vm5, %v1791_v47, %v2998_v15  ;;  %v1678_v25 = vsel %vm253_vm0, %v4537_v57, %v2703_v34 }
 0x125   : > { %v3006_v13 = vpop.permute.xlu1 %3005  ;;  %v1840_v14 = vsel %vm1833_vm6, %v1807_v53, %v3002_v52  ;;  %v1841_v0 = vsel %vm1833_vm6, %v1808_v26, %v3003_v20  ;;  %v4540_v20 = vld [vmem:[#allocation5_spill] sm:$0xff]  ;;  %v1910_v26 = vpack.c.bf16 %v3873_v29, %v3871_v28 }
 0x126   : > { %v3011_v38 = vpop.permute.xlu0 %3010  ;;  %v3008_v37 = vunpack.i.h.bf16 %v3006_v13  ;;  %v3007_v2 = vunpack.i.l.bf16 %v3006_v13  ;;  %v1693_v52 = vsel %vm253_vm0, %v4540_v20, %v2742_v11  ;;  %v1711_v13 = vsel %vm1701_vm2, %v1678_v25, %v2783_v22  ;;  %v4541_v25 = vld [vmem:[#allocation19_spill] sm:$0xff] }
 0x127   : > { %v3013_v55 = vunpack.i.h.bf16 %v3011_v38  ;;  %v3012_v24 = vunpack.i.l.bf16 %v3011_v38  ;;  %v1926_v9 = vpack.c.bf16 %v4542_v10, %v4541_v25 }
 0x128   : > { %v1856_v6 = vsel %vm1833_vm6, %v1823_v19, %v3007_v2  ;;  %v1857_v45 = vsel %vm1833_vm6, %v1824_v41, %v3008_v37 }
 0x129   : > { %v3016_v16 = vpop.permute.xlu1 %3015  ;;  %v1873_v62 = vsel %vm1866_vm7, %v1840_v14, %v3012_v24  ;;  %v1874_v30 = vsel %vm1866_vm7, %v1841_v0, %v3013_v55 }
 0x12a   : > { %v3018_v61 = vunpack.i.h.bf16 %v3016_v16  ;;  %v3017_v7 = vunpack.i.l.bf16 %v3016_v16  ;;  %v3021_v12 = vpop.permute.xlu0 %3020  ;;  %v1905_v5 = vpack.c.bf16 %v1874_v30, %v1873_v62 }
 0x12b   : > { %v3023_v1 = vunpack.i.h.bf16 %v3021_v12 }
 0x12c   : > { %2108 = vmatmul.mubr.bf16.gmra.mrb[12].mxu0 %v1905_v5  ;;  %v1889_v39 = vsel %vm1866_vm7, %v1856_v6, %v3017_v7  ;;  %v1890_v63 = vsel %vm1866_vm7, %v1857_v45, %v3018_v61 }
 0x12d   : > { %v3026_v46 = vpop.permute.xlu1 %3025  ;;  %v1921_v23 = vpack.c.bf16 %v1890_v63, %v1889_v39  ;;  %2562 = vmatprep.mubr.msk.bf16.mxu0 %vm253_vm0, %v1908_v50  ;;  %v3022_v50 = vunpack.i.l.bf16 %v3021_v12  ;;  %v1727_v38 = vsel %vm1701_vm2, %v1694_v27, %v3023_v1 }
 0x12e   : > { %v3031_v48 = vpop.permute.xlu0 %3030  ;;  %v3028_v8 = vunpack.i.h.bf16 %v3026_v46  ;;  %v3027_v51 = vunpack.i.l.bf16 %v3026_v46 }
 0x12f   : > { %2172 = vmatmul.mubr.bf16.gmra.mrb[12].mxu1 %v1921_v23  ;;  %v3033_v33 = vunpack.i.h.bf16 %v3031_v48  ;;  %v3032_v53 = vunpack.i.l.bf16 %v3031_v48  ;;  %v1726_v15 = vsel %vm1701_vm2, %v1693_v52, %v3022_v50  ;;  %v4543_v52 = vld [vmem:[#allocation8_spill] sm:$0xff] }
 0x130   : > { %2570 = vmatprep.mubr.msk.bf16.mxu1 %vm253_vm0, %v1924_v31  ;;  %v1743_v0 = vsel %vm1734_vm3, %v1710_v49, %v3027_v51  ;;  %v1744_v47 = vsel %vm1734_vm3, %v1711_v13, %v3028_v8  ;;  %v2708_v49 = vunpack.i.h.bf16 %v4543_v52  ;;  %v2707_v8 = vunpack.i.l.bf16 %v4543_v52  ;;  %v4544_v51 = vld [vmem:[#allocation12_spill] sm:$0xff] }
 0x131   : > { %v3036_v17 = vpop.permute.xlu1 %3035  ;;  %v1759_v28 = vsel %vm1734_vm3, %v1726_v15, %v3032_v53  ;;  %v1760_v29 = vsel %vm1734_vm3, %v1727_v38, %v3033_v33  ;;  %v2747_v13 = vunpack.i.l.bf16 %v4544_v51  ;;  %v4545_v33 = vld [vmem:[#allocation16_spill] sm:$0xff] }
 0x132   : > { %v3041_v21 = vpop.permute.xlu0 %3040  ;;  %v3038_v37 = vunpack.i.h.bf16 %v3036_v17  ;;  %v3037_v2 = vunpack.i.l.bf16 %v3036_v17  ;;  %v2788_v53 = vunpack.i.h.bf16 %v4545_v33  ;;  %v2787_v15 = vunpack.i.l.bf16 %v4545_v33 }
 0x133   : > { %v3043_v55 = vunpack.i.h.bf16 %v3041_v21  ;;  %v3042_v24 = vunpack.i.l.bf16 %v3041_v21 }
 0x134   : > { %v1776_v61 = vsel %vm1767_vm4, %v1743_v0, %v3037_v2  ;;  %v1777_v7 = vsel %vm1767_vm4, %v1744_v47, %v3038_v37  ;;  %v3250_v47 = vld [vmem:[#allocation2 + $0x140] sm:$0xff] }
 0x135   : > { %v3046_v35 = vpop.permute.xlu1 %3045  ;;  %v1792_v6 = vsel %vm1767_vm4, %v1759_v28, %v3042_v24  ;;  %v1793_v45 = vsel %vm1767_vm4, %v1760_v29, %v3043_v55 }
 0x136   : > { %v3051_v36 = vpop.permute.xlu0 %3050  ;;  %v3048_v18 = vunpack.i.h.bf16 %v3046_v35  ;;  %v3047_v3 = vunpack.i.l.bf16 %v3046_v35 }
 0x137   : > { %v3053_v19 = vunpack.i.h.bf16 %v3051_v36  ;;  %v3052_v16 = vunpack.i.l.bf16 %v3051_v36  ;;  %v2748_v36 = vunpack.i.h.bf16 %v4544_v51 }
 0x138   : > { %v1809_v39 = vsel %vm1800_vm5, %v1776_v61, %v3047_v3  ;;  %v1810_v63 = vsel %vm1800_vm5, %v1777_v7, %v3048_v18  ;;  %v3248_v18 = vld [vmem:[#allocation2 + $0x80] sm:$0xff] }
 0x139   : > { %v3056_v14 = vpop.permute.xlu1 %3055  ;;  %v1825_v46 = vsel %vm1800_vm5, %v1792_v6, %v3052_v16  ;;  %v1826_v23 = vsel %vm1800_vm5, %v1793_v45, %v3053_v19  ;;  %v1680_v3 = vsel %vm253_vm0, %v3248_v18, %v2708_v49  ;;  %v1696_v19 = vsel %vm253_vm0, %v3250_v47, %v2748_v36  ;;  %v3251_v16 = vld [vmem:[#allocation2 + $0x138] sm:$0xff]  ;;  %v4546_v18 = vld [vmem:[#allocation9_spill] sm:$0xff] }
 0x13a   : > { %v3061_v62 = vpop.permute.xlu0 %3060  ;;  %v3058_v30 = vunpack.i.h.bf16 %v3056_v14  ;;  %v3057_v41 = vunpack.i.l.bf16 %v3056_v14  ;;  %v3249_v14 = vld [vmem:[#allocation2 + $0x78] sm:$0xff]  ;;  %v1713_v28 = vsel %vm1701_vm2, %v1680_v3, %v2788_v53  ;;  %v1912_v45 = vpack.c.bf16 %v3982_v56, %v3978_v44 }
 0x13b   : > { %v3063_v12 = vunpack.i.h.bf16 %v3061_v62  ;;  %v3062_v5 = vunpack.i.l.bf16 %v3061_v62  ;;  %v1679_v0 = vsel %vm253_vm0, %v3249_v14, %v2707_v8  ;;  %v1695_v62 = vsel %vm253_vm0, %v3251_v16, %v2747_v13 }
 0x13c   : > { %v1842_v59 = vsel %vm1833_vm6, %v1809_v39, %v3057_v41  ;;  %v1843_v43 = vsel %vm1833_vm6, %v1810_v63, %v3058_v30  ;;  %v1712_v29 = vsel %vm1701_vm2, %v1679_v0, %v2787_v15  ;;  %v2713_v3 = vunpack.i.h.bf16 %v4546_v18  ;;  %v4547_v0 = vld [vmem:[#allocation13_spill] sm:$0xff] }
 0x13d   : > { %v3066_v31 = vpop.permute.xlu1 %3065  ;;  %v1858_v11 = vsel %vm1833_vm6, %v1825_v46, %v3062_v5  ;;  %v1859_v60 = vsel %vm1833_vm6, %v1826_v23, %v3063_v12  ;;  %v2712_v14 = vunpack.i.l.bf16 %v4546_v18  ;;  %v2753_v47 = vunpack.i.h.bf16 %v4547_v0  ;;  %v771_v18 = vld [vmem:[#allocation2 + $0x19a] sm:$0xff] }
 0x13e   : > { %v3068_v48 = vunpack.i.h.bf16 %v3066_v31  ;;  %v3067_v32 = vunpack.i.l.bf16 %v3066_v31  ;;  %v3071_v34 = vpop.permute.xlu0 %3070  ;;  %v2752_v16 = vunpack.i.l.bf16 %v4547_v0 }
 0x13f   : > { %v3073_v40 = vunpack.i.h.bf16 %v3071_v34  ;;  %v3072_v17 = vunpack.i.l.bf16 %v3071_v34 }
 0x140   : > { %v1875_v4 = vsel %vm1866_vm7, %v1842_v59, %v3067_v32  ;;  %v1876_v21 = vsel %vm1866_vm7, %v1843_v43, %v3068_v48 }
 0x141   : > { %v3076_v22 = vpop.permute.xlu1 %3075  ;;  %v1907_v1 = vpack.c.bf16 %v1876_v21, %v1875_v4  ;;  %v1891_v50 = vsel %vm1866_vm7, %v1858_v11, %v3072_v17  ;;  %v1892_v57 = vsel %vm1866_vm7, %v1859_v60, %v3073_v40 }
 0x142   : > { %v3081_v58 = vpop.permute.xlu0 %3080  ;;  %v1923_v27 = vpack.c.bf16 %v1892_v57, %v1891_v50  ;;  %v3078_v2 = vunpack.i.h.bf16 %v3076_v22 }
 0x143   : > { %2116 = vmatmul.mubr.bf16.gmra.mrb[16].mxu0 %v1907_v1  ;;  %v3083_v55 = vunpack.i.h.bf16 %v3081_v58  ;;  %v3082_v24 = vunpack.i.l.bf16 %v3081_v58 }
 0x144   : > { %2180 = vmatmul.mubr.bf16.gmra.mrb[16].mxu1 %v1923_v27  ;;  %2563 = vmatprep.mubr.msk.bf16.mxu0 %vm253_vm0, %v1910_v26  ;;  %v3077_v26 = vunpack.i.l.bf16 %v3076_v22  ;;  %v1729_v39 = vsel %vm1701_vm2, %v1696_v19, %v3078_v2  ;;  %v1928_v2 = vpack.c.bf16 %v4052_v54, %v4050_v42 }
 0x145   : > { %v3086_v35 = vpop.permute.xlu1 %3085  ;;  %2571 = vmatprep.mubr.msk.bf16.mxu1 %vm253_vm0, %v1926_v9  ;;  %v1746_v31 = vsel %vm1734_vm3, %v1713_v28, %v3083_v55  ;;  %v1745_v46 = vsel %vm1734_vm3, %v1712_v29, %v3082_v24 }
 0x146   : > { %v3091_v20 = vpop.permute.xlu0 %3090  ;;  %v3087_v7 = vunpack.i.l.bf16 %v3086_v35  ;;  %v1728_v63 = vsel %vm1701_vm2, %v1695_v62, %v3077_v26  ;;  %v3088_v23 = vunpack.i.h.bf16 %v3086_v35  ;;  %v4548_v62 = vld [vmem:[#allocation17_spill] sm:$0xff] }
 0x147   : > { %v3093_v30 = vunpack.i.h.bf16 %v3091_v20  ;;  %v3092_v41 = vunpack.i.l.bf16 %v3091_v20  ;;  %v2792_v28 = vunpack.i.l.bf16 %v4548_v62  ;;  %v2793_v54 = vunpack.i.h.bf16 %v4548_v62 }
 0x148   : > { %v1761_v44 = vsel %vm1734_vm3, %v1728_v63, %v3087_v7  ;;  %v1762_v25 = vsel %vm1734_vm3, %v1729_v39, %v3088_v23  ;;  %v3252_v7 = vld [vmem:[#allocation2 + $0x98] sm:$0xff] }
 0x149   : > { %v3096_v38 = vpop.permute.xlu1 %3095  ;;  %v1778_v59 = vsel %vm1767_vm4, %v1745_v46, %v3092_v41  ;;  %v1779_v43 = vsel %vm1767_vm4, %v1746_v31, %v3093_v30  ;;  %v4271_v41 = vld [vmem:[#allocation2 + $0xda] sm:$0xff]  ;;  %v3255_v31 = vld [vmem:[#allocation2 + $0x150] sm:$0xff] }
 0x14a   : > { %v3101_v37 = vpop.permute.xlu0 %3100  ;;  %v3097_v48 = vunpack.i.l.bf16 %v3096_v38  ;;  %v3098_v40 = vunpack.i.h.bf16 %v3096_v38  ;;  %v1697_v46 = vsel %vm253_vm0, %v3255_v31, %v2752_v16  ;;  %v4550_v31 = vld [vmem:[#allocation14_spill] sm:$0xff] }
 0x14b   : > { %v3103_v12 = vunpack.i.h.bf16 %v3101_v37  ;;  %v3102_v5 = vunpack.i.l.bf16 %v3101_v37 }
 0x14c   : > { %v1794_v10 = vsel %vm1767_vm4, %v1761_v44, %v3097_v48  ;;  %v1795_v27 = vsel %vm1767_vm4, %v1762_v25, %v3098_v40 }
 0x14d   : > { %v3106_v61 = vpop.permute.xlu1 %3105  ;;  %v1811_v56 = vsel %vm1800_vm5, %v1778_v59, %v3102_v5  ;;  %v1812_v60 = vsel %vm1800_vm5, %v1779_v43, %v3103_v12  ;;  %v1682_v12 = vsel %vm253_vm0, %v3252_v7, %v2713_v3  ;;  %v3253_v5 = vld [vmem:[#allocation2 + $0x90] sm:$0xff]  ;;  %v772_v3 = vld [vmem:[#allocation2 + $0x1a2] sm:$0xff] }
 0x14e   : > { %v3111_v6 = vpop.permute.xlu0 %3110  ;;  %v3107_v17 = vunpack.i.l.bf16 %v3106_v61  ;;  %v3108_v4 = vunpack.i.h.bf16 %v3106_v61  ;;  %v4273_v61 = vld [vmem:[#allocation2 + $0xe2] sm:$0xff]  ;;  %v1715_v59 = vsel %vm1701_vm2, %v1682_v12, %v2793_v54 }
 0x14f   : > { %v3113_v32 = vunpack.i.h.bf16 %v3111_v6  ;;  %v3112_v34 = vunpack.i.l.bf16 %v3111_v6  ;;  %v1681_v6 = vsel %vm253_vm0, %v3253_v5, %v2712_v14 }
 0x150   : > { %v1827_v35 = vsel %vm1800_vm5, %v1794_v10, %v3107_v17  ;;  %v1828_v8 = vsel %vm1800_vm5, %v1795_v27, %v3108_v4  ;;  %v1714_v23 = vsel %vm1701_vm2, %v1681_v6, %v2792_v28  ;;  %v1914_v17 = vpack.c.bf16 %v4273_v61, %v4271_v41 }
 0x151   : > { %v3116_v11 = vpop.permute.xlu1 %3115  ;;  %v1844_v9 = vsel %vm1833_vm6, %v1811_v56, %v3112_v34  ;;  %v1845_v58 = vsel %vm1833_vm6, %v1812_v60, %v3113_v32  ;;  %v1930_v61 = vpack.c.bf16 %v772_v3, %v771_v18 }
 0x152   : > { %v3121_v21 = vpop.permute.xlu0 %3120  ;;  %v3118_v22 = vunpack.i.h.bf16 %v3116_v11  ;;  %v3117_v1 = vunpack.i.l.bf16 %v3116_v11 }
 0x153   : > { %v3123_v50 = vunpack.i.h.bf16 %v3121_v21  ;;  %v3122_v57 = vunpack.i.l.bf16 %v3121_v21 }
 0x154   : > { %v1860_v53 = vsel %vm1833_vm6, %v1827_v35, %v3117_v1  ;;  %v1861_v15 = vsel %vm1833_vm6, %v1828_v8, %v3118_v22 }
 0x155   : > { %v3126_v20 = vpop.permute.xlu1 %3125  ;;  %v1877_v52 = vsel %vm1866_vm7, %v1844_v9, %v3122_v57  ;;  %v1878_v49 = vsel %vm1866_vm7, %v1845_v58, %v3123_v50 }
 0x156   : > { %v3128_v51 = vunpack.i.h.bf16 %v3126_v20  ;;  %v3127_v36 = vunpack.i.l.bf16 %v3126_v20  ;;  %v3131_v13 = vpop.permute.xlu0 %3130  ;;  %v1909_v33 = vpack.c.bf16 %v1878_v49, %v1877_v52 }
 0x157   : > { %v3133_v29 = vunpack.i.h.bf16 %v3131_v13  ;;  %v3132_v30 = vunpack.i.l.bf16 %v3131_v13 }
 0x158   : > { %2124 = vmatmul.mubr.bf16.gmra.mrb[20].mxu0 %v1909_v33  ;;  %v1893_v38 = vsel %vm1866_vm7, %v1860_v53, %v3127_v36  ;;  %v1894_v37 = vsel %vm1866_vm7, %v1861_v15, %v3128_v51 }
 0x159   : > { %v3136_v26 = vpop.permute.xlu1 %3135  ;;  %v1925_v55 = vpack.c.bf16 %v1894_v37, %v1893_v38  ;;  %2564 = vmatprep.mubr.msk.bf16.mxu0 %vm253_vm0, %v1912_v45  ;;  %v3254_v45 = vld [vmem:[#allocation2 + $0x158] sm:$0xff]  ;;  %v1730_v11 = vsel %vm1701_vm2, %v1697_v46, %v3132_v30  ;;  %v2758_v46 = vunpack.i.h.bf16 %v4550_v31 }
 0x15a   : > { %v3141_v24 = vpop.permute.xlu0 %3140  ;;  %v1698_v39 = vsel %vm253_vm0, %v3254_v45, %v2753_v47  ;;  %v3138_v48 = vunpack.i.h.bf16 %v3136_v26  ;;  %v3137_v32 = vunpack.i.l.bf16 %v3136_v26  ;;  %v4549_v45 = vld [vmem:[#allocation10_spill] sm:$0xff] }
 0x15b   : > { %2188 = vmatmul.mubr.bf16.gmra.mrb[20].mxu1 %v1925_v55  ;;  %v3143_v43 = vunpack.i.h.bf16 %v3141_v24  ;;  %v3142_v40 = vunpack.i.l.bf16 %v3141_v24  ;;  %v1731_v44 = vsel %vm1701_vm2, %v1698_v39, %v3133_v29  ;;  %v2718_v39 = vunpack.i.h.bf16 %v4549_v45 }
 0x15c   : > { %2572 = vmatprep.mubr.msk.bf16.mxu1 %vm253_vm0, %v1928_v2  ;;  %v1747_v57 = vsel %vm1734_vm3, %v1714_v23, %v3137_v32  ;;  %v1748_v25 = vsel %vm1734_vm3, %v1715_v59, %v3138_v48  ;;  %v2757_v23 = vunpack.i.l.bf16 %v4550_v31  ;;  %v4551_v48 = vld [vmem:[#allocation18_spill] sm:$0xff] }
 0x15d   : > { %v3146_v19 = vpop.permute.xlu1 %3145  ;;  %v1763_v27 = vsel %vm1734_vm3, %v1730_v11, %v3142_v40  ;;  %v1764_v35 = vsel %vm1734_vm3, %v1731_v44, %v3143_v43  ;;  %v2798_v32 = vunpack.i.h.bf16 %v4551_v48  ;;  %v2797_v59 = vunpack.i.l.bf16 %v4551_v48 }
 0x15e   : > { %v3151_v42 = vpop.permute.xlu0 %3150  ;;  %v3148_v56 = vunpack.i.h.bf16 %v3146_v19  ;;  %v3147_v60 = vunpack.i.l.bf16 %v3146_v19 }
 0x15f   : > { %v3153_v4 = vunpack.i.h.bf16 %v3151_v42  ;;  %v3152_v21 = vunpack.i.l.bf16 %v3151_v42 }
 0x160   : > { %v1780_v49 = vsel %vm1767_vm4, %v1747_v57, %v3147_v60  ;;  %v1781_v8 = vsel %vm1767_vm4, %v1748_v25, %v3148_v56  ;;  %v3256_v56 = vld [vmem:[#allocation2 + $0xb0] sm:$0xff] }
 0x161   : > { %v3156_v63 = vpop.permute.xlu1 %3155  ;;  %v1796_v13 = vsel %vm1767_vm4, %v1763_v27, %v3152_v21  ;;  %v1797_v33 = vsel %vm1767_vm4, %v1764_v35, %v3153_v4  ;;  %v1684_v60 = vsel %vm253_vm0, %v3256_v56, %v2718_v39  ;;  %v3257_v4 = vld [vmem:[#allocation2 + $0xa8] sm:$0xff] }
 0x162   : > { %v3161_v34 = vpop.permute.xlu0 %3160  ;;  %v3158_v22 = vunpack.i.h.bf16 %v3156_v63  ;;  %v3157_v1 = vunpack.i.l.bf16 %v3156_v63  ;;  %v2717_v63 = vunpack.i.l.bf16 %v4549_v45  ;;  %v1717_v25 = vsel %vm1701_vm2, %v1684_v60, %v2798_v32 }
 0x163   : > { %v3163_v10 = vunpack.i.h.bf16 %v3161_v34  ;;  %v3162_v9 = vunpack.i.l.bf16 %v3161_v34 }
 0x164   : > { %v1813_v53 = vsel %vm1800_vm5, %v1780_v49, %v3157_v1  ;;  %v1814_v15 = vsel %vm1800_vm5, %v1781_v8, %v3158_v22  ;;  %v1683_v21 = vsel %vm253_vm0, %v3257_v4, %v2717_v63  ;;  %v3258_v22 = vld [vmem:[#allocation2 + $0x170] sm:$0xff] }
 0x165   : > { %v3166_v50 = vpop.permute.xlu1 %3165  ;;  %v1829_v37 = vsel %vm1800_vm5, %v1796_v13, %v3162_v9  ;;  %v1830_v2 = vsel %vm1800_vm5, %v1797_v33, %v3163_v10  ;;  %v1700_v1 = vsel %vm253_vm0, %v3258_v22, %v2758_v46  ;;  %v1716_v27 = vsel %vm1701_vm2, %v1683_v21, %v2797_v59 }
 0x166   : > { %v3171_v58 = vpop.permute.xlu0 %3170  ;;  %v3168_v20 = vunpack.i.h.bf16 %v3166_v50  ;;  %v3167_v52 = vunpack.i.l.bf16 %v3166_v50  ;;  %v3259_v50 = vld [vmem:[#allocation2 + $0x168] sm:$0xff] }
 0x167   : > { %v3173_v51 = vunpack.i.h.bf16 %v3171_v58  ;;  %v3172_v36 = vunpack.i.l.bf16 %v3171_v58  ;;  %v1699_v57 = vsel %vm253_vm0, %v3259_v50, %v2757_v23 }
 0x168   : > { %v1846_v14 = vsel %vm1833_vm6, %v1813_v53, %v3167_v52  ;;  %v1847_v0 = vsel %vm1833_vm6, %v1814_v15, %v3168_v20 }
 0x169   : > { %v3176_v38 = vpop.permute.xlu1 %3175  ;;  %v1862_v16 = vsel %vm1833_vm6, %v1829_v37, %v3172_v36  ;;  %v1863_v62 = vsel %vm1833_vm6, %v1830_v2, %v3173_v51 }
 0x16a   : > { %v3178_v26 = vunpack.i.h.bf16 %v3176_v38  ;;  %v3177_v55 = vunpack.i.l.bf16 %v3176_v38  ;;  %v3181_v24 = vpop.permute.xlu0 %3180 }
 0x16b   : > { %v3183_v47 = vunpack.i.h.bf16 %v3181_v24  ;;  %v3182_v19 = vunpack.i.l.bf16 %v3181_v24 }
 0x16c   : > { %v1879_v28 = vsel %vm1866_vm7, %v1846_v14, %v3177_v55  ;;  %v1880_v42 = vsel %vm1866_vm7, %v1847_v0, %v3178_v26 }
 0x16d   : > { %v3186_v54 = vpop.permute.xlu1 %3185  ;;  %v1911_v29 = vpack.c.bf16 %v1880_v42, %v1879_v28  ;;  %v1895_v30 = vsel %vm1866_vm7, %v1862_v16, %v3182_v19  ;;  %v1896_v41 = vsel %vm1866_vm7, %v1863_v62, %v3183_v47 }
 0x16e   : > { %v3191_v7 = vpop.permute.xlu0 %3190  ;;  %v1927_v12 = vpack.c.bf16 %v1896_v41, %v1895_v30  ;;  %v3188_v40 = vunpack.i.h.bf16 %v3186_v54 }
 0x16f   : > { %2132 = vmatmul.mubr.bf16.gmra.mrb[24].mxu0 %v1911_v29  ;;  %v3193_v11 = vunpack.i.h.bf16 %v3191_v7  ;;  %v3192_v44 = vunpack.i.l.bf16 %v3191_v7 }
 0x170   : > { %2196 = vmatmul.mubr.bf16.gmra.mrb[24].mxu1 %v1927_v12  ;;  %2565 = vmatprep.mubr.msk.bf16.mxu0 %vm253_vm0, %v1914_v17  ;;  %v3187_v17 = vunpack.i.l.bf16 %v3186_v54  ;;  %v1733_v8 = vsel %vm1701_vm2, %v1700_v1, %v3188_v40 }
 0x171   : > { %v3196_v5 = vpop.permute.xlu1 %3195  ;;  %2573 = vmatprep.mubr.msk.bf16.mxu1 %vm253_vm0, %v1930_v61  ;;  %v1750_v36 = vsel %vm1734_vm3, %v1717_v25, %v3193_v11  ;;  %v1749_v13 = vsel %vm1734_vm3, %v1716_v27, %v3192_v44 }
 0x172   : > { %v3201_v6 = vpop.permute.xlu0 %3200  ;;  %v3197_v35 = vunpack.i.l.bf16 %v3196_v5  ;;  %v1732_v51 = vsel %vm1701_vm2, %v1699_v57, %v3187_v17  ;;  %v3198_v33 = vunpack.i.h.bf16 %v3196_v5 }
 0x173   : > { %v3203_v10 = vunpack.i.h.bf16 %v3201_v6  ;;  %v3202_v9 = vunpack.i.l.bf16 %v3201_v6 }
 0x174   : > { %v1765_v18 = vsel %vm1734_vm3, %v1732_v51, %v3197_v35  ;;  %v1766_v42 = vsel %vm1734_vm3, %v1733_v8, %v3198_v33 }
 0x175   : > { %v3206_v34 = vpop.permute.xlu1 %3205  ;;  %v1782_v37 = vsel %vm1767_vm4, %v1749_v13, %v3202_v9  ;;  %v1783_v2 = vsel %vm1767_vm4, %v1750_v36, %v3203_v10 }
 0x176   : > { %v3211_v43 = vpop.permute.xlu0 %3210  ;;  %v3207_v53 = vunpack.i.l.bf16 %v3206_v34  ;;  %v3208_v26 = vunpack.i.h.bf16 %v3206_v34  ;;  %v4344_v34 = vld [vmem:[%s4492_s4] ss:$0 sm:$0xff] }
 0x177   : > { %v3213_v20 = vunpack.i.h.bf16 %v3211_v43  ;;  %v3212_v52 = vunpack.i.l.bf16 %v3211_v43  ;;  %v4349_v43 = vld [vmem:[%s4493_s5] ss:$0 sm:$0xff] }
 0x178   : > { %v1798_v54 = vsel %vm1767_vm4, %v1765_v18, %v3207_v53  ;;  %v1799_v41 = vsel %vm1767_vm4, %v1766_v42, %v3208_v26 }
 0x179   : > { %v3216_v58 = vpop.permute.xlu1 %3215  ;;  %v1815_v3 = vsel %vm1800_vm5, %v1782_v37, %v3212_v52  ;;  %v1816_v14 = vsel %vm1800_vm5, %v1783_v2, %v3213_v20 }
 0x17a   : > { %v3221_v49 = vpop.permute.xlu0 %3220  ;;  %v3217_v55 = vunpack.i.l.bf16 %v3216_v58  ;;  %v3218_v0 = vunpack.i.h.bf16 %v3216_v58 }
 0x17b   : > { %v3223_v15 = vunpack.i.h.bf16 %v3221_v49  ;;  %v3222_v38 = vunpack.i.l.bf16 %v3221_v49 }
 0x17c   : > { %v1831_v61 = vsel %vm1800_vm5, %v1798_v54, %v3217_v55  ;;  %v1832_v6 = vsel %vm1800_vm5, %v1799_v41, %v3218_v0 }
 0x17d   : > { %v3226_v24 = vpop.permute.xlu1 %3225  ;;  %v1848_v29 = vsel %vm1833_vm6, %v1815_v3, %v3222_v38  ;;  %v1849_v30 = vsel %vm1833_vm6, %v1816_v14, %v3223_v15 }
 0x17e   : > { %v3231_v47 = vpop.permute.xlu0 %3230  ;;  %v3228_v19 = vunpack.i.h.bf16 %v3226_v24  ;;  %v3227_v16 = vunpack.i.l.bf16 %v3226_v24 }
 0x17f   : > { %v3233_v62 = vunpack.i.h.bf16 %v3231_v47  ;;  %v3232_v28 = vunpack.i.l.bf16 %v3231_v47 }
 0x180   : > { %v1864_v31 = vsel %vm1833_vm6, %v1831_v61, %v3227_v16  ;;  %v1865_v46 = vsel %vm1833_vm6, %v1832_v6, %v3228_v19 }
 0x181   : > { %v3236_v7 = vpop.permute.xlu1 %3235  ;;  %v1881_v12 = vsel %vm1866_vm7, %v1848_v29, %v3232_v28  ;;  %v1882_v5 = vsel %vm1866_vm7, %v1849_v30, %v3233_v62 }
 0x182   : > { %v3238_v45 = vunpack.i.h.bf16 %v3236_v7  ;;  %v3237_v39 = vunpack.i.l.bf16 %v3236_v7  ;;  %v1913_v63 = vpack.c.bf16 %v1882_v5, %v1881_v12 }
 0x184   : > { %2140 = vmatmul.mubr.bf16.gmra.mrb[28].mxu0 %v1913_v63  ;;  %v1897_v23 = vsel %vm1866_vm7, %v1864_v31, %v3237_v39  ;;  %v1898_v48 = vsel %vm1866_vm7, %v1865_v46, %v3238_v45 }
 0x185   : > { %v1929_v32 = vpack.c.bf16 %v1898_v48, %v1897_v23 }
 0x187   : > { %2204 = vmatmul.mubr.bf16.gmra.mrb[28].mxu1 %v1929_v32 }
 0x1c2   : > { %v2085_v59 = vpop.f32.mrb[0].mxu0 }
 0x1c3   : > { %v2219_v40 = vmul.f32 %v4344_v34, %v2085_v59  ;;  %v2149_v17 = vpop.f32.mrb[0].mxu1  ;;  %v2087_v11 = vpop.f32.mrb[1].mxu0 }
 0x1c4   : > { %v2235_v44 = vmul.f32 %v4344_v34, %v2149_v17  ;;  %v2151_v56 = vpop.f32.mrb[1].mxu1  ;;  %v2088_v60 = vpop.f32.mrb[2].mxu0 }
 0x1c5   : > { %v2258_v4 = vadd.f32 %v4349_v43, %v2219_v40  ;;  %v2220_v21 = vmul.f32 %v4344_v34, %v2088_v60  ;;  %v2152_v22 = vpop.f32.mrb[2].mxu1  ;;  %v2090_v1 = vpop.f32.mrb[3].mxu0 }
 0x1c6   : > { %v2274_v50 = vadd.f32 %v4349_v43, %v2235_v44  ;;  %v2236_v57 = vmul.f32 %v4344_v34, %v2152_v22  ;;  %v2154_v25 = vpop.f32.mrb[3].mxu1 }
 0x1c7   : > { %v2290_v10 = vmax.f32 %v2258_v4, 0.0  ;;  %v2259_v9 = vadd.f32 %v4349_v43, %v2220_v21 }
 0x1c8   : > { %v2306_v58 = vmax.f32 %v2274_v50, 0.0  ;;  %v2275_v27 = vadd.f32 %v4349_v43, %v2236_v57 }
 0x1c9   : > { %v2612_v35 = vpack.c.bf16 %v2290_v10, %v2290_v10  ;;  %v2291_v20 = vmax.f32 %v2259_v9, 0.0 }
 0x1ca   : > { %v2628_v52 = vpack.c.bf16 %v2306_v58, %v2306_v58  ;;  %v2307_v49 = vmax.f32 %v2275_v27, 0.0 }
 0x1cb   : > { %2451 = vst.msk [vmem:[%s4362_s18] sm:$0xf] %vm2450_vm8, %v2612_v35  ;;  %v2613_v8 = vpack.c.bf16 %v2291_v20, %v2291_v20 }
 0x1cc   : > { %2467 = vst.msk [vmem:[%s4362_s18 + $0x40] sm:$0xf] %vm2450_vm8, %v2628_v52  ;;  %v2629_v51 = vpack.c.bf16 %v2307_v49, %v2307_v49 }
 0x1cd   : > { %2452 = vst.msk [vmem:[%s4362_s18 + $0x4] sm:$0xf] %vm2450_vm8, %v2613_v8 }
 0x1ce   : > { %2468 = vst.msk [vmem:[%s4362_s18 + $0x44] sm:$0xf] %vm2450_vm8, %v2629_v51 }
 0x1d6   : > { %v2093_v36 = vpop.f32.mrb[4].mxu0 }
 0x1d7   : > { %v2221_v13 = vmul.f32 %v4344_v34, %v2093_v36  ;;  %v2157_v33 = vpop.f32.mrb[4].mxu1  ;;  %v2095_v53 = vpop.f32.mrb[5].mxu0 }
 0x1d8   : > { %v2237_v15 = vmul.f32 %v4344_v34, %v2157_v33  ;;  %v2159_v38 = vpop.f32.mrb[5].mxu1  ;;  %v2096_v37 = vpop.f32.mrb[6].mxu0 }
 0x1d9   : > { %v2260_v2 = vadd.f32 %v4349_v43, %v2221_v13  ;;  %v2222_v26 = vmul.f32 %v4344_v34, %v2096_v37  ;;  %v2160_v55 = vpop.f32.mrb[6].mxu1  ;;  %v2098_v24 = vpop.f32.mrb[7].mxu0 }
 0x1da   : > { %v2276_v18 = vadd.f32 %v4349_v43, %v2237_v15  ;;  %v2238_v3 = vmul.f32 %v4344_v34, %v2160_v55  ;;  %v2162_v14 = vpop.f32.mrb[7].mxu1 }
 0x1db   : > { %v2292_v0 = vmax.f32 %v2260_v2, 0.0  ;;  %v2261_v47 = vadd.f32 %v4349_v43, %v2222_v26 }
 0x1dc   : > { %v2308_v19 = vmax.f32 %v2276_v18, 0.0  ;;  %v2277_v16 = vadd.f32 %v4349_v43, %v2238_v3 }
 0x1dd   : > { %v2614_v62 = vpack.c.bf16 %v2292_v0, %v2292_v0  ;;  %v2293_v28 = vmax.f32 %v2261_v47, 0.0 }
 0x1de   : > { %v2630_v42 = vpack.c.bf16 %v2308_v19, %v2308_v19  ;;  %v2309_v54 = vmax.f32 %v2277_v16, 0.0 }
 0x1df   : > { %2453 = vst.msk [vmem:[%s4362_s18 + $0x8] sm:$0xf] %vm2450_vm8, %v2614_v62  ;;  %v2615_v29 = vpack.c.bf16 %v2293_v28, %v2293_v28 }
 0x1e0   : > { %2469 = vst.msk [vmem:[%s4362_s18 + $0x48] sm:$0xf] %vm2450_vm8, %v2630_v42  ;;  %v2631_v30 = vpack.c.bf16 %v2309_v54, %v2309_v54 }
 0x1e1   : > { %2454 = vst.msk [vmem:[%s4362_s18 + $0xc] sm:$0xf] %vm2450_vm8, %v2615_v29 }
 0x1e2   : > { %2470 = vst.msk [vmem:[%s4362_s18 + $0x4c] sm:$0xf] %vm2450_vm8, %v2631_v30 }
 0x1ea   : > { %v2101_v41 = vpop.f32.mrb[8].mxu0 }
 0x1eb   : > { %v2223_v61 = vmul.f32 %v4344_v34, %v2101_v41  ;;  %v2165_v7 = vpop.f32.mrb[8].mxu1  ;;  %v2103_v12 = vpop.f32.mrb[9].mxu0 }
 0x1ec   : > { %v2239_v5 = vmul.f32 %v4344_v34, %v2165_v7  ;;  %v2167_v6 = vpop.f32.mrb[9].mxu1  ;;  %v2104_v45 = vpop.f32.mrb[10].mxu0 }
 0x1ed   : > { %v2262_v39 = vadd.f32 %v4349_v43, %v2223_v61  ;;  %v2224_v63 = vmul.f32 %v4344_v34, %v2104_v45  ;;  %v2168_v31 = vpop.f32.mrb[10].mxu1  ;;  %v2106_v46 = vpop.f32.mrb[11].mxu0 }
 0x1ee   : > { %v2278_v23 = vadd.f32 %v4349_v43, %v2239_v5  ;;  %v2240_v48 = vmul.f32 %v4344_v34, %v2168_v31  ;;  %v2170_v32 = vpop.f32.mrb[11].mxu1 }
 0x1ef   : > { %v2294_v59 = vmax.f32 %v2262_v39, 0.0  ;;  %v2263_v40 = vadd.f32 %v4349_v43, %v2224_v63 }
 0x1f0   : > { %v2310_v17 = vmax.f32 %v2278_v23, 0.0  ;;  %v2279_v11 = vadd.f32 %v4349_v43, %v2240_v48 }
 0x1f1   : > { %v2616_v44 = vpack.c.bf16 %v2294_v59, %v2294_v59  ;;  %v2295_v56 = vmax.f32 %v2263_v40, 0.0 }
 0x1f2   : > { %v2632_v60 = vpack.c.bf16 %v2310_v17, %v2310_v17  ;;  %v2311_v4 = vmax.f32 %v2279_v11, 0.0 }
 0x1f3   : > { %2455 = vst.msk [vmem:[%s4362_s18 + $0x10] sm:$0xf] %vm2450_vm8, %v2616_v44  ;;  %v2617_v21 = vpack.c.bf16 %v2295_v56, %v2295_v56 }
 0x1f4   : > { %2471 = vst.msk [vmem:[%s4362_s18 + $0x50] sm:$0xf] %vm2450_vm8, %v2632_v60  ;;  %v2633_v22 = vpack.c.bf16 %v2311_v4, %v2311_v4 }
 0x1f5   : > { %2456 = vst.msk [vmem:[%s4362_s18 + $0x14] sm:$0xf] %vm2450_vm8, %v2617_v21 }
 0x1f6   : > { %2472 = vst.msk [vmem:[%s4362_s18 + $0x54] sm:$0xf] %vm2450_vm8, %v2633_v22 }
 0x1ff   : > { %v2109_v1 = vpop.f32.mrb[12].mxu0 }
 0x200   : > { %v2225_v50 = vmul.f32 %v4344_v34, %v2109_v1  ;;  %v2111_v57 = vpop.f32.mrb[13].mxu0 }
 0x201   : > { %v2112_v25 = vpop.f32.mrb[14].mxu0 }
 0x202   : > { %v2264_v10 = vadd.f32 %v4349_v43, %v2225_v50  ;;  %v2226_v9 = vmul.f32 %v4344_v34, %v2112_v25  ;;  %v2114_v58 = vpop.f32.mrb[15].mxu0  ;;  %v2173_v27 = vpop.f32.mrb[12].mxu1 }
 0x203   : > { %v2241_v35 = vmul.f32 %v4344_v34, %v2173_v27  ;;  %v2175_v20 = vpop.f32.mrb[13].mxu1 }
 0x204   : > { %v2296_v52 = vmax.f32 %v2264_v10, 0.0  ;;  %v2265_v49 = vadd.f32 %v4349_v43, %v2226_v9  ;;  %v2176_v8 = vpop.f32.mrb[14].mxu1 }
 0x205   : > { %v2280_v51 = vadd.f32 %v4349_v43, %v2241_v35  ;;  %v2242_v36 = vmul.f32 %v4344_v34, %v2176_v8  ;;  %v2178_v13 = vpop.f32.mrb[15].mxu1 }
 0x206   : > { %v2618_v33 = vpack.c.bf16 %v2296_v52, %v2296_v52  ;;  %v2297_v53 = vmax.f32 %v2265_v49, 0.0 }
 0x207   : > { %v2312_v15 = vmax.f32 %v2280_v51, 0.0  ;;  %v2281_v38 = vadd.f32 %v4349_v43, %v2242_v36 }
 0x208   : > { %2457 = vst.msk [vmem:[%s4362_s18 + $0x18] sm:$0xf] %vm2450_vm8, %v2618_v33  ;;  %v2619_v37 = vpack.c.bf16 %v2297_v53, %v2297_v53 }
 0x209   : > { %v2634_v2 = vpack.c.bf16 %v2312_v15, %v2312_v15  ;;  %v2313_v26 = vmax.f32 %v2281_v38, 0.0 }
 0x20a   : > { %2458 = vst.msk [vmem:[%s4362_s18 + $0x1c] sm:$0xf] %vm2450_vm8, %v2619_v37 }
 0x20b   : > { %2473 = vst.msk [vmem:[%s4362_s18 + $0x58] sm:$0xf] %vm2450_vm8, %v2634_v2  ;;  %v2635_v55 = vpack.c.bf16 %v2313_v26, %v2313_v26 }
 0x20d   : > { %2474 = vst.msk [vmem:[%s4362_s18 + $0x5c] sm:$0xf] %vm2450_vm8, %v2635_v55 }
 0x216   : > { %v2117_v24 = vpop.f32.mrb[16].mxu0 }
 0x217   : > { %v2227_v18 = vmul.f32 %v4344_v34, %v2117_v24  ;;  %v2181_v3 = vpop.f32.mrb[16].mxu1  ;;  %v2119_v14 = vpop.f32.mrb[17].mxu0 }
 0x218   : > { %v2243_v0 = vmul.f32 %v4344_v34, %v2181_v3  ;;  %v2183_v47 = vpop.f32.mrb[17].mxu1  ;;  %v2120_v19 = vpop.f32.mrb[18].mxu0 }
 0x219   : > { %v2266_v16 = vadd.f32 %v4349_v43, %v2227_v18  ;;  %v2228_v62 = vmul.f32 %v4344_v34, %v2120_v19  ;;  %v2184_v28 = vpop.f32.mrb[18].mxu1  ;;  %v2122_v42 = vpop.f32.mrb[19].mxu0 }
 0x21a   : > { %v2282_v54 = vadd.f32 %v4349_v43, %v2243_v0  ;;  %v2244_v29 = vmul.f32 %v4344_v34, %v2184_v28  ;;  %v2186_v30 = vpop.f32.mrb[19].mxu1 }
 0x21b   : > { %v2298_v41 = vmax.f32 %v2266_v16, 0.0  ;;  %v2267_v61 = vadd.f32 %v4349_v43, %v2228_v62 }
 0x21c   : > { %v2314_v7 = vmax.f32 %v2282_v54, 0.0  ;;  %v2283_v12 = vadd.f32 %v4349_v43, %v2244_v29 }
 0x21d   : > { %v2620_v5 = vpack.c.bf16 %v2298_v41, %v2298_v41  ;;  %v2299_v6 = vmax.f32 %v2267_v61, 0.0 }
 0x21e   : > { %v2636_v45 = vpack.c.bf16 %v2314_v7, %v2314_v7  ;;  %v2315_v39 = vmax.f32 %v2283_v12, 0.0 }
 0x21f   : > { %2459 = vst.msk [vmem:[%s4362_s18 + $0x20] sm:$0xf] %vm2450_vm8, %v2620_v5  ;;  %v2621_v63 = vpack.c.bf16 %v2299_v6, %v2299_v6 }
 0x220   : > { %2475 = vst.msk [vmem:[%s4362_s18 + $0x60] sm:$0xf] %vm2450_vm8, %v2636_v45  ;;  %v2637_v31 = vpack.c.bf16 %v2315_v39, %v2315_v39 }
 0x221   : > { %2460 = vst.msk [vmem:[%s4362_s18 + $0x24] sm:$0xf] %vm2450_vm8, %v2621_v63 }
 0x222   : > { %2476 = vst.msk [vmem:[%s4362_s18 + $0x64] sm:$0xf] %vm2450_vm8, %v2637_v31 }
 0x22b   : > { %v2125_v46 = vpop.f32.mrb[20].mxu0 }
 0x22c   : > { %v2229_v23 = vmul.f32 %v4344_v34, %v2125_v46  ;;  %v2127_v48 = vpop.f32.mrb[21].mxu0 }
 0x22d   : > { %v2128_v32 = vpop.f32.mrb[22].mxu0 }
 0x22e   : > { %v2268_v59 = vadd.f32 %v4349_v43, %v2229_v23  ;;  %v2230_v40 = vmul.f32 %v4344_v34, %v2128_v32  ;;  %v2130_v17 = vpop.f32.mrb[23].mxu0  ;;  %v2189_v11 = vpop.f32.mrb[20].mxu1 }
 0x22f   : > { %v2245_v44 = vmul.f32 %v4344_v34, %v2189_v11  ;;  %v2191_v56 = vpop.f32.mrb[21].mxu1 }
 0x230   : > { %v2300_v60 = vmax.f32 %v2268_v59, 0.0  ;;  %v2269_v4 = vadd.f32 %v4349_v43, %v2230_v40  ;;  %v2192_v21 = vpop.f32.mrb[22].mxu1 }
 0x231   : > { %v2284_v22 = vadd.f32 %v4349_v43, %v2245_v44  ;;  %v2246_v1 = vmul.f32 %v4344_v34, %v2192_v21  ;;  %v2194_v50 = vpop.f32.mrb[23].mxu1 }
 0x232   : > { %v2622_v57 = vpack.c.bf16 %v2300_v60, %v2300_v60  ;;  %v2301_v25 = vmax.f32 %v2269_v4, 0.0 }
 0x233   : > { %v2316_v10 = vmax.f32 %v2284_v22, 0.0  ;;  %v2285_v9 = vadd.f32 %v4349_v43, %v2246_v1 }
 0x234   : > { %2461 = vst.msk [vmem:[%s4362_s18 + $0x28] sm:$0xf] %vm2450_vm8, %v2622_v57  ;;  %v2623_v58 = vpack.c.bf16 %v2301_v25, %v2301_v25 }
 0x235   : > { %v2638_v27 = vpack.c.bf16 %v2316_v10, %v2316_v10  ;;  %v2317_v35 = vmax.f32 %v2285_v9, 0.0 }
 0x236   : > { %2462 = vst.msk [vmem:[%s4362_s18 + $0x2c] sm:$0xf] %vm2450_vm8, %v2623_v58 }
 0x237   : > { %2477 = vst.msk [vmem:[%s4362_s18 + $0x68] sm:$0xf] %vm2450_vm8, %v2638_v27  ;;  %v2639_v20 = vpack.c.bf16 %v2317_v35, %v2317_v35 }
 0x239   : > { %2478 = vst.msk [vmem:[%s4362_s18 + $0x6c] sm:$0xf] %vm2450_vm8, %v2639_v20 }
 0x242   : > { %v2133_v52 = vpop.f32.mrb[24].mxu0 }
 0x243   : > { %v2231_v49 = vmul.f32 %v4344_v34, %v2133_v52  ;;  %v2197_v8 = vpop.f32.mrb[24].mxu1  ;;  %v2135_v51 = vpop.f32.mrb[25].mxu0 }
 0x244   : > { %v2247_v36 = vmul.f32 %v4344_v34, %v2197_v8  ;;  %v2199_v13 = vpop.f32.mrb[25].mxu1  ;;  %v2136_v33 = vpop.f32.mrb[26].mxu0 }
 0x245   : > { %v2270_v53 = vadd.f32 %v4349_v43, %v2231_v49  ;;  %v2232_v15 = vmul.f32 %v4344_v34, %v2136_v33  ;;  %v2200_v38 = vpop.f32.mrb[26].mxu1  ;;  %v2138_v37 = vpop.f32.mrb[27].mxu0 }
 0x246   : > { %v2286_v2 = vadd.f32 %v4349_v43, %v2247_v36  ;;  %v2248_v26 = vmul.f32 %v4344_v34, %v2200_v38  ;;  %v2202_v55 = vpop.f32.mrb[27].mxu1 }
 0x247   : > { %v2302_v24 = vmax.f32 %v2270_v53, 0.0  ;;  %v2271_v18 = vadd.f32 %v4349_v43, %v2232_v15 }
 0x248   : > { %v2318_v3 = vmax.f32 %v2286_v2, 0.0  ;;  %v2287_v14 = vadd.f32 %v4349_v43, %v2248_v26 }
 0x249   : > { %v2624_v0 = vpack.c.bf16 %v2302_v24, %v2302_v24  ;;  %v2303_v47 = vmax.f32 %v2271_v18, 0.0 }
 0x24a   : > { %v2640_v19 = vpack.c.bf16 %v2318_v3, %v2318_v3  ;;  %v2319_v16 = vmax.f32 %v2287_v14, 0.0 }
 0x24b   : > { %2463 = vst.msk [vmem:[%s4362_s18 + $0x30] sm:$0xf] %vm2450_vm8, %v2624_v0  ;;  %v2625_v62 = vpack.c.bf16 %v2303_v47, %v2303_v47 }
 0x24c   : > { %2479 = vst.msk [vmem:[%s4362_s18 + $0x70] sm:$0xf] %vm2450_vm8, %v2640_v19  ;;  %v2641_v28 = vpack.c.bf16 %v2319_v16, %v2319_v16 }
 0x24d   : > { %2464 = vst.msk [vmem:[%s4362_s18 + $0x34] sm:$0xf] %vm2450_vm8, %v2625_v62 }
 0x24e   : > { %2480 = vst.msk [vmem:[%s4362_s18 + $0x74] sm:$0xf] %vm2450_vm8, %v2641_v28 }
 0x257   : > { %v2141_v42 = vpop.f32.mrb[28].mxu0 }
 0x258   : > { %v2233_v54 = vmul.f32 %v4344_v34, %v2141_v42  ;;  %v2143_v29 = vpop.f32.mrb[29].mxu0 }
 0x259   : > { %v2144_v30 = vpop.f32.mrb[30].mxu0 }
 0x25a   : > { %v2272_v41 = vadd.f32 %v4349_v43, %v2233_v54  ;;  %v2234_v61 = vmul.f32 %v4344_v34, %v2144_v30  ;;  %v2146_v7 = vpop.f32.mrb[31].mxu0  ;;  %v2205_v12 = vpop.f32.mrb[28].mxu1 }
 0x25b   : > { %v2249_v5 = vmul.f32 %v4344_v34, %v2205_v12  ;;  %v2207_v6 = vpop.f32.mrb[29].mxu1 }
 0x25c   : > { %v2304_v45 = vmax.f32 %v2272_v41, 0.0  ;;  %v2273_v39 = vadd.f32 %v4349_v43, %v2234_v61  ;;  %v2208_v63 = vpop.f32.mrb[30].mxu1 }
 0x25d   : > { %v2288_v31 = vadd.f32 %v4349_v43, %v2249_v5  ;;  %v2250_v46 = vmul.f32 %v4344_v34, %v2208_v63  ;;  %v2210_v23 = vpop.f32.mrb[31].mxu1 }
 0x25e   : > { %v2626_v48 = vpack.c.bf16 %v2304_v45, %v2304_v45  ;;  %v2305_v32 = vmax.f32 %v2273_v39, 0.0 }
 0x25f   : > { %v2320_v59 = vmax.f32 %v2288_v31, 0.0  ;;  %v2289_v40 = vadd.f32 %v4349_v43, %v2250_v46 }
 0x260   : > { %2465 = vst.msk [vmem:[%s4362_s18 + $0x38] sm:$0xf] %vm2450_vm8, %v2626_v48  ;;  %v2627_v17 = vpack.c.bf16 %v2305_v32, %v2305_v32 }
 0x261   : > { %v2642_v11 = vpack.c.bf16 %v2320_v59, %v2320_v59  ;;  %v2321_v44 = vmax.f32 %v2289_v40, 0.0 }
 0x262   : > { %2466 = vst.msk [vmem:[%s4362_s18 + $0x3c] sm:$0xf] %vm2450_vm8, %v2627_v17 }
 0x263   : > { %2481 = vst.msk [vmem:[%s4362_s18 + $0x78] sm:$0xf] %vm2450_vm8, %v2642_v11  ;;  %v2643_v56 = vpack.c.bf16 %v2321_v44, %v2321_v44 }
 0x265   : > { %2482 = vst.msk [vmem:[%s4362_s18 + $0x7c] sm:$0xf] %vm2450_vm8, %v2643_v56 }
 0x266 PF: > { %s16_s21 = sadd.s32 1, %s3266_s21  }
 0x267   : > { %p13_p4 = scmp.ge.s32.totalorder %s16_s21, 4  }
 0x269   :  { %15 = sbr.rel (!%p13_p4) target bundleno = 1 (0x1), region = 76 }

// kernel: fwd.7
= control target key start
LH: loop header
LB: loop body
LE: loop exit
PB: predicated region body
PF: predicated region fallthrough
CT: control target
= control target key end

     0   :  { %11 = vsyncpa [#allocation4], 0  ;;  %s2697_s0 = inlined_call_operand.vmem [shape: bf16[4,2,9,9,32], index: 0, kind: input, shape index: {}]   ;;  %s2698_s1 = inlined_call_operand.vmem [shape: f32[2,8,8,16], index: 1, kind: input, shape index: {}]   ;;  %s2699_s2 = inlined_call_operand.vmem [shape: bf16[288,32], index: 2, kind: input, shape index: {}]   ;;  %s2700_s3 = inlined_call_operand.vmem [shape: f32[1,1,16], index: 3, kind: input, shape index: {}]   ;;  %s2701_s4 = inlined_call_operand.vmem [shape: f32[1,1,16], index: 4, kind: input, shape index: {}]   ;;  %s2702_s5 = inlined_call_operand.vmem [shape: bf16[16,32], index: 5, kind: input, shape index: {}]   ;;  %s2703_s6 = inlined_call_operand.hbm [shape: f32[2,8,8,32], index: 6, kind: output, shape index: {}]  }
   0x1   :  { %13 = vsyncpa [#allocation4 + $0x1], 0  ;;  %s2102_s21 = smov 0   ;;  %s2104_s22 = smov 0  }
   0x2   :  { %s2106_s23 = smov 0   ;;  %s2108_s24 = smov 0  }
   0x3 LB: > { %s2123_s25 = sadd.s32 4294967295, %s2059_s24   ;;  %s1622_s26 = sadd.s32 4294967294, %s2059_s24   ;;  %s2059_s24 = sphi %s2108_s24, %s2709_s24   ;;  %s2055_s23 = sphi %s2106_s23, %s2708_s23   ;;  %s2051_s22 = sphi %s2104_s22, %s2707_s22   ;;  %s2047_s21 = sphi %s2102_s21, %s2706_s21  }
   0x4   : > { %s2127_s27 = sadd.s32 1, %s2059_s24   ;;  %s26_s28 = sadd.s32 1, %s2055_s23 }
   0x5   : > { %s23_s29 = ssub.s32 %s2059_s24, %s2127_s27  ;;  %p33_p0 = scmp.ne.s32.totalorder %s2055_s23, %s2051_s22 }
   0x6   : > { %p24_p1 = scmp.eq.s32.totalorder %s23_s29, 0  ;;  %p34_p2 = scmp.eq.s32.totalorder %s2059_s24, 0 }
   0x7   : > { %p173_p3 = scmp.eq.s32.totalorder %s2123_s25, 1  ;;  %p178_p4 = scmp.ne.s32.totalorder %s2051_s22, %s2047_s21 }
   0x8   : > { %s2139_s30 = scalar_select %p24_p1, %s2055_s23, %s26_s28  }
   0x9   : > { %p35_p5 = por %p34_p2, %p33_p0  ;;  %p2141_p6 = por %p173_p3, %p33_p0 }
   0xa   : > { %p179_p7 = scmp.eq.s32.totalorder %s1622_s26, 1  ;;  %p1624_p9 = scmp.ge.s32.totalorder %s2059_s24, 2 }
   0xc   : > { %p2145_p8 = por %p179_p7, %p178_p4  ;;  %207 = sbr.rel (%p1624_p9) target bundleno = 42 (0x2a), region = 32 }
  0x13   : > { %210 = sbr.rel (!%p35_p5) target bundleno = 42 (0x2a), region = 36  ;;  %s212_s9 = sand.u32 (%p35_p5), 1, %s2055_s23  }
  0x14   : > { %s1812_s10 = smul.u32 (%p35_p5), 72, %s2059_s24 }
  0x15   : > { %s1811_s11 = smul.u32 (%p35_p5), 288, %s212_s9 }
  0x16   : > { %s2157_s14 = scalar_lea.vmem (%p35_p5), %s2697_s0, %s1812_s10 }
  0x17   : > { %v233_v0 = vld [vmem:[%s2157_s14] sm:$0xff] (%p35_p5)   ;;  %v237_v1 = vld [vmem:[%s2157_s14 + $0x8] sm:$0xff] (%p35_p5)   ;;  %v241_v2 = vld [vmem:[%s2157_s14 + $0x10] sm:$0xff] (%p35_p5)   ;;  %s2162_s15 = scalar_lea.vmem (%p35_p5), [#allocation2], %s1811_s11 }
  0x18   : > { %234 = vst [vmem:[%s2162_s15] sm:$0xff] (%p35_p5), %v233_v0   ;;  %238 = vst [vmem:[%s2162_s15 + $0x8] sm:$0xff] (%p35_p5), %v237_v1   ;;  %v245_v3 = vld [vmem:[%s2157_s14 + $0x18] sm:$0xff] (%p35_p5)   ;;  %v249_v4 = vld [vmem:[%s2157_s14 + $0x20] sm:$0xff] (%p35_p5)  }
  0x19   : > { %242 = vst [vmem:[%s2162_s15 + $0x10] sm:$0xff] (%p35_p5), %v241_v2   ;;  %v253_v5 = vld [vmem:[%s2157_s14 + $0x28] sm:$0xff] (%p35_p5)   ;;  %246 = vst [vmem:[%s2162_s15 + $0x18] sm:$0xff] (%p35_p5), %v245_v3   ;;  %v257_v6 = vld [vmem:[%s2157_s14 + $0x30] sm:$0xff] (%p35_p5)  }
  0x1a   : > { %250 = vst [vmem:[%s2162_s15 + $0x20] sm:$0xff] %v249_v4   ;;  %254 = vst [vmem:[%s2162_s15 + $0x28] sm:$0xff] %v253_v5   ;;  %v261_v7 = vld [vmem:[%s2157_s14 + $0x38] sm:$0xff]   ;;  %v265_v8 = vld [vmem:[%s2157_s14 + $0x40] sm:$0xff]  }
  0x1b   : > { %258 = vst [vmem:[%s2162_s15 + $0x30] sm:$0xff] %v257_v6   ;;  %262 = vst [vmem:[%s2162_s15 + $0x38] sm:$0xff] %v261_v7   ;;  %v269_v9 = vld [vmem:[%s2157_s14 + $0x90] sm:$0xff]   ;;  %v273_v10 = vld [vmem:[%s2157_s14 + $0x98] sm:$0xff]  }
  0x1c   : > { %266 = vst [vmem:[%s2162_s15 + $0x40] sm:$0xff] %v265_v8   ;;  %v277_v11 = vld [vmem:[%s2157_s14 + $0xa0] sm:$0xff]   ;;  %270 = vst [vmem:[%s2162_s15 + $0x48] sm:$0xff] %v269_v9   ;;  %v281_v12 = vld [vmem:[%s2157_s14 + $0xa8] sm:$0xff]  }
  0x1d   : > { %274 = vst [vmem:[%s2162_s15 + $0x50] sm:$0xff] %v273_v10   ;;  %278 = vst [vmem:[%s2162_s15 + $0x58] sm:$0xff] %v277_v11   ;;  %v285_v13 = vld [vmem:[%s2157_s14 + $0xb0] sm:$0xff]   ;;  %v289_v14 = vld [vmem:[%s2157_s14 + $0xb8] sm:$0xff]  }
  0x1e   : > { %282 = vst [vmem:[%s2162_s15 + $0x60] sm:$0xff] %v281_v12   ;;  %286 = vst [vmem:[%s2162_s15 + $0x68] sm:$0xff] %v285_v13   ;;  %v293_v15 = vld [vmem:[%s2157_s14 + $0xc0] sm:$0xff]   ;;  %v297_v16 = vld [vmem:[%s2157_s14 + $0xc8] sm:$0xff]  }
  0x1f   : > { %290 = vst [vmem:[%s2162_s15 + $0x70] sm:$0xff] %v289_v14   ;;  %v301_v17 = vld [vmem:[%s2157_s14 + $0xd0] sm:$0xff]   ;;  %294 = vst [vmem:[%s2162_s15 + $0x78] sm:$0xff] %v293_v15   ;;  %v305_v18 = vld [vmem:[%s2157_s14 + $0x120] sm:$0xff]  }
  0x20   : > { %298 = vst [vmem:[%s2162_s15 + $0x80] sm:$0xff] %v297_v16   ;;  %302 = vst [vmem:[%s2162_s15 + $0x88] sm:$0xff] %v301_v17   ;;  %v309_v19 = vld [vmem:[%s2157_s14 + $0x128] sm:$0xff]   ;;  %v313_v20 = vld [vmem:[%s2157_s14 + $0x130] sm:$0xff]  }
  0x21   : > { %306 = vst [vmem:[%s2162_s15 + $0x90] sm:$0xff] %v305_v18   ;;  %310 = vst [vmem:[%s2162_s15 + $0x98] sm:$0xff] %v309_v19   ;;  %v317_v21 = vld [vmem:[%s2157_s14 + $0x138] sm:$0xff]   ;;  %v321_v22 = vld [vmem:[%s2157_s14 + $0x140] sm:$0xff]  }
  0x22   : > { %314 = vst [vmem:[%s2162_s15 + $0xa0] sm:$0xff] %v313_v20   ;;  %v325_v23 = vld [vmem:[%s2157_s14 + $0x148] sm:$0xff]   ;;  %318 = vst [vmem:[%s2162_s15 + $0xa8] sm:$0xff] %v317_v21   ;;  %v329_v24 = vld [vmem:[%s2157_s14 + $0x150] sm:$0xff]  }
  0x23   : > { %322 = vst [vmem:[%s2162_s15 + $0xb0] sm:$0xff] %v321_v22   ;;  %326 = vst [vmem:[%s2162_s15 + $0xb8] sm:$0xff] %v325_v23   ;;  %v333_v25 = vld [vmem:[%s2157_s14 + $0x158] sm:$0xff]   ;;  %v337_v26 = vld [vmem:[%s2157_s14 + $0x160] sm:$0xff]  }
  0x24   : > { %330 = vst [vmem:[%s2162_s15 + $0xc0] sm:$0xff] %v329_v24   ;;  %334 = vst [vmem:[%s2162_s15 + $0xc8] sm:$0xff] %v333_v25   ;;  %v341_v27 = vld [vmem:[%s2157_s14 + $0x1b0] sm:$0xff]   ;;  %v345_v28 = vld [vmem:[%s2157_s14 + $0x1b8] sm:$0xff]  }
  0x25   : > { %338 = vst [vmem:[%s2162_s15 + $0xd0] sm:$0xff] %v337_v26   ;;  %v349_v29 = vld [vmem:[%s2157_s14 + $0x1c0] sm:$0xff]   ;;  %342 = vst [vmem:[%s2162_s15 + $0xd8] sm:$0xff] %v341_v27   ;;  %v353_v30 = vld [vmem:[%s2157_s14 + $0x1c8] sm:$0xff]  }
  0x26   : > { %346 = vst [vmem:[%s2162_s15 + $0xe0] sm:$0xff] %v345_v28   ;;  %350 = vst [vmem:[%s2162_s15 + $0xe8] sm:$0xff] %v349_v29   ;;  %v357_v31 = vld [vmem:[%s2157_s14 + $0x1d0] sm:$0xff]   ;;  %v361_v32 = vld [vmem:[%s2157_s14 + $0x1d8] sm:$0xff]  }
  0x27   : > { %354 = vst [vmem:[%s2162_s15 + $0xf0] sm:$0xff] %v353_v30   ;;  %358 = vst [vmem:[%s2162_s15 + $0xf8] sm:$0xff] %v357_v31   ;;  %v365_v33 = vld [vmem:[%s2157_s14 + $0x1e0] sm:$0xff]   ;;  %v369_v34 = vld [vmem:[%s2157_s14 + $0x1e8] sm:$0xff]  }
  0x28   : > { %362 = vst [vmem:[%s2162_s15 + $0x100] sm:$0xff] %v361_v32   ;;  %v373_v35 = vld [vmem:[%s2157_s14 + $0x1f0] sm:$0xff]   ;;  %366 = vst [vmem:[%s2162_s15 + $0x108] sm:$0xff] %v365_v33  }
  0x29   : > { %370 = vst [vmem:[%s2162_s15 + $0x110] sm:$0xff] %v369_v34   ;;  %374 = vst [vmem:[%s2162_s15 + $0x118] sm:$0xff] %v373_v35  }
  0x2a PF: > { %p1626_p10 = scmp.ge.s32.totalorder %s2059_s24, 1  ;;  %p550_p11 = scmp.lt.s32.totalorder %s2059_s24, 3 }
  0x2c   : > { %p551_p12 = pnand %p1626_p10, %p550_p11 }
  0x2d   : > { %s2236_s16 = sand.u32 (!%p551_p12), 1, %s2051_s22   ;;  %v1978_v36 = vld [vmem:[%s2699_s2 + $0x40] sm:$0xff] (!%p551_p12)   ;;  %vm662_vm0 = vcmask (!%p551_p12), 1046528   ;;  %v1980_v38 = vld [vmem:[%s2699_s2 + $0x48] sm:$0xff] (!%p551_p12)   ;;  %s2061_s10 = smov (!%p551_p12), 64   ;;  %v1982_v33 = vld [vmem:[%s2699_s2 + $0x50] sm:$0xff] (!%p551_p12)  }
  0x2e   : > { %554 = sbr.rel (%p551_p12) target bundleno = 455 (0x1c7), region = 81  ;;  %1727 = vmatprep.subr.bf16.mxu1 (!%p551_p12), %v1978_v36  ;;  %v1979_v37 = vld [vmem:[%s2699_s2] sm:$0xff] (!%p551_p12)   ;;  %s2062_s11 = smov (!%p551_p12), 32   ;;  %v1981_v28 = vld [vmem:[%s2699_s2 + $0x8] sm:$0xff] (!%p551_p12)   ;;  %vm1192_vm1 = vcmask (!%p551_p12), 130048   ;;  %vm1035_vm2 = vcmask (!%p551_p12), 261120  }
  0x2f   : > { %s1813_s19 = smul.u32 (!%p551_p12), 288, %s2236_s16  ;;  %1728 = vmatpush3.bf16.msra.mxu1 (!%p551_p12), %v1979_v37  ;;  %s2063_s12 = smov (!%p551_p12), 96   ;;  %vm1044_vm3 = vcmask (!%p551_p12), 523264   ;;  %vm1053_vm4 = vcmask (!%p551_p12), 785408  }
  0x30   : > { %1729 = vmatprep.subr.bf16.mxu1 (!%p551_p12), %v1980_v38  ;;  %p591_p13 = scmp.lt.s32.totalorder (!%p551_p12), %s2123_s25, 1  ;;  %s2064_s20 = smov (!%p551_p12), [#allocation3]  }
  0x31   : > { %s2248_s9 = scalar_lea.vmem (!%p551_p12), [#allocation2], %s1813_s19  ;;  %s2001_s26 = sshll.u32 (!%p551_p12), %s2064_s20, 4  ;;  %s2002_s26 = int_to_ptr.vmem [resolvable:$false] %s2001_s26 }
  0x32   : > { %v2251_v39 = vld [vmem:[%s2248_s9 + $0x8] ss:$8 sps:$4 sm:$0xff] (!%p551_p12)   ;;  %v1654_v51 = vld [vmem:[%s2248_s9 + $0x94] sm:$0x1] (!%p551_p12)  ;;  %v1655_v52 = vld [vmem:[%s2248_s9 + $0x9c] sm:$0x1] (!%p551_p12) }
  0x33   : > { %v1630_v40 = vld [vmem:[%s2248_s9 + $0x48] ss:$8 sps:$4 sm:$0xff] (!%p551_p12)   ;;  %v786_v42 = vunpack.c.l.bf16 (!%p551_p12), %v2251_v39  ;;  %v787_v43 = vunpack.c.h.bf16 (!%p551_p12), %v2251_v39  ;;  %v630_v56 = vld [vmem:[%s2248_s9 + $0x4] sm:$0x1] (!%p551_p12)  ;;  %v631_v57 = vld [vmem:[%s2248_s9 + $0xc] sm:$0x1] (!%p551_p12)  ;;  %v729_v63 = vunpack.c.l.bf16 (!%p551_p12), %v1654_v51  ;;  %v730_v0 = vunpack.c.l.bf16 (!%p551_p12), %v1655_v52  ;;  %1730 = vmatpush3.bf16.msra.mxu1 (!%p551_p12), %v1981_v28 }
  0x34   : > { %v1638_v41 = vld [vmem:[%s2248_s9 + $0x90] ss:$8 sps:$4 sm:$0xff] (!%p551_p12)   ;;  %v622_v44 = vunpack.c.l.bf16 (!%p551_p12), %v1630_v40  ;;  %v623_v45 = vunpack.c.h.bf16 (!%p551_p12), %v1630_v40  ;;  %v2261_v53 = vld [vmem:[%s2248_s9] ss:$8 sps:$4 sm:$0xff] (!%p551_p12)   ;;  %v1656_v3 = vld [vmem:[%s2248_s9 + $0xa4] sm:$0x1] (!%p551_p12)  ;;  %v638_v5 = vunpack.c.l.bf16 (!%p551_p12), %v630_v56  ;;  %v639_v6 = vunpack.c.l.bf16 (!%p551_p12), %v631_v57  ;;  %1731 = vmatprep.subr.bf16.mxu1 (!%p551_p12), %v1982_v33 }
  0x35   : > { %v1670_v46 = vld [vmem:[%s2248_s9 + $0x50] ss:$8 sps:$4 sm:$0xff]   ;;  %v696_v47 = vunpack.c.l.bf16 %v1638_v41  ;;  %v697_v48 = vunpack.c.h.bf16 %v1638_v41  ;;  %v1863_v54 = vpack.i.bf16 %v787_v43, %v786_v42  ;;  %v2270_v58 = vld [vmem:[%s2248_s9 + $0xa0] ss:$8 sps:$4 sm:$0xff]   ;;  %v605_v1 = vunpack.c.l.bf16 %v2261_v53  ;;  %v1657_v4 = vld [vmem:[%s2248_s9 + $0xac] sm:$0x1] }
  0x36   : > { %v803_v49 = vunpack.c.l.bf16 %v1670_v46  ;;  %v804_v50 = vunpack.c.h.bf16 %v1670_v46  ;;  %v1858_v55 = vpack.i.bf16 %v623_v45, %v622_v44  ;;  %v606_v2 = vunpack.c.h.bf16 %v2261_v53  ;;  %v1632_v17 = vld [vmem:[%s2248_s9 + $0x58] ss:$8 sps:$4 sm:$0xff]   ;;  %v632_v36 = vld [vmem:[%s2248_s9 + $0x14] sm:$0x1]  ;;  %v633_v44 = vld [vmem:[%s2248_s9 + $0x1c] sm:$0x1] }
  0x37   : > { %v756_v59 = vrot.slane %v697_v48, 1  ;;  %v1873_v60 = vpack.i.bf16 %v697_v48, %v696_v47  ;;  %v753_v61 = vrot.slane %v696_v47, 1  ;;  %1864 = vrot.lane.b32.xlu1 %v1863_v54, %s2061_s10  ;;  %v698_v7 = vunpack.c.l.bf16 %v2270_v58  ;;  %v2294_v22 = vld [vmem:[%s2248_s9 + $0x18] ss:$8 sps:$4 sm:$0xff]   ;;  %v1659_v56 = vld [vmem:[%s2248_s9 + $0xbc] sm:$0x1] }
  0x38   : > { %v1868_v62 = vpack.i.bf16 %v804_v50, %v803_v49  ;;  %1859 = vrot.lane.b32.xlu0 %v1858_v55, %s2062_s11  ;;  %v699_v8 = vunpack.c.h.bf16 %v2270_v58  ;;  %v754_v9 = vrot.slane %v729_v63, 1  ;;  %v757_v10 = vrot.slane %v730_v0, 1  ;;  %v2299_v27 = vld [vmem:[%s2248_s9 + $0x10] ss:$8 sps:$4 sm:$0xff]   ;;  %v1672_v45 = vld [vmem:[%s2248_s9 + $0x60] ss:$8 sps:$4 sm:$0xff]  }
  0x39   : > { %v663_v11 = vrot.slane %v605_v1, 1  ;;  %v666_v12 = vrot.slane %v606_v2, 1  ;;  %v664_v13 = vrot.slane %v638_v5, 1  ;;  %v667_v14 = vrot.slane %v639_v6, 1  ;;  %v2319_v49 = vld [vmem:[%s2248_s9 + $0xb0] ss:$8 sps:$4 sm:$0xff]  }
  0x3a   : > { %v731_v15 = vunpack.c.l.bf16 %v1656_v3  ;;  %v732_v16 = vunpack.c.l.bf16 %v1657_v4  ;;  %v755_v18 = vsel %vm662_vm0, %v753_v61, %v754_v9  ;;  %v758_v19 = vsel %vm662_vm0, %v756_v59, %v757_v10  ;;  %v1658_v50 = vld [vmem:[%s2248_s9 + $0xb4] sm:$0x1]  ;;  %v1634_v57 = vld [vmem:[%s2248_s9 + $0x68] ss:$8 sps:$4 sm:$0xff]   ;;  %v634_v5 = vld [vmem:[%s2248_s9 + $0x24] sm:$0x1] }
  0x3b   : > { %1874 = vrot.lane.b32.xlu1 %v1873_v60, %s2063_s12  ;;  %v759_v20 = vrot.slane %v698_v7, 1  ;;  %v762_v21 = vrot.slane %v699_v8, 1  ;;  %v1878_v23 = vpack.i.bf16 %v758_v19, %v755_v18  ;;  %v665_v24 = vsel %vm662_vm0, %v663_v11, %v664_v13  ;;  %v1983_v59 = vld [vmem:[%s2699_s2 + $0x10] sm:$0xff]   ;;  %v2342_v4 = vld [vmem:[%s2248_s9 + $0x20] ss:$8 sps:$4 sm:$0xff]   ;;  %v1984_v6 = vld [vmem:[%s2699_s2 + $0x58] sm:$0xff]  }
  0x3c   : > { %1869 = vrot.lane.b32.xlu0 %v1868_v62, %s2063_s12  ;;  %v668_v25 = vsel %vm662_vm0, %v666_v12, %v667_v14  ;;  %v760_v26 = vrot.slane %v731_v15, 1  ;;  %v763_v30 = vrot.slane %v732_v16, 1  ;;  %v624_v31 = vunpack.c.l.bf16 %v1632_v17  ;;  %v2339_v63 = vld [vmem:[%s2248_s9 + $0x28] ss:$8 sps:$4 sm:$0xff]   ;;  %1732 = vmatpush3.bf16.msra.mxu1 %v1983_v59  ;;  %v1985_v18 = vld [vmem:[%s2699_s2 + $0x18] sm:$0xff]   ;;  %s2363_s13 = scalar_select %p591_p13, %s2123_s25, 1 }
  0x3d   : > { %v1883_v29 = vpack.i.bf16 %v668_v25, %v665_v24  ;;  %v625_v32 = vunpack.c.h.bf16 %v1632_v17  ;;  %v788_v35 = vunpack.c.l.bf16 %v2294_v22  ;;  %v789_v40 = vunpack.c.h.bf16 %v2294_v22  ;;  %v635_v17 = vld [vmem:[%s2248_s9 + $0x2c] sm:$0x1]  ;;  %1733 = vmatprep.subr.bf16.mxu1 %v1984_v6  ;;  %v2386_v33 = vld [vmem:[%s2248_s9 + $0xc0] ss:$8 sps:$4 sm:$0xff]   ;;  %s2003_s28 = scalar_lea.vmem %s2002_s26, 2048 }
  0x3e   : > { %v761_v34 = vsel %vm662_vm0, %v759_v20, %v760_v26  ;;  %v764_v37 = vsel %vm662_vm0, %v762_v21, %v763_v30  ;;  %v607_v41 = vunpack.c.l.bf16 %v2299_v27  ;;  %v608_v47 = vunpack.c.h.bf16 %v2299_v27  ;;  %v1987_v26 = vld [vmem:[%s2699_s2 + $0x60] sm:$0xff]   ;;  %s1720_s19 = sshll.u32 %s2363_s13, 6 }
  0x3f   : > { %1884 = vrot.lane.b32.xlu1 %v1883_v29, %s2061_s10  ;;  %v1893_v38 = vpack.i.bf16 %v625_v32, %v624_v31  ;;  %v1888_v46 = vpack.i.bf16 %v764_v37, %v761_v34  ;;  %v640_v48 = vunpack.c.l.bf16 %v632_v36  ;;  %v641_v51 = vunpack.c.l.bf16 %v633_v44  ;;  %v2383_v32 = vld [vmem:[%s2248_s9 + $0x70] ss:$8 sps:$4 sm:$0xff]   ;;  %v1660_v36 = vld [vmem:[%s2248_s9 + $0xc4] sm:$0x1]  ;;  %v1661_v37 = vld [vmem:[%s2248_s9 + $0xcc] sm:$0x1]  ;;  %s2425_s15 = scalar_lea.vmem %s2698_s1, %s1720_s19 }
  0x40   : > { %1879 = vrot.lane.b32.xlu0 %v1878_v23, %s2062_s11  ;;  %v669_v52 = vrot.slane %v607_v41, 1  ;;  %v805_v54 = vunpack.c.l.bf16 %v1672_v45  ;;  %v806_v55 = vunpack.c.h.bf16 %v1672_v45  ;;  %v1898_v60 = vpack.i.bf16 %v789_v40, %v788_v35  ;;  %1734 = vmatpush3.bf16.msra.mxu1 %v1985_v18 }
  0x41   : > { %v670_v61 = vrot.slane %v640_v48, 1  ;;  %v672_v62 = vrot.slane %v608_v47, 1  ;;  %v673_v0 = vrot.slane %v641_v51, 1  ;;  %v700_v10 = vunpack.c.l.bf16 %v2319_v49  ;;  %1735 = vmatprep.subr.bf16.mxu1 %v1987_v26  ;;  %v2396_v48 = vld [vmem:[%s2248_s9 + $0x78] ss:$8 sps:$4 sm:$0xff]  }
  0x42   : > { %v1908_v3 = vpack.i.bf16 %v806_v55, %v805_v54  ;;  %v701_v11 = vunpack.c.h.bf16 %v2319_v49  ;;  %v733_v12 = vunpack.c.l.bf16 %v1658_v50  ;;  %v1913_v14 = vpack.i.bf16 %v699_v8, %v698_v7  ;;  %v1986_v8 = vld [vmem:[%s2702_s5] sm:$0xff]   ;;  %v2404_v54 = vld [vmem:[%s2248_s9 + $0x30] ss:$8 sps:$4 sm:$0xff]  }
  0x43   : > { %1894 = vrot.lane.b32.xlu1 %v1893_v38, %s2062_s11  ;;  %v671_v9 = vsel %vm662_vm0, %v669_v52, %v670_v61  ;;  %v674_v13 = vsel %vm662_vm0, %v672_v62, %v673_v0  ;;  %v734_v15 = vunpack.c.l.bf16 %v1659_v56  ;;  %v626_v16 = vunpack.c.l.bf16 %v1634_v57  ;;  %1773 = vmatprep.subr.bf16.mxu0 %v1986_v8  ;;  %v2401_v52 = vld [vmem:[%s2248_s9 + $0x38] ss:$8 sps:$4 sm:$0xff]   ;;  %v636_v61 = vld [vmem:[%s2248_s9 + $0x34] sm:$0x1]  ;;  %v1989_v62 = vld [vmem:[%s2699_s2 + $0x68] sm:$0xff]  }
  0x44   : > { %1889 = vrot.lane.b32.xlu0 %v1888_v46, %s2062_s11  ;;  %v1903_v19 = vpack.i.bf16 %v674_v13, %v671_v9  ;;  %v765_v20 = vrot.slane %v700_v10, 1  ;;  %v766_v58 = vrot.slane %v733_v12, 1  ;;  %v768_v7 = vrot.slane %v701_v11, 1  ;;  %1774 = vmatpush3.bf16.msra.mxu0 %v1986_v8  ;;  %v1988_v55 = vld [vmem:[%s2699_s2 + $0x20] sm:$0xff]   ;;  %v1990_v9 = vld [vmem:[%s2699_s2 + $0x28] sm:$0xff]   ;;  %v1995_v49 = vld [vmem:[%s2699_s2 + $0x38] sm:$0xff]  }
  0x45   : > { %v769_v21 = vrot.slane %v734_v15, 1  ;;  %v627_v23 = vunpack.c.h.bf16 %v1634_v57  ;;  %v790_v24 = vunpack.c.l.bf16 %v2339_v63  ;;  %v791_v25 = vunpack.c.h.bf16 %v2339_v63  ;;  %1736 = vmatpush3.bf16.msra.mxu1 %v1988_v55  ;;  %v2448_v26 = vld [vmem:[%s2248_s9 + $0x80] ss:$8 sps:$4 sm:$0xff]   ;;  %v1137_v55 = vld [vmem:[%s2425_s15 + $0x18] sm:$0xff] }
  0x46   : > { %v767_v28 = vsel %vm662_vm0, %v765_v20, %v766_v58  ;;  %v609_v29 = vunpack.c.l.bf16 %v2342_v4  ;;  %v610_v30 = vunpack.c.h.bf16 %v2342_v4  ;;  %v642_v31 = vunpack.c.l.bf16 %v634_v5  ;;  %1737 = vmatprep.subr.bf16.mxu1 %v1989_v62  ;;  %v637_v20 = vld [vmem:[%s2248_s9 + $0x3c] sm:$0x1]  ;;  %v1991_v58 = vld [vmem:[%s2699_s2 + $0x70] sm:$0xff]   ;;  %v1138_v62 = vld [vmem:[%s2425_s15 + $0x20] sm:$0xff] }
  0x47   : > { %1904 = vrot.lane.b32.xlu1 %v1903_v19, %s2061_s10  ;;  %v770_v34 = vsel %vm662_vm0, %v768_v7, %v769_v21  ;;  %v643_v44 = vunpack.c.l.bf16 %v635_v17  ;;  %v1923_v50 = vpack.i.bf16 %v627_v23, %v626_v16  ;;  %v1928_v56 = vpack.i.bf16 %v791_v25, %v790_v24 }
  0x48   : > { %1899 = vrot.lane.b32.xlu0 %v1898_v60, %s2061_s10  ;;  %v1918_v38 = vpack.i.bf16 %v770_v34, %v767_v28  ;;  %v675_v45 = vrot.slane %v609_v29, 1  ;;  %v676_v46 = vrot.slane %v642_v31, 1  ;;  %v678_v51 = vrot.slane %v610_v30, 1  ;;  %v1134_v28 = vld [vmem:[%s2425_s15] sm:$0xff]  ;;  %v1135_v31 = vld [vmem:[%s2425_s15 + $0x8] sm:$0xff] }
  0x49   : > { %v679_v57 = vrot.slane %v643_v44, 1  ;;  %v702_v59 = vunpack.c.l.bf16 %v2386_v33  ;;  %v703_v60 = vunpack.c.h.bf16 %v2386_v33  ;;  %v735_v5 = vunpack.c.l.bf16 %v1660_v36  ;;  %v1136_v44 = vld [vmem:[%s2425_s15 + $0x10] sm:$0xff]  ;;  %1738 = vmatpush3.bf16.msra.mxu1 %v1990_v9 }
  0x4a   : > { %v677_v0 = vsel %vm662_vm0, %v675_v45, %v676_v46  ;;  %v736_v6 = vunpack.c.l.bf16 %v1661_v37  ;;  %v808_v13 = vunpack.c.h.bf16 %v2383_v32  ;;  %v628_v18 = vunpack.c.l.bf16 %v2396_v48  ;;  %v1992_v45 = vld [vmem:[%s2699_s2 + $0x30] sm:$0xff]   ;;  %1739 = vmatprep.subr.bf16.mxu1 %v1991_v58 }
  0x4b   : > { %1914 = vrot.lane.b32.xlu1 %v1913_v14, %s2063_s12  ;;  %v680_v12 = vsel %vm662_vm0, %v678_v51, %v679_v57  ;;  %v771_v14 = vrot.slane %v702_v59, 1  ;;  %v774_v15 = vrot.slane %v703_v60, 1  ;;  %v772_v16 = vrot.slane %v735_v5, 1  ;;  %v1687_v51 = vld [vmem:[%s2701_s4] ss:$0 sm:$0xff] }
  0x4c   : > { %1909 = vrot.lane.b32.xlu0 %v1908_v3, %s2063_s12  ;;  %v807_v3 = vunpack.c.l.bf16 %v2383_v32  ;;  %v775_v17 = vrot.slane %v736_v6, 1  ;;  %v629_v19 = vunpack.c.h.bf16 %v2396_v48  ;;  %v1933_v7 = vpack.i.bf16 %v680_v12, %v677_v0  ;;  %v1686_v32 = vld [vmem:[%s2700_s3] ss:$0 sm:$0xff]  ;;  %v1994_v0 = vld [vmem:[%s2699_s2 + $0x78] sm:$0xff]   ;;  %v1139_v12 = vld [vmem:[%s2425_s15 + $0x28] sm:$0xff] }
  0x4d   : > { %v792_v8 = vunpack.c.l.bf16 %v2401_v52  ;;  %v611_v21 = vunpack.c.l.bf16 %v2404_v54  ;;  %v612_v23 = vunpack.c.h.bf16 %v2404_v54  ;;  %v773_v34 = vsel %vm662_vm0, %v771_v14, %v772_v16  ;;  %v2474_v57 = vld [vmem:[%s2699_s2 + $0x80] sm:$0xff]   ;;  %1740 = vmatpush3.bf16.msra.mxu1 %v1992_v45 }
  0x4e   : > { %v776_v36 = vsel %vm662_vm0, %v774_v15, %v775_v17  ;;  %v793_v37 = vunpack.c.h.bf16 %v2401_v52  ;;  %v2464_v46 = vrot.slane %v787_v43, 1  ;;  %v1938_v48 = vpack.i.bf16 %v808_v13, %v807_v3  ;;  %1783 = vmatprep.subr.bf16.mxu0 %v2474_v57  ;;  %1741 = vmatprep.subr.bf16.mxu1 %v1994_v0  ;;  %v1646_v52 = vld [vmem:[%s2248_s9 + $0xd8] ss:$8 sps:$4 sm:$0xff]  }
  0x4f   : > { %1924 = vrot.lane.b32.xlu1 %v1923_v50, %s2062_s11  ;;  %v645_v50 = vunpack.c.l.bf16 %v637_v20  ;;  %v681_v43 = vrot.slane %v611_v21, 1  ;;  %v1943_v3 = vpack.i.bf16 %v701_v11, %v700_v10  ;;  %v1948_v5 = vpack.i.bf16 %v776_v36, %v773_v34  ;;  %v1141_v20 = vld [vmem:[%s2425_s15 + $0x38] sm:$0xff] }
  0x50   : > { %1919 = vrot.lane.b32.xlu0 %v1918_v38, %s2062_s11  ;;  %v644_v38 = vunpack.c.l.bf16 %v636_v61  ;;  %v1953_v6 = vpack.i.bf16 %v629_v19, %v628_v18  ;;  %v1958_v13 = vpack.i.bf16 %v793_v37, %v792_v8  ;;  %v809_v14 = vunpack.c.l.bf16 %v2448_v26  ;;  %v1140_v19 = vld [vmem:[%s2425_s15 + $0x30] sm:$0xff] }
  0x51   : > { %v685_v9 = vrot.slane %v645_v50, 1  ;;  %v1149_v15 = vmul.f32 %v1686_v32, %v1134_v28  ;;  %v1150_v16 = vmul.f32 %v1686_v32, %v1135_v31  ;;  %v810_v11 = vunpack.c.h.bf16 %v2448_v26  ;;  %1742 = vmatpush3.bf16.msra.mxu1 %v1995_v49  ;;  %v1680_v50 = vld [vmem:[%s2248_s9 + $0x1c] sm:$0x1] }
  0x52   : > { %v682_v61 = vrot.slane %v644_v38, 1  ;;  %v1151_v17 = vmul.f32 %v1686_v32, %v1136_v44  ;;  %v1152_v18 = vmul.f32 %v1686_v32, %v1137_v55  ;;  %v1153_v36 = vmul.f32 %v1686_v32, %v1138_v62  ;;  %v1681_v55 = vld [vmem:[%s2248_s9 + $0x24] sm:$0x1] }
  0x53   : > { %1934 = vrot.lane.b32.xlu1 %v1933_v7, %s2061_s10  ;;  %v1164_v7 = vadd.f32 %v1687_v51, %v1149_v15  ;;  %v1165_v28 = vadd.f32 %v1687_v51, %v1150_v16  ;;  %v1154_v38 = vmul.f32 %v1686_v32, %v1139_v12  ;;  %v1155_v44 = vmul.f32 %v1686_v32, %v1140_v19  ;;  %v1678_v15 = vld [vmem:[%s2248_s9 + $0xc] sm:$0x1]  ;;  %v1679_v16 = vld [vmem:[%s2248_s9 + $0x14] sm:$0x1] }
  0x54   : > { %1929 = vrot.lane.b32.xlu0 %v1928_v56, %s2061_s10  ;;  %v684_v56 = vrot.slane %v612_v23, 1  ;;  %v683_v10 = vsel %vm662_vm0, %v681_v43, %v682_v61  ;;  %v1166_v31 = vadd.f32 %v1687_v51, %v1151_v17  ;;  %v1167_v34 = vadd.f32 %v1687_v51, %v1152_v18 }
  0x55   : > { %v1172_v45 = vmax.f32 %v1164_v7, 0.0  ;;  %v1173_v26 = vmax.f32 %v1165_v28, 0.0  ;;  %v1169_v0 = vadd.f32 %v1687_v51, %v1154_v38  ;;  %v821_v18 = vunpack.c.l.bf16 %v1680_v50  ;;  %v1682_v7 = vld [vmem:[%s2248_s9 + $0x2c] sm:$0x1] }
  0x56   : > { %v686_v58 = vsel %vm662_vm0, %v684_v56, %v685_v9  ;;  %v1174_v43 = vmax.f32 %v1166_v31, 0.0  ;;  %v1175_v61 = vmax.f32 %v1167_v34, 0.0  ;;  %v1168_v56 = vadd.f32 %v1687_v51, %v1153_v36 }
  0x57   : > { %1944 = vrot.lane.b32.xlu1 %v1943_v3, %s2063_s12  ;;  %v843_v3 = vrot.slane %v786_v42, 1  ;;  %v1180_v62 = vpack.c.bf16 %v1173_v26, %v1172_v45  ;;  %v1170_v9 = vadd.f32 %v1687_v51, %v1155_v44  ;;  %v822_v19 = vunpack.c.l.bf16 %v1681_v55  ;;  %v1996_v42 = vld [vmem:[%s2699_s2 + $0x88] sm:$0xff]   ;;  %v1684_v55 = vld [vmem:[%s2248_s9 + $0x3c] sm:$0x1] }
  0x58   : > { %1939 = vrot.lane.b32.xlu0 %v1938_v48, %s2063_s12  ;;  %v1156_v48 = vmul.f32 %v1686_v32, %v1141_v20  ;;  %v1963_v32 = vpack.i.bf16 %v686_v58, %v683_v10  ;;  %v1181_v49 = vpack.c.bf16 %v1175_v61, %v1174_v43  ;;  %v1176_v17 = vmax.f32 %v1168_v56, 0.0  ;;  %v1685_v43 = vld [vmem:[%s2248_s9 + $0x44] sm:$0x1] }
  0x59   : > { %v1968_v20 = vpack.i.bf16 %v810_v11, %v809_v14  ;;  %1775 = vmatprep.mubr.msk.bf16.mxu0 %vm1192_vm1, %v1180_v62  ;;  %v1178_v39 = vmax.f32 %v1170_v9, 0.0  ;;  %v819_v58 = vunpack.c.l.bf16 %v1678_v15  ;;  %v820_v28 = vunpack.c.l.bf16 %v1679_v16 }
  0x5a   : > { %v1171_v12 = vadd.f32 %v1687_v51, %v1156_v48  ;;  %v1683_v51 = vld [vmem:[%s2248_s9 + $0x34] sm:$0x1]  ;;  %1776 = vmatmul.mubr.msk.bf16.vlgmr.msra.gmra.mrb[0].mxu0 %vm1192_vm1, %v1181_v49  ;;  %v1973_v14 = vpack.i.bf16 %v703_v60, %v702_v59  ;;  %v850_v36 = vrot.slane %v821_v18, 1  ;;  %v852_v38 = vrot.slane %v789_v40, 1 }
  0x5b   : > { %1954 = vrot.lane.b32.xlu1 %v1953_v6, %s2062_s11  ;;  %1784 = vmatpush3.bf16.msra.mxu0 %v2474_v57  ;;  %v844_v11 = vrot.slane %v819_v58, 1  ;;  %v847_v31 = vrot.slane %v820_v28, 1  ;;  %v824_v34 = vunpack.c.l.bf16 %v1683_v51  ;;  %v853_v45 = vrot.slane %v822_v19, 1 }
  0x5c   : > { %1949 = vrot.lane.b32.xlu0 %v1948_v5, %s2062_s11  ;;  %v1177_v5 = vmax.f32 %v1169_v0, 0.0  ;;  %v1179_v10 = vmax.f32 %v1171_v12, 0.0  ;;  %1785 = vmatprep.subr.bf16.mxu0 %v1996_v42  ;;  %v849_v57 = vrot.slane %v788_v35, 1  ;;  %v858_v26 = vrot.slane %v791_v25, 1  ;;  %s1721_s11 = sshll.u32 %s2123_s25, 10  ;;  %s1529_s25 = scalar_lea.sflag [#allocation4], %s2236_s16 }
  0x5d   : > { %v845_v59 = vsel %vm662_vm0, %v843_v3, %v844_v11  ;;  %v848_v60 = vsel %vm662_vm0, %v2464_v46, %v847_v31  ;;  %v855_v40 = vrot.slane %v790_v24, 1  ;;  %v859_v50 = vrot.slane %v824_v34, 1  ;;  %s2647_s18 = scalar_lea.hbm %s2703_s6, %s1721_s11 }
  0x5e   : > { %v1182_v6 = vpack.c.bf16 %v1177_v5, %v1176_v17  ;;  %v1183_v33 = vpack.c.bf16 %v1179_v10, %v1178_v39  ;;  %v1088_v44 = vpack.c.bf16 %v848_v60, %v845_v59  ;;  %v854_v22 = vsel %vm662_vm0, %v852_v38, %v853_v45 }
  0x5f   : > { %1964 = vrot.lane.b32.xlu1 %v1963_v32, %s2061_s10  ;;  %1786 = vmatpush3.bf16.msra.mxu0 %v1996_v42  ;;  %v851_v35 = vsel %vm662_vm0, %v849_v57, %v850_v36  ;;  %v825_v25 = vunpack.c.l.bf16 %v1684_v55  ;;  %v826_v63 = vunpack.c.l.bf16 %v1685_v43  ;;  %v860_v46 = vsel %vm662_vm0, %v858_v26, %v859_v50  ;;  %v1648_v57 = vld [vmem:[%s2248_s9 + $0xe8] ss:$8 sps:$4 sm:$0xff]  }
  0x60   : > { %1959 = vrot.lane.b32.xlu0 %v1958_v13, %s2061_s10  ;;  %1779 = vmatprep.mubr.msk.bf16.mxu0 %vm1192_vm1, %v1182_v6  ;;  %v823_v13 = vunpack.c.l.bf16 %v1682_v7  ;;  %v1091_v61 = vpack.c.bf16 %v854_v22, %v851_v35  ;;  %v861_v56 = vrot.slane %v792_v8, 1  ;;  %v864_v0 = vrot.slane %v793_v37, 1 }
  0x61   : > { %v862_v62 = vrot.slane %v825_v25, 1  ;;  %v865_v9 = vrot.slane %v826_v63, 1  ;;  %v713_v18 = vunpack.c.l.bf16 %v1646_v52  ;;  %v714_v19 = vunpack.c.h.bf16 %v1646_v52 }
  0x62   : > { %v856_v48 = vrot.slane %v823_v13, 1  ;;  %1780 = vmatmul.mubr.msk.bf16.gmra.mrb[4].mxu0 %vm1192_vm1, %v1183_v33  ;;  %v716_v43 = vunpack.c.h.bf16 %v1648_v57 }
  0x63   : > { %1974 = vrot.lane.b32.xlu1 %v1973_v14, %s2063_s12  ;;  %1787 = vmatprep.mubr.msk.bf16.mxu0 %vm1035_vm2, %v1088_v44  ;;  %v863_v12 = vsel %vm662_vm0, %v861_v56, %v862_v62  ;;  %v866_v15 = vsel %vm662_vm0, %v864_v0, %v865_v9 }
  0x64   : > { %1969 = vrot.lane.b32.xlu0 %v1968_v20, %s2063_s12  ;;  %v857_v24 = vsel %vm662_vm0, %v855_v40, %v856_v48  ;;  %v1097_v16 = vpack.c.bf16 %v866_v15, %v863_v12  ;;  %v715_v48 = vunpack.c.l.bf16 %v1648_v57 }
  0x65   : > { %v1094_v3 = vpack.c.bf16 %v860_v46, %v857_v24 }
  0x6a   : > { %1788 = vmatmul.mubr.msk.bf16.vlgmr.msra.gmra.mrb[0].mxu0 %vm1035_vm2, %v1091_v61 }
  0x6b   : > { %1791 = vmatprep.mubr.msk.bf16.mxu0 %vm1035_vm2, %v1094_v3 }
  0x72   : > { %1792 = vmatmul.mubr.msk.bf16.gmra.mrb[4].mxu0 %vm1035_vm2, %v1097_v16 }
  0xa9   : > { %v1865_v32 = vpop.permute.xlu1 %1864 }
  0xaa   : > { %v1860_v49 = vpop.permute.xlu0 %1859  ;;  %v1867_v20 = vunpack.i.h.bf16 %v1865_v32  ;;  %v1866_v39 = vunpack.i.l.bf16 %v1865_v32 }
  0xab   : > { %v1862_v37 = vunpack.i.h.bf16 %v1860_v49  ;;  %v1861_v5 = vunpack.i.l.bf16 %v1860_v49 }
  0xad   : > { %v1875_v8 = vpop.permute.xlu1 %1874  ;;  %v1036_v28 = vsel %vm1035_vm2, %v605_v1, %v1861_v5  ;;  %v1037_v14 = vsel %vm1035_vm2, %v606_v2, %v1862_v37 }
  0xae   : > { %v1870_v17 = vpop.permute.xlu0 %1869  ;;  %v1877_v11 = vunpack.i.h.bf16 %v1875_v8  ;;  %v1876_v31 = vunpack.i.l.bf16 %v1875_v8 }
  0xaf   : > { %v1872_v45 = vunpack.i.h.bf16 %v1870_v17  ;;  %v1871_v33 = vunpack.i.l.bf16 %v1870_v17 }
  0xb1   : > { %v1885_v7 = vpop.permute.xlu1 %1884 }
  0xb2   : > { %v1880_v42 = vpop.permute.xlu0 %1879  ;;  %v1887_v10 = vunpack.i.h.bf16 %v1885_v7  ;;  %v1886_v58 = vunpack.i.l.bf16 %v1885_v7  ;;  %v1650_v7 = vld [vmem:[%s2248_s9 + $0xf8] ss:$8 sps:$4 sm:$0xff]  }
  0xb3   : > { %v1882_v51 = vunpack.i.h.bf16 %v1880_v42  ;;  %v1881_v6 = vunpack.i.l.bf16 %v1880_v42 }
  0xb4   : > { %v1046_v13 = vsel %vm1044_vm3, %v1037_v14, %v1887_v10  ;;  %v1045_v34 = vsel %vm1044_vm3, %v1036_v28, %v1886_v58  ;;  %v717_v58 = vunpack.c.l.bf16 %v1650_v7  ;;  %v718_v28 = vunpack.c.h.bf16 %v1650_v7 }
  0xb5   : > { %v1062_v36 = vsel %vm1035_vm2, %v713_v18, %v1881_v6  ;;  %v1063_v38 = vsel %vm1035_vm2, %v714_v19, %v1882_v51  ;;  %v1895_v60 = vpop.permute.xlu1 %1894  ;;  %v1054_v40 = vsel %vm1053_vm4, %v1045_v34, %v1876_v31  ;;  %v1055_v44 = vsel %vm1053_vm4, %v1046_v13, %v1877_v11 }
  0xb6   : > { %v1890_v59 = vpop.permute.xlu0 %1889  ;;  %v1070_v1 = vsel %vm1044_vm3, %v1062_v36, %v1866_v39  ;;  %v1071_v53 = vsel %vm1044_vm3, %v1063_v38, %v1867_v20  ;;  %v1086_v25 = vpack.c.bf16 %v1055_v44, %v1054_v40  ;;  %v1897_v63 = vunpack.i.h.bf16 %v1895_v60 }
  0xb7   : > { %v1078_v2 = vsel %vm1053_vm4, %v1070_v1, %v1871_v33  ;;  %v1079_v26 = vsel %vm1053_vm4, %v1071_v53, %v1872_v45  ;;  %v1892_v22 = vunpack.i.h.bf16 %v1890_v59  ;;  %v1891_v35 = vunpack.i.l.bf16 %v1890_v59 }
  0xb8   : > { %v1087_v55 = vpack.c.bf16 %v1079_v26, %v1078_v2  ;;  %v1896_v24 = vunpack.i.l.bf16 %v1895_v60  ;;  %v1039_v32 = vsel %vm1035_vm2, %v608_v47, %v1897_v63 }
  0xb9   : > { %v1905_v56 = vpop.permute.xlu1 %1904  ;;  %v1065_v9 = vsel %vm1035_vm2, %v716_v43, %v1892_v22  ;;  %v1064_v12 = vsel %vm1035_vm2, %v715_v48, %v1891_v35 }
  0xba   : > { %v1900_v50 = vpop.permute.xlu0 %1899  ;;  %1422 = vmatprep.mubr.bf16.mxu1 %v1087_v55  ;;  %v1907_v0 = vunpack.i.h.bf16 %v1905_v56  ;;  %v1906_v3 = vunpack.i.l.bf16 %v1905_v56  ;;  %v1038_v49 = vsel %vm1035_vm2, %v607_v41, %v1896_v24  ;;  %v1652_v24 = vld [vmem:[%s2248_s9 + $0x108] ss:$8 sps:$4 sm:$0xff]   ;;  %s1627_s9 = sshll.u32 %s2236_s16, 6 }
  0xbb   : > { %v1902_v46 = vunpack.i.h.bf16 %v1900_v50  ;;  %v1901_v61 = vunpack.i.l.bf16 %v1900_v50  ;;  %1423 = vmatmul.mubr.bf16.vlgmr.msra.gmra.mrb[0].mxu1 %v1086_v25  ;;  %s2628_s10 = scalar_lea.vmem [#allocation3], %s1627_s9 }
  0xbc   : > { %v1047_v20 = vsel %vm1044_vm3, %v1038_v49, %v1906_v3  ;;  %v1048_v39 = vsel %vm1044_vm3, %v1039_v32, %v1907_v0  ;;  %v719_v0 = vunpack.c.l.bf16 %v1652_v24  ;;  %v720_v3 = vunpack.c.h.bf16 %v1652_v24  ;;  %s1542_s12 = sshll.u32 %s2628_s10, 4  ;;  %s2649_s12 = int_to_ptr.vmem [resolvable:$true] %s1542_s12 }
  0xbd   : > { %v1072_v8 = vsel %vm1044_vm3, %v1064_v12, %v1901_v61  ;;  %v1073_v17 = vsel %vm1044_vm3, %v1065_v9, %v1902_v46  ;;  %v1915_v52 = vpop.permute.xlu1 %1914  ;;  %s1997_s19 = scalar_lea.vmem %s2649_s12, 1024  ;;  %p2004_p3 = scmp.lt.s32.totalorder %s2649_s12, %s2002_s26 }
  0xbe   : > { %v1910_v62 = vpop.permute.xlu0 %1909  ;;  %v1917_v37 = vunpack.i.h.bf16 %v1915_v52  ;;  %v1916_v5 = vunpack.i.l.bf16 %v1915_v52  ;;  %p1998_p0 = scmp.ne.s32.totalorder %s2649_s12, %s1997_s19  ;;  %p2005_p4 = scmp.lt.s32.totalorder %s2003_s28, %s1997_s19 }
  0xbf   : > { %v1912_v15 = vunpack.i.h.bf16 %v1910_v62  ;;  %v1911_v16 = vunpack.i.l.bf16 %v1910_v62 }
  0xc0   : > { %v1056_v27 = vsel %vm1053_vm4, %v1047_v20, %v1916_v5  ;;  %v1057_v41 = vsel %vm1053_vm4, %v1048_v39, %v1917_v37  ;;  %p1999_p1 = pnand %p1998_p0, %p2141_p6  ;;  %p2006_p5 = por %p2005_p4, %p2004_p3 }
  0xc1   : > { %v1080_v18 = vsel %vm1053_vm4, %v1072_v8, %v1911_v16  ;;  %v1081_v19 = vsel %vm1053_vm4, %v1073_v17, %v1912_v15  ;;  %v1925_v51 = vpop.permute.xlu1 %1924  ;;  %v1089_v6 = vpack.c.bf16 %v1057_v41, %v1056_v27 }
  0xc2   : > { %v1920_v47 = vpop.permute.xlu0 %1919  ;;  %v1090_v42 = vpack.c.bf16 %v1081_v19, %v1080_v18  ;;  %v1927_v31 = vunpack.i.h.bf16 %v1925_v51  ;;  %v1926_v13 = vunpack.i.l.bf16 %v1925_v51  ;;  %p2000_p2 = pneg %p1999_p1 }
  0xc3   : > { %v1922_v14 = vunpack.i.h.bf16 %v1920_v47  ;;  %v1921_v11 = vunpack.i.l.bf16 %v1920_v47 }
  0xc4   : > { %1430 = vmatprep.mubr.bf16.mxu1 %v1090_v42  ;;  %v1041_v2 = vsel %vm1035_vm2, %v610_v30, %v1927_v31  ;;  %v1040_v26 = vsel %vm1035_vm2, %v609_v29, %v1926_v13  ;;  %p2007_p7 = pnand %p2006_p5, %p2000_p2 }
  0xc5   : > { %1431 = vmatmul.mubr.bf16.gmra.mrb[4].mxu1 %v1089_v6  ;;  %v1935_v38 = vpop.permute.xlu1 %1934  ;;  %v1067_v60 = vsel %vm1035_vm2, %v718_v28, %v1922_v14  ;;  %v1066_v1 = vsel %vm1035_vm2, %v717_v58, %v1921_v11 }
  0xc6   : > { %v1930_v10 = vpop.permute.xlu0 %1929  ;;  %v1937_v45 = vunpack.i.h.bf16 %v1935_v38  ;;  %v1936_v33 = vunpack.i.l.bf16 %v1935_v38 }
  0xc7   : > { %v1932_v34 = vunpack.i.h.bf16 %v1930_v10  ;;  %v1931_v36 = vunpack.i.l.bf16 %v1930_v10 }
  0xc8   : > { %v1049_v35 = vsel %vm1044_vm3, %v1040_v26, %v1936_v33  ;;  %v1050_v25 = vsel %vm1044_vm3, %v1041_v2, %v1937_v45 }
  0xc9   : > { %v1074_v40 = vsel %vm1044_vm3, %v1066_v1, %v1931_v36  ;;  %v1075_v44 = vsel %vm1044_vm3, %v1067_v60, %v1932_v34  ;;  %v1945_v48 = vpop.permute.xlu1 %1944 }
  0xca   : > { %v1940_v59 = vpop.permute.xlu0 %1939  ;;  %v1947_v50 = vunpack.i.h.bf16 %v1945_v48  ;;  %v1946_v55 = vunpack.i.l.bf16 %v1945_v48 }
  0xcb   : > { %v1942_v53 = vunpack.i.h.bf16 %v1940_v59  ;;  %v1941_v57 = vunpack.i.l.bf16 %v1940_v59 }
  0xcc   : > { %v1058_v4 = vsel %vm1053_vm4, %v1049_v35, %v1946_v55  ;;  %v1059_v29 = vsel %vm1053_vm4, %v1050_v25, %v1947_v50 }
  0xcd   : > { %v1082_v43 = vsel %vm1053_vm4, %v1074_v40, %v1941_v57  ;;  %v1083_v22 = vsel %vm1053_vm4, %v1075_v44, %v1942_v53  ;;  %v1955_v46 = vpop.permute.xlu1 %1954  ;;  %v1092_v61 = vpack.c.bf16 %v1059_v29, %v1058_v4 }
  0xce   : > { %v1950_v30 = vpop.permute.xlu0 %1949  ;;  %v1093_v63 = vpack.c.bf16 %v1083_v22, %v1082_v43  ;;  %v1957_v12 = vunpack.i.h.bf16 %v1955_v46  ;;  %v1956_v15 = vunpack.i.l.bf16 %v1955_v46 }
  0xcf   : > { %v1952_v62 = vunpack.i.h.bf16 %v1950_v30  ;;  %v1951_v9 = vunpack.i.l.bf16 %v1950_v30 }
  0xd0   : > { %1438 = vmatprep.mubr.bf16.mxu1 %v1093_v63  ;;  %v1043_v20 = vsel %vm1035_vm2, %v612_v23, %v1957_v12  ;;  %v1042_v39 = vsel %vm1035_vm2, %v611_v21, %v1956_v15 }
  0xd1   : > { %1439 = vmatmul.mubr.bf16.gmra.mrb[8].mxu1 %v1092_v61  ;;  %v1965_v49 = vpop.permute.xlu1 %1964  ;;  %v1069_v37 = vsel %vm1035_vm2, %v720_v3, %v1952_v62  ;;  %v1068_v5 = vsel %vm1035_vm2, %v719_v0, %v1951_v9 }
  0xd2   : > { %v1960_v56 = vpop.permute.xlu0 %1959  ;;  %v1967_v8 = vunpack.i.h.bf16 %v1965_v49  ;;  %v1966_v17 = vunpack.i.l.bf16 %v1965_v49 }
  0xd3   : > { %v1962_v16 = vunpack.i.h.bf16 %v1960_v56  ;;  %v1961_v32 = vunpack.i.l.bf16 %v1960_v56 }
  0xd4   : > { %v1051_v10 = vsel %vm1044_vm3, %v1042_v39, %v1966_v17  ;;  %v1052_v58 = vsel %vm1044_vm3, %v1043_v20, %v1967_v8 }
  0xd5   : > { %v1076_v47 = vsel %vm1044_vm3, %v1068_v5, %v1961_v32  ;;  %v1077_v42 = vsel %vm1044_vm3, %v1069_v37, %v1962_v16  ;;  %v1975_v27 = vpop.permute.xlu1 %1974 }
  0xd6   : > { %v1970_v52 = vpop.permute.xlu0 %1969  ;;  %v1977_v41 = vunpack.i.h.bf16 %v1975_v27  ;;  %v1976_v7 = vunpack.i.l.bf16 %v1975_v27 }
  0xd7   : > { %v1972_v18 = vunpack.i.h.bf16 %v1970_v52  ;;  %v1971_v19 = vunpack.i.l.bf16 %v1970_v52 }
  0xd8   : > { %v1060_v54 = vsel %vm1053_vm4, %v1051_v10, %v1976_v7  ;;  %v1061_v21 = vsel %vm1053_vm4, %v1052_v58, %v1977_v41 }
  0xd9   : > { %v1084_v51 = vsel %vm1053_vm4, %v1076_v47, %v1971_v19  ;;  %v1085_v6 = vsel %vm1053_vm4, %v1077_v42, %v1972_v18  ;;  %v1095_v28 = vpack.c.bf16 %v1061_v21, %v1060_v54 }
  0xda   : > { %v1096_v23 = vpack.c.bf16 %v1085_v6, %v1084_v51 }
  0xdc   : > { %1446 = vmatprep.mubr.bf16.mxu1 %v1096_v23 }
  0xdd   : > { %1447 = vmatmul.mubr.bf16.gmra.mrb[12].mxu1 %v1095_v28 }
 0x13d   : > { %v1789_v14 = vpop.f32.mrb[0].mxu0 }
 0x13e   : > { %v1489_v11 = vpop.f32.mrb[1].mxu0 }
 0x13f   : > { %v1790_v31 = vpop.f32.mrb[2].mxu0 }
 0x140   : > { %v1492_v13 = vpop.f32.mrb[3].mxu0 }
 0x145   : > { %v1793_v34 = vpop.f32.mrb[4].mxu0 }
 0x146   : > { %v1505_v36 = vpop.f32.mrb[5].mxu0 }
 0x147   : > { %v1794_v38 = vpop.f32.mrb[6].mxu0 }
 0x148   : > { %v1508_v45 = vpop.f32.mrb[7].mxu0 }
 0x18e   : > { %v1743_v33 = vpop.f32.mrb[0].mxu1 }
 0x18f   : > { %v1744_v59 = vpop.f32.mrb[1].mxu1 }
 0x190   : > { %v1745_v60 = vadd.f32 %v1744_v59, %v1743_v33  ;;  %v1746_v1 = vpop.f32.mrb[2].mxu1 }
 0x191   : > { %v1747_v53 = vpop.f32.mrb[3].mxu1 }
 0x192   : > { %v1748_v57 = vadd.f32 %v1747_v53, %v1746_v1  ;;  %v1796_v2 = vadd.f32 %v1745_v60, %v1489_v11 }
 0x194   : > { %1520 = vst.msk [vmem:[%s2628_s10] sm:$0xff] %vm1035_vm2, %v1796_v2  ;;  %v1798_v26 = vadd.f32 %v1748_v57, %v1492_v13 }
 0x196   : > { %1521 = vst.msk [vmem:[%s2628_s10 + $0x8] sm:$0xff] %vm1035_vm2, %v1798_v26 }
 0x198   : > { %v1749_v40 = vpop.f32.mrb[4].mxu1 }
 0x199   : > { %v1750_v44 = vpop.f32.mrb[5].mxu1 }
 0x19a   : > { %v1751_v48 = vadd.f32 %v1750_v44, %v1749_v40  ;;  %v1752_v50 = vpop.f32.mrb[6].mxu1 }
 0x19b   : > { %v1753_v55 = vpop.f32.mrb[7].mxu1 }
 0x19c   : > { %v1795_v43 = vadd.f32 %v1789_v14, %v1751_v48  ;;  %v1754_v22 = vadd.f32 %v1753_v55, %v1752_v50 }
 0x19e   : > { %1522 = vst.msk [vmem:[%s2628_s10 + $0x10] sm:$0xff] %vm1035_vm2, %v1795_v43  ;;  %v1797_v35 = vadd.f32 %v1790_v31, %v1754_v22 }
 0x1a0   : > { %1523 = vst.msk [vmem:[%s2628_s10 + $0x18] sm:$0xff] %vm1035_vm2, %v1797_v35 }
 0x1a4   : > { %v1755_v25 = vpop.f32.mrb[8].mxu1 }
 0x1a5   : > { %v1756_v30 = vpop.f32.mrb[9].mxu1 }
 0x1a6   : > { %v1757_v63 = vadd.f32 %v1756_v30, %v1755_v25  ;;  %v1758_v4 = vpop.f32.mrb[10].mxu1 }
 0x1a7   : > { %v1759_v29 = vpop.f32.mrb[11].mxu1 }
 0x1a8   : > { %v1800_v24 = vadd.f32 %v1757_v63, %v1505_v36  ;;  %v1760_v46 = vadd.f32 %v1759_v29, %v1758_v4 }
 0x1aa   : > { %1524 = vst.msk [vmem:[%s2628_s10 + $0x20] sm:$0xff] %vm1035_vm2, %v1800_v24  ;;  %v1802_v61 = vadd.f32 %v1760_v46, %v1508_v45 }
 0x1ac   : > { %1525 = vst.msk [vmem:[%s2628_s10 + $0x28] sm:$0xff] %vm1035_vm2, %v1802_v61 }
 0x1b0   : > { %v1761_v56 = vpop.f32.mrb[12].mxu1 }
 0x1b1   : > { %v1762_v0 = vpop.f32.mrb[13].mxu1 }
 0x1b2   : > { %v1763_v3 = vadd.f32 %v1762_v0, %v1761_v56  ;;  %v1764_v62 = vpop.f32.mrb[14].mxu1 }
 0x1b3   : > { %v1765_v9 = vpop.f32.mrb[15].mxu1 }
 0x1b4   : > { %v1799_v12 = vadd.f32 %v1793_v34, %v1763_v3  ;;  %v1766_v15 = vadd.f32 %v1765_v9, %v1764_v62 }
 0x1b6   : > { %1526 = vst.msk [vmem:[%s2628_s10 + $0x30] sm:$0xff] %vm1035_vm2, %v1799_v12  ;;  %v1801_v16 = vadd.f32 %v1794_v38, %v1766_v15 }
 0x1b8   : > { %1527 = vst.msk [vmem:[%s2628_s10 + $0x38] sm:$0xff] %vm1035_vm2, %v1801_v16 }
 0x1b9   : > { %2010 = shalt.err (!%p2007_p7)
}
 0x1ba   : > { %s2011_s29 = scalar_lea.hbm %s2647_s18, 1024  ;;  %s2015_s9 = scalar_lea.hbm %s2703_s6, 2048 }
 0x1bb   : > { %p2012_p10 = scmp.ne.s32.totalorder %s2647_s18, %s2011_s29  ;;  %p2016_p13 = scmp.lt.u32.totalorder %s2647_s18, %s2703_s6 }
 0x1bc   : > { %p2017_p0 = scmp.lt.u32.totalorder %s2015_s9, %s2011_s29  ;;  %p2019_p2 = scmp.lt.u32.totalorder %s2011_s29, %s2647_s18 }
 0x1bd   : > { %p2013_p11 = pnand %p2012_p10, %p2141_p6 }
 0x1be   : > { %p2018_p1 = por %p2017_p0, %p2016_p13 }
 0x1bf   : > { %p2014_p12 = pneg %p2013_p11 }
 0x1c0   : > { %p2020_p3 = por %p2019_p2, %p2018_p1 }
 0x1c2   : > { %p2021_p4 = pnand %p2020_p3, %p2014_p12 }
 0x1c4   : > { %2024 = shalt.err (!%p2021_p4)
}
 0x1c5   : > { %s2065_s14 = smov 128   ;;  %s2066_s17 = smov 8  }
 0x1c6   : > { %1814 = dma.vmem_to_hbm [thread:$0]  (%p2141_p6), %s2649_s12, 1024, %s2647_s18, %s1529_s25, %s2065_s14, %s2065_s14, %s2066_s17  }
 0x1c7 PF: > { %s1557_s19 = sand.u32 1, %s2047_s21   ;;  %p1817_p5 = pnand %p1624_p9, %p2145_p8 }
 0x1c8   : > { %s1558_s20 = scalar_lea.sflag [#allocation4], %s1557_s19 }
 0x1c9   : > { %2042 = dma.done.wait (!%p1817_p5), %s1558_s20, 1024  }
 0x1ca   : > { %2044 = vsyncadd (!%p1817_p5), %s1558_s20, 4294966272  ;;  %p16_p7 = scmp.ge.s32.totalorder %s2127_s27, 4   ;;  %s2706_s21 = smov %s2051_s22 }
 0x1cb   : > { %s2707_s22 = smov %s2055_s23  ;;  %s2708_s23 = smov %s2139_s30 }
 0x1cc   : > { %s2709_s24 = smov %s2127_s27  ;;  %18 = sbr.rel (!%p16_p7) target bundleno = 3 (0x3), region = 133 }
 0x1d3   :  { %1563 = vsyncpa [#allocation4], 1 }
 0x1d4   :  { %1565 = vsyncpa [#allocation4 + $0x1], 1 }

</bundles_post_ra>
